<compile_context>
chip_gen: v5e
topology: v5e:2x2
jax: 0.10.0
libtpu: 0.0.40
codegen_flags: <defaults>
</compile_context>

<pallas_src>
import functools

import jax
import jax.numpy as jnp
from jax import lax
from jax.experimental import pallas as pl
from jax.experimental.pallas import tpu as pltpu

EPS = 1e-5        # nn.BatchNorm2d default eps
SLOPE = 0.2       # LeakyReLU negative_slope
LANE = 128        # TPU lane width


def _leaky(x):
    return jnp.where(x > 0, x, SLOPE * x)


def _conv3x3_taps(src_ref, w_ref, H, W, Cp):
    """9 accumulated tap matmuls on the padded-flat activation.

    src_ref: ((H+4)*(W+2), Cp) zero-padded flat activation (guard/halo rows zero).
    w_ref:   (9, Cp, Cp) tap weight matrices (tap index = ky*3 + kx).
    Returns the f32 (H*(W+2), Cp) conv output block (junk columns hold garbage that
    the caller masks away)."""
    Wp = W + 2
    M = H * Wp
    acc = jnp.zeros((M, Cp), jnp.float32)
    for ky in range(3):
        for kx in range(3):
            start = (ky + 1) * Wp + kx - 1          # static, contiguous row slice
            tap = src_ref[pl.ds(start, M), :]
            acc = acc + jnp.dot(tap, w_ref[ky * 3 + kx],
                                preferred_element_type=jnp.float32)
    return acc


def _store_out_and_stats(acc, maskb, y_ref, st_ref):
    """Store conv output (lane-dense, unmasked vst) + masked BN sum / sum-of-squares
    taken from the f32 accumulator."""
    accm = jnp.where(maskb, acc, 0.0)               # exclude junk columns from stats
    y_ref[...] = acc.astype(y_ref.dtype)
    st_ref[0:1, :] = jnp.sum(accm, axis=0, keepdims=True)
    st_ref[1:2, :] = jnp.sum(accm * accm, axis=0, keepdims=True)


def _conv1_kernel(mask_ref, x_ref, w_ref, y_ref, st_ref, *, H, W, Cp):
    """Pass A: conv1 on the pre-padded input (no scratch, no halo zeroing)."""
    maskb = mask_ref[...] > 0.0                     # (H*(W+2), 1)
    acc = _conv3x3_taps(x_ref, w_ref, H, W, Cp)
    _store_out_and_stats(acc, maskb, y_ref, st_ref)


def _bn_act_conv2_kernel(mask_ref, y1_ref, bn_ref, w_ref, y_ref, st_ref, apad_ref,
                         *, H, W, Cp):
    """Pass B: BN1 (fused affine) + LeakyReLU + conv2, emitting BN2 partial stats."""
    Wp = W + 2
    M = H * Wp
    maskb = mask_ref[...] > 0.0
    # Zero only the 2-row top/bottom border blocks of the padded-flat scratch each
    # step (interior rows are fully overwritten below).  Cheap and megacore-safe.
    zrows = jnp.zeros((2 * Wp, Cp), apad_ref.dtype)
    apad_ref[pl.ds(0, 2 * Wp), :] = zrows
    apad_ref[pl.ds((H + 2) * Wp, 2 * Wp), :] = zrows
    # BN1 affine + LeakyReLU in f32; restore exact zeros at the junk columns so the
    # conv padding stays correct.
    a = _leaky(y1_ref[...].astype(jnp.float32) * bn_ref[0:1, :] + bn_ref[1:2, :])
    a = jnp.where(maskb, a, 0.0)
    apad_ref[pl.ds(2 * Wp, M), :] = a.astype(apad_ref.dtype)   # one contiguous store
    acc = _conv3x3_taps(apad_ref, w_ref, H, W, Cp)
    _store_out_and_stats(acc, maskb, y_ref, st_ref)


def _bn_scale_shift(stats, gamma, beta, count):
    """Finalize training-mode BN: biased batch stats -> fused per-channel affine.
    Padded channels have gamma=0 -> scale=shift=0 -> they stay exactly zero.
    (E[y^2]-E[y]^2 from f32 sums; fine at these scales, switch to a shifted/Welford
    reduction if activations grow huge.)"""
    s = jnp.sum(stats[:, 0, :], axis=0)
    ss = jnp.sum(stats[:, 1, :], axis=0)
    mean = s / count
    var = jnp.maximum(ss / count - mean * mean, 0.0)
    scale = gamma * lax.rsqrt(var + EPS)
    shift = beta - mean * scale
    return scale, shift


def residual_block(x_nchw, w1_oihw, w2_oihw, g1, b1, g2, b2,
                   io_dtype=jnp.bfloat16):
    """PyTorch-convention wrapper: NCHW input, OIHW conv weights (bias=False),
    BatchNorm2d training-mode semantics, LeakyReLU(0.2).
    io_dtype controls the matmul-operand / HBM-intermediate precision."""
    N, C, H, W = x_nchw.shape
    Cp = -(-C // LANE) * LANE                 # channels padded to lane width
    Wp = W + 2                                # width incl. conv zero-padding
    M = H * Wp                                # conv-output block rows (flat)
    Mpad = (H + 4) * Wp                       # padded-flat activation rows
    isz = jnp.dtype(io_dtype).itemsize

    # --- single boundary relayout: NCHW -> lane-dense padded-flat layout in HBM.
    x32 = x_nchw.astype(jnp.float32)
    x_nhwc = jnp.transpose(x32, (0, 2, 3, 1))
    x_pf = jnp.pad(x_nhwc, ((0, 0), (2, 2), (1, 1), (0, Cp - C)))
    x_pf = x_pf.reshape(N, Mpad, Cp).astype(io_dtype)

    def prep_w(w_oihw):                       # OIHW -> (9, Cp, Cp) tap matrices
        w = jnp.transpose(w_oihw, (2, 3, 1, 0)).astype(jnp.float32)   # (kh,kw,ci,co)
        w = jnp.pad(w, ((0, 0), (0, 0), (0, Cp - C), (0, Cp - C)))
        return w.reshape(9, Cp, Cp).astype(io_dtype)

    w1m, w2m = prep_w(w1_oihw), prep_w(w2_oihw)
    padc = lambda v: jnp.pad(v.astype(jnp.float32), (0, Cp - C))
    g1p, b1p, g2p, b2p = padc(g1), padc(b1), padc(g2), padc(b2)

    # interior-column mask: 1 at the W valid columns of every Wp-wide flattened row.
    col = jnp.arange(M, dtype=jnp.int32) % Wp
    mask = ((col >= 1) & (col <= W)).astype(jnp.float32).reshape(M, 1)

    mask_spec = pl.BlockSpec((M, 1), lambda n: (0, 0))
    xpf_spec = pl.BlockSpec((None, Mpad, Cp), lambda n: (n, 0, 0))
    y_spec = pl.BlockSpec((None, M, Cp), lambda n: (n, 0, 0))
    w_spec = pl.BlockSpec((9, Cp, Cp), lambda n: (0, 0, 0))
    bn_spec = pl.BlockSpec((2, Cp), lambda n: (0, 0))
    st_spec = pl.BlockSpec((None, 2, Cp), lambda n: (n, 0, 0))

    # vmem limit from actual buffer math (double-buffered blocks + scratch + f32 acc).
    need = (2 * (Mpad * Cp * isz + M * Cp * isz + 9 * Cp * Cp * isz + 4 * Cp * 4)
            + Mpad * Cp * isz + 4 * M * Cp * 4)
    vmem_limit = min(max(2 * need + (8 << 20), 32 << 20), 96 << 20)
    cparams = pltpu.CompilerParams(
        dimension_semantics=("parallel",),    # pipelined; megacore-shardable on v7x
        vmem_limit_bytes=int(vmem_limit))

    conv_out = (jax.ShapeDtypeStruct((N, M, Cp), io_dtype),
                jax.ShapeDtypeStruct((N, 2, Cp), jnp.float32))
    count = float(N * H * W)

    # --- pass A: conv1 + BN1 partial stats ------------------------------------
    y1, st1 = pl.pallas_call(
        functools.partial(_conv1_kernel, H=H, W=W, Cp=Cp),
        grid=(N,),
        in_specs=[mask_spec, xpf_spec, w_spec],
        out_specs=(y_spec, st_spec),
        out_shape=conv_out,
        compiler_params=cparams,
    )(mask, x_pf, w1m)
    scale1, shift1 = _bn_scale_shift(st1, g1p, b1p, count)

    # --- pass B: BN1 + LeakyReLU + conv2 + BN2 partial stats ------------------
    y2, st2 = pl.pallas_call(
        functools.partial(_bn_act_conv2_kernel, H=H, W=W, Cp=Cp),
        grid=(N,),
        in_specs=[mask_spec, y_spec, bn_spec, w_spec],
        out_specs=(y_spec, st_spec),
        out_shape=conv_out,
        scratch_shapes=[pltpu.VMEM((Mpad, Cp), io_dtype)],
        compiler_params=cparams,
    )(mask, y1, jnp.stack([scale1, shift1]), w2m)
    scale2, shift2 = _bn_scale_shift(st2, g2p, b2p, count)

    # --- pass C (fused XLA epilogue): BN2 affine + residual + LeakyReLU + NCHW.
    y2v = y2.reshape(N, H, Wp, Cp)[:, :, 1:W + 1, :C].astype(jnp.float32)
    y2v = y2v * scale2[:C].reshape(1, 1, 1, C) + shift2[:C].reshape(1, 1, 1, C)
    return _leaky(x32 + jnp.transpose(y2v, (0, 3, 1, 2)))


def _ref_forward(x, w1, w2, g1, b1, g2, b2):
    """Pure-JAX reference (NCHW, OIHW), mirrors the PyTorch forward."""
    def conv(z, w):
        return lax.conv_general_dilated(
            z, w, (1, 1), ((1, 1), (1, 1)),
            dimension_numbers=("NCHW", "OIHW", "NCHW"),
            precision=lax.Precision.HIGHEST)

    def bn(z, g, b):
        m = z.mean(axis=(0, 2, 3), keepdims=True)
        v = ((z - m) ** 2).mean(axis=(0, 2, 3), keepdims=True)
        return (z - m) / jnp.sqrt(v + EPS) * g.reshape(1, -1, 1, 1) \
            + b.reshape(1, -1, 1, 1)

    lrelu = lambda z: jnp.where(z > 0, z, SLOPE * z)
    y = lrelu(bn(conv(x, w1), g1, b1))
    y = bn(conv(y, w2), g2, b2)
    return lrelu(x + y)


if __name__ == "__main__":
    N, C, H, W = 2, 4, 16, 16
    key = jax.random.PRNGKey(0)
    kx, k1, k2 = jax.random.split(key, 3)

    x = jax.random.normal(kx, (N, C, H, W), jnp.float32)
    scale = (1.0 / (C * 9)) ** 0.5
    w1 = jax.random.normal(k1, (C, C, 3, 3), jnp.float32) * scale
    w2 = jax.random.normal(k2, (C, C, 3, 3), jnp.float32) * scale
    g1 = jnp.ones((C,), jnp.float32)
    b1 = jnp.zeros((C,), jnp.float32)
    g2 = jnp.ones((C,), jnp.float32)
    b2 = jnp.zeros((C,), jnp.float32)

    ref = _ref_forward(x, w1, w2, g1, b1, g2, b2)

    # exact-precision path: strict tolerance proves the structure is correct.
    fwd_f32 = jax.jit(functools.partial(residual_block, io_dtype=jnp.float32))
    out_f32 = jax.block_until_ready(fwd_f32(x, w1, w2, g1, b1, g2, b2))
    assert out_f32.shape == (N, C, H, W) and out_f32.dtype == jnp.float32
    err_f32 = jnp.max(jnp.abs(out_f32 - ref))
    assert jnp.allclose(out_f32, ref, atol=1e-3, rtol=1e-3), f"f32 max err {err_f32}"

    # default bf16 path (MXU-native operands + bf16 HBM intermediates).
    fwd_bf16 = jax.jit(residual_block)
    out_bf16 = jax.block_until_ready(fwd_bf16(x, w1, w2, g1, b1, g2, b2))
    assert out_bf16.shape == (N, C, H, W) and out_bf16.dtype == jnp.float32
    err_b = jnp.max(jnp.abs(out_bf16 - ref))
    assert jnp.allclose(out_bf16, ref, atol=5e-2, rtol=5e-2), f"bf16 max err {err_b}"

    print("KERNEL_OK")
</pallas_src>

<mosaic_0001>
module attributes {stable_mosaic.version = 11 : i64} {
  func.func @_conv1_kernel(%arg0: i32, %arg1: memref<288x1xf32, #tpu.memory_space<vmem>>, %arg2: memref<1x360x128xf32, #tpu.memory_space<vmem>>, %arg3: memref<9x128x128xf32, #tpu.memory_space<vmem>>, %arg4: memref<1x288x128xf32, #tpu.memory_space<vmem>>, %arg5: memref<1x2x128xf32, #tpu.memory_space<vmem>>) attributes {dimension_semantics = [#tpu.dimension_semantics<parallel>], iteration_bounds = array<i64: 2>, scalar_prefetch = 0 : i64, scratch_operands = 0 : i64, tpu.core_type = #tpu.core_type<tc>, window_params = [{pipeline_mode = #tpu.pipeline_mode<synchronous>, transform_indices = @transform_0, window_bounds = array<i64: 288, 1>}, {transform_indices = @transform_1, window_bounds = array<i64: 1, 360, 128>}, {pipeline_mode = #tpu.pipeline_mode<synchronous>, transform_indices = @transform_2, window_bounds = array<i64: 9, 128, 128>}, {transform_indices = @transform_3, window_bounds = array<i64: 1, 288, 128>}, {transform_indices = @transform_4, window_bounds = array<i64: 1, 2, 128>}]} {
    %c0 = arith.constant 0 : index
    %c0_0 = arith.constant 0 : index
    %0 = vector.load %arg1[%c0, %c0_0] : memref<288x1xf32, #tpu.memory_space<vmem>>, vector<288x1xf32>
    %cst = arith.constant 0.000000e+00 : f32
    %1 = vector.broadcast %cst : f32 to vector<288x1xf32>
    %2 = arith.cmpf ogt, %0, %1 : vector<288x1xf32>
    %cst_1 = arith.constant 0.000000e+00 : f32
    %3 = vector.broadcast %cst_1 : f32 to vector<288x128xf32>
    %c0_2 = arith.constant 0 : index
    %c17 = arith.constant 17 : index
    %c0_3 = arith.constant 0 : index
    %4 = vector.load %arg2[%c0_2, %c17, %c0_3] : memref<1x360x128xf32, #tpu.memory_space<vmem>>, vector<1x288x128xf32>
    %5 = vector.shape_cast %4 : vector<1x288x128xf32> to vector<288x128xf32>
    %c0_4 = arith.constant 0 : index
    %c0_5 = arith.constant 0 : index
    %c0_6 = arith.constant 0 : index
    %6 = vector.load %arg3[%c0_4, %c0_5, %c0_6] : memref<9x128x128xf32, #tpu.memory_space<vmem>>, vector<1x128x128xf32>
    %7 = vector.shape_cast %6 : vector<1x128x128xf32> to vector<128x128xf32>
    %cst_7 = arith.constant dense<0.000000e+00> : vector<288x128xf32>
    %8 = tpu.matmul %5, %7, %cst_7 {dimension_numbers = #tpu.dot_dimension_numbers<[1], [0], [0], [1], [0, 0, 1, 1], [], []>} : vector<288x128xf32>, vector<128x128xf32>, vector<288x128xf32> -> vector<288x128xf32>
    %9 = arith.addf %3, %8 : vector<288x128xf32>
    %c0_8 = arith.constant 0 : index
    %c18 = arith.constant 18 : index
    %c0_9 = arith.constant 0 : index
    %10 = vector.load %arg2[%c0_8, %c18, %c0_9] : memref<1x360x128xf32, #tpu.memory_space<vmem>>, vector<1x288x128xf32>
    %11 = vector.shape_cast %10 : vector<1x288x128xf32> to vector<288x128xf32>
    %c1 = arith.constant 1 : index
    %c0_10 = arith.constant 0 : index
    %c0_11 = arith.constant 0 : index
    %12 = vector.load %arg3[%c1, %c0_10, %c0_11] : memref<9x128x128xf32, #tpu.memory_space<vmem>>, vector<1x128x128xf32>
    %13 = vector.shape_cast %12 : vector<1x128x128xf32> to vector<128x128xf32>
    %cst_12 = arith.constant dense<0.000000e+00> : vector<288x128xf32>
    %14 = tpu.matmul %11, %13, %cst_12 {dimension_numbers = #tpu.dot_dimension_numbers<[1], [0], [0], [1], [0, 0, 1, 1], [], []>} : vector<288x128xf32>, vector<128x128xf32>, vector<288x128xf32> -> vector<288x128xf32>
    %15 = arith.addf %9, %14 : vector<288x128xf32>
    %c0_13 = arith.constant 0 : index
    %c19 = arith.constant 19 : index
    %c0_14 = arith.constant 0 : index
    %16 = vector.load %arg2[%c0_13, %c19, %c0_14] : memref<1x360x128xf32, #tpu.memory_space<vmem>>, vector<1x288x128xf32>
    %17 = vector.shape_cast %16 : vector<1x288x128xf32> to vector<288x128xf32>
    %c2 = arith.constant 2 : index
    %c0_15 = arith.constant 0 : index
    %c0_16 = arith.constant 0 : index
    %18 = vector.load %arg3[%c2, %c0_15, %c0_16] : memref<9x128x128xf32, #tpu.memory_space<vmem>>, vector<1x128x128xf32>
    %19 = vector.shape_cast %18 : vector<1x128x128xf32> to vector<128x128xf32>
    %cst_17 = arith.constant dense<0.000000e+00> : vector<288x128xf32>
    %20 = tpu.matmul %17, %19, %cst_17 {dimension_numbers = #tpu.dot_dimension_numbers<[1], [0], [0], [1], [0, 0, 1, 1], [], []>} : vector<288x128xf32>, vector<128x128xf32>, vector<288x128xf32> -> vector<288x128xf32>
    %21 = arith.addf %15, %20 : vector<288x128xf32>
    %c0_18 = arith.constant 0 : index
    %c35 = arith.constant 35 : index
    %c0_19 = arith.constant 0 : index
    %22 = vector.load %arg2[%c0_18, %c35, %c0_19] : memref<1x360x128xf32, #tpu.memory_space<vmem>>, vector<1x288x128xf32>
    %23 = vector.shape_cast %22 : vector<1x288x128xf32> to vector<288x128xf32>
    %c3 = arith.constant 3 : index
    %c0_20 = arith.constant 0 : index
    %c0_21 = arith.constant 0 : index
    %24 = vector.load %arg3[%c3, %c0_20, %c0_21] : memref<9x128x128xf32, #tpu.memory_space<vmem>>, vector<1x128x128xf32>
    %25 = vector.shape_cast %24 : vector<1x128x128xf32> to vector<128x128xf32>
    %cst_22 = arith.constant dense<0.000000e+00> : vector<288x128xf32>
    %26 = tpu.matmul %23, %25, %cst_22 {dimension_numbers = #tpu.dot_dimension_numbers<[1], [0], [0], [1], [0, 0, 1, 1], [], []>} : vector<288x128xf32>, vector<128x128xf32>, vector<288x128xf32> -> vector<288x128xf32>
    %27 = arith.addf %21, %26 : vector<288x128xf32>
    %c0_23 = arith.constant 0 : index
    %c36 = arith.constant 36 : index
    %c0_24 = arith.constant 0 : index
    %28 = vector.load %arg2[%c0_23, %c36, %c0_24] : memref<1x360x128xf32, #tpu.memory_space<vmem>>, vector<1x288x128xf32>
    %29 = vector.shape_cast %28 : vector<1x288x128xf32> to vector<288x128xf32>
    %c4 = arith.constant 4 : index
    %c0_25 = arith.constant 0 : index
    %c0_26 = arith.constant 0 : index
    %30 = vector.load %arg3[%c4, %c0_25, %c0_26] : memref<9x128x128xf32, #tpu.memory_space<vmem>>, vector<1x128x128xf32>
    %31 = vector.shape_cast %30 : vector<1x128x128xf32> to vector<128x128xf32>
    %cst_27 = arith.constant dense<0.000000e+00> : vector<288x128xf32>
    %32 = tpu.matmul %29, %31, %cst_27 {dimension_numbers = #tpu.dot_dimension_numbers<[1], [0], [0], [1], [0, 0, 1, 1], [], []>} : vector<288x128xf32>, vector<128x128xf32>, vector<288x128xf32> -> vector<288x128xf32>
    %33 = arith.addf %27, %32 : vector<288x128xf32>
    %c0_28 = arith.constant 0 : index
    %c37 = arith.constant 37 : index
    %c0_29 = arith.constant 0 : index
    %34 = vector.load %arg2[%c0_28, %c37, %c0_29] : memref<1x360x128xf32, #tpu.memory_space<vmem>>, vector<1x288x128xf32>
    %35 = vector.shape_cast %34 : vector<1x288x128xf32> to vector<288x128xf32>
    %c5 = arith.constant 5 : index
    %c0_30 = arith.constant 0 : index
    %c0_31 = arith.constant 0 : index
    %36 = vector.load %arg3[%c5, %c0_30, %c0_31] : memref<9x128x128xf32, #tpu.memory_space<vmem>>, vector<1x128x128xf32>
    %37 = vector.shape_cast %36 : vector<1x128x128xf32> to vector<128x128xf32>
    %cst_32 = arith.constant dense<0.000000e+00> : vector<288x128xf32>
    %38 = tpu.matmul %35, %37, %cst_32 {dimension_numbers = #tpu.dot_dimension_numbers<[1], [0], [0], [1], [0, 0, 1, 1], [], []>} : vector<288x128xf32>, vector<128x128xf32>, vector<288x128xf32> -> vector<288x128xf32>
    %39 = arith.addf %33, %38 : vector<288x128xf32>
    %c0_33 = arith.constant 0 : index
    %c53 = arith.constant 53 : index
    %c0_34 = arith.constant 0 : index
    %40 = vector.load %arg2[%c0_33, %c53, %c0_34] : memref<1x360x128xf32, #tpu.memory_space<vmem>>, vector<1x288x128xf32>
    %41 = vector.shape_cast %40 : vector<1x288x128xf32> to vector<288x128xf32>
    %c6 = arith.constant 6 : index
    %c0_35 = arith.constant 0 : index
    %c0_36 = arith.constant 0 : index
    %42 = vector.load %arg3[%c6, %c0_35, %c0_36] : memref<9x128x128xf32, #tpu.memory_space<vmem>>, vector<1x128x128xf32>
    %43 = vector.shape_cast %42 : vector<1x128x128xf32> to vector<128x128xf32>
    %cst_37 = arith.constant dense<0.000000e+00> : vector<288x128xf32>
    %44 = tpu.matmul %41, %43, %cst_37 {dimension_numbers = #tpu.dot_dimension_numbers<[1], [0], [0], [1], [0, 0, 1, 1], [], []>} : vector<288x128xf32>, vector<128x128xf32>, vector<288x128xf32> -> vector<288x128xf32>
    %45 = arith.addf %39, %44 : vector<288x128xf32>
    %c0_38 = arith.constant 0 : index
    %c54 = arith.constant 54 : index
    %c0_39 = arith.constant 0 : index
    %46 = vector.load %arg2[%c0_38, %c54, %c0_39] : memref<1x360x128xf32, #tpu.memory_space<vmem>>, vector<1x288x128xf32>
    %47 = vector.shape_cast %46 : vector<1x288x128xf32> to vector<288x128xf32>
    %c7 = arith.constant 7 : index
    %c0_40 = arith.constant 0 : index
    %c0_41 = arith.constant 0 : index
    %48 = vector.load %arg3[%c7, %c0_40, %c0_41] : memref<9x128x128xf32, #tpu.memory_space<vmem>>, vector<1x128x128xf32>
    %49 = vector.shape_cast %48 : vector<1x128x128xf32> to vector<128x128xf32>
    %cst_42 = arith.constant dense<0.000000e+00> : vector<288x128xf32>
    %50 = tpu.matmul %47, %49, %cst_42 {dimension_numbers = #tpu.dot_dimension_numbers<[1], [0], [0], [1], [0, 0, 1, 1], [], []>} : vector<288x128xf32>, vector<128x128xf32>, vector<288x128xf32> -> vector<288x128xf32>
    %51 = arith.addf %45, %50 : vector<288x128xf32>
    %c0_43 = arith.constant 0 : index
    %c55 = arith.constant 55 : index
    %c0_44 = arith.constant 0 : index
    %52 = vector.load %arg2[%c0_43, %c55, %c0_44] : memref<1x360x128xf32, #tpu.memory_space<vmem>>, vector<1x288x128xf32>
    %53 = vector.shape_cast %52 : vector<1x288x128xf32> to vector<288x128xf32>
    %c8 = arith.constant 8 : index
    %c0_45 = arith.constant 0 : index
    %c0_46 = arith.constant 0 : index
    %54 = vector.load %arg3[%c8, %c0_45, %c0_46] : memref<9x128x128xf32, #tpu.memory_space<vmem>>, vector<1x128x128xf32>
    %55 = vector.shape_cast %54 : vector<1x128x128xf32> to vector<128x128xf32>
    %cst_47 = arith.constant dense<0.000000e+00> : vector<288x128xf32>
    %56 = tpu.matmul %53, %55, %cst_47 {dimension_numbers = #tpu.dot_dimension_numbers<[1], [0], [0], [1], [0, 0, 1, 1], [], []>} : vector<288x128xf32>, vector<128x128xf32>, vector<288x128xf32> -> vector<288x128xf32>
    %57 = arith.addf %51, %56 : vector<288x128xf32>
    %cst_48 = arith.constant 0.000000e+00 : f32
    %58 = vector.shape_cast %2 : vector<288x1xi1> to vector<288x1xi1>
    %59 = vector.broadcast %58 : vector<288x1xi1> to vector<288x128xi1>
    %60 = vector.broadcast %cst_48 : f32 to vector<288x128xf32>
    %61 = arith.select %59, %57, %60 : vector<288x128xi1>, vector<288x128xf32>
    %c0_49 = arith.constant 0 : index
    %c0_50 = arith.constant 0 : index
    %c0_51 = arith.constant 0 : index
    %62 = vector.load %arg4[%c0_49, %c0_50, %c0_51] : memref<1x288x128xf32, #tpu.memory_space<vmem>>, vector<1x288x128xf32>
    %63 = vector.shape_cast %62 : vector<1x288x128xf32> to vector<288x128xf32>
    %64 = vector.shape_cast %57 : vector<288x128xf32> to vector<1x288x128xf32>
    tpu.vector_store %arg4[%c0_49, %c0_50, %c0_51], %64 {strides = array<i32>} : memref<1x288x128xf32, #tpu.memory_space<vmem>>, vector<1x288x128xf32>,
    %cst_52 = arith.constant dense<0.000000e+00> : vector<128xf32>
    %65 = vector.multi_reduction <add>, %61, %cst_52 [0] : vector<288x128xf32> to vector<128xf32>
    %66 = vector.shape_cast %65 : vector<128xf32> to vector<1x128xf32>
    %c0_53 = arith.constant 0 : index
    %c0_54 = arith.constant 0 : index
    %c0_55 = arith.constant 0 : index
    %67 = vector.load %arg5[%c0_53, %c0_54, %c0_55] : memref<1x2x128xf32, #tpu.memory_space<vmem>>, vector<1x1x128xf32>
    %68 = vector.shape_cast %67 : vector<1x1x128xf32> to vector<1x128xf32>
    %69 = vector.shape_cast %66 : vector<1x128xf32> to vector<1x1x128xf32>
    tpu.vector_store %arg5[%c0_53, %c0_54, %c0_55], %69 {strides = array<i32>} : memref<1x2x128xf32, #tpu.memory_space<vmem>>, vector<1x1x128xf32>,
    %70 = arith.mulf %61, %61 : vector<288x128xf32>
    %cst_56 = arith.constant dense<0.000000e+00> : vector<128xf32>
    %71 = vector.multi_reduction <add>, %70, %cst_56 [0] : vector<288x128xf32> to vector<128xf32>
    %72 = vector.shape_cast %71 : vector<128xf32> to vector<1x128xf32>
    %c0_57 = arith.constant 0 : index
    %c1_58 = arith.constant 1 : index
    %c0_59 = arith.constant 0 : index
    %73 = vector.load %arg5[%c0_57, %c1_58, %c0_59] : memref<1x2x128xf32, #tpu.memory_space<vmem>>, vector<1x1x128xf32>
    %74 = vector.shape_cast %73 : vector<1x1x128xf32> to vector<1x128xf32>
    %75 = vector.shape_cast %72 : vector<1x128xf32> to vector<1x1x128xf32>
    tpu.vector_store %arg5[%c0_57, %c1_58, %c0_59], %75 {strides = array<i32>} : memref<1x2x128xf32, #tpu.memory_space<vmem>>, vector<1x1x128xf32>,
    return
  }
  func.func @transform_0(%arg0: i32) -> (i32, i32) {
    %c0_i32 = arith.constant 0 : i32
    %c0_i32_0 = arith.constant 0 : i32
    %c0_i32_1 = arith.constant 0 : i32
    return %c0_i32, %c0_i32_0 : i32, i32
  }
  func.func @transform_1(%arg0: i32) -> (i32, i32, i32) {
    %c0_i32 = arith.constant 0 : i32
    %c0_i32_0 = arith.constant 0 : i32
    %c0_i32_1 = arith.constant 0 : i32
    return %arg0, %c0_i32, %c0_i32_0 : i32, i32, i32
  }
  func.func @transform_2(%arg0: i32) -> (i32, i32, i32) {
    %c0_i32 = arith.constant 0 : i32
    %c0_i32_0 = arith.constant 0 : i32
    %c0_i32_1 = arith.constant 0 : i32
    %c0_i32_2 = arith.constant 0 : i32
    return %c0_i32, %c0_i32_0, %c0_i32_1 : i32, i32, i32
  }
  func.func @transform_3(%arg0: i32) -> (i32, i32, i32) {
    %c0_i32 = arith.constant 0 : i32
    %c0_i32_0 = arith.constant 0 : i32
    %c0_i32_1 = arith.constant 0 : i32
    return %arg0, %c0_i32, %c0_i32_0 : i32, i32, i32
  }
  func.func @transform_4(%arg0: i32) -> (i32, i32, i32) {
    %c0_i32 = arith.constant 0 : i32
    %c0_i32_0 = arith.constant 0 : i32
    %c0_i32_1 = arith.constant 0 : i32
    return %arg0, %c0_i32, %c0_i32_0 : i32, i32, i32
  }
}

module attributes {stable_mosaic.version = 11 : i64} {
  func.func @_bn_act_conv2_kernel(%arg0: i32, %arg1: memref<288x1xf32, #tpu.memory_space<vmem>>, %arg2: memref<1x288x128xf32, #tpu.memory_space<vmem>>, %arg3: memref<2x128xf32, #tpu.memory_space<vmem>>, %arg4: memref<9x128x128xf32, #tpu.memory_space<vmem>>, %arg5: memref<1x288x128xf32, #tpu.memory_space<vmem>>, %arg6: memref<1x2x128xf32, #tpu.memory_space<vmem>>, %arg7: memref<360x128xf32, #tpu.memory_space<vmem>>) attributes {dimension_semantics = [#tpu.dimension_semantics<parallel>], iteration_bounds = array<i64: 2>, scalar_prefetch = 0 : i64, scratch_operands = 1 : i64, tpu.core_type = #tpu.core_type<tc>, window_params = [{pipeline_mode = #tpu.pipeline_mode<synchronous>, transform_indices = @transform_0, window_bounds = array<i64: 288, 1>}, {transform_indices = @transform_1, window_bounds = array<i64: 1, 288, 128>}, {pipeline_mode = #tpu.pipeline_mode<synchronous>, transform_indices = @transform_2, window_bounds = array<i64: 2, 128>}, {pipeline_mode = #tpu.pipeline_mode<synchronous>, transform_indices = @transform_3, window_bounds = array<i64: 9, 128, 128>}, {transform_indices = @transform_4, window_bounds = array<i64: 1, 288, 128>}, {transform_indices = @transform_5, window_bounds = array<i64: 1, 2, 128>}]} {
    %c0 = arith.constant 0 : index
    %c0_0 = arith.constant 0 : index
    %0 = vector.load %arg1[%c0, %c0_0] : memref<288x1xf32, #tpu.memory_space<vmem>>, vector<288x1xf32>
    %cst = arith.constant 0.000000e+00 : f32
    %1 = vector.broadcast %cst : f32 to vector<288x1xf32>
    %2 = arith.cmpf ogt, %0, %1 : vector<288x1xf32>
    %cst_1 = arith.constant 0.000000e+00 : f32
    %3 = vector.broadcast %cst_1 : f32 to vector<36x128xf32>
    %c0_2 = arith.constant 0 : index
    %c0_3 = arith.constant 0 : index
    %4 = vector.load %arg7[%c0_2, %c0_3] : memref<360x128xf32, #tpu.memory_space<vmem>>, vector<36x128xf32>
    tpu.vector_store %arg7[%c0_2, %c0_3], %3 {strides = array<i32>} : memref<360x128xf32, #tpu.memory_space<vmem>>, vector<36x128xf32>,
    %c324 = arith.constant 324 : index
    %c0_4 = arith.constant 0 : index
    %5 = vector.load %arg7[%c324, %c0_4] : memref<360x128xf32, #tpu.memory_space<vmem>>, vector<36x128xf32>
    tpu.vector_store %arg7[%c324, %c0_4], %3 {strides = array<i32>} : memref<360x128xf32, #tpu.memory_space<vmem>>, vector<36x128xf32>,
    %c0_5 = arith.constant 0 : index
    %c0_6 = arith.constant 0 : index
    %c0_7 = arith.constant 0 : index
    %6 = vector.load %arg2[%c0_5, %c0_6, %c0_7] : memref<1x288x128xf32, #tpu.memory_space<vmem>>, vector<1x288x128xf32>
    %7 = vector.shape_cast %6 : vector<1x288x128xf32> to vector<288x128xf32>
    %c0_8 = arith.constant 0 : index
    %c0_9 = arith.constant 0 : index
    %8 = vector.load %arg3[%c0_8, %c0_9] : memref<2x128xf32, #tpu.memory_space<vmem>>, vector<1x128xf32>
    %9 = vector.broadcast %8 : vector<1x128xf32> to vector<288x128xf32>
    %10 = arith.mulf %7, %9 : vector<288x128xf32>
    %c1 = arith.constant 1 : index
    %c0_10 = arith.constant 0 : index
    %11 = vector.load %arg3[%c1, %c0_10] : memref<2x128xf32, #tpu.memory_space<vmem>>, vector<1x128xf32>
    %12 = vector.broadcast %11 : vector<1x128xf32> to vector<288x128xf32>
    %13 = arith.addf %10, %12 : vector<288x128xf32>
    %cst_11 = arith.constant 0.000000e+00 : f32
    %14 = vector.broadcast %cst_11 : f32 to vector<288x128xf32>
    %15 = arith.cmpf ogt, %13, %14 : vector<288x128xf32>
    %cst_12 = arith.constant 2.000000e-01 : f32
    %16 = vector.broadcast %cst_12 : f32 to vector<288x128xf32>
    %17 = arith.mulf %16, %13 : vector<288x128xf32>
    %18 = arith.select %15, %13, %17 : vector<288x128xi1>, vector<288x128xf32>
    %cst_13 = arith.constant 0.000000e+00 : f32
    %19 = vector.shape_cast %2 : vector<288x1xi1> to vector<288x1xi1>
    %20 = vector.broadcast %19 : vector<288x1xi1> to vector<288x128xi1>
    %21 = vector.broadcast %cst_13 : f32 to vector<288x128xf32>
    %22 = arith.select %20, %18, %21 : vector<288x128xi1>, vector<288x128xf32>
    %c36 = arith.constant 36 : index
    %c0_14 = arith.constant 0 : index
    %23 = vector.load %arg7[%c36, %c0_14] : memref<360x128xf32, #tpu.memory_space<vmem>>, vector<288x128xf32>
    tpu.vector_store %arg7[%c36, %c0_14], %22 {strides = array<i32>} : memref<360x128xf32, #tpu.memory_space<vmem>>, vector<288x128xf32>,
    %cst_15 = arith.constant 0.000000e+00 : f32
    %24 = vector.broadcast %cst_15 : f32 to vector<288x128xf32>
    %c17 = arith.constant 17 : index
    %c0_16 = arith.constant 0 : index
    %25 = vector.load %arg7[%c17, %c0_16] : memref<360x128xf32, #tpu.memory_space<vmem>>, vector<288x128xf32>
    %c0_17 = arith.constant 0 : index
    %c0_18 = arith.constant 0 : index
    %c0_19 = arith.constant 0 : index
    %26 = vector.load %arg4[%c0_17, %c0_18, %c0_19] : memref<9x128x128xf32, #tpu.memory_space<vmem>>, vector<1x128x128xf32>
    %27 = vector.shape_cast %26 : vector<1x128x128xf32> to vector<128x128xf32>
    %cst_20 = arith.constant dense<0.000000e+00> : vector<288x128xf32>
    %28 = tpu.matmul %25, %27, %cst_20 {dimension_numbers = #tpu.dot_dimension_numbers<[1], [0], [0], [1], [0, 0, 1, 1], [], []>} : vector<288x128xf32>, vector<128x128xf32>, vector<288x128xf32> -> vector<288x128xf32>
    %29 = arith.addf %24, %28 : vector<288x128xf32>
    %c18 = arith.constant 18 : index
    %c0_21 = arith.constant 0 : index
    %30 = vector.load %arg7[%c18, %c0_21] : memref<360x128xf32, #tpu.memory_space<vmem>>, vector<288x128xf32>
    %c1_22 = arith.constant 1 : index
    %c0_23 = arith.constant 0 : index
    %c0_24 = arith.constant 0 : index
    %31 = vector.load %arg4[%c1_22, %c0_23, %c0_24] : memref<9x128x128xf32, #tpu.memory_space<vmem>>, vector<1x128x128xf32>
    %32 = vector.shape_cast %31 : vector<1x128x128xf32> to vector<128x128xf32>
    %cst_25 = arith.constant dense<0.000000e+00> : vector<288x128xf32>
    %33 = tpu.matmul %30, %32, %cst_25 {dimension_numbers = #tpu.dot_dimension_numbers<[1], [0], [0], [1], [0, 0, 1, 1], [], []>} : vector<288x128xf32>, vector<128x128xf32>, vector<288x128xf32> -> vector<288x128xf32>
    %34 = arith.addf %29, %33 : vector<288x128xf32>
    %c19 = arith.constant 19 : index
    %c0_26 = arith.constant 0 : index
    %35 = vector.load %arg7[%c19, %c0_26] : memref<360x128xf32, #tpu.memory_space<vmem>>, vector<288x128xf32>
    %c2 = arith.constant 2 : index
    %c0_27 = arith.constant 0 : index
    %c0_28 = arith.constant 0 : index
    %36 = vector.load %arg4[%c2, %c0_27, %c0_28] : memref<9x128x128xf32, #tpu.memory_space<vmem>>, vector<1x128x128xf32>
    %37 = vector.shape_cast %36 : vector<1x128x128xf32> to vector<128x128xf32>
    %cst_29 = arith.constant dense<0.000000e+00> : vector<288x128xf32>
    %38 = tpu.matmul %35, %37, %cst_29 {dimension_numbers = #tpu.dot_dimension_numbers<[1], [0], [0], [1], [0, 0, 1, 1], [], []>} : vector<288x128xf32>, vector<128x128xf32>, vector<288x128xf32> -> vector<288x128xf32>
    %39 = arith.addf %34, %38 : vector<288x128xf32>
    %c35 = arith.constant 35 : index
    %c0_30 = arith.constant 0 : index
    %40 = vector.load %arg7[%c35, %c0_30] : memref<360x128xf32, #tpu.memory_space<vmem>>, vector<288x128xf32>
    %c3 = arith.constant 3 : index
    %c0_31 = arith.constant 0 : index
    %c0_32 = arith.constant 0 : index
    %41 = vector.load %arg4[%c3, %c0_31, %c0_32] : memref<9x128x128xf32, #tpu.memory_space<vmem>>, vector<1x128x128xf32>
    %42 = vector.shape_cast %41 : vector<1x128x128xf32> to vector<128x128xf32>
    %cst_33 = arith.constant dense<0.000000e+00> : vector<288x128xf32>
    %43 = tpu.matmul %40, %42, %cst_33 {dimension_numbers = #tpu.dot_dimension_numbers<[1], [0], [0], [1], [0, 0, 1, 1], [], []>} : vector<288x128xf32>, vector<128x128xf32>, vector<288x128xf32> -> vector<288x128xf32>
    %44 = arith.addf %39, %43 : vector<288x128xf32>
    %c36_34 = arith.constant 36 : index
    %c0_35 = arith.constant 0 : index
    %45 = vector.load %arg7[%c36_34, %c0_35] : memref<360x128xf32, #tpu.memory_space<vmem>>, vector<288x128xf32>
    %c4 = arith.constant 4 : index
    %c0_36 = arith.constant 0 : index
    %c0_37 = arith.constant 0 : index
    %46 = vector.load %arg4[%c4, %c0_36, %c0_37] : memref<9x128x128xf32, #tpu.memory_space<vmem>>, vector<1x128x128xf32>
    %47 = vector.shape_cast %46 : vector<1x128x128xf32> to vector<128x128xf32>
    %cst_38 = arith.constant dense<0.000000e+00> : vector<288x128xf32>
    %48 = tpu.matmul %45, %47, %cst_38 {dimension_numbers = #tpu.dot_dimension_numbers<[1], [0], [0], [1], [0, 0, 1, 1], [], []>} : vector<288x128xf32>, vector<128x128xf32>, vector<288x128xf32> -> vector<288x128xf32>
    %49 = arith.addf %44, %48 : vector<288x128xf32>
    %c37 = arith.constant 37 : index
    %c0_39 = arith.constant 0 : index
    %50 = vector.load %arg7[%c37, %c0_39] : memref<360x128xf32, #tpu.memory_space<vmem>>, vector<288x128xf32>
    %c5 = arith.constant 5 : index
    %c0_40 = arith.constant 0 : index
    %c0_41 = arith.constant 0 : index
    %51 = vector.load %arg4[%c5, %c0_40, %c0_41] : memref<9x128x128xf32, #tpu.memory_space<vmem>>, vector<1x128x128xf32>
    %52 = vector.shape_cast %51 : vector<1x128x128xf32> to vector<128x128xf32>
    %cst_42 = arith.constant dense<0.000000e+00> : vector<288x128xf32>
    %53 = tpu.matmul %50, %52, %cst_42 {dimension_numbers = #tpu.dot_dimension_numbers<[1], [0], [0], [1], [0, 0, 1, 1], [], []>} : vector<288x128xf32>, vector<128x128xf32>, vector<288x128xf32> -> vector<288x128xf32>
    %54 = arith.addf %49, %53 : vector<288x128xf32>
    %c53 = arith.constant 53 : index
    %c0_43 = arith.constant 0 : index
    %55 = vector.load %arg7[%c53, %c0_43] : memref<360x128xf32, #tpu.memory_space<vmem>>, vector<288x128xf32>
    %c6 = arith.constant 6 : index
    %c0_44 = arith.constant 0 : index
    %c0_45 = arith.constant 0 : index
    %56 = vector.load %arg4[%c6, %c0_44, %c0_45] : memref<9x128x128xf32, #tpu.memory_space<vmem>>, vector<1x128x128xf32>
    %57 = vector.shape_cast %56 : vector<1x128x128xf32> to vector<128x128xf32>
    %cst_46 = arith.constant dense<0.000000e+00> : vector<288x128xf32>
    %58 = tpu.matmul %55, %57, %cst_46 {dimension_numbers = #tpu.dot_dimension_numbers<[1], [0], [0], [1], [0, 0, 1, 1], [], []>} : vector<288x128xf32>, vector<128x128xf32>, vector<288x128xf32> -> vector<288x128xf32>
    %59 = arith.addf %54, %58 : vector<288x128xf32>
    %c54 = arith.constant 54 : index
    %c0_47 = arith.constant 0 : index
    %60 = vector.load %arg7[%c54, %c0_47] : memref<360x128xf32, #tpu.memory_space<vmem>>, vector<288x128xf32>
    %c7 = arith.constant 7 : index
    %c0_48 = arith.constant 0 : index
    %c0_49 = arith.constant 0 : index
    %61 = vector.load %arg4[%c7, %c0_48, %c0_49] : memref<9x128x128xf32, #tpu.memory_space<vmem>>, vector<1x128x128xf32>
    %62 = vector.shape_cast %61 : vector<1x128x128xf32> to vector<128x128xf32>
    %cst_50 = arith.constant dense<0.000000e+00> : vector<288x128xf32>
    %63 = tpu.matmul %60, %62, %cst_50 {dimension_numbers = #tpu.dot_dimension_numbers<[1], [0], [0], [1], [0, 0, 1, 1], [], []>} : vector<288x128xf32>, vector<128x128xf32>, vector<288x128xf32> -> vector<288x128xf32>
    %64 = arith.addf %59, %63 : vector<288x128xf32>
    %c55 = arith.constant 55 : index
    %c0_51 = arith.constant 0 : index
    %65 = vector.load %arg7[%c55, %c0_51] : memref<360x128xf32, #tpu.memory_space<vmem>>, vector<288x128xf32>
    %c8 = arith.constant 8 : index
    %c0_52 = arith.constant 0 : index
    %c0_53 = arith.constant 0 : index
    %66 = vector.load %arg4[%c8, %c0_52, %c0_53] : memref<9x128x128xf32, #tpu.memory_space<vmem>>, vector<1x128x128xf32>
    %67 = vector.shape_cast %66 : vector<1x128x128xf32> to vector<128x128xf32>
    %cst_54 = arith.constant dense<0.000000e+00> : vector<288x128xf32>
    %68 = tpu.matmul %65, %67, %cst_54 {dimension_numbers = #tpu.dot_dimension_numbers<[1], [0], [0], [1], [0, 0, 1, 1], [], []>} : vector<288x128xf32>, vector<128x128xf32>, vector<288x128xf32> -> vector<288x128xf32>
    %69 = arith.addf %64, %68 : vector<288x128xf32>
    %cst_55 = arith.constant 0.000000e+00 : f32
    %70 = vector.shape_cast %2 : vector<288x1xi1> to vector<288x1xi1>
    %71 = vector.broadcast %70 : vector<288x1xi1> to vector<288x128xi1>
    %72 = vector.broadcast %cst_55 : f32 to vector<288x128xf32>
    %73 = arith.select %71, %69, %72 : vector<288x128xi1>, vector<288x128xf32>
    %c0_56 = arith.constant 0 : index
    %c0_57 = arith.constant 0 : index
    %c0_58 = arith.constant 0 : index
    %74 = vector.load %arg5[%c0_56, %c0_57, %c0_58] : memref<1x288x128xf32, #tpu.memory_space<vmem>>, vector<1x288x128xf32>
    %75 = vector.shape_cast %74 : vector<1x288x128xf32> to vector<288x128xf32>
    %76 = vector.shape_cast %69 : vector<288x128xf32> to vector<1x288x128xf32>
    tpu.vector_store %arg5[%c0_56, %c0_57, %c0_58], %76 {strides = array<i32>} : memref<1x288x128xf32, #tpu.memory_space<vmem>>, vector<1x288x128xf32>,
    %cst_59 = arith.constant dense<0.000000e+00> : vector<128xf32>
    %77 = vector.multi_reduction <add>, %73, %cst_59 [0] : vector<288x128xf32> to vector<128xf32>
    %78 = vector.shape_cast %77 : vector<128xf32> to vector<1x128xf32>
    %c0_60 = arith.constant 0 : index
    %c0_61 = arith.constant 0 : index
    %c0_62 = arith.constant 0 : index
    %79 = vector.load %arg6[%c0_60, %c0_61, %c0_62] : memref<1x2x128xf32, #tpu.memory_space<vmem>>, vector<1x1x128xf32>
    %80 = vector.shape_cast %79 : vector<1x1x128xf32> to vector<1x128xf32>
    %81 = vector.shape_cast %78 : vector<1x128xf32> to vector<1x1x128xf32>
    tpu.vector_store %arg6[%c0_60, %c0_61, %c0_62], %81 {strides = array<i32>} : memref<1x2x128xf32, #tpu.memory_space<vmem>>, vector<1x1x128xf32>,
    %82 = arith.mulf %73, %73 : vector<288x128xf32>
    %cst_63 = arith.constant dense<0.000000e+00> : vector<128xf32>
    %83 = vector.multi_reduction <add>, %82, %cst_63 [0] : vector<288x128xf32> to vector<128xf32>
    %84 = vector.shape_cast %83 : vector<128xf32> to vector<1x128xf32>
    %c0_64 = arith.constant 0 : index
    %c1_65 = arith.constant 1 : index
    %c0_66 = arith.constant 0 : index
    %85 = vector.load %arg6[%c0_64, %c1_65, %c0_66] : memref<1x2x128xf32, #tpu.memory_space<vmem>>, vector<1x1x128xf32>
    %86 = vector.shape_cast %85 : vector<1x1x128xf32> to vector<1x128xf32>
    %87 = vector.shape_cast %84 : vector<1x128xf32> to vector<1x1x128xf32>
    tpu.vector_store %arg6[%c0_64, %c1_65, %c0_66], %87 {strides = array<i32>} : memref<1x2x128xf32, #tpu.memory_space<vmem>>, vector<1x1x128xf32>,
    return
  }
  func.func @transform_0(%arg0: i32) -> (i32, i32) {
    %c0_i32 = arith.constant 0 : i32
    %c0_i32_0 = arith.constant 0 : i32
    %c0_i32_1 = arith.constant 0 : i32
    return %c0_i32, %c0_i32_0 : i32, i32
  }
  func.func @transform_1(%arg0: i32) -> (i32, i32, i32) {
    %c0_i32 = arith.constant 0 : i32
    %c0_i32_0 = arith.constant 0 : i32
    %c0_i32_1 = arith.constant 0 : i32
    return %arg0, %c0_i32, %c0_i32_0 : i32, i32, i32
  }
  func.func @transform_2(%arg0: i32) -> (i32, i32) {
    %c0_i32 = arith.constant 0 : i32
    %c0_i32_0 = arith.constant 0 : i32
    %c0_i32_1 = arith.constant 0 : i32
    return %c0_i32, %c0_i32_0 : i32, i32
  }
  func.func @transform_3(%arg0: i32) -> (i32, i32, i32) {
    %c0_i32 = arith.constant 0 : i32
    %c0_i32_0 = arith.constant 0 : i32
    %c0_i32_1 = arith.constant 0 : i32
    %c0_i32_2 = arith.constant 0 : i32
    return %c0_i32, %c0_i32_0, %c0_i32_1 : i32, i32, i32
  }
  func.func @transform_4(%arg0: i32) -> (i32, i32, i32) {
    %c0_i32 = arith.constant 0 : i32
    %c0_i32_0 = arith.constant 0 : i32
    %c0_i32_1 = arith.constant 0 : i32
    return %arg0, %c0_i32, %c0_i32_0 : i32, i32, i32
  }
  func.func @transform_5(%arg0: i32) -> (i32, i32, i32) {
    %c0_i32 = arith.constant 0 : i32
    %c0_i32_0 = arith.constant 0 : i32
    %c0_i32_1 = arith.constant 0 : i32
    return %arg0, %c0_i32, %c0_i32_0 : i32, i32, i32
  }
}

</mosaic_0001>

<bundles_post_ra>
// kernel: residual_block.2
= control target key start
LH: loop header
LB: loop body
LE: loop exit
PB: predicated region body
PF: predicated region fallthrough
CT: control target
= control target key end

     0   :  { %s2826_s15 = smov 0   ;;  %s3970_s0 = inlined_call_operand.vmem [shape: f32[288,1], index: 0, kind: input, shape index: {}]   ;;  %s3971_s1 = inlined_call_operand.vmem [shape: f32[2,360,128], index: 1, kind: input, shape index: {}]   ;;  %s3972_s2 = inlined_call_operand.vmem [shape: f32[9,128,128], index: 2, kind: input, shape index: {}]   ;;  %s3973_s3 = inlined_call_operand.vmem [shape: f32[2,288,128], index: 3, kind: output, shape index: {0}]   ;;  %s3974_s4 = inlined_call_operand.vmem [shape: f32[2,2,128], index: 4, kind: output, shape index: {1}]  }
   0x1 LB: > { %s2592_s16 = sadd.s32 4294967295, %s2798_s15   ;;  %p2596_p0 = scmp.ge.s32.totalorder %s2798_s15, 1  ;;  %s2798_s15 = sphi %s2826_s15, %s15_s15  }
   0x2   : > { %p165_p1 = scmp.lt.s32.totalorder %s2798_s15, 3 }
   0x4   : > { %p166_p2 = pnand %p2596_p0, %p165_p1 }
   0x5   : > { %p195_p3 = scmp.lt.s32.totalorder (!%p166_p2), %s2592_s16, 1 }
   0x6   : > { %169 = sbr.rel (%p166_p2) target bundleno = 839 (0x347), region = 32 }
   0xb   : > { %v2615_v0 = vld [vmem:[%s3972_s2 + $0xf8] sm:$0xff]  ;;  %v2614_v1 = vld [vmem:[%s3972_s2 + $0xf0] sm:$0xff]  ;;  %v2613_v2 = vld [vmem:[%s3972_s2 + $0xe8] sm:$0xff]  ;;  %s3976_s16 = smov (!%p195_p3, %s2592_s16), 1 }
   0xc   : > { %2730 = vmatpush.msra.mxu1 %v2615_v0  ;;  %2731 = vmatpush.msra.mxu2 %v2615_v0  ;;  %v2612_v3 = vld [vmem:[%s3972_s2 + $0xe0] sm:$0xff]  ;;  %v2611_v4 = vld [vmem:[%s3972_s2 + $0xd8] sm:$0xff]  ;;  %v2610_v5 = vld [vmem:[%s3972_s2 + $0xd0] sm:$0xff]  ;;  %s2778_s19 = smul.u32 360, %s3976_s16 }
   0xd   : > { %2732 = vmatpush.msra.mxu3 %v2615_v0  ;;  %386 = vmatpush.msra.mxu0 %v2615_v0  ;;  %v2609_v6 = vld [vmem:[%s3972_s2 + $0xc8] sm:$0xff]  ;;  %v2608_v7 = vld [vmem:[%s3972_s2 + $0xc0] sm:$0xff]  ;;  %v2607_v8 = vld [vmem:[%s3972_s2 + $0xb8] sm:$0xff] }
   0xe   : > { %2733 = vmatpush.msra.mxu1 %v2614_v1  ;;  %2734 = vmatpush.msra.mxu2 %v2614_v1  ;;  %v2606_v9 = vld [vmem:[%s3972_s2 + $0xb0] sm:$0xff]  ;;  %v2605_v10 = vld [vmem:[%s3972_s2 + $0xa8] sm:$0xff]  ;;  %v2604_v11 = vld [vmem:[%s3972_s2 + $0xa0] sm:$0xff]  ;;  %s2889_s26 = scalar_lea.vmem %s3971_s1, %s2778_s19  ;;  %s2779_s19 = smul.u32 288, %s3976_s16 }
   0xf   : > { %2735 = vmatpush.msra.mxu3 %v2614_v1  ;;  %387 = vmatpush.msra.mxu0 %v2614_v1  ;;  %v2603_v12 = vld [vmem:[%s3972_s2 + $0x98] sm:$0xff]  ;;  %v2602_v13 = vld [vmem:[%s3972_s2 + $0x90] sm:$0xff]  ;;  %v2601_v14 = vld [vmem:[%s3972_s2 + $0x88] sm:$0xff] }
  0x10   : > { %2736 = vmatpush.msra.mxu1 %v2613_v2  ;;  %2737 = vmatpush.msra.mxu2 %v2613_v2  ;;  %v2600_v15 = vld [vmem:[%s3972_s2 + $0x80] sm:$0xff]  ;;  %v2631_v18 = vld [vmem:[%s3972_s2 + $0x178] sm:$0xff]  ;;  %v360_v19 = vld [vmem:[%s2889_s26 + $0xea] sm:$0xff]  ;;  %s3740_s24 = scalar_lea.vmem %s3973_s3, %s2779_s19 }
  0x11   : > { %2738 = vmatpush.msra.mxu3 %v2613_v2  ;;  %388 = vmatpush.msra.mxu0 %v2613_v2  ;;  %v342_v16 = vld [vmem:[%s2889_s26 + $0x5a] sm:$0xff]  ;;  %v351_v17 = vld [vmem:[%s2889_s26 + $0xa2] sm:$0xff]  ;;  %v2630_v22 = vld [vmem:[%s3972_s2 + $0x170] sm:$0xff] }
  0x12   : > { %2739 = vmatpush.msra.mxu1 %v2612_v3  ;;  %2740 = vmatpush.msra.mxu2 %v2612_v3  ;;  %v332_v20 = vld [vmem:[%s3972_s2 + $0x78] sm:$0xff]  ;;  %v331_v23 = vld [vmem:[%s3972_s2 + $0x70] sm:$0xff]  ;;  %v2629_v25 = vld [vmem:[%s3972_s2 + $0x168] sm:$0xff] }
  0x13   : > { %2741 = vmatpush.msra.mxu3 %v2612_v3  ;;  %389 = vmatpush.msra.mxu0 %v2612_v3  ;;  %v2647_v21 = vld [vmem:[%s3972_s2 + $0x1f8] sm:$0xff]  ;;  %v2646_v24 = vld [vmem:[%s3972_s2 + $0x1f0] sm:$0xff]  ;;  %v330_v27 = vld [vmem:[%s3972_s2 + $0x68] sm:$0xff] }
  0x14   : > { %2742 = vmatpush.msra.mxu1 %v2611_v4  ;;  %2743 = vmatpush.msra.mxu2 %v2611_v4  ;;  %v333_v26 = vld [vmem:[%s2889_s26 + $0x12] sm:$0xff]  ;;  %v2645_v29 = vld [vmem:[%s3972_s2 + $0x1e8] sm:$0xff]  ;;  %v2628_v32 = vld [vmem:[%s3972_s2 + $0x160] sm:$0xff] }
  0x15   : > { %2744 = vmatpush.msra.mxu3 %v2611_v4  ;;  %390 = vmatpush.msra.mxu0 %v2611_v4  ;;  %v2663_v28 = vld [vmem:[%s3972_s2 + $0x278] sm:$0xff]  ;;  %v343_v30 = vld [vmem:[%s2889_s26 + $0x62] sm:$0xff]  ;;  %v352_v31 = vld [vmem:[%s2889_s26 + $0xaa] sm:$0xff] }
  0x16   : > { %2745 = vmatpush.msra.mxu1 %v2610_v5  ;;  %2746 = vmatpush.msra.mxu2 %v2610_v5  ;;  %v2662_v33 = vld [vmem:[%s3972_s2 + $0x270] sm:$0xff]  ;;  %v329_v35 = vld [vmem:[%s3972_s2 + $0x60] sm:$0xff]  ;;  %v2627_v37 = vld [vmem:[%s3972_s2 + $0x158] sm:$0xff] }
  0x17   : > { %2747 = vmatpush.msra.mxu3 %v2610_v5  ;;  %391 = vmatpush.msra.mxu0 %v2610_v5  ;;  %v361_v34 = vld [vmem:[%s2889_s26 + $0xf2] sm:$0xff]  ;;  %v2644_v36 = vld [vmem:[%s3972_s2 + $0x1e0] sm:$0xff]  ;;  %v2661_v38 = vld [vmem:[%s3972_s2 + $0x268] sm:$0xff] }
  0x18   : > { %2748 = vmatpush.msra.mxu1 %v2609_v6  ;;  %2749 = vmatpush.msra.mxu2 %v2609_v6  ;;  %v328_v39 = vld [vmem:[%s3972_s2 + $0x58] sm:$0xff]  ;;  %v2626_v41 = vld [vmem:[%s3972_s2 + $0x150] sm:$0xff]  ;;  %v2660_v44 = vld [vmem:[%s3972_s2 + $0x260] sm:$0xff] }
  0x19   : > { %2750 = vmatpush.msra.mxu3 %v2609_v6  ;;  %392 = vmatpush.msra.mxu0 %v2609_v6  ;;  %v2643_v40 = vld [vmem:[%s3972_s2 + $0x1d8] sm:$0xff]  ;;  %v327_v43 = vld [vmem:[%s3972_s2 + $0x50] sm:$0xff]  ;;  %v2625_v48 = vld [vmem:[%s3972_s2 + $0x148] sm:$0xff] }
  0x1a   : > { %2751 = vmatpush.msra.mxu1 %v2608_v7  ;;  %2752 = vmatpush.msra.mxu2 %v2608_v7  ;;  %v334_v42 = vld [vmem:[%s2889_s26 + $0x1a] sm:$0xff]  ;;  %v2642_v45 = vld [vmem:[%s3972_s2 + $0x1d0] sm:$0xff]  ;;  %v326_v51 = vld [vmem:[%s3972_s2 + $0x48] sm:$0xff] }
  0x1b   : > { %2753 = vmatpush.msra.mxu3 %v2608_v7  ;;  %393 = vmatpush.msra.mxu0 %v2608_v7  ;;  %v344_v46 = vld [vmem:[%s2889_s26 + $0x6a] sm:$0xff]  ;;  %v353_v47 = vld [vmem:[%s2889_s26 + $0xb2] sm:$0xff]  ;;  %v362_v50 = vld [vmem:[%s2889_s26 + $0xfa] sm:$0xff] }
  0x1c   : > { %2754 = vmatpush.msra.mxu1 %v2607_v8  ;;  %2755 = vmatpush.msra.mxu2 %v2607_v8  ;;  %v2659_v49 = vld [vmem:[%s3972_s2 + $0x258] sm:$0xff]  ;;  %v2641_v52 = vld [vmem:[%s3972_s2 + $0x1c8] sm:$0xff]  ;;  %v2624_v53 = vld [vmem:[%s3972_s2 + $0x140] sm:$0xff] }
  0x1d   : > { %2756 = vmatpush.msra.mxu3 %v2607_v8  ;;  %394 = vmatpush.msra.mxu0 %v2607_v8  ;;  %v2658_v54 = vld [vmem:[%s3972_s2 + $0x250] sm:$0xff]  ;;  %v325_v55 = vld [vmem:[%s3972_s2 + $0x40] sm:$0xff]  ;;  %v2623_v57 = vld [vmem:[%s3972_s2 + $0x138] sm:$0xff] }
  0x1e   : > { %2757 = vmatpush.msra.mxu1 %v2606_v9  ;;  %2758 = vmatpush.msra.mxu2 %v2606_v9  ;;  %v2640_v56 = vld [vmem:[%s3972_s2 + $0x1c0] sm:$0xff]  ;;  %v324_v59 = vld [vmem:[%s3972_s2 + $0x38] sm:$0xff]  ;;  %v2657_v60 = vld [vmem:[%s3972_s2 + $0x248] sm:$0xff] }
  0x1f   : > { %2759 = vmatpush.msra.mxu3 %v2606_v9  ;;  %395 = vmatpush.msra.mxu0 %v2606_v9  ;;  %v335_v58 = vld [vmem:[%s2889_s26 + $0x22] sm:$0xff]  ;;  %v2639_v61 = vld [vmem:[%s3972_s2 + $0x1b8] sm:$0xff]  ;;  %v2622_v0 = vld [vmem:[%s3972_s2 + $0x130] sm:$0xff] }
  0x20   : > { %2760 = vmatpush.msra.mxu1 %v2605_v10  ;;  %2761 = vmatpush.msra.mxu2 %v2605_v10  ;;  %v345_v62 = vld [vmem:[%s2889_s26 + $0x72] sm:$0xff]  ;;  %v354_v63 = vld [vmem:[%s2889_s26 + $0xba] sm:$0xff]  ;;  %v363_v2 = vld [vmem:[%s2889_s26 + $0x102] sm:$0xff] }
  0x21   : > { %2762 = vmatpush.msra.mxu3 %v2605_v10  ;;  %396 = vmatpush.msra.mxu0 %v2605_v10  ;;  %v2656_v1 = vld [vmem:[%s3972_s2 + $0x240] sm:$0xff]  ;;  %v323_v3 = vld [vmem:[%s3972_s2 + $0x30] sm:$0xff]  ;;  %v2621_v5 = vld [vmem:[%s3972_s2 + $0x128] sm:$0xff] }
  0x22   : > { %2763 = vmatpush.msra.mxu1 %v2604_v11  ;;  %2764 = vmatpush.msra.mxu2 %v2604_v11  ;;  %v2638_v4 = vld [vmem:[%s3972_s2 + $0x1b0] sm:$0xff]  ;;  %v2655_v6 = vld [vmem:[%s3972_s2 + $0x238] sm:$0xff]  ;;  %v322_v7 = vld [vmem:[%s3972_s2 + $0x28] sm:$0xff] }
  0x23   : > { %2765 = vmatpush.msra.mxu3 %v2604_v11  ;;  %397 = vmatpush.msra.mxu0 %v2604_v11  ;;  %v2637_v8 = vld [vmem:[%s3972_s2 + $0x1a8] sm:$0xff]  ;;  %v2620_v9 = vld [vmem:[%s3972_s2 + $0x120] sm:$0xff] }
  0x24   : > { %2766 = vmatpush.msra.mxu1 %v2603_v12  ;;  %2767 = vmatpush.msra.mxu2 %v2603_v12  ;;  %v336_v10 = vld [vmem:[%s2889_s26 + $0x2a] sm:$0xff]  ;;  %v321_v11 = vld [vmem:[%s3972_s2 + $0x20] sm:$0xff] }
  0x25   : > { %2768 = vmatpush.msra.mxu3 %v2603_v12  ;;  %398 = vmatpush.msra.mxu0 %v2603_v12  ;;  %v2654_v12 = vld [vmem:[%s3972_s2 + $0x230] sm:$0xff] }
  0x26   : > { %2769 = vmatpush.msra.mxu1 %v2602_v13  ;;  %2770 = vmatpush.msra.mxu2 %v2602_v13 }
  0x27   : > { %2771 = vmatpush.msra.mxu3 %v2602_v13  ;;  %399 = vmatpush.msra.mxu0 %v2602_v13  ;;  %v2636_v13 = vld [vmem:[%s3972_s2 + $0x1a0] sm:$0xff] }
  0x28   : > { %2772 = vmatpush.msra.mxu1 %v2601_v14  ;;  %2773 = vmatpush.msra.mxu2 %v2601_v14 }
  0x29   : > { %2774 = vmatpush.msra.mxu3 %v2601_v14  ;;  %400 = vmatpush.msra.mxu0 %v2601_v14  ;;  %v346_v14 = vld [vmem:[%s2889_s26 + $0x7a] sm:$0xff] }
  0x2a   : > { %2775 = vmatpush.msra.mxu1 %v2600_v15  ;;  %2776 = vmatpush.msra.mxu2 %v2600_v15 }
  0x2b   : > { %429 = vmatmul.f32.vlgmr.msra.gmra.mxu1 %v342_v16  ;;  %456 = vmatmul.f32.vlgmr.msra.gmra.mxu2 %v351_v17  ;;  %v2619_v16 = vld [vmem:[%s3972_s2 + $0x118] sm:$0xff]  ;;  %v2653_v17 = vld [vmem:[%s3972_s2 + $0x228] sm:$0xff] }
  0x2c   : > { %689 = vmatpush.msrb.mxu2 %v2631_v18  ;;  %2777 = vmatpush.msra.mxu3 %v2600_v15  ;;  %v364_v18 = vld [vmem:[%s2889_s26 + $0x10a] sm:$0xff] }
  0x2d   : > { %483 = vmatmul.f32.vlgmr.msra.gmra.mxu3 %v360_v19  ;;  %511 = vmatpush.msrb.mxu1 %v332_v20  ;;  %v320_v19 = vld [vmem:[%s3972_s2 + $0x18] sm:$0xff] }
  0x2e   : > { %903 = vmatpush.msrb.mxu3 %v2647_v21  ;;  %690 = vmatpush.msrb.mxu2 %v2630_v22  ;;  %v2635_v20 = vld [vmem:[%s3972_s2 + $0x198] sm:$0xff]  ;;  %v2618_v21 = vld [vmem:[%s3972_s2 + $0x110] sm:$0xff]  ;;  %v2652_v22 = vld [vmem:[%s3972_s2 + $0x220] sm:$0xff] }
  0x2f   : > { %401 = vmatpush.msra.mxu0 %v2600_v15  ;;  %512 = vmatpush.msrb.mxu1 %v331_v23  ;;  %v355_v15 = vld [vmem:[%s2889_s26 + $0xc2] sm:$0xff]  ;;  %v319_v23 = vld [vmem:[%s3972_s2 + $0x10] sm:$0xff] }
  0x30   : > { %904 = vmatpush.msrb.mxu3 %v2646_v24  ;;  %691 = vmatpush.msrb.mxu2 %v2629_v25  ;;  %v2634_v24 = vld [vmem:[%s3972_s2 + $0x190] sm:$0xff]  ;;  %v2617_v25 = vld [vmem:[%s3972_s2 + $0x108] sm:$0xff] }
  0x31   : > { %402 = vmatmul.f32.vlgmr.msra.gmra.mxu0 %v333_v26  ;;  %513 = vmatpush.msrb.mxu1 %v330_v27  ;;  %v337_v26 = vld [vmem:[%s2889_s26 + $0x32] sm:$0xff]  ;;  %v318_v27 = vld [vmem:[%s3972_s2 + $0x8] sm:$0xff] }
  0x32   : > { %1117 = vmatpush.msrb.mxu0 %v2663_v28  ;;  %905 = vmatpush.msrb.mxu3 %v2645_v29  ;;  %v2651_v28 = vld [vmem:[%s3972_s2 + $0x218] sm:$0xff]  ;;  %v2633_v29 = vld [vmem:[%s3972_s2 + $0x188] sm:$0xff] }
  0x33   : > { %432 = vmatmul.f32.gmra.mxu1 %v343_v30  ;;  %459 = vmatmul.f32.gmra.mxu2 %v352_v31  ;;  %v347_v30 = vld [vmem:[%s2889_s26 + $0x82] sm:$0xff]  ;;  %v356_v31 = vld [vmem:[%s2889_s26 + $0xca] sm:$0xff] }
  0x34   : > { %692 = vmatpush.msrb.mxu2 %v2628_v32  ;;  %1118 = vmatpush.msrb.mxu0 %v2662_v33  ;;  %v2616_v32 = vld [vmem:[%s3972_s2 + $0x100] sm:$0xff]  ;;  %v2650_v33 = vld [vmem:[%s3972_s2 + $0x210] sm:$0xff] }
  0x35   : > { %486 = vmatmul.f32.gmra.mxu3 %v361_v34  ;;  %514 = vmatpush.msrb.mxu1 %v329_v35  ;;  %v365_v34 = vld [vmem:[%s2889_s26 + $0x112] sm:$0xff]  ;;  %v317_v35 = vld [vmem:[%s3972_s2] sm:$0xff] }
  0x36   : > { %906 = vmatpush.msrb.mxu3 %v2644_v36  ;;  %693 = vmatpush.msrb.mxu2 %v2627_v37  ;;  %v2632_v36 = vld [vmem:[%s3972_s2 + $0x180] sm:$0xff]  ;;  %v2695_v37 = vld [vmem:[%s3972_s2 + $0x378] sm:$0xff] }
  0x37   : > { %1119 = vmatpush.msrb.mxu0 %v2661_v38  ;;  %515 = vmatpush.msrb.mxu1 %v328_v39  ;;  %v2649_v38 = vld [vmem:[%s3972_s2 + $0x208] sm:$0xff]  ;;  %v2711_v39 = vld [vmem:[%s3972_s2 + $0x3f8] sm:$0xff] }
  0x38   : > { %907 = vmatpush.msrb.mxu3 %v2643_v40  ;;  %694 = vmatpush.msrb.mxu2 %v2626_v41  ;;  %v2679_v40 = vld [vmem:[%s3972_s2 + $0x2f8] sm:$0xff] }
  0x39   : > { %405 = vmatmul.f32.gmra.mxu0 %v334_v42  ;;  %516 = vmatpush.msrb.mxu1 %v327_v43  ;;  %v338_v41 = vld [vmem:[%s2889_s26 + $0x3a] sm:$0xff]  ;;  %v348_v43 = vld [vmem:[%s2889_s26 + $0x8a] sm:$0xff] }
  0x3a   : > { %1120 = vmatpush.msrb.mxu0 %v2660_v44  ;;  %908 = vmatpush.msrb.mxu3 %v2642_v45  ;;  %v2648_v42 = vld [vmem:[%s3972_s2 + $0x200] sm:$0xff]  ;;  %v357_v44 = vld [vmem:[%s2889_s26 + $0xd2] sm:$0xff] }
  0x3b   : > { %435 = vmatmul.f32.gmra.mxu1 %v344_v46  ;;  %462 = vmatmul.f32.gmra.mxu2 %v353_v47  ;;  %v366_v45 = vld [vmem:[%s2889_s26 + $0x11a] sm:$0xff]  ;;  %v339_v47 = vld [vmem:[%s2889_s26 + $0x42] sm:$0xff] }
  0x3c   : > { %695 = vmatpush.msrb.mxu2 %v2625_v48  ;;  %1121 = vmatpush.msrb.mxu0 %v2659_v49  ;;  %v2727_v46 = vld [vmem:[%s3972_s2 + $0x478] sm:$0xff] }
  0x3d   : > { %489 = vmatmul.f32.gmra.mxu3 %v362_v50  ;;  %517 = vmatpush.msrb.mxu1 %v326_v51  ;;  %v349_v48 = vld [vmem:[%s2889_s26 + $0x92] sm:$0xff]  ;;  %v358_v49 = vld [vmem:[%s2889_s26 + $0xda] sm:$0xff]  ;;  %v367_v50 = vld [vmem:[%s2889_s26 + $0x122] sm:$0xff] }
  0x3e   : > { %909 = vmatpush.msrb.mxu3 %v2641_v52  ;;  %696 = vmatpush.msrb.mxu2 %v2624_v53  ;;  %v2694_v51 = vld [vmem:[%s3972_s2 + $0x370] sm:$0xff] }
  0x3f   : > { %1122 = vmatpush.msrb.mxu0 %v2658_v54  ;;  %518 = vmatpush.msrb.mxu1 %v325_v55  ;;  %v2710_v52 = vld [vmem:[%s3972_s2 + $0x3f0] sm:$0xff]  ;;  %v350_v55 = vld [vmem:[%s2889_s26 + $0x9a] sm:$0xff] }
  0x40   : > { %910 = vmatpush.msrb.mxu3 %v2640_v56  ;;  %697 = vmatpush.msrb.mxu2 %v2623_v57  ;;  %v2678_v53 = vld [vmem:[%s3972_s2 + $0x2f0] sm:$0xff]  ;;  %v359_v56 = vld [vmem:[%s2889_s26 + $0xe2] sm:$0xff] }
  0x41   : > { %408 = vmatmul.f32.gmra.mxu0 %v335_v58  ;;  %519 = vmatpush.msrb.mxu1 %v324_v59  ;;  %v340_v54 = vld [vmem:[%s2889_s26 + $0x4a] sm:$0xff]  ;;  %v341_v59 = vld [vmem:[%s2889_s26 + $0x52] sm:$0xff] }
  0x42   : > { %1123 = vmatpush.msrb.mxu0 %v2657_v60  ;;  %911 = vmatpush.msrb.mxu3 %v2639_v61  ;;  %v368_v57 = vld [vmem:[%s2889_s26 + $0x12a] sm:$0xff]  ;;  %v636_v61 = vld [vmem:[%s2889_s26 + $0x13] sm:$0xff] }
  0x43   : > { %438 = vmatmul.f32.gmra.mxu1 %v345_v62  ;;  %465 = vmatmul.f32.gmra.mxu2 %v354_v63  ;;  %v2726_v58 = vld [vmem:[%s3972_s2 + $0x470] sm:$0xff]  ;;  %v850_v62 = vld [vmem:[%s2889_s26 + $0x23] sm:$0xff] }
  0x44   : > { %698 = vmatpush.msrb.mxu2 %v2622_v0  ;;  %1124 = vmatpush.msrb.mxu0 %v2656_v1  ;;  %v281_v60 = vld [vmem:[%s2889_s26 + $0x11] sm:$0xff]  ;;  %v2693_v63 = vld [vmem:[%s3972_s2 + $0x368] sm:$0xff] }
  0x45   : > { %492 = vmatmul.f32.gmra.mxu3 %v363_v2  ;;  %520 = vmatpush.msrb.mxu1 %v323_v3  ;;  %v2709_v0 = vld [vmem:[%s3972_s2 + $0x3e8] sm:$0xff]  ;;  %v282_v2 = vld [vmem:[%s2889_s26 + $0x19] sm:$0xff] }
  0x46   : > { %912 = vmatpush.msrb.mxu3 %v2638_v4  ;;  %699 = vmatpush.msrb.mxu2 %v2621_v5  ;;  %v1064_v1 = vld [vmem:[%s2889_s26 + $0x24] sm:$0xff]  ;;  %v637_v3 = vld [vmem:[%s2889_s26 + $0x1b] sm:$0xff] }
  0x47   : > { %1125 = vmatpush.msrb.mxu0 %v2655_v6  ;;  %521 = vmatpush.msrb.mxu1 %v322_v7  ;;  %v851_v4 = vld [vmem:[%s2889_s26 + $0x2b] sm:$0xff] }
  0x48   : > { %913 = vmatpush.msrb.mxu3 %v2637_v8  ;;  %700 = vmatpush.msrb.mxu2 %v2620_v9  ;;  %v2677_v5 = vld [vmem:[%s3972_s2 + $0x2e8] sm:$0xff]  ;;  %v852_v9 = vld [vmem:[%s2889_s26 + $0x33] sm:$0xff] }
  0x49   : > { %411 = vmatmul.f32.gmra.mxu0 %v336_v10  ;;  %522 = vmatpush.msrb.mxu1 %v321_v11  ;;  %v2725_v6 = vld [vmem:[%s3972_s2 + $0x468] sm:$0xff]  ;;  %v1066_v10 = vld [vmem:[%s2889_s26 + $0x34] sm:$0xff] }
  0x4a   : > { %1126 = vmatpush.msrb.mxu0 %v2654_v12  ;;  %914 = vmatpush.msrb.mxu3 %v2636_v13  ;;  %v1065_v7 = vld [vmem:[%s2889_s26 + $0x2c] sm:$0xff]  ;;  %v283_v8 = vld [vmem:[%s2889_s26 + $0x21] sm:$0xff] }
  0x4b   : > { %441 = vmatmul.f32.gmra.mxu1 %v346_v14  ;;  %468 = vmatmul.f32.gmra.mxu2 %v355_v15  ;;  %v284_v11 = vld [vmem:[%s2889_s26 + $0x29] sm:$0xff]  ;;  %v2692_v12 = vld [vmem:[%s3972_s2 + $0x360] sm:$0xff] }
  0x4c   : > { %701 = vmatpush.msrb.mxu2 %v2619_v16  ;;  %1127 = vmatpush.msrb.mxu0 %v2653_v17  ;;  %v853_v13 = vld [vmem:[%s2889_s26 + $0x3b] sm:$0xff]  ;;  %v285_v17 = vld [vmem:[%s2889_s26 + $0x31] sm:$0xff] }
  0x4d   : > { %495 = vmatmul.f32.gmra.mxu3 %v364_v18  ;;  %523 = vmatpush.msrb.mxu1 %v320_v19  ;;  %v2708_v14 = vld [vmem:[%s3972_s2 + $0x3e0] sm:$0xff] }
  0x4e   : > { %915 = vmatpush.msrb.mxu3 %v2635_v20  ;;  %702 = vmatpush.msrb.mxu2 %v2618_v21  ;;  %v2676_v15 = vld [vmem:[%s3972_s2 + $0x2e0] sm:$0xff] }
  0x4f   : > { %1128 = vmatpush.msrb.mxu0 %v2652_v22  ;;  %524 = vmatpush.msrb.mxu1 %v319_v23  ;;  %v1067_v16 = vld [vmem:[%s2889_s26 + $0x3c] sm:$0xff]  ;;  %v1068_v20 = vld [vmem:[%s2889_s26 + $0x44] sm:$0xff] }
  0x50   : > { %916 = vmatpush.msrb.mxu3 %v2634_v24  ;;  %703 = vmatpush.msrb.mxu2 %v2617_v25  ;;  %v854_v18 = vld [vmem:[%s2889_s26 + $0x43] sm:$0xff]  ;;  %v286_v21 = vld [vmem:[%s2889_s26 + $0x39] sm:$0xff]  ;;  %v855_v22 = vld [vmem:[%s2889_s26 + $0x4b] sm:$0xff] }
  0x51   : > { %414 = vmatmul.f32.gmra.mxu0 %v337_v26  ;;  %525 = vmatpush.msrb.mxu1 %v318_v27  ;;  %v2724_v19 = vld [vmem:[%s3972_s2 + $0x460] sm:$0xff]  ;;  %v2691_v23 = vld [vmem:[%s3972_s2 + $0x358] sm:$0xff]  ;;  %v1069_v25 = vld [vmem:[%s2889_s26 + $0x4c] sm:$0xff] }
  0x52   : > { %1129 = vmatpush.msrb.mxu0 %v2651_v28  ;;  %917 = vmatpush.msrb.mxu3 %v2633_v29  ;;  %v2707_v24 = vld [vmem:[%s3972_s2 + $0x3d8] sm:$0xff]  ;;  %v287_v27 = vld [vmem:[%s2889_s26 + $0x41] sm:$0xff] }
  0x53   : > { %444 = vmatmul.f32.gmra.mxu1 %v347_v30  ;;  %471 = vmatmul.f32.gmra.mxu2 %v356_v31  ;;  %v2675_v26 = vld [vmem:[%s3972_s2 + $0x2d8] sm:$0xff] }
  0x54   : > { %704 = vmatpush.msrb.mxu2 %v2616_v32  ;;  %1130 = vmatpush.msrb.mxu0 %v2650_v33  ;;  %v856_v28 = vld [vmem:[%s2889_s26 + $0x53] sm:$0xff]  ;;  %v288_v32 = vld [vmem:[%s2889_s26 + $0x49] sm:$0xff]  ;;  %v857_v33 = vld [vmem:[%s2889_s26 + $0x5b] sm:$0xff] }
  0x55   : > { %498 = vmatmul.f32.gmra.mxu3 %v365_v34  ;;  %526 = vmatpush.msrb.mxu1 %v317_v35  ;;  %v2723_v29 = vld [vmem:[%s3972_s2 + $0x458] sm:$0xff]  ;;  %v2690_v34 = vld [vmem:[%s3972_s2 + $0x350] sm:$0xff] }
  0x56   : > { %918 = vmatpush.msrb.mxu3 %v2632_v36  ;;  %1545 = vmatpush.msra.mxu2 %v2695_v37  ;;  %v1070_v30 = vld [vmem:[%s2889_s26 + $0x54] sm:$0xff]  ;;  %v1071_v37 = vld [vmem:[%s2889_s26 + $0x5c] sm:$0xff] }
  0x57   : > { %1131 = vmatpush.msrb.mxu0 %v2649_v38  ;;  %1331 = vmatpush.msra.mxu1 %v2679_v40  ;;  %v2706_v38 = vld [vmem:[%s3972_s2 + $0x3d0] sm:$0xff] }
  0x58   : > { %1759 = vmatpush.msra.mxu3 %v2711_v39  ;;  %1546 = vmatpush.msra.mxu2 %v2694_v51  ;;  %v859_v51 = vld [vmem:[%s2889_s26 + $0x6b] sm:$0xff] }
  0x59   : > { %417 = vmatmul.f32.gmra.mxu0 %v338_v41  ;;  %1332 = vmatpush.msra.mxu1 %v2678_v53  ;;  %v289_v41 = vld [vmem:[%s2889_s26 + $0x51] sm:$0xff] }
  0x5a   : > { %1132 = vmatpush.msrb.mxu0 %v2648_v42  ;;  %1760 = vmatpush.msra.mxu3 %v2710_v52  ;;  %v2674_v42 = vld [vmem:[%s3972_s2 + $0x2d0] sm:$0xff] }
  0x5b   : > { %447 = vmatmul.f32.gmra.mxu1 %v348_v43  ;;  %474 = vmatmul.f32.gmra.mxu2 %v357_v44  ;;  %v858_v43 = vld [vmem:[%s2889_s26 + $0x63] sm:$0xff] }
  0x5c   : > { %1973 = vmatpush.msra.mxu0 %v2727_v46  ;;  %1547 = vmatpush.msra.mxu2 %v2693_v63  ;;  %v1072_v46 = vld [vmem:[%s2889_s26 + $0x64] sm:$0xff] }
  0x5d   : > { %501 = vmatmul.f32.gmra.mxu3 %v366_v45  ;;  %1333 = vmatpush.msra.mxu1 %v2677_v5  ;;  %v861_v5 = vld [vmem:[%s2889_s26 + $0x7b] sm:$0xff] }
  0x5e   : > { %1974 = vmatpush.msra.mxu0 %v2726_v58  ;;  %1761 = vmatpush.msra.mxu3 %v2709_v0  ;;  %v291_v58 = vld [vmem:[%s2889_s26 + $0x61] sm:$0xff]  ;;  %v1074_v0 = vld [vmem:[%s2889_s26 + $0x74] sm:$0xff] }
  0x5f   : > { %1548 = vmatpush.msra.mxu2 %v2692_v12  ;;  %1334 = vmatpush.msra.mxu1 %v2676_v15  ;;  %v2688_v12 = vld [vmem:[%s3972_s2 + $0x340] sm:$0xff] }
  0x60   : > { %1975 = vmatpush.msra.mxu0 %v2725_v6  ;;  %1762 = vmatpush.msra.mxu3 %v2708_v14  ;;  %v2704_v14 = vld [vmem:[%s3972_s2 + $0x3c0] sm:$0xff] }
  0x61   : > { %420 = vmatmul.f32.gmra.mxu0 %v339_v47  ;;  %1549 = vmatpush.msra.mxu2 %v2691_v23  ;;  %v2722_v47 = vld [vmem:[%s3972_s2 + $0x450] sm:$0xff]  ;;  %v2672_v15 = vld [vmem:[%s3972_s2 + $0x2c0] sm:$0xff] }
  0x62   : > { %1976 = vmatpush.msra.mxu0 %v2724_v19  ;;  %1763 = vmatpush.msra.mxu3 %v2707_v24  ;;  %v2720_v23 = vld [vmem:[%s3972_s2 + $0x440] sm:$0xff] }
  0x63   : > { %450 = vmatmul.f32.gmra.mxu1 %v349_v48  ;;  %477 = vmatmul.f32.gmra.mxu2 %v358_v49 }
  0x64   : > { %1335 = vmatpush.msra.mxu1 %v2675_v26  ;;  %1977 = vmatpush.msra.mxu0 %v2723_v29  ;;  %v1077_v26 = vld [vmem:[%s2889_s26 + $0x8c] sm:$0xff]  ;;  %v295_v29 = vld [vmem:[%s2889_s26 + $0x81] sm:$0xff] }
  0x65   : > { %504 = vmatmul.f32.gmra.mxu3 %v367_v50  ;;  %1550 = vmatpush.msra.mxu2 %v2690_v34  ;;  %v290_v50 = vld [vmem:[%s2889_s26 + $0x59] sm:$0xff] }
  0x66   : > { %1764 = vmatpush.msra.mxu3 %v2706_v38  ;;  %1336 = vmatpush.msra.mxu1 %v2674_v42  ;;  %v1078_v38 = vld [vmem:[%s2889_s26 + $0x94] sm:$0xff] }
  0x67   : > { %1978 = vmatpush.msra.mxu0 %v2722_v47  ;;  %v865_v47 = vld [vmem:[%s2889_s26 + $0x9b] sm:$0xff] }
  0x69   : > { %423 = vmatmul.f32.gmra.mxu0 %v340_v54  ;;  %v1073_v54 = vld [vmem:[%s2889_s26 + $0x6c] sm:$0xff] }
  0x6b   : > { %453 = vmatmul.f32.gmra.mxu1 %v350_v55  ;;  %480 = vmatmul.f32.gmra.mxu2 %v359_v56  ;;  %v2689_v55 = vld [vmem:[%s3972_s2 + $0x348] sm:$0xff] }
  0x6c   : > { %1551 = vmatpush.msra.mxu2 %v2689_v55  ;;  %v1079_v55 = vld [vmem:[%s2889_s26 + $0x9c] sm:$0xff] }
  0x6d   : > { %507 = vmatmul.f32.gmra.mxu3 %v368_v57 }
  0x6e   : > { %1552 = vmatpush.msra.mxu2 %v2688_v12  ;;  %v2702_v12 = vld [vmem:[%s3972_s2 + $0x3b0] sm:$0xff] }
  0x71   : > { %426 = vmatmul.f32.gmra.mxu0 %v341_v59  ;;  %v2705_v59 = vld [vmem:[%s3972_s2 + $0x3c8] sm:$0xff] }
  0x72   : > { %1765 = vmatpush.msra.mxu3 %v2705_v59 }
  0x73   : > { %527 = vmatmul.f32.vlgmr.msrb.gmra.mxu1 %v281_v60  ;;  %705 = vmatmul.f32.vlgmr.msrb.gmra.mxu2 %v636_v61  ;;  %v860_v60 = vld [vmem:[%s2889_s26 + $0x73] sm:$0xff]  ;;  %v2673_v61 = vld [vmem:[%s3972_s2 + $0x2c8] sm:$0xff] }
  0x74   : > { %1337 = vmatpush.msra.mxu1 %v2673_v61  ;;  %1766 = vmatpush.msra.mxu3 %v2704_v14  ;;  %v866_v61 = vld [vmem:[%s2889_s26 + $0xa3] sm:$0xff] }
  0x75   : > { %919 = vmatmul.f32.vlgmr.msrb.gmra.mxu3 %v850_v62 }
  0x76   : > { %1338 = vmatpush.msra.mxu1 %v2672_v15  ;;  %v298_v15 = vld [vmem:[%s2889_s26 + $0x99] sm:$0xff] }
  0x79   : > { %1133 = vmatmul.f32.vlgmr.msrb.gmra.mxu0 %v1064_v1 }
  0x7b   : > { %530 = vmatmul.f32.gmra.mxu1 %v282_v2  ;;  %708 = vmatmul.f32.gmra.mxu2 %v637_v3  ;;  %v292_v3 = vld [vmem:[%s2889_s26 + $0x69] sm:$0xff] }
  0x7d   : > { %922 = vmatmul.f32.gmra.mxu3 %v851_v4 }
  0x81   : > { %1136 = vmatmul.f32.gmra.mxu0 %v1065_v7 }
  0x83   : > { %533 = vmatmul.f32.gmra.mxu1 %v283_v8  ;;  %711 = vmatmul.f32.gmra.mxu2 %v850_v62  ;;  %v1075_v8 = vld [vmem:[%s2889_s26 + $0x7c] sm:$0xff] }
  0x85   : > { %925 = vmatmul.f32.gmra.mxu3 %v852_v9 }
  0x89   : > { %1139 = vmatmul.f32.gmra.mxu0 %v1066_v10 }
  0x8b   : > { %536 = vmatmul.f32.gmra.mxu1 %v284_v11  ;;  %714 = vmatmul.f32.gmra.mxu2 %v851_v4  ;;  %v2721_v4 = vld [vmem:[%s3972_s2 + $0x448] sm:$0xff]  ;;  %v293_v11 = vld [vmem:[%s2889_s26 + $0x71] sm:$0xff] }
  0x8c   : > { %1979 = vmatpush.msra.mxu0 %v2721_v4 }
  0x8d   : > { %928 = vmatmul.f32.gmra.mxu3 %v853_v13 }
  0x8e   : > { %1980 = vmatpush.msra.mxu0 %v2720_v23 }
  0x91   : > { %1142 = vmatmul.f32.gmra.mxu0 %v1067_v16 }
  0x93   : > { %539 = vmatmul.f32.gmra.mxu1 %v285_v17  ;;  %717 = vmatmul.f32.gmra.mxu2 %v852_v9 }
  0x95   : > { %931 = vmatmul.f32.gmra.mxu3 %v854_v18 }
  0x99   : > { %1145 = vmatmul.f32.gmra.mxu0 %v1068_v20 }
  0x9b   : > { %542 = vmatmul.f32.gmra.mxu1 %v286_v21  ;;  %720 = vmatmul.f32.gmra.mxu2 %v853_v13  ;;  %v862_v13 = vld [vmem:[%s2889_s26 + $0x83] sm:$0xff]  ;;  %v294_v21 = vld [vmem:[%s2889_s26 + $0x79] sm:$0xff] }
  0x9d   : > { %934 = vmatmul.f32.gmra.mxu3 %v855_v22 }
  0xa1   : > { %1148 = vmatmul.f32.gmra.mxu0 %v1069_v25 }
  0xa3   : > { %545 = vmatmul.f32.gmra.mxu1 %v287_v27  ;;  %723 = vmatmul.f32.gmra.mxu2 %v854_v18  ;;  %v1076_v18 = vld [vmem:[%s2889_s26 + $0x84] sm:$0xff] }
  0xa5   : > { %937 = vmatmul.f32.gmra.mxu3 %v856_v28 }
  0xa8   : > { %v3205_v31 = vpop.f32.mrf.mxu1 }
  0xa9   : > { %1151 = vmatmul.f32.gmra.mxu0 %v1070_v30  ;;  %v864_v30 = vld [vmem:[%s2889_s26 + $0x93] sm:$0xff] }
  0xab   : > { %548 = vmatmul.f32.gmra.mxu1 %v288_v32  ;;  %726 = vmatmul.f32.gmra.mxu2 %v855_v22  ;;  %v863_v22 = vld [vmem:[%s2889_s26 + $0x8b] sm:$0xff]  ;;  %v2687_v32 = vld [vmem:[%s3972_s2 + $0x338] sm:$0xff] }
  0xac   : > { %1553 = vmatpush.msra.mxu2 %v2687_v32 }
  0xad   : > { %940 = vmatmul.f32.gmra.mxu3 %v857_v33 }
  0xae   : > { %v3212_v35 = vpop.f32.mrf.mxu2  ;;  %v3214_v36 = vpop.f32.mrf.mxu0 }
  0xb0   : > { %v3220_v39 = vpop.f32.mrf.mxu1  ;;  %v3222_v40 = vpop.f32.mrf.mxu3 }
  0xb1   : > { %1154 = vmatmul.f32.gmra.mxu0 %v1071_v37 }
  0xb3   : > { %551 = vmatmul.f32.gmra.mxu1 %v289_v41  ;;  %729 = vmatmul.f32.gmra.mxu2 %v856_v28  ;;  %v2671_v41 = vld [vmem:[%s3972_s2 + $0x2b8] sm:$0xff] }
  0xb4   : > { %1339 = vmatpush.msra.mxu1 %v2671_v41 }
  0xb5   : > { %943 = vmatmul.f32.gmra.mxu3 %v858_v43 }
  0xb6   : > { %v3229_v44 = vpop.f32.mrf.mxu2  ;;  %v3231_v45 = vpop.f32.mrf.mxu0 }
  0xb8   : > { %v3237_v48 = vpop.f32.mrf.mxu1  ;;  %v3239_v49 = vpop.f32.mrf.mxu3 }
  0xb9   : > { %1157 = vmatmul.f32.gmra.mxu0 %v1072_v46  ;;  %v296_v46 = vld [vmem:[%s2889_s26 + $0x89] sm:$0xff] }
  0xbb   : > { %554 = vmatmul.f32.gmra.mxu1 %v290_v50  ;;  %732 = vmatmul.f32.gmra.mxu2 %v857_v33  ;;  %v2703_v33 = vld [vmem:[%s3972_s2 + $0x3b8] sm:$0xff] }
  0xbc   : > { %1767 = vmatpush.msra.mxu3 %v2703_v33  ;;  %v2719_v50 = vld [vmem:[%s3972_s2 + $0x438] sm:$0xff]  ;;  %v2718_v33 = vld [vmem:[%s3972_s2 + $0x430] sm:$0xff] }
  0xbd   : > { %946 = vmatmul.f32.gmra.mxu3 %v859_v51  ;;  %1981 = vmatpush.msra.mxu0 %v2719_v50 }
  0xbe   : > { %v3243_v52 = vpop.f32.mrf.mxu2  ;;  %v3245_v53 = vpop.f32.mrf.mxu0  ;;  %1768 = vmatpush.msra.mxu3 %v2702_v12 }
  0xbf   : > { %1982 = vmatpush.msra.mxu0 %v2718_v33 }
  0xc0   : > { %v3251_v56 = vpop.f32.mrf.mxu1  ;;  %v3253_v57 = vpop.f32.mrf.mxu3 }
  0xc1   : > { %1160 = vmatmul.f32.gmra.mxu0 %v1073_v54 }
  0xc3   : > { %557 = vmatmul.f32.gmra.mxu1 %v291_v58  ;;  %735 = vmatmul.f32.gmra.mxu2 %v858_v43 }
  0xc5   : > { %949 = vmatmul.f32.gmra.mxu3 %v860_v60 }
  0xc6   : > { %v3263_v62 = vpop.f32.mrf.mxu2  ;;  %v3265_v63 = vpop.f32.mrf.mxu0 }
  0xc8   : > { %v3268_v1 = vpop.f32.mrf.mxu1  ;;  %v3270_v2 = vpop.f32.mrf.mxu3 }
  0xc9   : > { %1163 = vmatmul.f32.gmra.mxu0 %v1074_v0 }
  0xcb   : > { %560 = vmatmul.f32.gmra.mxu1 %v292_v3  ;;  %738 = vmatmul.f32.gmra.mxu2 %v859_v51  ;;  %v2686_v3 = vld [vmem:[%s3972_s2 + $0x330] sm:$0xff] }
  0xcc   : > { %1554 = vmatpush.msra.mxu2 %v2686_v3 }
  0xcd   : > { %952 = vmatmul.f32.gmra.mxu3 %v861_v5 }
  0xce   : > { %v3277_v6 = vpop.f32.mrf.mxu2  ;;  %v3279_v7 = vpop.f32.mrf.mxu0 }
  0xd0   : > { %v3282_v9 = vpop.f32.mrf.mxu1  ;;  %v3284_v10 = vpop.f32.mrf.mxu3 }
  0xd1   : > { %1166 = vmatmul.f32.gmra.mxu0 %v1075_v8  ;;  %v1080_v8 = vld [vmem:[%s2889_s26 + $0xa4] sm:$0xff] }
  0xd3   : > { %563 = vmatmul.f32.gmra.mxu1 %v293_v11  ;;  %741 = vmatmul.f32.gmra.mxu2 %v860_v60  ;;  %v297_v60 = vld [vmem:[%s2889_s26 + $0x91] sm:$0xff] }
  0xd5   : > { %955 = vmatmul.f32.gmra.mxu3 %v862_v13 }
  0xd6   : > { %v3297_v16 = vpop.f32.mrf.mxu2  ;;  %v3299_v17 = vpop.f32.mrf.mxu0 }
  0xd8   : > { %v3302_v19 = vpop.f32.mrf.mxu1  ;;  %v3304_v20 = vpop.f32.mrf.mxu3 }
  0xd9   : > { %1169 = vmatmul.f32.gmra.mxu0 %v1076_v18  ;;  %v2670_v18 = vld [vmem:[%s3972_s2 + $0x2b0] sm:$0xff] }
  0xda   : > { %1340 = vmatpush.msra.mxu1 %v2670_v18 }
  0xdb   : > { %566 = vmatmul.f32.gmra.mxu1 %v294_v21  ;;  %744 = vmatmul.f32.gmra.mxu2 %v861_v5  ;;  %v867_v21 = vld [vmem:[%s2889_s26 + $0xab] sm:$0xff] }
  0xdd   : > { %958 = vmatmul.f32.gmra.mxu3 %v863_v22 }
  0xde   : > { %v3311_v24 = vpop.f32.mrf.mxu2  ;;  %v3313_v25 = vpop.f32.mrf.mxu0 }
  0xe0   : > { %v3316_v27 = vpop.f32.mrf.mxu1  ;;  %v3318_v28 = vpop.f32.mrf.mxu3 }
  0xe1   : > { %1172 = vmatmul.f32.gmra.mxu0 %v1077_v26 }
  0xe3   : > { %569 = vmatmul.f32.gmra.mxu1 %v295_v29  ;;  %747 = vmatmul.f32.gmra.mxu2 %v862_v13 }
  0xe5   : > { %961 = vmatmul.f32.gmra.mxu3 %v864_v30 }
  0xe6   : > { %v3328_v34 = vpop.f32.mrf.mxu2  ;;  %v3330_v37 = vpop.f32.mrf.mxu0 }
  0xe8   : > { %v3336_v42 = vpop.f32.mrf.mxu1  ;;  %v3338_v43 = vpop.f32.mrf.mxu3 }
  0xe9   : > { %1175 = vmatmul.f32.gmra.mxu0 %v1078_v38 }
  0xeb   : > { %572 = vmatmul.f32.gmra.mxu1 %v296_v46  ;;  %750 = vmatmul.f32.gmra.mxu2 %v863_v22  ;;  %v299_v46 = vld [vmem:[%s2889_s26 + $0xa1] sm:$0xff] }
  0xed   : > { %964 = vmatmul.f32.gmra.mxu3 %v865_v47 }
  0xee   : > { %v3345_v51 = vpop.f32.mrf.mxu2  ;;  %v3347_v54 = vpop.f32.mrf.mxu0 }
  0xf0   : > { %v3350_v58 = vpop.f32.mrf.mxu3  ;;  %v528_v59 = vpop.f32.mrf.mxu1 }
  0xf1   : > { %1178 = vmatmul.f32.gmra.mxu0 %v1079_v55  ;;  %v529_v0 = vadd.f32 %v528_v59, %v3214_v36 }
  0xf3   : > { %575 = vmatmul.f32.gmra.mxu1 %v297_v60  ;;  %753 = vmatmul.f32.gmra.mxu2 %v864_v30  ;;  %v1081_v30 = vld [vmem:[%s2889_s26 + $0xac] sm:$0xff] }
  0xf5   : > { %967 = vmatmul.f32.gmra.mxu3 %v866_v61 }
  0xf6   : > { %v706_v4 = vpop.f32.mrf.mxu2  ;;  %v1134_v5 = vpop.f32.mrf.mxu0 }
  0xf7   : > { %v814_v11 = vadd.f32 %v706_v4, %v529_v0  ;;  %v1082_v0 = vld [vmem:[%s2889_s26 + $0xb4] sm:$0xff]  ;;  %v2685_v4 = vld [vmem:[%s3972_s2 + $0x328] sm:$0xff] }
  0xf8   : > { %v531_v13 = vpop.f32.mrf.mxu1  ;;  %v920_v14 = vpop.f32.mrf.mxu3  ;;  %1555 = vmatpush.msra.mxu2 %v2685_v4 }
  0xf9   : > { %v1028_v36 = vadd.f32 %v920_v14, %v814_v11  ;;  %1181 = vmatmul.f32.gmra.mxu0 %v1080_v8  ;;  %v532_v23 = vadd.f32 %v531_v13, %v3231_v45  ;;  %v300_v11 = vld [vmem:[%s2889_s26 + $0xa9] sm:$0xff] }
  0xfa   : > { %v2669_v14 = vld [vmem:[%s3972_s2 + $0x2a8] sm:$0xff] }
  0xfb   : > { %v3367_v22 = vadd.f32 %v1134_v5, %v1028_v36  ;;  %578 = vmatmul.f32.gmra.mxu1 %v298_v15  ;;  %756 = vmatmul.f32.gmra.mxu2 %v865_v47  ;;  %v868_v47 = vld [vmem:[%s2889_s26 + $0xb3] sm:$0xff] }
  0xfc   : > { %1341 = vmatpush.msra.mxu1 %v2669_v14 }
  0xfd   : > { %970 = vmatmul.f32.gmra.mxu3 %v867_v21 }
  0xfe   : > { %v709_v26 = vpop.f32.mrf.mxu2  ;;  %v1137_v29 = vpop.f32.mrf.mxu0 }
  0xff   : > { %v815_v32 = vadd.f32 %v709_v26, %v532_v23  ;;  %v1083_v23 = vld [vmem:[%s2889_s26 + $0xbc] sm:$0xff] }
 0x100   : > { %v534_v38 = vpop.f32.mrf.mxu1  ;;  %v923_v41 = vpop.f32.mrf.mxu3 }
 0x101   : > { %v1029_v50 = vadd.f32 %v923_v41, %v815_v32  ;;  %1184 = vmatmul.f32.gmra.mxu0 %v1081_v30  ;;  %v535_v45 = vadd.f32 %v534_v38, %v3245_v53  ;;  %v2701_v53 = vld [vmem:[%s3972_s2 + $0x3a8] sm:$0xff]  ;;  %v301_v32 = vld [vmem:[%s2889_s26 + $0xb1] sm:$0xff] }
 0x102   : > { %1769 = vmatpush.msra.mxu3 %v2701_v53  ;;  %v870_v38 = vld [vmem:[%s2889_s26 + $0xc3] sm:$0xff] }
 0x103   : > { %v3376_v55 = vadd.f32 %v1137_v29, %v1029_v50  ;;  %581 = vmatmul.f32.gmra.mxu1 %v299_v46  ;;  %759 = vmatmul.f32.gmra.mxu2 %v866_v61  ;;  %v869_v61 = vld [vmem:[%s2889_s26 + $0xbb] sm:$0xff] }
 0x105   : > { %973 = vmatmul.f32.gmra.mxu3 %v868_v47 }
 0x106   : > { %v712_v59 = vpop.f32.mrf.mxu2  ;;  %v1140_v60 = vpop.f32.mrf.mxu0 }
 0x107   : > { %v816_v3 = vadd.f32 %v712_v59, %v535_v45  ;;  %v1084_v45 = vld [vmem:[%s2889_s26 + $0xc4] sm:$0xff] }
 0x108   : > { %v537_v5 = vpop.f32.mrf.mxu1  ;;  %v926_v8 = vpop.f32.mrf.mxu3 }
 0x109   : > { %v1030_v12 = vadd.f32 %v926_v8, %v816_v3  ;;  %1187 = vmatmul.f32.gmra.mxu0 %v1082_v0  ;;  %v538_v15 = vadd.f32 %v537_v5, %v3265_v63  ;;  %v302_v3 = vld [vmem:[%s2889_s26 + $0xb9] sm:$0xff]  ;;  %v871_v8 = vld [vmem:[%s2889_s26 + $0xcb] sm:$0xff] }
 0x10a   : > { %v2684_v5 = vld [vmem:[%s3972_s2 + $0x320] sm:$0xff] }
 0x10b   : > { %v3388_v13 = vadd.f32 %v1140_v60, %v1030_v12  ;;  %584 = vmatmul.f32.gmra.mxu1 %v300_v11  ;;  %762 = vmatmul.f32.gmra.mxu2 %v867_v21  ;;  %v2717_v21 = vld [vmem:[%s3972_s2 + $0x428] sm:$0xff]  ;;  %v2668_v12 = vld [vmem:[%s3972_s2 + $0x2a0] sm:$0xff] }
 0x10c   : > { %1983 = vmatpush.msra.mxu0 %v2717_v21  ;;  %1556 = vmatpush.msra.mxu2 %v2684_v5 }
 0x10d   : > { %976 = vmatmul.f32.gmra.mxu3 %v869_v61  ;;  %1342 = vmatpush.msra.mxu1 %v2668_v12 }
 0x10e   : > { %v715_v36 = vpop.f32.mrf.mxu2  ;;  %v1143_v18 = vpop.f32.mrf.mxu0 }
 0x10f   : > { %v817_v26 = vadd.f32 %v715_v36, %v538_v15  ;;  %v1085_v15 = vld [vmem:[%s2889_s26 + $0xcc] sm:$0xff] }
 0x110   : > { %v540_v29 = vpop.f32.mrf.mxu1  ;;  %v929_v30 = vpop.f32.mrf.mxu3 }
 0x111   : > { %v1031_v33 = vadd.f32 %v929_v30, %v817_v26  ;;  %1190 = vmatmul.f32.gmra.mxu0 %v1083_v23  ;;  %v541_v41 = vadd.f32 %v540_v29, %v3279_v7  ;;  %v2700_v7 = vld [vmem:[%s3972_s2 + $0x3a0] sm:$0xff]  ;;  %v872_v29 = vld [vmem:[%s2889_s26 + $0xd3] sm:$0xff] }
 0x112   : > { %1770 = vmatpush.msra.mxu3 %v2700_v7  ;;  %v303_v23 = vld [vmem:[%s2889_s26 + $0xc1] sm:$0xff] }
 0x113   : > { %v3400_v63 = vadd.f32 %v1143_v18, %v1031_v33  ;;  %587 = vmatmul.f32.gmra.mxu1 %v301_v32  ;;  %765 = vmatmul.f32.gmra.mxu2 %v868_v47 }
 0x115   : > { %979 = vmatmul.f32.gmra.mxu3 %v870_v38 }
 0x116   : > { %v718_v46 = vpop.f32.mrf.mxu2  ;;  %v1146_v50 = vpop.f32.mrf.mxu0 }
 0x117   : > { %v818_v59 = vadd.f32 %v718_v46, %v541_v41  ;;  %v1086_v41 = vld [vmem:[%s2889_s26 + $0xd4] sm:$0xff] }
 0x118   : > { %v543_v60 = vpop.f32.mrf.mxu1  ;;  %v932_v0 = vpop.f32.mrf.mxu3 }
 0x119   : > { %v1032_v4 = vadd.f32 %v932_v0, %v818_v59  ;;  %1193 = vmatmul.f32.gmra.mxu0 %v1084_v45  ;;  %v544_v11 = vadd.f32 %v543_v60, %v3299_v17  ;;  %v2716_v17 = vld [vmem:[%s3972_s2 + $0x420] sm:$0xff]  ;;  %v304_v59 = vld [vmem:[%s2889_s26 + $0xc9] sm:$0xff] }
 0x11a   : > { %1984 = vmatpush.msra.mxu0 %v2716_v17  ;;  %v873_v0 = vld [vmem:[%s2889_s26 + $0xdb] sm:$0xff] }
 0x11b   : > { %v3409_v47 = vadd.f32 %v1146_v50, %v1032_v4  ;;  %590 = vmatmul.f32.gmra.mxu1 %v302_v3  ;;  %768 = vmatmul.f32.gmra.mxu2 %v869_v61  ;;  %v2699_v4 = vld [vmem:[%s3972_s2 + $0x398] sm:$0xff] }
 0x11c   : > { %1771 = vmatpush.msra.mxu3 %v2699_v4 }
 0x11d   : > { %982 = vmatmul.f32.gmra.mxu3 %v871_v8 }
 0x11e   : > { %v721_v53 = vpop.f32.mrf.mxu2  ;;  %v1149_v14 = vpop.f32.mrf.mxu0 }
 0x11f   : > { %v819_v36 = vadd.f32 %v721_v53, %v544_v11  ;;  %v1087_v11 = vld [vmem:[%s2889_s26 + $0xdc] sm:$0xff] }
 0x120   : > { %v546_v61 = vpop.f32.mrf.mxu1  ;;  %v935_v18 = vpop.f32.mrf.mxu3 }
 0x121   : > { %v1033_v26 = vadd.f32 %v935_v18, %v819_v36  ;;  %1196 = vmatmul.f32.gmra.mxu0 %v1085_v15  ;;  %v547_v32 = vadd.f32 %v546_v61, %v3313_v25  ;;  %v2683_v25 = vld [vmem:[%s3972_s2 + $0x318] sm:$0xff]  ;;  %v874_v36 = vld [vmem:[%s2889_s26 + $0xe3] sm:$0xff] }
 0x122   : > { %1557 = vmatpush.msra.mxu2 %v2683_v25  ;;  %v305_v15 = vld [vmem:[%s2889_s26 + $0xd1] sm:$0xff] }
 0x123   : > { %v3421_v30 = vadd.f32 %v1149_v14, %v1033_v26  ;;  %593 = vmatmul.f32.gmra.mxu1 %v303_v23  ;;  %771 = vmatmul.f32.gmra.mxu2 %v870_v38  ;;  %v2715_v23 = vld [vmem:[%s3972_s2 + $0x418] sm:$0xff] }
 0x124   : > { %1985 = vmatpush.msra.mxu0 %v2715_v23 }
 0x125   : > { %985 = vmatmul.f32.gmra.mxu3 %v872_v29 }
 0x126   : > { %v724_v33 = vpop.f32.mrf.mxu2  ;;  %v1152_v21 = vpop.f32.mrf.mxu0 }
 0x127   : > { %v820_v46 = vadd.f32 %v724_v33, %v547_v32  ;;  %v1088_v32 = vld [vmem:[%s2889_s26 + $0xe4] sm:$0xff] }
 0x128   : > { %v549_v50 = vpop.f32.mrf.mxu1  ;;  %v938_v45 = vpop.f32.mrf.mxu3 }
 0x129   : > { %v1034_v60 = vadd.f32 %v938_v45, %v820_v46  ;;  %1199 = vmatmul.f32.gmra.mxu0 %v1086_v41  ;;  %v550_v3 = vadd.f32 %v549_v50, %v3330_v37  ;;  %v306_v46 = vld [vmem:[%s2889_s26 + $0xd9] sm:$0xff] }
 0x12b   : > { %v3430_v38 = vadd.f32 %v1152_v21, %v1034_v60  ;;  %596 = vmatmul.f32.gmra.mxu1 %v304_v59  ;;  %774 = vmatmul.f32.gmra.mxu2 %v871_v8  ;;  %v2667_v8 = vld [vmem:[%s3972_s2 + $0x298] sm:$0xff]  ;;  %v2682_v59 = vld [vmem:[%s3972_s2 + $0x310] sm:$0xff] }
 0x12c   : > { %1343 = vmatpush.msra.mxu1 %v2667_v8  ;;  %1558 = vmatpush.msra.mxu2 %v2682_v59  ;;  %v876_v8 = vld [vmem:[%s2889_s26 + $0xf3] sm:$0xff] }
 0x12d   : > { %988 = vmatmul.f32.gmra.mxu3 %v873_v0 }
 0x12e   : > { %v727_v5 = vpop.f32.mrf.mxu2  ;;  %v1155_v7 = vpop.f32.mrf.mxu0 }
 0x12f   : > { %v821_v12 = vadd.f32 %v727_v5, %v550_v3  ;;  %v1089_v3 = vld [vmem:[%s2889_s26 + $0xec] sm:$0xff] }
 0x130   : > { %v552_v53 = vpop.f32.mrf.mxu1  ;;  %v941_v14 = vpop.f32.mrf.mxu3  ;;  %v2698_v5 = vld [vmem:[%s3972_s2 + $0x390] sm:$0xff] }
 0x131   : > { %v1035_v37 = vadd.f32 %v941_v14, %v821_v12  ;;  %1202 = vmatmul.f32.gmra.mxu0 %v1087_v11  ;;  %v553_v18 = vadd.f32 %v552_v53, %v3347_v54  ;;  %v307_v11 = vld [vmem:[%s2889_s26 + $0xe1] sm:$0xff]  ;;  %1772 = vmatpush.msra.mxu3 %v2698_v5  ;;  %v2666_v12 = vld [vmem:[%s3972_s2 + $0x290] sm:$0xff] }
 0x132   : > { %1344 = vmatpush.msra.mxu1 %v2666_v12 }
 0x133   : > { %v3445_v61 = vadd.f32 %v1155_v7, %v1035_v37  ;;  %599 = vmatmul.f32.gmra.mxu1 %v305_v15  ;;  %777 = vmatmul.f32.gmra.mxu2 %v872_v29  ;;  %v875_v29 = vld [vmem:[%s2889_s26 + $0xeb] sm:$0xff] }
 0x135   : > { %991 = vmatmul.f32.gmra.mxu3 %v874_v36 }
 0x136   : > { %v730_v26 = vpop.f32.mrf.mxu2  ;;  %v1158_v17 = vpop.f32.mrf.mxu0 }
 0x137   : > { %v822_v33 = vadd.f32 %v730_v26, %v553_v18  ;;  %v1090_v18 = vld [vmem:[%s2889_s26 + $0xf4] sm:$0xff] }
 0x138   : > { %v555_v21 = vpop.f32.mrf.mxu1  ;;  %v944_v41 = vpop.f32.mrf.mxu3  ;;  %v2714_v26 = vld [vmem:[%s3972_s2 + $0x410] sm:$0xff] }
 0x139   : > { %v1036_v50 = vadd.f32 %v944_v41, %v822_v33  ;;  %1205 = vmatmul.f32.gmra.mxu0 %v1088_v32  ;;  %v556_v54 = vadd.f32 %v555_v21, %v3205_v31  ;;  %v308_v33 = vld [vmem:[%s2889_s26 + $0xe9] sm:$0xff] }
 0x13a   : > { %1986 = vmatpush.msra.mxu0 %v2714_v26 }
 0x13b   : > { %v3454_v45 = vadd.f32 %v1158_v17, %v1036_v50  ;;  %602 = vmatmul.f32.gmra.mxu1 %v306_v46  ;;  %780 = vmatmul.f32.gmra.mxu2 %v873_v0 }
 0x13d   : > { %994 = vmatmul.f32.gmra.mxu3 %v875_v29 }
 0x13e   : > { %v733_v60 = vpop.f32.mrf.mxu2  ;;  %v1161_v25 = vpop.f32.mrf.mxu0 }
 0x13f   : > { %v823_v4 = vadd.f32 %v733_v60, %v556_v54  ;;  %v1091_v54 = vld [vmem:[%s2889_s26 + $0xfc] sm:$0xff]  ;;  %v2681_v60 = vld [vmem:[%s3972_s2 + $0x308] sm:$0xff] }
 0x140   : > { %v558_v7 = vpop.f32.mrf.mxu1  ;;  %v947_v0 = vpop.f32.mrf.mxu3  ;;  %1559 = vmatpush.msra.mxu2 %v2681_v60 }
 0x141   : > { %v1037_v31 = vadd.f32 %v947_v0, %v823_v4  ;;  %1208 = vmatmul.f32.gmra.mxu0 %v1089_v3  ;;  %v559_v14 = vadd.f32 %v558_v7, %v3220_v39  ;;  %v309_v4 = vld [vmem:[%s2889_s26 + $0xf1] sm:$0xff]  ;;  %v2665_v0 = vld [vmem:[%s3972_s2 + $0x288] sm:$0xff] }
 0x142   : > { %1345 = vmatpush.msra.mxu1 %v2665_v0 }
 0x143   : > { %v3469_v53 = vadd.f32 %v1161_v25, %v1037_v31  ;;  %605 = vmatmul.f32.gmra.mxu1 %v307_v11  ;;  %783 = vmatmul.f32.gmra.mxu2 %v874_v36  ;;  %v877_v36 = vld [vmem:[%s2889_s26 + $0xfb] sm:$0xff] }
 0x145   : > { %997 = vmatmul.f32.gmra.mxu3 %v876_v8 }
 0x146   : > { %v736_v15 = vpop.f32.mrf.mxu2  ;;  %v1164_v37 = vpop.f32.mrf.mxu0 }
 0x147   : > { %v824_v23 = vadd.f32 %v736_v15, %v559_v14  ;;  %v1092_v14 = vld [vmem:[%s2889_s26 + $0x104] sm:$0xff] }
 0x148   : > { %v561_v17 = vpop.f32.mrf.mxu1  ;;  %v950_v32 = vpop.f32.mrf.mxu3 }
 0x149   : > { %v1038_v21 = vadd.f32 %v950_v32, %v824_v23  ;;  %1211 = vmatmul.f32.gmra.mxu0 %v1090_v18  ;;  %v562_v39 = vadd.f32 %v561_v17, %v3237_v48  ;;  %v2697_v48 = vld [vmem:[%s3972_s2 + $0x388] sm:$0xff]  ;;  %v310_v23 = vld [vmem:[%s2889_s26 + $0xf9] sm:$0xff] }
 0x14a   : > { %1773 = vmatpush.msra.mxu3 %v2697_v48  ;;  %v879_v17 = vld [vmem:[%s2889_s26 + $0x10b] sm:$0xff] }
 0x14b   : > { %v3478_v41 = vadd.f32 %v1164_v37, %v1038_v21  ;;  %608 = vmatmul.f32.gmra.mxu1 %v308_v33  ;;  %786 = vmatmul.f32.gmra.mxu2 %v875_v29  ;;  %v878_v29 = vld [vmem:[%s2889_s26 + $0x103] sm:$0xff] }
 0x14d   : > { %1000 = vmatmul.f32.gmra.mxu3 %v877_v36 }
 0x14e   : > { %v739_v46 = vpop.f32.mrf.mxu2  ;;  %v1167_v50 = vpop.f32.mrf.mxu0 }
 0x14f   : > { %v825_v59 = vadd.f32 %v739_v46, %v562_v39  ;;  %v1093_v39 = vld [vmem:[%s2889_s26 + $0x10c] sm:$0xff] }
 0x150   : > { %v564_v25 = vpop.f32.mrf.mxu1  ;;  %v953_v3 = vpop.f32.mrf.mxu3 }
 0x151   : > { %v1039_v5 = vadd.f32 %v953_v3, %v825_v59  ;;  %1214 = vmatmul.f32.gmra.mxu0 %v1091_v54  ;;  %v565_v11 = vadd.f32 %v564_v25, %v3251_v56  ;;  %v311_v59 = vld [vmem:[%s2889_s26 + $0x101] sm:$0xff]  ;;  %v880_v3 = vld [vmem:[%s2889_s26 + $0x113] sm:$0xff] }
 0x152   : > { %v2680_v25 = vld [vmem:[%s3972_s2 + $0x300] sm:$0xff] }
 0x153   : > { %v3490_v7 = vadd.f32 %v1167_v50, %v1039_v5  ;;  %611 = vmatmul.f32.gmra.mxu1 %v309_v4  ;;  %789 = vmatmul.f32.gmra.mxu2 %v876_v8  ;;  %v2713_v8 = vld [vmem:[%s3972_s2 + $0x408] sm:$0xff]  ;;  %v2664_v5 = vld [vmem:[%s3972_s2 + $0x280] sm:$0xff] }
 0x154   : > { %1987 = vmatpush.msra.mxu0 %v2713_v8  ;;  %1560 = vmatpush.msra.mxu2 %v2680_v25  ;;  %v1096_v25 = vld [vmem:[%s2889_s26 + $0x124] sm:$0xff] }
 0x155   : > { %1003 = vmatmul.f32.gmra.mxu3 %v878_v29  ;;  %1346 = vmatpush.msra.mxu1 %v2664_v5 }
 0x156   : > { %v742_v31 = vpop.f32.mrf.mxu2  ;;  %v1170_v12 = vpop.f32.mrf.mxu0 }
 0x157   : > { %v826_v15 = vadd.f32 %v742_v31, %v565_v11  ;;  %v1094_v11 = vld [vmem:[%s2889_s26 + $0x114] sm:$0xff] }
 0x158   : > { %v567_v37 = vpop.f32.mrf.mxu1  ;;  %v956_v18 = vpop.f32.mrf.mxu3 }
 0x159   : > { %v1040_v26 = vadd.f32 %v956_v18, %v826_v15  ;;  %1217 = vmatmul.f32.gmra.mxu0 %v1092_v14  ;;  %v568_v32 = vadd.f32 %v567_v37, %v3268_v1  ;;  %v2696_v1 = vld [vmem:[%s3972_s2 + $0x380] sm:$0xff]  ;;  %v312_v14 = vld [vmem:[%s2889_s26 + $0x109] sm:$0xff] }
 0x15a   : > { %1774 = vmatpush.msra.mxu3 %v2696_v1  ;;  %v881_v37 = vld [vmem:[%s2889_s26 + $0x11b] sm:$0xff] }
 0x15b   : > { %v3502_v56 = vadd.f32 %v1170_v12, %v1040_v26  ;;  %614 = vmatmul.f32.gmra.mxu1 %v310_v23  ;;  %792 = vmatmul.f32.gmra.mxu2 %v877_v36 }
 0x15d   : > { %1006 = vmatmul.f32.gmra.mxu3 %v879_v17 }
 0x15e   : > { %v745_v33 = vpop.f32.mrf.mxu2  ;;  %v1173_v21 = vpop.f32.mrf.mxu0 }
 0x15f   : > { %v827_v46 = vadd.f32 %v745_v33, %v568_v32  ;;  %v1095_v32 = vld [vmem:[%s2889_s26 + $0x11c] sm:$0xff] }
 0x160   : > { %v570_v50 = vpop.f32.mrf.mxu1  ;;  %v959_v54 = vpop.f32.mrf.mxu3 }
 0x161   : > { %v1041_v60 = vadd.f32 %v959_v54, %v827_v46  ;;  %1220 = vmatmul.f32.gmra.mxu0 %v1093_v39  ;;  %v571_v4 = vadd.f32 %v570_v50, %v3282_v9  ;;  %v2712_v9 = vld [vmem:[%s3972_s2 + $0x400] sm:$0xff]  ;;  %v313_v46 = vld [vmem:[%s2889_s26 + $0x111] sm:$0xff] }
 0x162   : > { %1988 = vmatpush.msra.mxu0 %v2712_v9 }
 0x163   : > { %v3511_v36 = vadd.f32 %v1173_v21, %v1041_v60  ;;  %617 = vmatmul.f32.gmra.mxu1 %v311_v59  ;;  %795 = vmatmul.f32.gmra.mxu2 %v878_v29 }
 0x165   : > { %1009 = vmatmul.f32.gmra.mxu3 %v880_v3 }
 0x166   : > { %v748_v48 = vpop.f32.mrf.mxu2  ;;  %v1176_v0 = vpop.f32.mrf.mxu0 }
 0x167   : > { %v828_v31 = vadd.f32 %v748_v48, %v571_v4  ;;  %v314_v48 = vld [vmem:[%s2889_s26 + $0x119] sm:$0xff] }
 0x168   : > { %v573_v29 = vpop.f32.mrf.mxu1  ;;  %v962_v12 = vpop.f32.mrf.mxu3 }
 0x169   : > { %v1042_v15 = vadd.f32 %v962_v12, %v828_v31  ;;  %1223 = vmatmul.f32.gmra.mxu0 %v1094_v11  ;;  %v574_v23 = vadd.f32 %v573_v29, %v3302_v19  ;;  %v883_v11 = vld [vmem:[%s2889_s26 + $0x12b] sm:$0xff] }
 0x16a   : > { %v1097_v12 = vld [vmem:[%s2889_s26 + $0x12c] sm:$0xff] }
 0x16b   : > { %v3523_v18 = vadd.f32 %v1176_v0, %v1042_v15  ;;  %620 = vmatmul.f32.gmra.mxu1 %v312_v14  ;;  %798 = vmatmul.f32.gmra.mxu2 %v879_v17  ;;  %v882_v17 = vld [vmem:[%s2889_s26 + $0x123] sm:$0xff] }
 0x16d   : > { %1012 = vmatmul.f32.gmra.mxu3 %v881_v37 }
 0x16e   : > { %v751_v26 = vpop.f32.mrf.mxu2  ;;  %v1179_v8 = vpop.f32.mrf.mxu0 }
 0x16f   : > { %v829_v33 = vadd.f32 %v751_v26, %v574_v23  ;;  %v315_v23 = vld [vmem:[%s2889_s26 + $0x121] sm:$0xff] }
 0x170   : > { %v576_v21 = vpop.f32.mrf.mxu1  ;;  %v965_v39 = vpop.f32.mrf.mxu3 }
 0x171   : > { %v1043_v50 = vadd.f32 %v965_v39, %v829_v33  ;;  %1226 = vmatmul.f32.gmra.mxu0 %v1095_v32  ;;  %v577_v19 = vadd.f32 %v576_v21, %v3316_v27  ;;  %v1098_v21 = vld [vmem:[%s2889_s26 + $0x134] sm:$0xff]  ;;  %v209_v39 = vld [vmem:[%s3970_s0] sm:$0xff] }
 0x172   : > { %vm245_vm0 = vcmp.gt.f32.partialorder %v209_v39, 0.0 }
 0x173   : > { %v3532_v54 = vadd.f32 %v1179_v8, %v1043_v50  ;;  %623 = vmatmul.f32.gmra.mxu1 %v313_v46  ;;  %801 = vmatmul.f32.gmra.mxu2 %v880_v3  ;;  %v884_v8 = vld [vmem:[%s2889_s26 + $0x133] sm:$0xff] }
 0x175   : > { %1015 = vmatmul.f32.gmra.mxu3 %v882_v17 }
 0x176   : > { %v754_v59 = vpop.f32.mrf.mxu2  ;;  %v1182_v60 = vpop.f32.mrf.mxu0 }
 0x177   : > { %v830_v1 = vadd.f32 %v754_v59, %v577_v19  ;;  %v316_v59 = vld [vmem:[%s2889_s26 + $0x129] sm:$0xff] }
 0x178   : > { %v579_v4 = vpop.f32.mrf.mxu1  ;;  %v968_v5 = vpop.f32.mrf.mxu3 }
 0x179   : > { %v1044_v0 = vadd.f32 %v968_v5, %v830_v1  ;;  %1229 = vmatmul.f32.gmra.mxu0 %v1096_v25  ;;  %v580_v27 = vadd.f32 %v579_v4, %v3336_v42  ;;  %v885_v25 = vld [vmem:[%s2889_s26 + $0x13b] sm:$0xff] }
 0x17b   : > { %v3538_v31 = vadd.f32 %v1182_v60, %v1044_v0  ;;  %626 = vmatmul.f32.gmra.mxu1 %v314_v48  ;;  %804 = vmatmul.f32.gmra.mxu2 %v881_v37  ;;  %v2800_v60 = vmov 0   ;;  %v1099_v0 = vld [vmem:[%s2889_s26 + $0x13c] sm:$0xff] }
 0x17c   : > { %2789 = vset.pattern.permute.xlu0 %v2800_v60  ;;  %2790 = vset.pattern.permute.xlu1 %v2800_v60 }
 0x17d   : > { %1018 = vmatmul.f32.gmra.mxu3 %v883_v11  ;;  %2791 = vset.pattern.permute.xlu2 %v2800_v60 }
 0x17e   : > { %v757_v3 = vpop.f32.mrf.mxu2  ;;  %v1185_v29 = vpop.f32.mrf.mxu0 }
 0x17f   : > { %v831_v14 = vadd.f32 %v757_v3, %v580_v27  ;;  %v210_v27 = vld [vmem:[%s3970_s0 + $0x8] sm:$0xff] }
 0x180   : > { %v582_v15 = vpop.f32.mrf.mxu1  ;;  %v971_v9 = vpop.f32.mrf.mxu3  ;;  %vm246_vm1 = vcmp.gt.f32.partialorder %v210_v27, 0.0 }
 0x181   : > { %v1045_v26 = vadd.f32 %v971_v9, %v831_v14  ;;  %1232 = vmatmul.f32.gmra.mxu0 %v1097_v12  ;;  %v583_v37 = vadd.f32 %v582_v15, %v3212_v35  ;;  %v2134_v35 = vsel %vm245_vm0, 1, %v2800_v60  ;;  %v1278_v14 = vld [vmem:[%s2889_s26 + $0x25] sm:$0xff]  ;;  %v1492_v15 = vld [vmem:[%s2889_s26 + $0x35] sm:$0xff] }
 0x182   : > { %2171 = vperm.xlu0 %2789, %v2134_v35  }
 0x183   : > { %v3544_v32 = vadd.f32 %v1185_v29, %v1045_v26  ;;  %629 = vmatmul.f32.gmra.mxu1 %v315_v23  ;;  %807 = vmatmul.f32.gmra.mxu2 %v882_v17 }
 0x185   : > { %1021 = vmatmul.f32.gmra.mxu3 %v884_v8 }
 0x186   : > { %v760_v42 = vpop.f32.mrf.mxu2  ;;  %v1188_v33 = vpop.f32.mrf.mxu0 }
 0x187   : > { %v832_v46 = vadd.f32 %v760_v42, %v583_v37  ;;  %v1920_v42 = vld [vmem:[%s2889_s26 + $0x37] sm:$0xff] }
 0x188   : > { %v585_v50 = vpop.f32.mrf.mxu1  ;;  %v974_v19 = vpop.f32.mrf.mxu3 }
 0x189   : > { %v1046_v17 = vadd.f32 %v974_v19, %v832_v46  ;;  %1235 = vmatmul.f32.gmra.mxu0 %v1098_v21  ;;  %v586_v4 = vadd.f32 %v585_v50, %v3229_v44  ;;  %v1706_v44 = vld [vmem:[%s2889_s26 + $0x36] sm:$0xff]  ;;  %v1279_v50 = vld [vmem:[%s2889_s26 + $0x2d] sm:$0xff] }
 0x18a   : > { %v1493_v19 = vld [vmem:[%s2889_s26 + $0x3d] sm:$0xff] }
 0x18b   : > { %v3557_v1 = vadd.f32 %v1188_v33, %v1046_v17  ;;  %632 = vmatmul.f32.gmra.mxu1 %v316_v59  ;;  %810 = vmatmul.f32.gmra.mxu2 %v883_v11  ;;  %v2135_v11 = vsel %vm246_vm1, 1, %v2800_v60  ;;  %v211_v33 = vld [vmem:[%s3970_s0 + $0x10] sm:$0xff] }
 0x18c   : > { %2174 = vperm.xlu0 %2789, %v2135_v11   ;;  %vm247_vm2 = vcmp.gt.f32.partialorder %v211_v33, 0.0 }
 0x18d   : > { %1024 = vmatmul.f32.gmra.mxu3 %v885_v25  ;;  %v2136_v59 = vsel %vm247_vm2, 1, %v2800_v60 }
 0x18e   : > { %v763_v5 = vpop.f32.mrf.mxu2  ;;  %v1191_v48 = vpop.f32.mrf.mxu0  ;;  %2177 = vperm.xlu1 %2790, %v2136_v59  }
 0x18f   : > { %v833_v3 = vadd.f32 %v763_v5, %v586_v4 }
 0x190   : > { %v588_v29 = vpop.f32.mrf.mxu1  ;;  %v977_v12 = vpop.f32.mrf.mxu3 }
 0x191   : > { %v1047_v9 = vadd.f32 %v977_v12, %v833_v3  ;;  %1238 = vmatmul.f32.gmra.mxu0 %v1099_v0  ;;  %v589_v26 = vadd.f32 %v588_v29, %v3243_v52  ;;  %v1707_v52 = vld [vmem:[%s2889_s26 + $0x3e] sm:$0xff] }
 0x192   : > { %v212_v0 = vld [vmem:[%s3970_s0 + $0x18] sm:$0xff]  ;;  %v1494_v12 = vld [vmem:[%s2889_s26 + $0x45] sm:$0xff] }
 0x193   : > { %v3568_v23 = vadd.f32 %v1191_v48, %v1047_v9  ;;  %1347 = vmatmul.f32.vlgmr.msra.gmra.mxu1 %v1278_v14  ;;  %1561 = vmatmul.f32.vlgmr.msra.gmra.mxu2 %v1492_v15  ;;  %v1921_v48 = vld [vmem:[%s2889_s26 + $0x3f] sm:$0xff]  ;;  %vm248_vm3 = vcmp.gt.f32.partialorder %v212_v0, 0.0 }
 0x194   : > { %v2137_v14 = vsel %vm248_vm3, 1, %v2800_v60 }
 0x195   : > { %1775 = vmatmul.f32.vlgmr.msra.gmra.mxu3 %v1706_v44 }
 0x196   : > { %v766_v8 = vpop.f32.mrf.mxu2  ;;  %v1194_v37 = vpop.f32.mrf.mxu0  ;;  %2180 = vperm.xlu1 %2790, %v2137_v14   ;;  %v1924_v14 = vld [vmem:[%s2889_s26 + $0x57] sm:$0xff] }
 0x197   : > { %v834_v21 = vadd.f32 %v766_v8, %v589_v26 }
 0x198   : > { %v591_v39 = vpop.f32.mrf.mxu1  ;;  %v980_v46 = vpop.f32.mrf.mxu3 }
 0x199   : > { %v1048_v35 = vadd.f32 %v980_v46, %v834_v21  ;;  %1989 = vmatmul.f32.vlgmr.msra.gmra.mxu0 %v1920_v42  ;;  %v592_v25 = vadd.f32 %v591_v39, %v3263_v62  ;;  %v1708_v62 = vld [vmem:[%s2889_s26 + $0x46] sm:$0xff] }
 0x19a   : > { %v1495_v39 = vld [vmem:[%s2889_s26 + $0x4d] sm:$0xff] }
 0x19b   : > { %v3579_v17 = vadd.f32 %v1194_v37, %v1048_v35  ;;  %1350 = vmatmul.f32.gmra.mxu1 %v1279_v50  ;;  %1564 = vmatmul.f32.gmra.mxu2 %v1493_v19  ;;  %v1922_v37 = vld [vmem:[%s2889_s26 + $0x47] sm:$0xff] }
 0x19c   : > { %v1709_v50 = vld [vmem:[%s2889_s26 + $0x4e] sm:$0xff] }
 0x19d   : > { %1778 = vmatmul.f32.gmra.mxu3 %v1707_v52  ;;  %v1923_v52 = vld [vmem:[%s2889_s26 + $0x4f] sm:$0xff] }
 0x19e   : > { %v769_v4 = vpop.f32.mrf.mxu2  ;;  %v1197_v5 = vpop.f32.mrf.mxu0 }
 0x19f   : > { %v835_v27 = vadd.f32 %v769_v4, %v592_v25 }
 0x1a0   : > { %v594_v3 = vpop.f32.mrf.mxu1  ;;  %v983_v29 = vpop.f32.mrf.mxu3 }
 0x1a1   : > { %v1049_v11 = vadd.f32 %v983_v29, %v835_v27  ;;  %1992 = vmatmul.f32.gmra.mxu0 %v1921_v48  ;;  %v595_v44 = vadd.f32 %v594_v3, %v3277_v6  ;;  %v1496_v48 = vld [vmem:[%s2889_s26 + $0x55] sm:$0xff] }
 0x1a2   : > { %v1710_v27 = vld [vmem:[%s2889_s26 + $0x56] sm:$0xff] }
 0x1a3   : > { %v3589_v9 = vadd.f32 %v1197_v5, %v1049_v11  ;;  %1353 = vmatmul.f32.gmra.mxu1 %v1492_v15  ;;  %1567 = vmatmul.f32.gmra.mxu2 %v1494_v12  ;;  %v215_v11 = vld [vmem:[%s3970_s0 + $0x30] sm:$0xff] }
 0x1a4   : > { %vm251_vm4 = vcmp.gt.f32.partialorder %v215_v11, 0.0  ;;  %v214_v11 = vld [vmem:[%s3970_s0 + $0x28] sm:$0xff] }
 0x1a5   : > { %1781 = vmatmul.f32.gmra.mxu3 %v1708_v62  ;;  %vm250_vm7 = vcmp.gt.f32.partialorder %v214_v11, 0.0 }
 0x1a6   : > { %v772_v26 = vpop.f32.mrf.mxu2  ;;  %v1200_v8 = vpop.f32.mrf.mxu0 }
 0x1a7   : > { %v836_v42 = vadd.f32 %v772_v26, %v595_v44 }
 0x1a8   : > { %v597_v33 = vpop.f32.mrf.mxu1  ;;  %v986_v21 = vpop.f32.mrf.mxu3 }
 0x1a9   : > { %v1050_v46 = vadd.f32 %v986_v21, %v836_v42  ;;  %1995 = vmatmul.f32.gmra.mxu0 %v1922_v37  ;;  %v598_v6 = vadd.f32 %v597_v33, %v3297_v16 }
 0x1ab   : > { %v3595_v59 = vadd.f32 %v1200_v8, %v1050_v46  ;;  %1356 = vmatmul.f32.gmra.mxu1 %v1493_v19  ;;  %1570 = vmatmul.f32.gmra.mxu2 %v1495_v39  ;;  %v1497_v8 = vld [vmem:[%s2889_s26 + $0x5d] sm:$0xff] }
 0x1ad   : > { %1784 = vmatmul.f32.gmra.mxu3 %v1709_v50  ;;  %v1925_v50 = vld [vmem:[%s2889_s26 + $0x5f] sm:$0xff] }
 0x1ae   : > { %v775_v15 = vpop.f32.mrf.mxu2  ;;  %v1203_v35 = vpop.f32.mrf.mxu0 }
 0x1af   : > { %v837_v25 = vadd.f32 %v775_v15, %v598_v6  ;;  %v213_v6 = vld [vmem:[%s3970_s0 + $0x20] sm:$0xff]  ;;  %v216_v15 = vld [vmem:[%s3970_s0 + $0x38] sm:$0xff] }
 0x1b0   : > { %v600_v4 = vpop.f32.mrf.mxu1  ;;  %v989_v5 = vpop.f32.mrf.mxu3  ;;  %vm249_vm5 = vcmp.gt.f32.partialorder %v213_v6, 0.0  ;;  %vm252_vm6 = vcmp.gt.f32.partialorder %v216_v15, 0.0  ;;  %v218_v6 = vld [vmem:[%s3970_s0 + $0x48] sm:$0xff] }
 0x1b1   : > { %v1051_v0 = vadd.f32 %v989_v5, %v837_v25  ;;  %1998 = vmatmul.f32.gmra.mxu0 %v1923_v52  ;;  %v601_v16 = vadd.f32 %v600_v4, %v3311_v24  ;;  %v1711_v24 = vld [vmem:[%s2889_s26 + $0x5e] sm:$0xff]  ;;  %v2138_v25 = vsel %vm249_vm5, 1, %v2800_v60  ;;  %v2141_v4 = vsel %vm252_vm6, 1, %v2800_v60 }
 0x1b2   : > { %2183 = vperm.xlu2 %2791, %v2138_v25   ;;  %2192 = vperm.xlu1 %2790, %v2141_v4   ;;  %vm254_vm8 = vcmp.gt.f32.partialorder %v218_v6, 0.0 }
 0x1b3   : > { %v3601_v3 = vadd.f32 %v1203_v35, %v1051_v0  ;;  %1359 = vmatmul.f32.gmra.mxu1 %v1494_v12  ;;  %1573 = vmatmul.f32.gmra.mxu2 %v1496_v48  ;;  %v2140_v12 = vsel %vm251_vm4, 1, %v2800_v60  ;;  %v1712_v0 = vld [vmem:[%s2889_s26 + $0x66] sm:$0xff] }
 0x1b4   : > { %2189 = vperm.xlu0 %2789, %v2140_v12   ;;  %v1499_v12 = vld [vmem:[%s2889_s26 + $0x6d] sm:$0xff] }
 0x1b5   : > { %1787 = vmatmul.f32.gmra.mxu3 %v1710_v27 }
 0x1b6   : > { %v778_v19 = vpop.f32.mrf.mxu2  ;;  %v1206_v29 = vpop.f32.mrf.mxu0 }
 0x1b7   : > { %v838_v62 = vadd.f32 %v778_v19, %v601_v16 }
 0x1b8   : > { %v603_v44 = vpop.f32.mrf.mxu1  ;;  %v992_v26 = vpop.f32.mrf.mxu3 }
 0x1b9   : > { %v1052_v37 = vadd.f32 %v992_v26, %v838_v62  ;;  %2001 = vmatmul.f32.gmra.mxu0 %v1924_v14  ;;  %v604_v33 = vadd.f32 %v603_v44, %v3328_v34  ;;  %v1498_v34 = vld [vmem:[%s2889_s26 + $0x65] sm:$0xff] }
 0x1ba   : > { %v1926_v14 = vld [vmem:[%s2889_s26 + $0x67] sm:$0xff] }
 0x1bb   : > { %v3611_v42 = vadd.f32 %v1206_v29, %v1052_v37  ;;  %1362 = vmatmul.f32.gmra.mxu1 %v1495_v39  ;;  %1576 = vmatmul.f32.gmra.mxu2 %v1497_v8 }
 0x1bd   : > { %1790 = vmatmul.f32.gmra.mxu3 %v1711_v24 }
 0x1be   : > { %v781_v21 = vpop.f32.mrf.mxu2  ;;  %v1209_v46 = vpop.f32.mrf.mxu0 }
 0x1bf   : > { %v839_v35 = vadd.f32 %v781_v21, %v604_v33 }
 0x1c0   : > { %v606_v39 = vpop.f32.mrf.mxu1  ;;  %v995_v52 = vpop.f32.mrf.mxu3 }
 0x1c1   : > { %v1053_v5 = vadd.f32 %v995_v52, %v839_v35  ;;  %2004 = vmatmul.f32.gmra.mxu0 %v1925_v50  ;;  %v607_v16 = vadd.f32 %v606_v39, %v3345_v51  ;;  %v1713_v51 = vld [vmem:[%s2889_s26 + $0x6e] sm:$0xff] }
 0x1c2   : > { %v1927_v50 = vld [vmem:[%s2889_s26 + $0x6f] sm:$0xff] }
 0x1c3   : > { %v3625_v27 = vadd.f32 %v1209_v46, %v1053_v5  ;;  %1365 = vmatmul.f32.gmra.mxu1 %v1496_v48  ;;  %1579 = vmatmul.f32.gmra.mxu2 %v1498_v34  ;;  %v2139_v48 = vsel %vm250_vm7, 1, %v2800_v60  ;;  %v1500_v52 = vld [vmem:[%s2889_s26 + $0x75] sm:$0xff] }
 0x1c4   : > { %2186 = vperm.xlu2 %2791, %v2139_v48  }
 0x1c5   : > { %1793 = vmatmul.f32.gmra.mxu3 %v1712_v0 }
 0x1c6   : > { %v784_v19 = vpop.f32.mrf.mxu2  ;;  %v1212_v29 = vpop.f32.mrf.mxu0 }
 0x1c7   : > { %v840_v62 = vadd.f32 %v784_v19, %v607_v16  ;;  %v1928_v19 = vld [vmem:[%s2889_s26 + $0x77] sm:$0xff] }
 0x1c8   : > { %v609_v44 = vpop.f32.mrf.mxu1  ;;  %v998_v26 = vpop.f32.mrf.mxu3 }
 0x1c9   : > { %v1054_v37 = vadd.f32 %v998_v26, %v840_v62  ;;  %2007 = vmatmul.f32.gmra.mxu0 %v1926_v14  ;;  %v610_v33 = vadd.f32 %v609_v44, %v3222_v40  ;;  %v1714_v40 = vld [vmem:[%s2889_s26 + $0x76] sm:$0xff] }
 0x1ca   : > { %v1501_v44 = vld [vmem:[%s2889_s26 + $0x7d] sm:$0xff] }
 0x1cb   : > { %v3635_v24 = vadd.f32 %v1212_v29, %v1054_v37  ;;  %1368 = vmatmul.f32.gmra.mxu1 %v1497_v8  ;;  %1582 = vmatmul.f32.gmra.mxu2 %v1499_v12  ;;  %v2143_v8 = vsel %vm254_vm8, 1, %v2800_v60  ;;  %v219_v29 = vld [vmem:[%s3970_s0 + $0x50] sm:$0xff] }
 0x1cc   : > { %2198 = vperm.xlu0 %2789, %v2143_v8   ;;  %vm255_vm9 = vcmp.gt.f32.partialorder %v219_v29, 0.0 }
 0x1cd   : > { %1796 = vmatmul.f32.gmra.mxu3 %v1713_v51 }
 0x1ce   : > { %v787_v21 = vpop.f32.mrf.mxu2  ;;  %v1215_v46 = vpop.f32.mrf.mxu0 }
 0x1cf   : > { %v841_v15 = vadd.f32 %v787_v21, %v610_v33  ;;  %v1929_v21 = vld [vmem:[%s2889_s26 + $0x7f] sm:$0xff] }
 0x1d0   : > { %v612_v35 = vpop.f32.mrf.mxu1  ;;  %v1001_v39 = vpop.f32.mrf.mxu3 }
 0x1d1   : > { %v1055_v25 = vadd.f32 %v1001_v39, %v841_v15  ;;  %2010 = vmatmul.f32.gmra.mxu0 %v1927_v50  ;;  %v613_v5 = vadd.f32 %v612_v35, %v3239_v49  ;;  %v1715_v49 = vld [vmem:[%s2889_s26 + $0x7e] sm:$0xff] }
 0x1d2   : > { %v1502_v35 = vld [vmem:[%s2889_s26 + $0x85] sm:$0xff] }
 0x1d3   : > { %v3645_v4 = vadd.f32 %v1215_v46, %v1055_v25  ;;  %1371 = vmatmul.f32.gmra.mxu1 %v1498_v34  ;;  %1585 = vmatmul.f32.gmra.mxu2 %v1500_v52  ;;  %v2144_v34 = vsel %vm255_vm9, 1, %v2800_v60  ;;  %v217_v46 = vld [vmem:[%s3970_s0 + $0x40] sm:$0xff] }
 0x1d4   : > { %2201 = vperm.xlu1 %2790, %v2144_v34   ;;  %vm253_vm10 = vcmp.gt.f32.partialorder %v217_v46, 0.0 }
 0x1d5   : > { %1799 = vmatmul.f32.gmra.mxu3 %v1714_v40 }
 0x1d6   : > { %v790_v0 = vpop.f32.mrf.mxu2  ;;  %v1218_v16 = vpop.f32.mrf.mxu0 }
 0x1d7   : > { %v842_v14 = vadd.f32 %v790_v0, %v613_v5  ;;  %v1930_v0 = vld [vmem:[%s2889_s26 + $0x87] sm:$0xff] }
 0x1d8   : > { %v615_v11 = vpop.f32.mrf.mxu1  ;;  %v1004_v62 = vpop.f32.mrf.mxu3 }
 0x1d9   : > { %v1056_v26 = vadd.f32 %v1004_v62, %v842_v14  ;;  %2013 = vmatmul.f32.gmra.mxu0 %v1928_v19  ;;  %v616_v37 = vadd.f32 %v615_v11, %v3253_v57  ;;  %v1716_v57 = vld [vmem:[%s2889_s26 + $0x86] sm:$0xff] }
 0x1da   : > { %v1503_v11 = vld [vmem:[%s2889_s26 + $0x8d] sm:$0xff] }
 0x1db   : > { %v3655_v48 = vadd.f32 %v1218_v16, %v1056_v26  ;;  %1374 = vmatmul.f32.gmra.mxu1 %v1499_v12  ;;  %1588 = vmatmul.f32.gmra.mxu2 %v1501_v44  ;;  %v2142_v12 = vsel %vm253_vm10, 1, %v2800_v60  ;;  %v221_v16 = vld [vmem:[%s3970_s0 + $0x60] sm:$0xff] }
 0x1dc   : > { %2195 = vperm.xlu2 %2791, %v2142_v12   ;;  %vm257_vm11 = vcmp.gt.f32.partialorder %v221_v16, 0.0 }
 0x1dd   : > { %1802 = vmatmul.f32.gmra.mxu3 %v1715_v49 }
 0x1de   : > { %v793_v51 = vpop.f32.mrf.mxu2  ;;  %v1221_v33 = vpop.f32.mrf.mxu0 }
 0x1df   : > { %v843_v50 = vadd.f32 %v793_v51, %v616_v37  ;;  %v1931_v51 = vld [vmem:[%s2889_s26 + $0x8f] sm:$0xff] }
 0x1e0   : > { %v618_v6 = vpop.f32.mrf.mxu1  ;;  %v1007_v15 = vpop.f32.mrf.mxu3 }
 0x1e1   : > { %v1057_v39 = vadd.f32 %v1007_v15, %v843_v50  ;;  %2016 = vmatmul.f32.gmra.mxu0 %v1929_v21  ;;  %v619_v25 = vadd.f32 %v618_v6, %v3270_v2  ;;  %v1717_v2 = vld [vmem:[%s2889_s26 + $0x8e] sm:$0xff] }
 0x1e2   : > { %v1504_v6 = vld [vmem:[%s2889_s26 + $0x95] sm:$0xff] }
 0x1e3   : > { %v3665_v8 = vadd.f32 %v1221_v33, %v1057_v39  ;;  %1377 = vmatmul.f32.gmra.mxu1 %v1500_v52  ;;  %1591 = vmatmul.f32.gmra.mxu2 %v1502_v35  ;;  %v2146_v52 = vsel %vm257_vm11, 1, %v2800_v60  ;;  %v222_v33 = vld [vmem:[%s3970_s0 + $0x68] sm:$0xff] }
 0x1e4   : > { %2207 = vperm.xlu0 %2789, %v2146_v52   ;;  %vm258_vm12 = vcmp.gt.f32.partialorder %v222_v33, 0.0 }
 0x1e5   : > { %1805 = vmatmul.f32.gmra.mxu3 %v1716_v57 }
 0x1e6   : > { %v796_v40 = vpop.f32.mrf.mxu2  ;;  %v1224_v5 = vpop.f32.mrf.mxu0 }
 0x1e7   : > { %v844_v19 = vadd.f32 %v796_v40, %v619_v25  ;;  %v1932_v40 = vld [vmem:[%s2889_s26 + $0x97] sm:$0xff] }
 0x1e8   : > { %v621_v29 = vpop.f32.mrf.mxu1  ;;  %v1010_v14 = vpop.f32.mrf.mxu3 }
 0x1e9   : > { %v1058_v62 = vadd.f32 %v1010_v14, %v844_v19  ;;  %2019 = vmatmul.f32.gmra.mxu0 %v1930_v0  ;;  %v622_v26 = vadd.f32 %v621_v29, %v3284_v10  ;;  %v1718_v10 = vld [vmem:[%s2889_s26 + $0x96] sm:$0xff] }
 0x1ea   : > { %v1505_v29 = vld [vmem:[%s2889_s26 + $0x9d] sm:$0xff] }
 0x1eb   : > { %v3675_v34 = vadd.f32 %v1224_v5, %v1058_v62  ;;  %1380 = vmatmul.f32.gmra.mxu1 %v1501_v44  ;;  %1594 = vmatmul.f32.gmra.mxu2 %v1503_v11  ;;  %v2147_v44 = vsel %vm258_vm12, 1, %v2800_v60  ;;  %v220_v5 = vld [vmem:[%s3970_s0 + $0x58] sm:$0xff] }
 0x1ec   : > { %2210 = vperm.xlu1 %2790, %v2147_v44   ;;  %vm256_vm13 = vcmp.gt.f32.partialorder %v220_v5, 0.0 }
 0x1ed   : > { %1808 = vmatmul.f32.gmra.mxu3 %v1717_v2 }
 0x1ee   : > { %v799_v49 = vpop.f32.mrf.mxu2  ;;  %v1227_v37 = vpop.f32.mrf.mxu0 }
 0x1ef   : > { %v845_v21 = vadd.f32 %v799_v49, %v622_v26  ;;  %v1933_v49 = vld [vmem:[%s2889_s26 + $0x9f] sm:$0xff] }
 0x1f0   : > { %v624_v46 = vpop.f32.mrf.mxu1  ;;  %v1013_v50 = vpop.f32.mrf.mxu3 }
 0x1f1   : > { %v1059_v15 = vadd.f32 %v1013_v50, %v845_v21  ;;  %2022 = vmatmul.f32.gmra.mxu0 %v1931_v51  ;;  %v625_v39 = vadd.f32 %v624_v46, %v3304_v20  ;;  %v1719_v20 = vld [vmem:[%s2889_s26 + $0x9e] sm:$0xff] }
 0x1f2   : > { %v1506_v46 = vld [vmem:[%s2889_s26 + $0xa5] sm:$0xff] }
 0x1f3   : > { %v3685_v12 = vadd.f32 %v1227_v37, %v1059_v15  ;;  %1383 = vmatmul.f32.gmra.mxu1 %v1502_v35  ;;  %1597 = vmatmul.f32.gmra.mxu2 %v1504_v6  ;;  %v2145_v35 = vsel %vm256_vm13, 1, %v2800_v60  ;;  %v224_v37 = vld [vmem:[%s3970_s0 + $0x78] sm:$0xff] }
 0x1f4   : > { %2204 = vperm.xlu2 %2791, %v2145_v35   ;;  %vm260_vm14 = vcmp.gt.f32.partialorder %v224_v37, 0.0 }
 0x1f5   : > { %1811 = vmatmul.f32.gmra.mxu3 %v1718_v10 }
 0x1f6   : > { %v802_v57 = vpop.f32.mrf.mxu2  ;;  %v1230_v25 = vpop.f32.mrf.mxu0 }
 0x1f7   : > { %v846_v0 = vadd.f32 %v802_v57, %v625_v39  ;;  %v1934_v57 = vld [vmem:[%s2889_s26 + $0xa7] sm:$0xff] }
 0x1f8   : > { %v627_v16 = vpop.f32.mrf.mxu1  ;;  %v1016_v19 = vpop.f32.mrf.mxu3 }
 0x1f9   : > { %v1060_v14 = vadd.f32 %v1016_v19, %v846_v0  ;;  %2025 = vmatmul.f32.gmra.mxu0 %v1932_v40  ;;  %v628_v62 = vadd.f32 %v627_v16, %v3318_v28  ;;  %v1720_v28 = vld [vmem:[%s2889_s26 + $0xa6] sm:$0xff] }
 0x1fa   : > { %v1507_v16 = vld [vmem:[%s2889_s26 + $0xad] sm:$0xff] }
 0x1fb   : > { %v3695_v52 = vadd.f32 %v1230_v25, %v1060_v14  ;;  %1386 = vmatmul.f32.gmra.mxu1 %v1503_v11  ;;  %1600 = vmatmul.f32.gmra.mxu2 %v1505_v29  ;;  %v2149_v11 = vsel %vm260_vm14, 1, %v2800_v60  ;;  %v225_v25 = vld [vmem:[%s3970_s0 + $0x80] sm:$0xff] }
 0x1fc   : > { %2216 = vperm.xlu0 %2789, %v2149_v11   ;;  %vm261_vm15 = vcmp.gt.f32.partialorder %v225_v25, 0.0 }
 0x1fd   : > { %1814 = vmatmul.f32.gmra.mxu3 %v1719_v20 }
 0x1fe   : > { %v805_v2 = vpop.f32.mrf.mxu2  ;;  %v1233_v26 = vpop.f32.mrf.mxu0 }
 0x1ff   : > { %v847_v51 = vadd.f32 %v805_v2, %v628_v62  ;;  %v1935_v2 = vld [vmem:[%s2889_s26 + $0xaf] sm:$0xff] }
 0x200   : > { %v630_v33 = vpop.f32.mrf.mxu1  ;;  %v1019_v21 = vpop.f32.mrf.mxu3 }
 0x201   : > { %v1061_v50 = vadd.f32 %v1019_v21, %v847_v51  ;;  %2028 = vmatmul.f32.gmra.mxu0 %v1933_v49  ;;  %v631_v15 = vadd.f32 %v630_v33, %v3338_v43  ;;  %v1721_v43 = vld [vmem:[%s2889_s26 + $0xae] sm:$0xff] }
 0x202   : > { %v1508_v33 = vld [vmem:[%s2889_s26 + $0xb5] sm:$0xff] }
 0x203   : > { %v3705_v44 = vadd.f32 %v1233_v26, %v1061_v50  ;;  %1389 = vmatmul.f32.gmra.mxu1 %v1504_v6  ;;  %1603 = vmatmul.f32.gmra.mxu2 %v1506_v46  ;;  %v2150_v6 = vsel %vm261_vm15, 1, %v2800_v60  ;;  %v223_v26 = vld [vmem:[%s3970_s0 + $0x70] sm:$0xff] }
 0x204   : > { %2219 = vperm.xlu1 %2790, %v2150_v6   ;;  %vm259_vm0 = vcmp.gt.f32.partialorder %v223_v26, 0.0  ;;  %v1723_v6 = vld [vmem:[%s2889_s26 + $0xbe] sm:$0xff] }
 0x205   : > { %1817 = vmatmul.f32.gmra.mxu3 %v1720_v28  ;;  %v2172_v28 = vpop.permute.xlu0 %2171 }
 0x206   : > { %v808_v10 = vpop.f32.mrf.mxu2  ;;  %v1236_v39 = vpop.f32.mrf.mxu0  ;;  %vm2278_vm3 = vcmp.eq.s32.totalorder %v2172_v28, 1 }
 0x207   : > { %v848_v40 = vadd.f32 %v808_v10, %v631_v15 }
 0x208   : > { %v633_v5 = vpop.f32.mrf.mxu1  ;;  %v1022_v0 = vpop.f32.mrf.mxu3 }
 0x209   : > { %v1062_v19 = vadd.f32 %v1022_v0, %v848_v40  ;;  %2031 = vmatmul.f32.gmra.mxu0 %v1934_v57  ;;  %v634_v14 = vadd.f32 %v633_v5, %v3350_v58  ;;  %v1722_v58 = vld [vmem:[%s2889_s26 + $0xb6] sm:$0xff] }
 0x20a   : > { %v227_v57 = vld [vmem:[%s3970_s0 + $0x90] sm:$0xff]  ;;  %v3734_v0 = vld [vmem:[%s2889_s26 + $0xbd] sm:$0xff] }
 0x20b   : > { %v3715_v35 = vadd.f32 %v1236_v39, %v1062_v19  ;;  %1392 = vmatmul.f32.gmra.mxu1 %v1505_v29  ;;  %1606 = vmatmul.f32.gmra.mxu2 %v1507_v16  ;;  %v2148_v29 = vsel %vm259_vm0, 1, %v2800_v60  ;;  %v1936_v39 = vld [vmem:[%s2889_s26 + $0xb7] sm:$0xff]  ;;  %vm263_vm1 = vcmp.gt.f32.partialorder %v227_v57, 0.0 }
 0x20c   : > { %2213 = vperm.xlu2 %2791, %v2148_v29   ;;  %v3752_v29 = vld [vmem:[%s2889_s26 + $0xc5] sm:$0xff] }
 0x20d   : > { %1820 = vmatmul.f32.gmra.mxu3 %v1721_v43  ;;  %v228_v43 = vld [vmem:[%s3970_s0 + $0x98] sm:$0xff] }
 0x20e   : > { %v811_v20 = vpop.f32.mrf.mxu2  ;;  %v1239_v62 = vpop.f32.mrf.mxu0  ;;  %vm264_vm2 = vcmp.gt.f32.partialorder %v228_v43, 0.0 }
 0x20f   : > { %v849_v49 = vadd.f32 %v811_v20, %v634_v14  ;;  %v2153_v26 = vsel %vm264_vm2, 1, %v2800_v60 }
 0x210   : > { %v1025_v37 = vpop.f32.mrf.mxu3  ;;  %v1348_v51 = vpop.f32.mrf.mxu1  ;;  %2228 = vperm.xlu1 %2790, %v2153_v26  }
 0x211   : > { %v1063_v21 = vadd.f32 %v1025_v37, %v849_v49  ;;  %2034 = vmatmul.f32.gmra.mxu0 %v1935_v2  ;;  %v1456_v50 = vadd.f32 %v1348_v51, %v3367_v22  ;;  %v1937_v2 = vld [vmem:[%s2889_s26 + $0xbf] sm:$0xff] }
 0x213   : > { %v3725_v11 = vadd.f32 %v1239_v62, %v1063_v21  ;;  %1395 = vmatmul.f32.gmra.mxu1 %v1506_v46  ;;  %1609 = vmatmul.f32.gmra.mxu2 %v1508_v33  ;;  %v2152_v46 = vsel %vm263_vm1, 1, %v2800_v60 }
 0x214   : > { %2225 = vperm.xlu0 %2789, %v2152_v46  }
 0x215   : > { %1823 = vmatmul.f32.gmra.mxu3 %v1722_v58  ;;  %v230_v58 = vld [vmem:[%s3970_s0 + $0xa8] sm:$0xff] }
 0x216   : > { %v1562_v15 = vpop.f32.mrf.mxu2  ;;  %v1990_v10 = vpop.f32.mrf.mxu0  ;;  %vm266_vm5 = vcmp.gt.f32.partialorder %v230_v58, 0.0 }
 0x217   : > { %v1670_v25 = vadd.f32 %v1562_v15, %v1456_v50  ;;  %v2155_v28 = vsel %vm266_vm5, 1, %v2800_v60 }
 0x218   : > { %v1351_v40 = vpop.f32.mrf.mxu1  ;;  %v1776_v5 = vpop.f32.mrf.mxu3 }
 0x219   : > { %v1884_v22 = vadd.f32 %v1776_v5, %v1670_v25  ;;  %2037 = vmatmul.f32.gmra.mxu0 %v1936_v39  ;;  %v1457_v14 = vadd.f32 %v1351_v40, %v3376_v55  ;;  %v1724_v55 = vld [vmem:[%s2889_s26 + $0xc6] sm:$0xff]  ;;  %v2178_v25 = vpop.permute.xlu1 %2177 }
 0x21a   : > { %vm2280_vm8 = vcmp.eq.s32.totalorder %v2178_v25, 1 }
 0x21b   : > { %v2098_v19 = vadd.f32 %v1990_v10, %v1884_v22  ;;  %1398 = vmatmul.f32.gmra.mxu1 %v1507_v16  ;;  %1612 = vmatmul.f32.gmra.mxu2 %v3734_v0  ;;  %v2175_v16 = vpop.permute.xlu0 %2174  ;;  %v231_v10 = vld [vmem:[%s3970_s0 + $0xb0] sm:$0xff] }
 0x21c   : > { %vm2279_vm4 = vcmp.eq.s32.totalorder %v2175_v16, 1  ;;  %2234 = vperm.xlu0 %2789, %v2155_v28   ;;  %vm267_vm6 = vcmp.gt.f32.partialorder %v231_v10, 0.0  ;;  %v1725_v16 = vld [vmem:[%s2889_s26 + $0xce] sm:$0xff] }
 0x21d   : > { %2350 = vst [vmem:[%s3740_s24] sm:$0xff] %v2098_v19  ;;  %1826 = vmatmul.f32.gmra.mxu3 %v1723_v6  ;;  %v2314_v50 = vsel %vm2278_vm3, %v2098_v19, 0.0  ;;  %v1938_v6 = vld [vmem:[%s2889_s26 + $0xc7] sm:$0xff]  ;;  %v2156_v19 = vsel %vm267_vm6, 1, %v2800_v60 }
 0x21e   : > { %v1565_v20 = vpop.f32.mrf.mxu2  ;;  %v1993_v62 = vpop.f32.mrf.mxu0  ;;  %2237 = vperm.xlu1 %2790, %v2156_v19   ;;  %v236_v19 = vld [vmem:[%s3970_s0 + $0xd8] sm:$0xff] }
 0x21f   : > { %v1671_v49 = vadd.f32 %v1565_v20, %v1457_v14  ;;  %vm272_vm12 = vcmp.gt.f32.partialorder %v236_v19, 0.0 }
 0x220   : > { %v1354_v37 = vpop.f32.mrf.mxu1  ;;  %v1779_v51 = vpop.f32.mrf.mxu3 }
 0x221   : > { %v1885_v21 = vadd.f32 %v1779_v51, %v1671_v49  ;;  %2040 = vmatmul.f32.gmra.mxu0 %v1937_v2  ;;  %v1458_v39 = vadd.f32 %v1354_v37, %v3388_v13  ;;  %v226_v13 = vld [vmem:[%s3970_s0 + $0x88] sm:$0xff]  ;;  %v233_v37 = vld [vmem:[%s3970_s0 + $0xc0] sm:$0xff] }
 0x222   : > { %vm262_vm7 = vcmp.gt.f32.partialorder %v226_v13, 0.0  ;;  %v3771_v2 = vld [vmem:[%s2889_s26 + $0xcd] sm:$0xff]  ;;  %vm269_vm9 = vcmp.gt.f32.partialorder %v233_v37, 0.0 }
 0x223   : > { %v2099_v15 = vadd.f32 %v1993_v62, %v1885_v21  ;;  %1401 = vmatmul.f32.gmra.mxu1 %v1508_v33  ;;  %1615 = vmatmul.f32.gmra.mxu2 %v3752_v29  ;;  %v2428_v33 = vmul.f32 %v2314_v50, %v2314_v50  ;;  %v2151_v26 = vsel %vm262_vm7, 1, %v2800_v60  ;;  %v2158_v21 = vsel %vm269_vm9, 1, %v2800_v60 }
 0x224   : > { %2222 = vperm.xlu2 %2791, %v2151_v26   ;;  %2243 = vperm.xlu0 %2789, %v2158_v21   ;;  %v2184_v26 = vpop.permute.xlu2 %2183 }
 0x225   : > { %2351 = vst [vmem:[%s3740_s24 + $0x8] sm:$0xff] %v2099_v15  ;;  %v2315_v57 = vsel %vm2279_vm4, %v2099_v15, 0.0  ;;  %1829 = vmatmul.f32.gmra.mxu3 %v1724_v55  ;;  %v234_v55 = vld [vmem:[%s3970_s0 + $0xc8] sm:$0xff]  ;;  %vm2282_vm15 = vcmp.eq.s32.totalorder %v2184_v26, 1 }
 0x226   : > { %v2386_v40 = vadd.f32 %v2315_v57, %v2314_v50  ;;  %v2429_v5 = vmul.f32 %v2315_v57, %v2315_v57  ;;  %v1568_v46 = vpop.f32.mrf.mxu2  ;;  %v1996_v22 = vpop.f32.mrf.mxu0  ;;  %vm270_vm10 = vcmp.gt.f32.partialorder %v234_v55, 0.0  ;;  %v229_v55 = vld [vmem:[%s3970_s0 + $0xa0] sm:$0xff] }
 0x227   : > { %v1672_v43 = vadd.f32 %v1568_v46, %v1458_v39  ;;  %v1939_v39 = vld [vmem:[%s2889_s26 + $0xcf] sm:$0xff]  ;;  %v2159_v57 = vsel %vm270_vm10, 1, %v2800_v60  ;;  %vm265_vm14 = vcmp.gt.f32.partialorder %v229_v55, 0.0 }
 0x228   : > { %v2464_v14 = vadd.f32 %v2429_v5, %v2428_v33  ;;  %v1357_v20 = vpop.f32.mrf.mxu1  ;;  %v1782_v62 = vpop.f32.mrf.mxu3  ;;  %2246 = vperm.xlu1 %2790, %v2159_v57   ;;  %v239_v57 = vld [vmem:[%s3970_s0 + $0xf0] sm:$0xff] }
 0x229   : > { %v1886_v49 = vadd.f32 %v1782_v62, %v1672_v43  ;;  %2043 = vmatmul.f32.gmra.mxu0 %v1938_v6  ;;  %v1459_v58 = vadd.f32 %v1357_v20, %v3400_v63  ;;  %v2181_v33 = vpop.permute.xlu1 %2180  ;;  %v2161_v43 = vsel %vm272_vm12, 1, %v2800_v60  ;;  %vm275_vm0 = vcmp.gt.f32.partialorder %v239_v57, 0.0  ;;  %v1942_v57 = vld [vmem:[%s2889_s26 + $0xe7] sm:$0xff] }
 0x22a   : > { %vm2281_vm11 = vcmp.eq.s32.totalorder %v2181_v33, 1  ;;  %v2164_v33 = vsel %vm275_vm0, 1, %v2800_v60 }
 0x22b   : > { %v2100_v51 = vadd.f32 %v1996_v22, %v1886_v49  ;;  %1404 = vmatmul.f32.gmra.mxu1 %v3734_v0  ;;  %1618 = vmatmul.f32.gmra.mxu2 %v3771_v2  ;;  %v3789_v22 = vld [vmem:[%s2889_s26 + $0xd5] sm:$0xff] }
 0x22c   : > { %2252 = vperm.xlu0 %2789, %v2161_v43  }
 0x22d   : > { %2352 = vst [vmem:[%s3740_s24 + $0x10] sm:$0xff] %v2100_v51  ;;  %v2316_v50 = vsel %vm2280_vm8, %v2100_v51, 0.0  ;;  %1832 = vmatmul.f32.gmra.mxu3 %v1725_v16  ;;  %v1940_v51 = vld [vmem:[%s2889_s26 + $0xd7] sm:$0xff] }
 0x22e   : > { %v2387_v15 = vadd.f32 %v2386_v40, %v2316_v50  ;;  %v2430_v0 = vmul.f32 %v2316_v50, %v2316_v50  ;;  %v1571_v28 = vpop.f32.mrf.mxu2  ;;  %v1999_v10 = vpop.f32.mrf.mxu0  ;;  %v1726_v40 = vld [vmem:[%s2889_s26 + $0xd6] sm:$0xff] }
 0x22f   : > { %v1673_v25 = vadd.f32 %v1571_v28, %v1459_v58  ;;  %v3809_v28 = vld [vmem:[%s2889_s26 + $0xdd] sm:$0xff] }
 0x230   : > { %v2465_v5 = vadd.f32 %v2464_v14, %v2430_v0  ;;  %v1360_v63 = vpop.f32.mrf.mxu1  ;;  %v1785_v46 = vpop.f32.mrf.mxu3  ;;  %v237_v14 = vld [vmem:[%s3970_s0 + $0xe0] sm:$0xff] }
 0x231   : > { %v1887_v6 = vadd.f32 %v1785_v46, %v1673_v25  ;;  %2046 = vmatmul.f32.gmra.mxu0 %v1939_v39  ;;  %v1460_v20 = vadd.f32 %v1360_v63, %v3409_v47  ;;  %vm273_vm13 = vcmp.gt.f32.partialorder %v237_v14, 0.0  ;;  %v1727_v39 = vld [vmem:[%s2889_s26 + $0xde] sm:$0xff] }
 0x232   : > { %v2162_v21 = vsel %vm273_vm13, 1, %v2800_v60  ;;  %v232_v14 = vld [vmem:[%s3970_s0 + $0xb8] sm:$0xff] }
 0x233   : > { %v2101_v13 = vadd.f32 %v1999_v10, %v1887_v6  ;;  %1407 = vmatmul.f32.gmra.mxu1 %v3752_v29  ;;  %1621 = vmatmul.f32.gmra.mxu2 %v3789_v22  ;;  %vm268_vm2 = vcmp.gt.f32.partialorder %v232_v14, 0.0 }
 0x234   : > { %2255 = vperm.xlu1 %2790, %v2162_v21   ;;  %2261 = vperm.xlu0 %2789, %v2164_v33   ;;  %v242_v21 = vld [vmem:[%s3970_s0 + $0x108] sm:$0xff]  ;;  %v235_v33 = vld [vmem:[%s3970_s0 + $0xd0] sm:$0xff] }
 0x235   : > { %2353 = vst [vmem:[%s3740_s24 + $0x18] sm:$0xff] %v2101_v13  ;;  %v2317_v62 = vsel %vm2281_vm11, %v2101_v13, 0.0  ;;  %1835 = vmatmul.f32.gmra.mxu3 %v1726_v40  ;;  %v1941_v13 = vld [vmem:[%s2889_s26 + $0xdf] sm:$0xff]  ;;  %vm278_vm4 = vcmp.gt.f32.partialorder %v242_v21, 0.0  ;;  %vm271_vm6 = vcmp.gt.f32.partialorder %v235_v33, 0.0  ;;  %v2193_v21 = vpop.permute.xlu1 %2192 }
 0x236   : > { %v2388_v29 = vadd.f32 %v2387_v15, %v2317_v62  ;;  %v2431_v49 = vmul.f32 %v2317_v62, %v2317_v62  ;;  %v1574_v16 = vpop.f32.mrf.mxu2  ;;  %v2002_v37 = vpop.f32.mrf.mxu0  ;;  %v2154_v15 = vsel %vm265_vm14, 1, %v2800_v60  ;;  %vm2285_vm9 = vcmp.eq.s32.totalorder %v2193_v21, 1 }
 0x237   : > { %v1674_v47 = vadd.f32 %v1574_v16, %v1460_v20  ;;  %2231 = vperm.xlu2 %2791, %v2154_v15   ;;  %v2157_v16 = vsel %vm268_vm2, 1, %v2800_v60 }
 0x238   : > { %v2466_v58 = vadd.f32 %v2465_v5, %v2431_v49  ;;  %v1363_v50 = vpop.f32.mrf.mxu1  ;;  %v1788_v0 = vpop.f32.mrf.mxu3  ;;  %v240_v5 = vld [vmem:[%s3970_s0 + $0xf8] sm:$0xff] }
 0x239   : > { %v1888_v10 = vadd.f32 %v1788_v0, %v1674_v47  ;;  %2049 = vmatmul.f32.gmra.mxu0 %v1940_v51  ;;  %v1461_v63 = vadd.f32 %v1363_v50, %v3421_v30  ;;  %vm276_vm1 = vcmp.gt.f32.partialorder %v240_v5, 0.0  ;;  %v2187_v30 = vpop.permute.xlu2 %2186  ;;  %v1728_v51 = vld [vmem:[%s2889_s26 + $0xe6] sm:$0xff]  ;;  %v2167_v47 = vsel %vm278_vm4, 1, %v2800_v60 }
 0x23a   : > { %v2165_v43 = vsel %vm276_vm1, 1, %v2800_v60  ;;  %vm2283_vm3 = vcmp.eq.s32.totalorder %v2187_v30, 1 }
 0x23b   : > { %v2102_v25 = vadd.f32 %v2002_v37, %v1888_v10  ;;  %1410 = vmatmul.f32.gmra.mxu1 %v3771_v2  ;;  %1624 = vmatmul.f32.gmra.mxu2 %v3809_v28 }
 0x23c   : > { %2264 = vperm.xlu1 %2790, %v2165_v43   ;;  %2270 = vperm.xlu0 %2789, %v2167_v47   ;;  %v1516_v47 = vld [vmem:[%s2889_s26 + $0xf5] sm:$0xff] }
 0x23d   : > { %2354 = vst [vmem:[%s3740_s24 + $0x20] sm:$0xff] %v2102_v25  ;;  %v2318_v46 = vsel %vm2282_vm15, %v2102_v25, 0.0  ;;  %1838 = vmatmul.f32.gmra.mxu3 %v1727_v39 }
 0x23e   : > { %v2389_v6 = vadd.f32 %v2388_v29, %v2318_v46  ;;  %v2432_v40 = vmul.f32 %v2318_v46, %v2318_v46  ;;  %v1577_v2 = vpop.f32.mrf.mxu2  ;;  %v2005_v19 = vpop.f32.mrf.mxu0  ;;  %v3830_v29 = vld [vmem:[%s2889_s26 + $0xe5] sm:$0xff] }
 0x23f   : > { %v1675_v20 = vadd.f32 %v1577_v2, %v1461_v63  ;;  %2240 = vperm.xlu2 %2791, %v2157_v16   ;;  %v2160_v2 = vsel %vm271_vm6, 1, %v2800_v60  ;;  %v1943_v16 = vld [vmem:[%s2889_s26 + $0xef] sm:$0xff] }
 0x240   : > { %v2467_v62 = vadd.f32 %v2466_v58, %v2432_v40  ;;  %v1366_v26 = vpop.f32.mrf.mxu1  ;;  %v1791_v49 = vpop.f32.mrf.mxu3  ;;  %v243_v58 = vld [vmem:[%s3970_s0 + $0x110] sm:$0xff] }
 0x241   : > { %v1889_v37 = vadd.f32 %v1791_v49, %v1675_v20  ;;  %2052 = vmatmul.f32.gmra.mxu0 %v1941_v13  ;;  %v1462_v50 = vadd.f32 %v1366_v26, %v3430_v38  ;;  %vm279_vm5 = vcmp.gt.f32.partialorder %v243_v58, 0.0  ;;  %v2190_v38 = vpop.permute.xlu0 %2189  ;;  %v1729_v13 = vld [vmem:[%s2889_s26 + $0xee] sm:$0xff] }
 0x242   : > { %v2168_v25 = vsel %vm279_vm5, 1, %v2800_v60  ;;  %vm2284_vm7 = vcmp.eq.s32.totalorder %v2190_v38, 1  ;;  %v241_v38 = vld [vmem:[%s3970_s0 + $0x100] sm:$0xff] }
 0x243   : > { %v2103_v55 = vadd.f32 %v2005_v19, %v1889_v37  ;;  %1413 = vmatmul.f32.gmra.mxu1 %v3789_v22  ;;  %1627 = vmatmul.f32.gmra.mxu2 %v3830_v29  ;;  %v238_v37 = vld [vmem:[%s3970_s0 + $0xe8] sm:$0xff]  ;;  %vm277_vm10 = vcmp.gt.f32.partialorder %v241_v38, 0.0 }
 0x244   : > { %2273 = vperm.xlu1 %2790, %v2168_v25   ;;  %vm274_vm8 = vcmp.gt.f32.partialorder %v238_v37, 0.0  ;;  %v1945_v37 = vld [vmem:[%s2889_s26 + $0xff] sm:$0xff] }
 0x245   : > { %2355 = vst [vmem:[%s3740_s24 + $0x28] sm:$0xff] %v2103_v55  ;;  %v2319_v0 = vsel %vm2283_vm3, %v2103_v55, 0.0  ;;  %1841 = vmatmul.f32.gmra.mxu3 %v1728_v51  ;;  %v2163_v58 = vsel %vm274_vm8, 1, %v2800_v60 }
 0x246   : > { %v2390_v15 = vadd.f32 %v2389_v6, %v2319_v0  ;;  %v2433_v10 = vmul.f32 %v2319_v0, %v2319_v0  ;;  %v1580_v22 = vpop.f32.mrf.mxu2  ;;  %v2008_v39 = vpop.f32.mrf.mxu0  ;;  %v1515_v6 = vld [vmem:[%s2889_s26 + $0xed] sm:$0xff]  ;;  %v1730_v0 = vld [vmem:[%s2889_s26 + $0xf6] sm:$0xff] }
 0x247   : > { %v1676_v5 = vadd.f32 %v1580_v22, %v1462_v50  ;;  %2249 = vperm.xlu2 %2791, %v2160_v2   ;;  %v1517_v2 = vld [vmem:[%s2889_s26 + $0xfd] sm:$0xff]  ;;  %v2202_v38 = vpop.permute.xlu1 %2201 }
 0x248   : > { %v2468_v63 = vadd.f32 %v2467_v62, %v2433_v10  ;;  %v1369_v46 = vpop.f32.mrf.mxu1  ;;  %v1794_v40 = vpop.f32.mrf.mxu3  ;;  %vm2288_vm14 = vcmp.eq.s32.totalorder %v2202_v38, 1 }
 0x249   : > { %v1890_v19 = vadd.f32 %v1794_v40, %v1676_v5  ;;  %2055 = vmatmul.f32.gmra.mxu0 %v1942_v57  ;;  %v1463_v14 = vadd.f32 %v1369_v46, %v3445_v61  ;;  %v1944_v5 = vld [vmem:[%s2889_s26 + $0xf7] sm:$0xff]  ;;  %v2196_v46 = vpop.permute.xlu2 %2195 }
 0x24a   : > { %vm2286_vm11 = vcmp.eq.s32.totalorder %v2196_v46, 1 }
 0x24b   : > { %v2104_v43 = vadd.f32 %v2008_v39, %v1890_v19  ;;  %1416 = vmatmul.f32.gmra.mxu1 %v3809_v28  ;;  %1630 = vmatmul.f32.gmra.mxu2 %v1515_v6  ;;  %v2166_v19 = vsel %vm277_vm10, 1, %v2800_v60 }
 0x24d   : > { %2356 = vst [vmem:[%s3740_s24 + $0x30] sm:$0xff] %v2104_v43  ;;  %v2320_v20 = vsel %vm2284_vm7, %v2104_v43, 0.0  ;;  %1844 = vmatmul.f32.gmra.mxu3 %v1729_v13  ;;  %v1731_v43 = vld [vmem:[%s2889_s26 + $0xfe] sm:$0xff] }
 0x24e   : > { %v2391_v30 = vadd.f32 %v2390_v15, %v2320_v20  ;;  %v2434_v62 = vmul.f32 %v2320_v20, %v2320_v20  ;;  %v1583_v26 = vpop.f32.mrf.mxu2  ;;  %v2011_v49 = vpop.f32.mrf.mxu0 }
 0x24f   : > { %v1677_v51 = vadd.f32 %v1583_v26, %v1463_v14  ;;  %2258 = vperm.xlu2 %2791, %v2163_v58  }
 0x250   : > { %v2469_v28 = vadd.f32 %v2468_v63, %v2434_v62  ;;  %v1372_v61 = vpop.f32.mrf.mxu1  ;;  %v1797_v55 = vpop.f32.mrf.mxu3 }
 0x251   : > { %v1891_v50 = vadd.f32 %v1797_v55, %v1677_v51  ;;  %2058 = vmatmul.f32.gmra.mxu0 %v1943_v16  ;;  %v1464_v10 = vadd.f32 %v1372_v61, %v3454_v45  ;;  %v244_v51 = vld [vmem:[%s3970_s0 + $0x118] sm:$0xff]  ;;  %v1518_v55 = vld [vmem:[%s2889_s26 + $0x105] sm:$0xff] }
 0x252   : > { %vm280_vm12 = vcmp.gt.f32.partialorder %v244_v51, 0.0 }
 0x253   : > { %v2105_v15 = vadd.f32 %v2011_v49, %v1891_v50  ;;  %1419 = vmatmul.f32.gmra.mxu1 %v3830_v29  ;;  %1633 = vmatmul.f32.gmra.mxu2 %v1516_v47  ;;  %v2169_v58 = vsel %vm280_vm12, 1, %v2800_v60 }
 0x255   : > { %2357 = vst [vmem:[%s3740_s24 + $0x38] sm:$0xff] %v2105_v15  ;;  %v2321_v22 = vsel %vm2285_vm9, %v2105_v15, 0.0  ;;  %1847 = vmatmul.f32.gmra.mxu3 %v1730_v0  ;;  %v1732_v0 = vld [vmem:[%s2889_s26 + $0x106] sm:$0xff] }
 0x256   : > { %v2392_v39 = vadd.f32 %v2391_v30, %v2321_v22  ;;  %v2435_v57 = vmul.f32 %v2321_v22, %v2321_v22  ;;  %v1586_v25 = vpop.f32.mrf.mxu2  ;;  %v2014_v33 = vpop.f32.mrf.mxu0 }
 0x257   : > { %v1678_v63 = vadd.f32 %v1586_v25, %v1464_v10  ;;  %2267 = vperm.xlu2 %2791, %v2166_v19  }
 0x258   : > { %v2470_v29 = vadd.f32 %v2469_v28, %v2435_v57  ;;  %v1375_v45 = vpop.f32.mrf.mxu1  ;;  %v1800_v40 = vpop.f32.mrf.mxu3 }
 0x259   : > { %v1892_v13 = vadd.f32 %v1800_v40, %v1678_v63  ;;  %2061 = vmatmul.f32.gmra.mxu0 %v1944_v5  ;;  %v1465_v20 = vadd.f32 %v1375_v45, %v3469_v53  ;;  %v2199_v28 = vpop.permute.xlu0 %2198 }
 0x25a   : > { %vm2287_vm13 = vcmp.eq.s32.totalorder %v2199_v28, 1 }
 0x25b   : > { %v2106_v14 = vadd.f32 %v2014_v33, %v1892_v13  ;;  %1422 = vmatmul.f32.gmra.mxu1 %v1515_v6  ;;  %1636 = vmatmul.f32.gmra.mxu2 %v1517_v2  ;;  %v1946_v33 = vld [vmem:[%s2889_s26 + $0x107] sm:$0xff] }
 0x25d   : > { %2358 = vst [vmem:[%s3740_s24 + $0x40] sm:$0xff] %v2106_v14  ;;  %v2322_v30 = vsel %vm2286_vm11, %v2106_v14, 0.0  ;;  %1850 = vmatmul.f32.gmra.mxu3 %v1731_v43 }
 0x25e   : > { %v2393_v62 = vadd.f32 %v2392_v39, %v2322_v30  ;;  %v2436_v26 = vmul.f32 %v2322_v30, %v2322_v30  ;;  %v1589_v49 = vpop.f32.mrf.mxu2  ;;  %v2017_v16 = vpop.f32.mrf.mxu0 }
 0x25f   : > { %v1679_v21 = vadd.f32 %v1589_v49, %v1465_v20  ;;  %2276 = vperm.xlu2 %2791, %v2169_v58   ;;  %v2205_v49 = vpop.permute.xlu2 %2204 }
 0x260   : > { %v2471_v6 = vadd.f32 %v2470_v29, %v2436_v26  ;;  %v1378_v53 = vpop.f32.mrf.mxu1  ;;  %v1803_v61 = vpop.f32.mrf.mxu3  ;;  %vm2289_vm15 = vcmp.eq.s32.totalorder %v2205_v49, 1 }
 0x261   : > { %v1893_v50 = vadd.f32 %v1803_v61, %v1679_v21  ;;  %2064 = vmatmul.f32.gmra.mxu0 %v1945_v37  ;;  %v1466_v10 = vadd.f32 %v1378_v53, %v3478_v41  ;;  %v1733_v41 = vld [vmem:[%s2889_s26 + $0x10e] sm:$0xff] }
 0x263   : > { %v2107_v15 = vadd.f32 %v2017_v16, %v1893_v50  ;;  %1425 = vmatmul.f32.gmra.mxu1 %v1516_v47  ;;  %1639 = vmatmul.f32.gmra.mxu2 %v1518_v55  ;;  %v1519_v47 = vld [vmem:[%s2889_s26 + $0x10d] sm:$0xff] }
 0x265   : > { %2359 = vst [vmem:[%s3740_s24 + $0x48] sm:$0xff] %v2107_v15  ;;  %v2323_v22 = vsel %vm2287_vm13, %v2107_v15, 0.0  ;;  %1853 = vmatmul.f32.gmra.mxu3 %v1732_v0  ;;  %v1948_v15 = vld [vmem:[%s2889_s26 + $0x117] sm:$0xff] }
 0x266   : > { %v2394_v39 = vadd.f32 %v2393_v62, %v2323_v22  ;;  %v2437_v57 = vmul.f32 %v2323_v22, %v2323_v22  ;;  %v1592_v25 = vpop.f32.mrf.mxu2  ;;  %v2020_v60 = vpop.f32.mrf.mxu0  ;;  %v1947_v62 = vld [vmem:[%s2889_s26 + $0x10f] sm:$0xff] }
 0x267   : > { %v1680_v5 = vadd.f32 %v1592_v25, %v1466_v10  ;;  %v2208_v22 = vpop.permute.xlu0 %2207 }
 0x268   : > { %v2472_v63 = vadd.f32 %v2471_v6, %v2437_v57  ;;  %v1381_v46 = vpop.f32.mrf.mxu1  ;;  %v1806_v29 = vpop.f32.mrf.mxu3  ;;  %vm2290_vm0 = vcmp.eq.s32.totalorder %v2208_v22, 1 }
 0x269   : > { %v1894_v45 = vadd.f32 %v1806_v29, %v1680_v5  ;;  %2067 = vmatmul.f32.gmra.mxu0 %v1946_v33  ;;  %v1467_v19 = vadd.f32 %v1381_v46, %v3490_v7  ;;  %v1734_v7 = vld [vmem:[%s2889_s26 + $0x116] sm:$0xff] }
 0x26b   : > { %v2108_v40 = vadd.f32 %v2020_v60, %v1894_v45  ;;  %1428 = vmatmul.f32.gmra.mxu1 %v1517_v2  ;;  %1642 = vmatmul.f32.gmra.mxu2 %v1519_v47  ;;  %v1520_v2 = vld [vmem:[%s2889_s26 + $0x115] sm:$0xff] }
 0x26d   : > { %2360 = vst [vmem:[%s3740_s24 + $0x50] sm:$0xff] %v2108_v40  ;;  %v2324_v13 = vsel %vm2288_vm14, %v2108_v40, 0.0  ;;  %1856 = vmatmul.f32.gmra.mxu3 %v1733_v41  ;;  %v1949_v41 = vld [vmem:[%s2889_s26 + $0x11f] sm:$0xff] }
 0x26e   : > { %v2395_v43 = vadd.f32 %v2394_v39, %v2324_v13  ;;  %v2438_v14 = vmul.f32 %v2324_v13, %v2324_v13  ;;  %v1595_v20 = vpop.f32.mrf.mxu2  ;;  %v2023_v30 = vpop.f32.mrf.mxu0 }
 0x26f   : > { %v1681_v26 = vadd.f32 %v1595_v20, %v1467_v19  ;;  %v2211_v19 = vpop.permute.xlu1 %2210 }
 0x270   : > { %v2473_v16 = vadd.f32 %v2472_v63, %v2438_v14  ;;  %v1384_v37 = vpop.f32.mrf.mxu1  ;;  %v1809_v51 = vpop.f32.mrf.mxu3  ;;  %vm2291_vm1 = vcmp.eq.s32.totalorder %v2211_v19, 1 }
 0x271   : > { %v1895_v21 = vadd.f32 %v1809_v51, %v1681_v26  ;;  %2070 = vmatmul.f32.gmra.mxu0 %v1947_v62  ;;  %v1468_v6 = vadd.f32 %v1384_v37, %v3502_v56  ;;  %v1735_v56 = vld [vmem:[%s2889_s26 + $0x11e] sm:$0xff] }
 0x273   : > { %v2109_v28 = vadd.f32 %v2023_v30, %v1895_v21  ;;  %1431 = vmatmul.f32.gmra.mxu1 %v1518_v55  ;;  %1645 = vmatmul.f32.gmra.mxu2 %v1520_v2  ;;  %v1521_v55 = vld [vmem:[%s2889_s26 + $0x11d] sm:$0xff]  ;;  %v1950_v21 = vld [vmem:[%s2889_s26 + $0x127] sm:$0xff] }
 0x275   : > { %2361 = vst [vmem:[%s3740_s24 + $0x58] sm:$0xff] %v2109_v28  ;;  %v2325_v53 = vsel %vm2289_vm15, %v2109_v28, 0.0  ;;  %1859 = vmatmul.f32.gmra.mxu3 %v1734_v7  ;;  %v2214_v28 = vpop.permute.xlu2 %2213 }
 0x276   : > { %v2396_v61 = vadd.f32 %v2395_v43, %v2325_v53  ;;  %v2439_v58 = vmul.f32 %v2325_v53, %v2325_v53  ;;  %v1598_v50 = vpop.f32.mrf.mxu2  ;;  %v2026_v0 = vpop.f32.mrf.mxu0  ;;  %vm2292_vm2 = vcmp.eq.s32.totalorder %v2214_v28, 1 }
 0x277   : > { %v1682_v10 = vadd.f32 %v1598_v50, %v1468_v6 }
 0x278   : > { %v2474_v39 = vadd.f32 %v2473_v16, %v2439_v58  ;;  %v1387_v57 = vpop.f32.mrf.mxu1  ;;  %v1812_v25 = vpop.f32.mrf.mxu3 }
 0x279   : > { %v1896_v60 = vadd.f32 %v1812_v25, %v1682_v10  ;;  %2073 = vmatmul.f32.gmra.mxu0 %v1948_v15  ;;  %v1469_v5 = vadd.f32 %v1387_v57, %v3511_v36  ;;  %v1736_v36 = vld [vmem:[%s2889_s26 + $0x126] sm:$0xff]  ;;  %v1951_v25 = vld [vmem:[%s2889_s26 + $0x12f] sm:$0xff] }
 0x27b   : > { %v2110_v33 = vadd.f32 %v2026_v0, %v1896_v60  ;;  %1434 = vmatmul.f32.gmra.mxu1 %v1519_v47  ;;  %1648 = vmatmul.f32.gmra.mxu2 %v1521_v55  ;;  %v1522_v47 = vld [vmem:[%s2889_s26 + $0x125] sm:$0xff] }
 0x27d   : > { %2362 = vst [vmem:[%s3740_s24 + $0x60] sm:$0xff] %v2110_v33  ;;  %v2326_v38 = vsel %vm2290_vm0, %v2110_v33, 0.0  ;;  %1862 = vmatmul.f32.gmra.mxu3 %v1735_v56  ;;  %v2217_v56 = vpop.permute.xlu0 %2216 }
 0x27e   : > { %v2397_v63 = vadd.f32 %v2396_v61, %v2326_v38  ;;  %v2440_v46 = vmul.f32 %v2326_v38, %v2326_v38  ;;  %v1601_v29 = vpop.f32.mrf.mxu2  ;;  %v2029_v45 = vpop.f32.mrf.mxu0  ;;  %vm2293_vm3 = vcmp.eq.s32.totalorder %v2217_v56, 1  ;;  %v1954_v56 = vld [vmem:[%s2889_s26 + $0x147] sm:$0xff] }
 0x27f   : > { %v1683_v40 = vadd.f32 %v1601_v29, %v1469_v5 }
 0x280   : > { %v2475_v13 = vadd.f32 %v2474_v39, %v2440_v46  ;;  %v1390_v43 = vpop.f32.mrf.mxu1  ;;  %v1815_v14 = vpop.f32.mrf.mxu3 }
 0x281   : > { %v1897_v20 = vadd.f32 %v1815_v14, %v1683_v40  ;;  %2076 = vmatmul.f32.gmra.mxu0 %v1949_v41  ;;  %v1470_v62 = vadd.f32 %v1390_v43, %v3523_v18  ;;  %v1737_v18 = vld [vmem:[%s2889_s26 + $0x12e] sm:$0xff]  ;;  %v1952_v43 = vld [vmem:[%s2889_s26 + $0x137] sm:$0xff] }
 0x283   : > { %v2111_v30 = vadd.f32 %v2029_v45, %v1897_v20  ;;  %1437 = vmatmul.f32.gmra.mxu1 %v1520_v2  ;;  %1651 = vmatmul.f32.gmra.mxu2 %v1522_v47  ;;  %v1523_v2 = vld [vmem:[%s2889_s26 + $0x12d] sm:$0xff]  ;;  %v2220_v20 = vpop.permute.xlu1 %2219 }
 0x284   : > { %vm2294_vm4 = vcmp.eq.s32.totalorder %v2220_v20, 1 }
 0x285   : > { %2363 = vst [vmem:[%s3740_s24 + $0x68] sm:$0xff] %v2111_v30  ;;  %v2327_v26 = vsel %vm2291_vm1, %v2111_v30, 0.0  ;;  %1865 = vmatmul.f32.gmra.mxu3 %v1736_v36 }
 0x286   : > { %v2398_v49 = vadd.f32 %v2397_v63, %v2327_v26  ;;  %v2441_v16 = vmul.f32 %v2327_v26, %v2327_v26  ;;  %v1604_v37 = vpop.f32.mrf.mxu2  ;;  %v2032_v51 = vpop.f32.mrf.mxu0 }
 0x287   : > { %v1684_v7 = vadd.f32 %v1604_v37, %v1470_v62 }
 0x288   : > { %v2476_v6 = vadd.f32 %v2475_v13, %v2441_v16  ;;  %v1393_v53 = vpop.f32.mrf.mxu1  ;;  %v1818_v61 = vpop.f32.mrf.mxu3 }
 0x289   : > { %v1898_v58 = vadd.f32 %v1818_v61, %v1684_v7  ;;  %2079 = vmatmul.f32.gmra.mxu0 %v1950_v21  ;;  %v1471_v0 = vadd.f32 %v1393_v53, %v3532_v54  ;;  %v1738_v54 = vld [vmem:[%s2889_s26 + $0x136] sm:$0xff]  ;;  %v2223_v61 = vpop.permute.xlu2 %2222 }
 0x28a   : > { %vm2295_vm5 = vcmp.eq.s32.totalorder %v2223_v61, 1 }
 0x28b   : > { %v2112_v50 = vadd.f32 %v2032_v51, %v1898_v58  ;;  %1440 = vmatmul.f32.gmra.mxu1 %v1521_v55  ;;  %1654 = vmatmul.f32.gmra.mxu2 %v1523_v2  ;;  %v1524_v55 = vld [vmem:[%s2889_s26 + $0x135] sm:$0xff] }
 0x28d   : > { %2364 = vst [vmem:[%s3740_s24 + $0x70] sm:$0xff] %v2112_v50  ;;  %v2328_v15 = vsel %vm2292_vm2, %v2112_v50, 0.0  ;;  %1868 = vmatmul.f32.gmra.mxu3 %v1737_v18 }
 0x28e   : > { %v2399_v10 = vadd.f32 %v2398_v49, %v2328_v15  ;;  %v2442_v22 = vmul.f32 %v2328_v15, %v2328_v15  ;;  %v1607_v39 = vpop.f32.mrf.mxu2  ;;  %v2035_v57 = vpop.f32.mrf.mxu0 }
 0x28f   : > { %v1685_v60 = vadd.f32 %v1607_v39, %v1471_v0 }
 0x290   : > { %v2477_v33 = vadd.f32 %v2476_v6, %v2442_v22  ;;  %v1396_v5 = vpop.f32.mrf.mxu1  ;;  %v1821_v38 = vpop.f32.mrf.mxu3  ;;  %v1953_v6 = vld [vmem:[%s2889_s26 + $0x13f] sm:$0xff] }
 0x291   : > { %v1899_v63 = vadd.f32 %v1821_v38, %v1685_v60  ;;  %2082 = vmatmul.f32.gmra.mxu0 %v1951_v25  ;;  %v1472_v29 = vadd.f32 %v1396_v5, %v3538_v31  ;;  %v1739_v31 = vld [vmem:[%s2889_s26 + $0x13e] sm:$0xff]  ;;  %v2226_v5 = vpop.permute.xlu0 %2225  ;;  %v2232_v61 = vpop.permute.xlu2 %2231 }
 0x292   : > { %vm2296_vm6 = vcmp.eq.s32.totalorder %v2226_v5, 1  ;;  %vm2298_vm8 = vcmp.eq.s32.totalorder %v2232_v61, 1 }
 0x293   : > { %v2113_v46 = vadd.f32 %v2035_v57, %v1899_v63  ;;  %1443 = vmatmul.f32.gmra.mxu1 %v1522_v47  ;;  %1657 = vmatmul.f32.gmra.mxu2 %v1524_v55  ;;  %v1525_v47 = vld [vmem:[%s2889_s26 + $0x13d] sm:$0xff] }
 0x295   : > { %2365 = vst [vmem:[%s3740_s24 + $0x78] sm:$0xff] %v2113_v46  ;;  %v2329_v45 = vsel %vm2293_vm3, %v2113_v46, 0.0  ;;  %1871 = vmatmul.f32.gmra.mxu3 %v1738_v54 }
 0x296   : > { %v2400_v41 = vadd.f32 %v2399_v10, %v2329_v45  ;;  %v2443_v40 = vmul.f32 %v2329_v45, %v2329_v45  ;;  %v1610_v19 = vpop.f32.mrf.mxu2  ;;  %v2038_v13 = vpop.f32.mrf.mxu0 }
 0x297   : > { %v1686_v14 = vadd.f32 %v1610_v19, %v1472_v29 }
 0x298   : > { %v2478_v36 = vadd.f32 %v2477_v33, %v2443_v40  ;;  %v1399_v30 = vpop.f32.mrf.mxu1  ;;  %v1824_v62 = vpop.f32.mrf.mxu3 }
 0x299   : > { %v1900_v26 = vadd.f32 %v1824_v62, %v1686_v14  ;;  %2085 = vmatmul.f32.gmra.mxu0 %v1952_v43  ;;  %v1473_v16 = vadd.f32 %v1399_v30, %v3544_v32  ;;  %v1740_v32 = vld [vmem:[%s2889_s26 + $0x146] sm:$0xff]  ;;  %v1955_v14 = vld [vmem:[%s2889_s26 + $0x14f] sm:$0xff] }
 0x29b   : > { %v2114_v49 = vadd.f32 %v2038_v13, %v1900_v26  ;;  %1446 = vmatmul.f32.gmra.mxu1 %v1523_v2  ;;  %1660 = vmatmul.f32.gmra.mxu2 %v1525_v47  ;;  %v1526_v2 = vld [vmem:[%s2889_s26 + $0x145] sm:$0xff] }
 0x29d   : > { %2366 = vst [vmem:[%s3740_s24 + $0x80] sm:$0xff] %v2114_v49  ;;  %v2330_v37 = vsel %vm2294_vm4, %v2114_v49, 0.0  ;;  %1874 = vmatmul.f32.gmra.mxu3 %v1739_v31  ;;  %v2229_v31 = vpop.permute.xlu1 %2228 }
 0x29e   : > { %v2401_v51 = vadd.f32 %v2400_v41, %v2330_v37  ;;  %v2444_v21 = vmul.f32 %v2330_v37, %v2330_v37  ;;  %v1613_v7 = vpop.f32.mrf.mxu2  ;;  %v2041_v28 = vpop.f32.mrf.mxu0  ;;  %vm2297_vm7 = vcmp.eq.s32.totalorder %v2229_v31, 1 }
 0x29f   : > { %v1687_v53 = vadd.f32 %v1613_v7, %v1473_v16  ;;  %v2241_v31 = vpop.permute.xlu2 %2240 }
 0x2a0   : > { %v2479_v58 = vadd.f32 %v2478_v36, %v2444_v21  ;;  %v1402_v18 = vpop.f32.mrf.mxu1  ;;  %v1827_v50 = vpop.f32.mrf.mxu3  ;;  %vm2301_vm11 = vcmp.eq.s32.totalorder %v2241_v31, 1 }
 0x2a1   : > { %v1901_v0 = vadd.f32 %v1827_v50, %v1687_v53  ;;  %2088 = vmatmul.f32.gmra.mxu0 %v1953_v6  ;;  %v1474_v10 = vadd.f32 %v1402_v18, %v3557_v1  ;;  %v1741_v1 = vld [vmem:[%s2889_s26 + $0x14e] sm:$0xff] }
 0x2a3   : > { %v2115_v15 = vadd.f32 %v2041_v28, %v1901_v0  ;;  %1449 = vmatmul.f32.gmra.mxu1 %v1524_v55  ;;  %1663 = vmatmul.f32.gmra.mxu2 %v1526_v2  ;;  %v1527_v55 = vld [vmem:[%s2889_s26 + $0x14d] sm:$0xff]  ;;  %s2599_s26 = sshll.u32 %s3976_s16, 1 }
 0x2a4   : > { %s208_s18 = scalar_lea.vmem %s3974_s4, %s2599_s26 }
 0x2a5   : > { %2367 = vst [vmem:[%s3740_s24 + $0x88] sm:$0xff] %v2115_v15  ;;  %v2331_v22 = vsel %vm2295_vm5, %v2115_v15, 0.0  ;;  %1877 = vmatmul.f32.gmra.mxu3 %v1740_v32 }
 0x2a6   : > { %v2402_v39 = vadd.f32 %v2401_v51, %v2331_v22  ;;  %v2445_v57 = vmul.f32 %v2331_v22, %v2331_v22  ;;  %v1616_v25 = vpop.f32.mrf.mxu2  ;;  %v2044_v60 = vpop.f32.mrf.mxu0 }
 0x2a7   : > { %v1688_v33 = vadd.f32 %v1616_v25, %v1474_v10  ;;  %v2235_v25 = vpop.permute.xlu0 %2234 }
 0x2a8   : > { %v2480_v38 = vadd.f32 %v2479_v58, %v2445_v57  ;;  %v1405_v63 = vpop.f32.mrf.mxu1  ;;  %v1830_v54 = vpop.f32.mrf.mxu3  ;;  %vm2299_vm9 = vcmp.eq.s32.totalorder %v2235_v25, 1 }
 0x2a9   : > { %v1902_v46 = vadd.f32 %v1830_v54, %v1688_v33  ;;  %2091 = vmatmul.f32.gmra.mxu0 %v1954_v56  ;;  %v1475_v45 = vadd.f32 %v1405_v63, %v3568_v23 }
 0x2ab   : > { %v2116_v29 = vadd.f32 %v2044_v60, %v1902_v46  ;;  %1452 = vmatmul.f32.gmra.mxu1 %v1525_v47  ;;  %1666 = vmatmul.f32.gmra.mxu2 %v1527_v55 }
 0x2ad   : > { %2368 = vst [vmem:[%s3740_s24 + $0x90] sm:$0xff] %v2116_v29  ;;  %v2332_v41 = vsel %vm2296_vm6, %v2116_v29, 0.0  ;;  %1880 = vmatmul.f32.gmra.mxu3 %v1741_v1 }
 0x2ae   : > { %v2403_v40 = vadd.f32 %v2402_v39, %v2332_v41  ;;  %v2446_v19 = vmul.f32 %v2332_v41, %v2332_v41  ;;  %v1619_v13 = vpop.f32.mrf.mxu2  ;;  %v2047_v43 = vpop.f32.mrf.mxu0 }
 0x2af   : > { %v1689_v20 = vadd.f32 %v1619_v13, %v1475_v45  ;;  %v2238_v45 = vpop.permute.xlu1 %2237 }
 0x2b0   : > { %v2481_v36 = vadd.f32 %v2480_v38, %v2446_v19  ;;  %v1408_v30 = vpop.f32.mrf.mxu1  ;;  %v1833_v62 = vpop.f32.mrf.mxu3  ;;  %vm2300_vm10 = vcmp.eq.s32.totalorder %v2238_v45, 1 }
 0x2b1   : > { %v1903_v26 = vadd.f32 %v1833_v62, %v1689_v20  ;;  %2094 = vmatmul.f32.gmra.mxu0 %v1955_v14  ;;  %v1476_v23 = vadd.f32 %v1408_v30, %v3579_v17 }
 0x2b3   : > { %v2117_v47 = vadd.f32 %v2047_v43, %v1903_v26 }
 0x2b5   : > { %v2333_v49 = vsel %vm2297_vm7, %v2117_v47, 0.0  ;;  %2369 = vst [vmem:[%s3740_s24 + $0x98] sm:$0xff] %v2117_v47 }
 0x2b6   : > { %v2404_v16 = vadd.f32 %v2403_v40, %v2333_v49  ;;  %v2447_v37 = vmul.f32 %v2333_v49, %v2333_v49  ;;  %v1622_v51 = vpop.f32.mrf.mxu2  ;;  %v2050_v21 = vpop.f32.mrf.mxu0 }
 0x2b7   : > { %v1690_v7 = vadd.f32 %v1622_v51, %v1476_v23  ;;  %v2247_v25 = vpop.permute.xlu1 %2246 }
 0x2b8   : > { %v2482_v28 = vadd.f32 %v2481_v36, %v2447_v37  ;;  %v1411_v6 = vpop.f32.mrf.mxu1  ;;  %v1836_v53 = vpop.f32.mrf.mxu3  ;;  %vm2303_vm13 = vcmp.eq.s32.totalorder %v2247_v25, 1 }
 0x2b9   : > { %v1904_v58 = vadd.f32 %v1836_v53, %v1690_v7  ;;  %v1477_v50 = vadd.f32 %v1411_v6, %v3589_v9 }
 0x2bb   : > { %v2118_v18 = vadd.f32 %v2050_v21, %v1904_v58  ;;  %v2244_v58 = vpop.permute.xlu0 %2243 }
 0x2bc   : > { %vm2302_vm12 = vcmp.eq.s32.totalorder %v2244_v58, 1 }
 0x2bd   : > { %v2334_v2 = vsel %vm2298_vm8, %v2118_v18, 0.0  ;;  %2370 = vst [vmem:[%s3740_s24 + $0xa0] sm:$0xff] %v2118_v18 }
 0x2be   : > { %v2405_v17 = vadd.f32 %v2404_v16, %v2334_v2  ;;  %v2448_v0 = vmul.f32 %v2334_v2, %v2334_v2  ;;  %v1625_v32 = vpop.f32.mrf.mxu2  ;;  %v2053_v15 = vpop.f32.mrf.mxu0 }
 0x2bf   : > { %v1691_v10 = vadd.f32 %v1625_v32, %v1477_v50 }
 0x2c0   : > { %v2483_v22 = vadd.f32 %v2482_v28, %v2448_v0  ;;  %v1414_v39 = vpop.f32.mrf.mxu1  ;;  %v1839_v57 = vpop.f32.mrf.mxu3 }
 0x2c1   : > { %v1905_v60 = vadd.f32 %v1839_v57, %v1691_v10  ;;  %v1478_v33 = vadd.f32 %v1414_v39, %v3595_v59 }
 0x2c3   : > { %v2119_v56 = vadd.f32 %v2053_v15, %v1905_v60 }
 0x2c5   : > { %v2335_v5 = vsel %vm2299_vm9, %v2119_v56, 0.0  ;;  %2371 = vst [vmem:[%s3740_s24 + $0xa8] sm:$0xff] %v2119_v56 }
 0x2c6   : > { %v2406_v9 = vadd.f32 %v2405_v17, %v2335_v5  ;;  %v2449_v38 = vmul.f32 %v2335_v5, %v2335_v5  ;;  %v1628_v63 = vpop.f32.mrf.mxu2  ;;  %v2056_v54 = vpop.f32.mrf.mxu0 }
 0x2c7   : > { %v1692_v55 = vadd.f32 %v1628_v63, %v1478_v33 }
 0x2c8   : > { %v2484_v46 = vadd.f32 %v2483_v22, %v2449_v38  ;;  %v1417_v1 = vpop.f32.mrf.mxu1  ;;  %v1842_v29 = vpop.f32.mrf.mxu3 }
 0x2c9   : > { %v1906_v41 = vadd.f32 %v1842_v29, %v1692_v55  ;;  %v1479_v19 = vadd.f32 %v1417_v1, %v3601_v3  ;;  %v2250_v29 = vpop.permute.xlu2 %2249 }
 0x2ca   : > { %vm2304_vm14 = vcmp.eq.s32.totalorder %v2250_v29, 1 }
 0x2cb   : > { %v2120_v40 = vadd.f32 %v2056_v54, %v1906_v41 }
 0x2cd   : > { %v2336_v13 = vsel %vm2300_vm10, %v2120_v40, 0.0  ;;  %2372 = vst [vmem:[%s3740_s24 + $0xb0] sm:$0xff] %v2120_v40 }
 0x2ce   : > { %v2407_v59 = vadd.f32 %v2406_v9, %v2336_v13  ;;  %v2450_v43 = vmul.f32 %v2336_v13, %v2336_v13  ;;  %v1631_v14 = vpop.f32.mrf.mxu2  ;;  %v2059_v20 = vpop.f32.mrf.mxu0 }
 0x2cf   : > { %v1693_v36 = vadd.f32 %v1631_v14, %v1479_v19 }
 0x2d0   : > { %v2485_v30 = vadd.f32 %v2484_v46, %v2450_v43  ;;  %v1420_v62 = vpop.f32.mrf.mxu1  ;;  %v1845_v26 = vpop.f32.mrf.mxu3 }
 0x2d1   : > { %v1907_v47 = vadd.f32 %v1845_v26, %v1693_v36  ;;  %v1480_v49 = vadd.f32 %v1420_v62, %v3611_v42  ;;  %v2253_v62 = vpop.permute.xlu0 %2252 }
 0x2d2   : > { %vm2305_vm15 = vcmp.eq.s32.totalorder %v2253_v62, 1 }
 0x2d3   : > { %v2121_v23 = vadd.f32 %v2059_v20, %v1907_v47 }
 0x2d5   : > { %v2337_v16 = vsel %vm2301_vm11, %v2121_v23, 0.0  ;;  %2373 = vst [vmem:[%s3740_s24 + $0xb8] sm:$0xff] %v2121_v23 }
 0x2d6   : > { %v2408_v3 = vadd.f32 %v2407_v59, %v2337_v16  ;;  %v2451_v37 = vmul.f32 %v2337_v16, %v2337_v16  ;;  %v1634_v51 = vpop.f32.mrf.mxu2  ;;  %v2062_v21 = vpop.f32.mrf.mxu0 }
 0x2d7   : > { %v1694_v7 = vadd.f32 %v1634_v51, %v1480_v49 }
 0x2d8   : > { %v2486_v28 = vadd.f32 %v2485_v30, %v2451_v37  ;;  %v1423_v6 = vpop.f32.mrf.mxu1  ;;  %v1848_v53 = vpop.f32.mrf.mxu3 }
 0x2d9   : > { %v1908_v61 = vadd.f32 %v1848_v53, %v1694_v7  ;;  %v1481_v50 = vadd.f32 %v1423_v6, %v3625_v27 }
 0x2db   : > { %v2122_v18 = vadd.f32 %v2062_v21, %v1908_v61 }
 0x2dd   : > { %v2338_v2 = vsel %vm2302_vm12, %v2122_v18, 0.0  ;;  %2374 = vst [vmem:[%s3740_s24 + $0xc0] sm:$0xff] %v2122_v18 }
 0x2de   : > { %v2409_v42 = vadd.f32 %v2408_v3, %v2338_v2  ;;  %v2452_v17 = vmul.f32 %v2338_v2, %v2338_v2  ;;  %v1637_v0 = vpop.f32.mrf.mxu2  ;;  %v2065_v32 = vpop.f32.mrf.mxu0 }
 0x2df   : > { %v1695_v15 = vadd.f32 %v1637_v0, %v1481_v50 }
 0x2e0   : > { %v2487_v10 = vadd.f32 %v2486_v28, %v2452_v17  ;;  %v1426_v22 = vpop.f32.mrf.mxu1  ;;  %v1851_v39 = vpop.f32.mrf.mxu3 }
 0x2e1   : > { %v1909_v57 = vadd.f32 %v1851_v39, %v1695_v15  ;;  %v1482_v56 = vadd.f32 %v1426_v22, %v3635_v24  ;;  %v2256_v28 = vpop.permute.xlu1 %2255  ;;  %v2259_v15 = vpop.permute.xlu2 %2258 }
 0x2e2   : > { %vm2306_vm0 = vcmp.eq.s32.totalorder %v2256_v28, 1  ;;  %vm2307_vm1 = vcmp.eq.s32.totalorder %v2259_v15, 1 }
 0x2e3   : > { %v2123_v60 = vadd.f32 %v2065_v32, %v1909_v57 }
 0x2e5   : > { %v2339_v33 = vsel %vm2303_vm13, %v2123_v60, 0.0  ;;  %2375 = vst [vmem:[%s3740_s24 + $0xc8] sm:$0xff] %v2123_v60 }
 0x2e6   : > { %v2410_v27 = vadd.f32 %v2409_v42, %v2339_v33  ;;  %v2453_v5 = vmul.f32 %v2339_v33, %v2339_v33  ;;  %v1640_v9 = vpop.f32.mrf.mxu2  ;;  %v2068_v38 = vpop.f32.mrf.mxu0 }
 0x2e7   : > { %v1696_v63 = vadd.f32 %v1640_v9, %v1482_v56 }
 0x2e8   : > { %v2488_v54 = vadd.f32 %v2487_v10, %v2453_v5  ;;  %v1429_v55 = vpop.f32.mrf.mxu1  ;;  %v1854_v46 = vpop.f32.mrf.mxu3 }
 0x2e9   : > { %v1910_v1 = vadd.f32 %v1854_v46, %v1696_v63  ;;  %v1483_v41 = vadd.f32 %v1429_v55, %v3645_v4 }
 0x2eb   : > { %v2124_v45 = vadd.f32 %v2068_v38, %v1910_v1  ;;  %v2262_v38 = vpop.permute.xlu0 %2261 }
 0x2ec   : > { %vm2308_vm2 = vcmp.eq.s32.totalorder %v2262_v38, 1 }
 0x2ed   : > { %v2340_v40 = vsel %vm2304_vm14, %v2124_v45, 0.0  ;;  %2376 = vst [vmem:[%s3740_s24 + $0xd0] sm:$0xff] %v2124_v45 }
 0x2ee   : > { %v2411_v24 = vadd.f32 %v2410_v27, %v2340_v40  ;;  %v2454_v19 = vmul.f32 %v2340_v40, %v2340_v40  ;;  %v1643_v13 = vpop.f32.mrf.mxu2  ;;  %v2071_v59 = vpop.f32.mrf.mxu0 }
 0x2ef   : > { %v1697_v43 = vadd.f32 %v1643_v13, %v1483_v41  ;;  %v2265_v13 = vpop.permute.xlu1 %2264 }
 0x2f0   : > { %v2489_v14 = vadd.f32 %v2488_v54, %v2454_v19  ;;  %v1432_v20 = vpop.f32.mrf.mxu1  ;;  %v1857_v36 = vpop.f32.mrf.mxu3  ;;  %vm2309_vm3 = vcmp.eq.s32.totalorder %v2265_v13, 1 }
 0x2f1   : > { %v1911_v30 = vadd.f32 %v1857_v36, %v1697_v43  ;;  %v1484_v31 = vadd.f32 %v1432_v20, %v3655_v48 }
 0x2f3   : > { %v2125_v26 = vadd.f32 %v2071_v59, %v1911_v30 }
 0x2f5   : > { %v2341_v47 = vsel %vm2305_vm15, %v2125_v26, 0.0  ;;  %2377 = vst [vmem:[%s3740_s24 + $0xd8] sm:$0xff] %v2125_v26 }
 0x2f6   : > { %v2412_v4 = vadd.f32 %v2411_v24, %v2341_v47  ;;  %v2455_v23 = vmul.f32 %v2341_v47, %v2341_v47  ;;  %v1646_v49 = vpop.f32.mrf.mxu2  ;;  %v2074_v16 = vpop.f32.mrf.mxu0 }
 0x2f7   : > { %v1698_v3 = vadd.f32 %v1646_v49, %v1484_v31 }
 0x2f8   : > { %v2490_v37 = vadd.f32 %v2489_v14, %v2455_v23  ;;  %v1435_v51 = vpop.f32.mrf.mxu1  ;;  %v1860_v21 = vpop.f32.mrf.mxu3 }
 0x2f9   : > { %v1912_v7 = vadd.f32 %v1860_v21, %v1698_v3  ;;  %v1485_v53 = vadd.f32 %v1435_v51, %v3665_v8  ;;  %v2268_v23 = vpop.permute.xlu2 %2267 }
 0x2fa   : > { %vm2310_vm4 = vcmp.eq.s32.totalorder %v2268_v23, 1 }
 0x2fb   : > { %v2126_v6 = vadd.f32 %v2074_v16, %v1912_v7 }
 0x2fd   : > { %v2342_v61 = vsel %vm2306_vm0, %v2126_v6, 0.0  ;;  %2378 = vst [vmem:[%s3740_s24 + $0xe0] sm:$0xff] %v2126_v6 }
 0x2fe   : > { %v2413_v48 = vadd.f32 %v2412_v4, %v2342_v61  ;;  %v2456_v58 = vmul.f32 %v2342_v61, %v2342_v61  ;;  %v1649_v18 = vpop.f32.mrf.mxu2  ;;  %v2077_v50 = vpop.f32.mrf.mxu0 }
 0x2ff   : > { %v1699_v2 = vadd.f32 %v1649_v18, %v1485_v53  ;;  %v2271_v61 = vpop.permute.xlu0 %2270 }
 0x300   : > { %v2491_v42 = vadd.f32 %v2490_v37, %v2456_v58  ;;  %v1438_v17 = vpop.f32.mrf.mxu1  ;;  %v1863_v0 = vpop.f32.mrf.mxu3  ;;  %vm2311_vm5 = vcmp.eq.s32.totalorder %v2271_v61, 1 }
 0x301   : > { %v1913_v32 = vadd.f32 %v1863_v0, %v1699_v2  ;;  %v1486_v22 = vadd.f32 %v1438_v17, %v3675_v34  ;;  %v2277_v38 = vpop.permute.xlu2 %2276 }
 0x302   : > { %vm2313_vm7 = vcmp.eq.s32.totalorder %v2277_v38, 1 }
 0x303   : > { %v2127_v10 = vadd.f32 %v2077_v50, %v1913_v32 }
 0x305   : > { %v2343_v39 = vsel %vm2307_vm1, %v2127_v10, 0.0  ;;  %2379 = vst [vmem:[%s3740_s24 + $0xe8] sm:$0xff] %v2127_v10  ;;  %v2274_v10 = vpop.permute.xlu1 %2273 }
 0x306   : > { %v2414_v8 = vadd.f32 %v2413_v48, %v2343_v39  ;;  %v2457_v57 = vmul.f32 %v2343_v39, %v2343_v39  ;;  %v1652_v25 = vpop.f32.mrf.mxu2  ;;  %v2080_v60 = vpop.f32.mrf.mxu0  ;;  %vm2312_vm6 = vcmp.eq.s32.totalorder %v2274_v10, 1 }
 0x307   : > { %v1700_v56 = vadd.f32 %v1652_v25, %v1486_v22 }
 0x308   : > { %v2492_v33 = vadd.f32 %v2491_v42, %v2457_v57  ;;  %v1441_v27 = vpop.f32.mrf.mxu1  ;;  %v1866_v5 = vpop.f32.mrf.mxu3 }
 0x309   : > { %v1914_v9 = vadd.f32 %v1866_v5, %v1700_v56  ;;  %v1487_v54 = vadd.f32 %v1441_v27, %v3685_v12 }
 0x30b   : > { %v2128_v63 = vadd.f32 %v2080_v60, %v1914_v9 }
 0x30d   : > { %v2344_v55 = vsel %vm2308_vm2, %v2128_v63, 0.0  ;;  %2380 = vst [vmem:[%s3740_s24 + $0xf0] sm:$0xff] %v2128_v63 }
 0x30e   : > { %v2415_v34 = vadd.f32 %v2414_v8, %v2344_v55  ;;  %v2458_v46 = vmul.f32 %v2344_v55, %v2344_v55  ;;  %v1655_v1 = vpop.f32.mrf.mxu2  ;;  %v2083_v29 = vpop.f32.mrf.mxu0 }
 0x30f   : > { %v1701_v45 = vadd.f32 %v1655_v1, %v1487_v54 }
 0x310   : > { %v2493_v41 = vadd.f32 %v2492_v33, %v2458_v46  ;;  %v1444_v40 = vpop.f32.mrf.mxu1  ;;  %v1869_v24 = vpop.f32.mrf.mxu3 }
 0x311   : > { %v1915_v19 = vadd.f32 %v1869_v24, %v1701_v45  ;;  %v1488_v43 = vadd.f32 %v1444_v40, %v3695_v52 }
 0x313   : > { %v2129_v59 = vadd.f32 %v2083_v29, %v1915_v19 }
 0x315   : > { %v2345_v14 = vsel %vm2309_vm3, %v2129_v59, 0.0  ;;  %2381 = vst [vmem:[%s3740_s24 + $0xf8] sm:$0xff] %v2129_v59 }
 0x316   : > { %v2416_v12 = vadd.f32 %v2415_v34, %v2345_v14  ;;  %v2459_v20 = vmul.f32 %v2345_v14, %v2345_v14  ;;  %v1658_v36 = vpop.f32.mrf.mxu2  ;;  %v2086_v30 = vpop.f32.mrf.mxu0 }
 0x317   : > { %v1702_v62 = vadd.f32 %v1658_v36, %v1488_v43 }
 0x318   : > { %v2494_v26 = vadd.f32 %v2493_v41, %v2459_v20  ;;  %v1447_v31 = vpop.f32.mrf.mxu1  ;;  %v1872_v47 = vpop.f32.mrf.mxu3 }
 0x319   : > { %v1916_v4 = vadd.f32 %v1872_v47, %v1702_v62  ;;  %v1489_v16 = vadd.f32 %v1447_v31, %v3705_v44 }
 0x31b   : > { %v2130_v49 = vadd.f32 %v2086_v30, %v1916_v4 }
 0x31d   : > { %v2346_v3 = vsel %vm2310_vm4, %v2130_v49, 0.0  ;;  %2382 = vst [vmem:[%s3740_s24 + $0x100] sm:$0xff] %v2130_v49 }
 0x31e   : > { %v2417_v52 = vadd.f32 %v2416_v12, %v2346_v3  ;;  %v2460_v37 = vmul.f32 %v2346_v3, %v2346_v3  ;;  %v1661_v51 = vpop.f32.mrf.mxu2  ;;  %v2089_v21 = vpop.f32.mrf.mxu0 }
 0x31f   : > { %v1703_v7 = vadd.f32 %v1661_v51, %v1489_v16 }
 0x320   : > { %v2495_v28 = vadd.f32 %v2494_v26, %v2460_v37  ;;  %v1450_v6 = vpop.f32.mrf.mxu1  ;;  %v1875_v53 = vpop.f32.mrf.mxu3 }
 0x321   : > { %v1917_v48 = vadd.f32 %v1875_v53, %v1703_v7  ;;  %v1490_v18 = vadd.f32 %v1450_v6, %v3715_v35 }
 0x323   : > { %v2131_v58 = vadd.f32 %v2089_v21, %v1917_v48 }
 0x325   : > { %v2347_v50 = vsel %vm2311_vm5, %v2131_v58, 0.0  ;;  %2383 = vst [vmem:[%s3740_s24 + $0x108] sm:$0xff] %v2131_v58 }
 0x326   : > { %v2418_v44 = vadd.f32 %v2417_v52, %v2347_v50  ;;  %v2461_v2 = vmul.f32 %v2347_v50, %v2347_v50  ;;  %v1664_v42 = vpop.f32.mrf.mxu2  ;;  %v2092_v17 = vpop.f32.mrf.mxu0 }
 0x327   : > { %v1704_v0 = vadd.f32 %v1664_v42, %v1490_v18 }
 0x328   : > { %v2496_v32 = vadd.f32 %v2495_v28, %v2461_v2  ;;  %v1878_v15 = vpop.f32.mrf.mxu3  ;;  %v1453_v39 = vpop.f32.mrf.mxu1 }
 0x329   : > { %v1918_v22 = vadd.f32 %v1878_v15, %v1704_v0  ;;  %v1491_v57 = vadd.f32 %v1453_v39, %v3725_v11 }
 0x32b   : > { %v2132_v8 = vadd.f32 %v2092_v17, %v1918_v22 }
 0x32d   : > { %v2348_v25 = vsel %vm2312_vm6, %v2132_v8, 0.0  ;;  %2384 = vst [vmem:[%s3740_s24 + $0x110] sm:$0xff] %v2132_v8 }
 0x32e   : > { %v2419_v35 = vadd.f32 %v2418_v44, %v2348_v25  ;;  %v2462_v60 = vmul.f32 %v2348_v25, %v2348_v25  ;;  %v1667_v56 = vpop.f32.mrf.mxu2  ;;  %v2095_v9 = vpop.f32.mrf.mxu0 }
 0x32f   : > { %v1705_v33 = vadd.f32 %v1667_v56, %v1491_v57 }
 0x330   : > { %v2497_v27 = vadd.f32 %v2496_v32, %v2462_v60  ;;  %v1881_v5 = vpop.f32.mrf.mxu3 }
 0x331   : > { %v1919_v63 = vadd.f32 %v1881_v5, %v1705_v33 }
 0x333   : > { %v2133_v54 = vadd.f32 %v2095_v9, %v1919_v63 }
 0x335   : > { %v2349_v55 = vsel %vm2313_vm7, %v2133_v54, 0.0  ;;  %2385 = vst [vmem:[%s3740_s24 + $0x118] sm:$0xff] %v2133_v54 }
 0x336   : > { %v2420_v34 = vadd.f32 %v2419_v35, %v2349_v55  ;;  %v2463_v46 = vmul.f32 %v2349_v55, %v2349_v55 }
 0x338   : > { %v2421_v1 = vrot.slane %v2420_v34, 4  ;;  %v2498_v11 = vadd.f32 %v2497_v27, %v2463_v46 }
 0x33a   : > { %v2422_v29 = vadd.f32 %v2421_v1, %v2420_v34  ;;  %v2499_v45 = vrot.slane %v2498_v11, 4 }
 0x33c   : > { %v2423_v41 = vrot.slane %v2422_v29, 2  ;;  %v2500_v40 = vadd.f32 %v2499_v45, %v2498_v11 }
 0x33e   : > { %v2424_v24 = vadd.f32 %v2423_v41, %v2422_v29  ;;  %v2501_v19 = vrot.slane %v2500_v40, 2 }
 0x340   : > { %v2425_v13 = vrot.slane %v2424_v24, 1  ;;  %v2502_v59 = vadd.f32 %v2501_v19, %v2500_v40 }
 0x342   : > { %v2426_v43 = vadd.f32 %v2425_v13, %v2424_v24  ;;  %v2503_v14 = vrot.slane %v2502_v59, 1 }
 0x344   : > { %2427 = vst [vmem:[%s208_s18] sm:$0x1] %v2426_v43  ;;  %v2504_v12 = vadd.f32 %v2503_v14, %v2502_v59 }
 0x346   : > { %2505 = vst [vmem:[%s208_s18 + $0x1] sm:$0x1] %v2504_v12 }
 0x347 PF: > { %s15_s15 = sadd.s32 1, %s2798_s15  }
 0x348   : > { %p12_p4 = scmp.ge.s32.totalorder %s15_s15, 4  }
 0x34a   :  { %14 = sbr.rel (!%p12_p4) target bundleno = 1 (0x1), region = 82 }

// kernel: residual_block.3
= control target key start
LH: loop header
LB: loop body
LE: loop exit
PB: predicated region body
PF: predicated region fallthrough
CT: control target
= control target key end

     0   :  { %s3176_s18 = smov 0   ;;  %s4786_s0 = inlined_call_operand.vmem [shape: f32[288,1], index: 0, kind: input, shape index: {}]   ;;  %s4787_s1 = inlined_call_operand.vmem [shape: f32[2,288,128], index: 1, kind: input, shape index: {}]   ;;  %s4788_s2 = inlined_call_operand.vmem [shape: f32[2,128], index: 2, kind: input, shape index: {}]   ;;  %s4789_s3 = inlined_call_operand.vmem [shape: f32[9,128,128], index: 3, kind: input, shape index: {}]   ;;  %s4790_s4 = inlined_call_operand.vmem [shape: f32[2,288,128], index: 4, kind: output, shape index: {0}]   ;;  %s4791_s5 = inlined_call_operand.vmem [shape: f32[2,2,128], index: 5, kind: output, shape index: {1}]  }
   0x1 LB: > { %s2921_s19 = sadd.s32 4294967295, %s3142_s18   ;;  %p2925_p0 = scmp.ge.s32.totalorder %s3142_s18, 1  ;;  %s3142_s18 = sphi %s3176_s18, %s16_s18  }
   0x2   : > { %p190_p1 = scmp.lt.s32.totalorder %s3142_s18, 3 }
   0x4   : > { %p191_p2 = pnand %p2925_p0, %p190_p1 }
   0x6   : > { %194 = sbr.rel (%p191_p2) target bundleno = 957 (0x3bd), region = 36 }
   0xb   : > { %v260_v0 = vld [vmem:[%s4786_s0 + $0xc0] sm:$0xff]  ;;  %v251_v1 = vld [vmem:[%s4786_s0 + $0x78] sm:$0xff]  ;;  %v242_v2 = vld [vmem:[%s4786_s0 + $0x30] sm:$0xff]  ;;  %v3144_v3 = vmov 0   ;;  %p3303_p3 = scmp.lt.s32.totalorder %s2921_s19, 1 }
   0xc   : > { %3120 = vset.pattern.permute.xlu2 %v3144_v3  ;;  %3119 = vset.pattern.permute.xlu1 %v3144_v3  ;;  %vm296_vm0 = vcmp.gt.f32.partialorder %v260_v0, 0.0  ;;  %vm287_vm1 = vcmp.gt.f32.partialorder %v251_v1, 0.0  ;;  %vm278_vm2 = vcmp.gt.f32.partialorder %v242_v2, 0.0  ;;  %v261_v7 = vld [vmem:[%s4786_s0 + $0xc8] sm:$0xff]  ;;  %v252_v8 = vld [vmem:[%s4786_s0 + $0x80] sm:$0xff]  ;;  %v243_v9 = vld [vmem:[%s4786_s0 + $0x38] sm:$0xff] }
   0xd   : > { %3118 = vset.pattern.permute.xlu0 %v3144_v3  ;;  %v562_v4 = vsel %vm296_vm0, 1, %v3144_v3  ;;  %v553_v5 = vsel %vm287_vm1, 1, %v3144_v3  ;;  %v544_v6 = vsel %vm278_vm2, 1, %v3144_v3  ;;  %vm297_vm3 = vcmp.gt.f32.partialorder %v261_v7, 0.0  ;;  %v262_v13 = vld [vmem:[%s4786_s0 + $0xd0] sm:$0xff]  ;;  %v253_v14 = vld [vmem:[%s4786_s0 + $0x88] sm:$0xff] }
   0xe   : > { %647 = vperm.xlu1 %3119, %v562_v4   ;;  %620 = vperm.xlu0 %3118, %v553_v5   ;;  %vm288_vm4 = vcmp.gt.f32.partialorder %v252_v8, 0.0  ;;  %vm279_vm5 = vcmp.gt.f32.partialorder %v243_v9, 0.0  ;;  %v563_v10 = vsel %vm297_vm3, 1, %v3144_v3  ;;  %v244_v15 = vld [vmem:[%s4786_s0 + $0x40] sm:$0xff]  ;;  %vm298_vm6 = vcmp.gt.f32.partialorder %v262_v13, 0.0  ;;  %v263_v19 = vld [vmem:[%s4786_s0 + $0xd8] sm:$0xff] }
   0xf   : > { %593 = vperm.xlu2 %3120, %v544_v6   ;;  %v554_v11 = vsel %vm288_vm4, 1, %v3144_v3  ;;  %v545_v12 = vsel %vm279_vm5, 1, %v3144_v3  ;;  %vm289_vm7 = vcmp.gt.f32.partialorder %v253_v14, 0.0  ;;  %vm280_vm8 = vcmp.gt.f32.partialorder %v244_v15, 0.0  ;;  %v254_v20 = vld [vmem:[%s4786_s0 + $0x90] sm:$0xff]  ;;  %v245_v21 = vld [vmem:[%s4786_s0 + $0x48] sm:$0xff] }
  0x10   : > { %v564_v16 = vsel %vm298_vm6, 1, %v3144_v3  ;;  %v555_v17 = vsel %vm289_vm7, 1, %v3144_v3  ;;  %v546_v18 = vsel %vm280_vm8, 1, %v3144_v3  ;;  %vm299_vm9 = vcmp.gt.f32.partialorder %v263_v19, 0.0  ;;  %v255_v25 = vld [vmem:[%s4786_s0 + $0x98] sm:$0xff]  ;;  %v236_v26 = vld [vmem:[%s4786_s0] sm:$0xff] }
  0x11   : > { %vm290_vm10 = vcmp.gt.f32.partialorder %v254_v20, 0.0  ;;  %vm281_vm11 = vcmp.gt.f32.partialorder %v245_v21, 0.0  ;;  %v565_v22 = vsel %vm299_vm9, 1, %v3144_v3  ;;  %v264_v27 = vld [vmem:[%s4786_s0 + $0xe0] sm:$0xff]  ;;  %vm291_vm12 = vcmp.gt.f32.partialorder %v255_v25, 0.0  ;;  %v246_v31 = vld [vmem:[%s4786_s0 + $0x50] sm:$0xff] }
  0x12   : > { %v556_v23 = vsel %vm290_vm10, 1, %v3144_v3  ;;  %v547_v24 = vsel %vm281_vm11, 1, %v3144_v3  ;;  %vm272_vm13 = vcmp.gt.f32.partialorder %v236_v26, 0.0  ;;  %vm300_vm14 = vcmp.gt.f32.partialorder %v264_v27, 0.0  ;;  %v256_v32 = vld [vmem:[%s4786_s0 + $0xa0] sm:$0xff]  ;;  %v237_v33 = vld [vmem:[%s4786_s0 + $0x8] sm:$0xff] }
  0x13   : > { %v557_v28 = vsel %vm291_vm12, 1, %v3144_v3  ;;  %v538_v29 = vsel %vm272_vm13, 1, %v3144_v3  ;;  %v566_v30 = vsel %vm300_vm14, 1, %v3144_v3  ;;  %vm282_vm15 = vcmp.gt.f32.partialorder %v246_v31, 0.0  ;;  %v265_v37 = vld [vmem:[%s4786_s0 + $0xe8] sm:$0xff]  ;;  %v247_v38 = vld [vmem:[%s4786_s0 + $0x58] sm:$0xff] }
  0x14   : > { %vm292_vm0 = vcmp.gt.f32.partialorder %v256_v32, 0.0  ;;  %vm273_vm1 = vcmp.gt.f32.partialorder %v237_v33, 0.0  ;;  %v548_v34 = vsel %vm282_vm15, 1, %v3144_v3  ;;  %v257_v39 = vld [vmem:[%s4786_s0 + $0xa8] sm:$0xff]  ;;  %vm301_vm2 = vcmp.gt.f32.partialorder %v265_v37, 0.0  ;;  %v238_v43 = vld [vmem:[%s4786_s0 + $0x10] sm:$0xff] }
  0x15   : > { %v558_v35 = vsel %vm292_vm0, 1, %v3144_v3  ;;  %v539_v36 = vsel %vm273_vm1, 1, %v3144_v3  ;;  %vm283_vm3 = vcmp.gt.f32.partialorder %v247_v38, 0.0  ;;  %vm293_vm4 = vcmp.gt.f32.partialorder %v257_v39, 0.0  ;;  %v266_v44 = vld [vmem:[%s4786_s0 + $0xf0] sm:$0xff]  ;;  %v248_v45 = vld [vmem:[%s4786_s0 + $0x60] sm:$0xff] }
  0x16   : > { %650 = vperm.xlu1 %3119, %v563_v10   ;;  %623 = vperm.xlu0 %3118, %v554_v11   ;;  %v567_v40 = vsel %vm301_vm2, 1, %v3144_v3  ;;  %v549_v41 = vsel %vm283_vm3, 1, %v3144_v3  ;;  %v559_v42 = vsel %vm293_vm4, 1, %v3144_v3  ;;  %v2944_v46 = vld [vmem:[%s4789_s3 + $0xf8] sm:$0xff]  ;;  %v2943_v47 = vld [vmem:[%s4789_s3 + $0xf0] sm:$0xff]  ;;  %vm274_vm5 = vcmp.gt.f32.partialorder %v238_v43, 0.0 }
  0x17   : > { %596 = vperm.xlu2 %3120, %v545_v12   ;;  %vm302_vm6 = vcmp.gt.f32.partialorder %v266_v44, 0.0  ;;  %3059 = vmatpush.msra.mxu1 %v2944_v46  ;;  %vm284_vm7 = vcmp.gt.f32.partialorder %v248_v45, 0.0  ;;  %v540_v48 = vsel %vm274_vm5, 1, %v3144_v3  ;;  %v258_v51 = vld [vmem:[%s4786_s0 + $0xb0] sm:$0xff]  ;;  %v239_v52 = vld [vmem:[%s4786_s0 + $0x18] sm:$0xff]  ;;  %v2942_v54 = vld [vmem:[%s4789_s3 + $0xe8] sm:$0xff] }
  0x18   : > { %3060 = vmatpush.msra.mxu2 %v2944_v46  ;;  %3061 = vmatpush.msra.mxu3 %v2944_v46  ;;  %v568_v49 = vsel %vm302_vm6, 1, %v3144_v3  ;;  %v550_v50 = vsel %vm284_vm7, 1, %v3144_v3  ;;  %v267_v53 = vld [vmem:[%s4786_s0 + $0xf8] sm:$0xff]  ;;  %vm294_vm8 = vcmp.gt.f32.partialorder %v258_v51, 0.0  ;;  %vm275_vm9 = vcmp.gt.f32.partialorder %v239_v52, 0.0  ;;  %v2941_v55 = vld [vmem:[%s4789_s3 + $0xe0] sm:$0xff] }
  0x19   : > { %895 = vmatpush.msra.mxu0 %v2944_v46  ;;  %3062 = vmatpush.msra.mxu1 %v2943_v47  ;;  %vm303_vm10 = vcmp.gt.f32.partialorder %v267_v53, 0.0  ;;  %v560_v56 = vsel %vm294_vm8, 1, %v3144_v3  ;;  %v541_v57 = vsel %vm275_vm9, 1, %v3144_v3  ;;  %v2940_v59 = vld [vmem:[%s4789_s3 + $0xd8] sm:$0xff]  ;;  %v2939_v60 = vld [vmem:[%s4789_s3 + $0xd0] sm:$0xff]  ;;  %v249_v61 = vld [vmem:[%s4786_s0 + $0x68] sm:$0xff] }
  0x1a   : > { %3063 = vmatpush.msra.mxu2 %v2943_v47  ;;  %3064 = vmatpush.msra.mxu3 %v2943_v47  ;;  %v569_v58 = vsel %vm303_vm10, 1, %v3144_v3  ;;  %v259_v62 = vld [vmem:[%s4786_s0 + $0xb8] sm:$0xff]  ;;  %v240_v63 = vld [vmem:[%s4786_s0 + $0x20] sm:$0xff]  ;;  %s4934_s19 = smov (!%p3303_p3, %s2921_s19), 1  ;;  %v2938_v0 = vld [vmem:[%s4789_s3 + $0xc8] sm:$0xff]  ;;  %vm285_vm11 = vcmp.gt.f32.partialorder %v249_v61, 0.0 }
  0x1b   : > { %896 = vmatpush.msra.mxu0 %v2943_v47  ;;  %3065 = vmatpush.msra.mxu1 %v2942_v54  ;;  %vm295_vm12 = vcmp.gt.f32.partialorder %v259_v62, 0.0  ;;  %vm276_vm13 = vcmp.gt.f32.partialorder %v240_v63, 0.0  ;;  %s3107_s26 = smul.u32 288, %s4934_s19  ;;  %v2937_v1 = vld [vmem:[%s4789_s3 + $0xc0] sm:$0xff]  ;;  %v551_v2 = vsel %vm285_vm11, 1, %v3144_v3  ;;  %v2936_v6 = vld [vmem:[%s4789_s3 + $0xb8] sm:$0xff] }
  0x1c   : > { %3066 = vmatpush.msra.mxu2 %v2942_v54  ;;  %3067 = vmatpush.msra.mxu3 %v2942_v54  ;;  %v561_v4 = vsel %vm295_vm12, 1, %v3144_v3  ;;  %v542_v5 = vsel %vm276_vm13, 1, %v3144_v3  ;;  %v2935_v7 = vld [vmem:[%s4789_s3 + $0xb0] sm:$0xff]  ;;  %v268_v8 = vld [vmem:[%s4786_s0 + $0x100] sm:$0xff]  ;;  %v241_v10 = vld [vmem:[%s4786_s0 + $0x28] sm:$0xff] }
  0x1d   : > { %897 = vmatpush.msra.mxu0 %v2942_v54  ;;  %3068 = vmatpush.msra.mxu1 %v2941_v55  ;;  %v250_v9 = vld [vmem:[%s4786_s0 + $0x70] sm:$0xff]  ;;  %s3364_s16 = scalar_lea.vmem %s4787_s1, %s3107_s26  ;;  %v2934_v11 = vld [vmem:[%s4789_s3 + $0xa8] sm:$0xff]  ;;  %vm304_vm14 = vcmp.gt.f32.partialorder %v268_v8, 0.0  ;;  %v3372_v12 = vld [vmem:[%s4788_s2] ss:$0 sm:$0xff]  ;;  %vm277_vm0 = vcmp.gt.f32.partialorder %v241_v10, 0.0  ;;  %s4541_s24 = scalar_lea.vmem %s4790_s4, %s3107_s26 }
  0x1e   : > { %653 = vperm.xlu1 %3119, %v564_v16   ;;  %626 = vperm.xlu0 %3118, %v555_v17   ;;  %vm286_vm15 = vcmp.gt.f32.partialorder %v250_v9, 0.0  ;;  %v324_v13 = vld [vmem:[%s3364_s16 + $0x30] sm:$0xff]  ;;  %v2933_v14 = vld [vmem:[%s4789_s3 + $0xa0] sm:$0xff]  ;;  %v570_v15 = vsel %vm304_vm14, 1, %v3144_v3  ;;  %v543_v17 = vsel %vm277_vm0, 1, %v3144_v3  ;;  %v2932_v20 = vld [vmem:[%s4789_s3 + $0x98] sm:$0xff] }
  0x1f   : > { %599 = vperm.xlu2 %3120, %v546_v18   ;;  %3069 = vmatpush.msra.mxu2 %v2941_v55  ;;  %v552_v16 = vsel %vm286_vm15, 1, %v3144_v3  ;;  %v3384_v18 = vld [vmem:[%s4788_s2 + $0x1] ss:$0 sm:$0xff]  ;;  %v362_v19 = vmul.f32 %v3372_v12, %v324_v13  ;;  %v2931_v21 = vld [vmem:[%s4789_s3 + $0x90] sm:$0xff]  ;;  %v2930_v25 = vld [vmem:[%s4789_s3 + $0x88] sm:$0xff]  ;;  %v3145_v54 = vmov 0.0  }
  0x20   : > { %3070 = vmatpush.msra.mxu3 %v2941_v55  ;;  %898 = vmatpush.msra.mxu0 %v2941_v55  ;;  %v325_v27 = vld [vmem:[%s3364_s16 + $0x38] sm:$0xff]  ;;  %v342_v43 = vld [vmem:[%s3364_s16 + $0xc0] sm:$0xff]  ;;  %v327_v45 = vld [vmem:[%s3364_s16 + $0x48] sm:$0xff]  ;;  %310 = vst [vmem:[#allocation2 + $0x10] sm:$0xff] %v3145_v54  ;;  %s2928_s26 = sshll.u32 %s4934_s19, 1 }
  0x21   : > { %3071 = vmatpush.msra.mxu1 %v2940_v59  ;;  %3072 = vmatpush.msra.mxu2 %v2940_v59  ;;  %v400_v26 = vadd.f32 %v3384_v18, %v362_v19  ;;  %v363_v33 = vmul.f32 %v3372_v12, %v325_v27  ;;  %v343_v53 = vld [vmem:[%s3364_s16 + $0xc8] sm:$0xff]  ;;  %311 = vst [vmem:[#allocation2 + $0x18] sm:$0xff] %v3145_v54  ;;  %s235_s28 = scalar_lea.vmem %s4791_s5, %s2928_s26 }
  0x22   : > { %3073 = vmatpush.msra.mxu3 %v2940_v59  ;;  %899 = vmatpush.msra.mxu0 %v2940_v59  ;;  %v346_v59 = vld [vmem:[%s3364_s16 + $0xe0] sm:$0xff]  ;;  %v381_v61 = vmul.f32 %v3372_v12, %v343_v53  ;;  %313 = vst [vmem:[#allocation2 + $0x144] sm:$0xff] %v3145_v54  ;;  %v319_v19 = vld [vmem:[%s3364_s16 + $0x8] sm:$0xff] }
  0x23   : > { %3074 = vmatpush.msra.mxu1 %v2939_v60  ;;  %3075 = vmatpush.msra.mxu2 %v2939_v60  ;;  %v472_v32 = vmul.f32 0.2, %v400_v26  ;;  %vm436_vm4 = vcmp.gt.f32.partialorder %v400_v26, 0.0  ;;  %312 = vst [vmem:[#allocation2 + $0x20] sm:$0xf] %v3145_v54 }
  0x24   : > { %3076 = vmatpush.msra.mxu3 %v2939_v60  ;;  %900 = vmatpush.msra.mxu0 %v2939_v60  ;;  %314 = vst [vmem:[#allocation2 + $0x14c] sm:$0xff] %v3145_v54 }
  0x25   : > { %3077 = vmatpush.msra.mxu1 %v2938_v0  ;;  %3078 = vmatpush.msra.mxu2 %v2938_v0  ;;  %315 = vst [vmem:[#allocation2 + $0x154] sm:$0xff] %v3145_v54 }
  0x26   : > { %656 = vperm.xlu1 %3119, %v565_v22   ;;  %629 = vperm.xlu0 %3118, %v556_v23   ;;  %v269_v22 = vld [vmem:[%s4786_s0 + $0x108] sm:$0xff]  ;;  %v270_v23 = vld [vmem:[%s4786_s0 + $0x110] sm:$0xff] }
  0x27   : > { %602 = vperm.xlu2 %3120, %v547_v24   ;;  %3080 = vmatpush.msra.mxu1 %v2937_v1  ;;  %v271_v24 = vld [vmem:[%s4786_s0 + $0x118] sm:$0xff]  ;;  %vm305_vm1 = vcmp.gt.f32.partialorder %v269_v22, 0.0  ;;  %vm306_vm2 = vcmp.gt.f32.partialorder %v270_v23, 0.0 }
  0x28   : > { %3079 = vmatpush.msra.mxu3 %v2938_v0  ;;  %3081 = vmatpush.msra.mxu2 %v2937_v1  ;;  %vm307_vm3 = vcmp.gt.f32.partialorder %v271_v24, 0.0  ;;  %v842_v9 = vld [vmem:[#allocation2 + $0x12] sm:$0xff] }
  0x29   : > { %3083 = vmatpush.msra.mxu1 %v2936_v6  ;;  %901 = vmatpush.msra.mxu0 %v2938_v0  ;;  %v573_v31 = vsel %vm307_vm3, 1, %v3144_v3 }
  0x2a   : > { %3082 = vmatpush.msra.mxu3 %v2937_v1  ;;  %3084 = vmatpush.msra.mxu2 %v2936_v6 }
  0x2b   : > { %3086 = vmatpush.msra.mxu1 %v2935_v7  ;;  %902 = vmatpush.msra.mxu0 %v2937_v1 }
  0x2c   : > { %3085 = vmatpush.msra.mxu3 %v2936_v6  ;;  %3087 = vmatpush.msra.mxu2 %v2935_v7 }
  0x2d   : > { %3089 = vmatpush.msra.mxu1 %v2934_v11  ;;  %903 = vmatpush.msra.mxu0 %v2936_v6 }
  0x2e   : > { %632 = vperm.xlu0 %3118, %v557_v28   ;;  %575 = vperm.xlu1 %3119, %v538_v29   ;;  %v2929_v28 = vld [vmem:[%s4789_s3 + $0x80] sm:$0xff]  ;;  %v571_v29 = vsel %vm305_vm1, 1, %v3144_v3 }
  0x2f   : > { %659 = vperm.xlu2 %3120, %v566_v30   ;;  %3092 = vmatpush.msra.mxu1 %v2933_v14  ;;  %v572_v30 = vsel %vm306_vm2, 1, %v3144_v3  ;;  %v326_v3 = vld [vmem:[%s3364_s16 + $0x40] sm:$0xff] }
  0x30   : > { %3088 = vmatpush.msra.mxu3 %v2935_v7  ;;  %3090 = vmatpush.msra.mxu2 %v2934_v11  ;;  %v364_v39 = vmul.f32 %v3372_v12, %v326_v3  ;;  %v2975_v3 = vld [vmem:[%s4789_s3 + $0x1f0] sm:$0xff] }
  0x31   : > { %3095 = vmatpush.msra.mxu1 %v2932_v20  ;;  %904 = vmatpush.msra.mxu0 %v2935_v7 }
  0x32   : > { %3091 = vmatpush.msra.mxu3 %v2934_v11  ;;  %3093 = vmatpush.msra.mxu2 %v2933_v14 }
  0x33   : > { %3098 = vmatpush.msra.mxu1 %v2931_v21  ;;  %905 = vmatpush.msra.mxu0 %v2934_v11 }
  0x34   : > { %3094 = vmatpush.msra.mxu3 %v2933_v14  ;;  %3096 = vmatpush.msra.mxu2 %v2932_v20 }
  0x35   : > { %3101 = vmatpush.msra.mxu1 %v2930_v25  ;;  %906 = vmatpush.msra.mxu0 %v2933_v14 }
  0x36   : > { %605 = vperm.xlu0 %3118, %v548_v34   ;;  %635 = vperm.xlu1 %3119, %v558_v35   ;;  %v508_v34 = vsel %vm436_vm4, %v400_v26, %v472_v32  ;;  %v401_v35 = vadd.f32 %v3384_v18, %v363_v33  ;;  %v2976_v32 = vld [vmem:[%s4789_s3 + $0x1f8] sm:$0xff] }
  0x37   : > { %578 = vperm.xlu2 %3120, %v539_v36   ;;  %3104 = vmatpush.msra.mxu1 %v2929_v28  ;;  %v841_v33 = vld [vmem:[%s4789_s3 + $0x78] sm:$0xff] }
  0x38   : > { %3097 = vmatpush.msra.mxu3 %v2932_v20  ;;  %3099 = vmatpush.msra.mxu2 %v2931_v21  ;;  %v473_v38 = vmul.f32 0.2, %v401_v35  ;;  %vm437_vm6 = vcmp.gt.f32.partialorder %v401_v35, 0.0 }
  0x39   : > { %907 = vmatpush.msra.mxu0 %v2932_v20  ;;  %1020 = vmatpush.msrb.mxu1 %v841_v33  ;;  %v2973_v33 = vld [vmem:[%s4789_s3 + $0x1e0] sm:$0xff] }
  0x3a   : > { %3100 = vmatpush.msra.mxu3 %v2931_v21  ;;  %3102 = vmatpush.msra.mxu2 %v2930_v25 }
  0x3b   : > { %908 = vmatpush.msra.mxu0 %v2931_v21 }
  0x3c   : > { %3103 = vmatpush.msra.mxu3 %v2930_v25  ;;  %3105 = vmatpush.msra.mxu2 %v2929_v28 }
  0x3d   : > { %909 = vmatpush.msra.mxu0 %v2930_v25 }
  0x3e   : > { %662 = vperm.xlu0 %3118, %v567_v40   ;;  %608 = vperm.xlu1 %3119, %v549_v41   ;;  %v333_v40 = vld [vmem:[%s3364_s16 + $0x78] sm:$0xff]  ;;  %v509_v41 = vsel %vm437_vm6, %v401_v35, %v473_v38  ;;  %v2959_v35 = vld [vmem:[%s4789_s3 + $0x170] sm:$0xff] }
  0x3f   : > { %638 = vperm.xlu2 %3120, %v559_v42   ;;  %3106 = vmatpush.msra.mxu3 %v2929_v28  ;;  %v402_v42 = vadd.f32 %v3384_v18, %v364_v39  ;;  %v371_v46 = vmul.f32 %v3372_v12, %v333_v40 }
  0x40   : > { %910 = vmatpush.msra.mxu0 %v2929_v28 }
  0x41   : > { %vm438_vm8 = vcmp.gt.f32.partialorder %v402_v42, 0.0  ;;  %v409_v51 = vadd.f32 %v3384_v18, %v371_v46  ;;  %911 = vmatmul.f32.vlgmr.msra.gmra.mxu0 %v842_v9  ;;  %1412 = vmatpush.msrb.mxu3 %v2976_v32  ;;  %v336_v46 = vld [vmem:[%s3364_s16 + $0x90] sm:$0xff] }
  0x42   : > { %v328_v32 = vld [vmem:[%s3364_s16 + $0x50] sm:$0xff] }
  0x43   : > { %v481_v60 = vmul.f32 0.2, %v409_v51  ;;  %vm445_vm11 = vcmp.gt.f32.partialorder %v409_v51, 0.0  ;;  %1413 = vmatpush.msrb.mxu3 %v2975_v3  ;;  %v2956_v3 = vld [vmem:[%s4789_s3 + $0x158] sm:$0xff] }
  0x45   : > { %v517_v7 = vsel %vm445_vm11, %v409_v51, %v481_v60 }
  0x46   : > { %581 = vperm.xlu0 %3118, %v540_v48   ;;  %665 = vperm.xlu1 %3119, %v568_v49   ;;  %v380_v48 = vmul.f32 %v3372_v12, %v342_v43  ;;  %v474_v49 = vmul.f32 0.2, %v402_v42 }
  0x47   : > { %611 = vperm.xlu2 %3120, %v550_v50   ;;  %v365_v50 = vmul.f32 %v3372_v12, %v327_v45 }
  0x48   : > { %v418_v52 = vadd.f32 %v3384_v18, %v380_v48  ;;  %v510_v55 = vsel %vm438_vm8, %v402_v42, %v474_v49  ;;  %v339_v49 = vld [vmem:[%s3364_s16 + $0xa8] sm:$0xff] }
  0x4a   : > { %v490_v63 = vmul.f32 0.2, %v418_v52  ;;  %vm454_vm10 = vcmp.gt.f32.partialorder %v418_v52, 0.0 }
  0x4c   : > { %v526_v6 = vsel %vm454_vm10, %v418_v52, %v490_v63  ;;  %v2992_v63 = vld [vmem:[%s4789_s3 + $0x278] sm:$0xff] }
  0x4d   : > { %1626 = vmatpush.msrb.mxu0 %v2992_v63 }
  0x4e   : > { %641 = vperm.xlu0 %3118, %v560_v56   ;;  %584 = vperm.xlu1 %3119, %v541_v57   ;;  %v403_v56 = vadd.f32 %v3384_v18, %v365_v50  ;;  %v334_v57 = vld [vmem:[%s3364_s16 + $0x80] sm:$0xff] }
  0x4f   : > { %668 = vperm.xlu2 %3120, %v569_v58   ;;  %v372_v1 = vmul.f32 %v3372_v12, %v334_v57 }
  0x50   : > { %vm439_vm12 = vcmp.gt.f32.partialorder %v403_v56, 0.0 }
  0x51   : > { %v410_v8 = vadd.f32 %v3384_v18, %v372_v1  ;;  %v839_v1 = vld [vmem:[%s4789_s3 + $0x68] sm:$0xff] }
  0x53   : > { %v482_v24 = vmul.f32 0.2, %v410_v8  ;;  %vm446_vm1 = vcmp.gt.f32.partialorder %v410_v8, 0.0 }
  0x55   : > { %v518_v38 = vsel %vm446_vm1, %v410_v8, %v482_v24  ;;  %v2991_v8 = vld [vmem:[%s4789_s3 + $0x270] sm:$0xff] }
  0x56   : > { %614 = vperm.xlu0 %3118, %v551_v2   ;;  %644 = vperm.xlu1 %3119, %v561_v4   ;;  %v475_v2 = vmul.f32 0.2, %v403_v56  ;;  %v384_v4 = vmul.f32 %v3372_v12, %v346_v59  ;;  %v377_v59 = vmul.f32 %v3372_v12, %v339_v49 }
  0x57   : > { %587 = vperm.xlu2 %3120, %v542_v5   ;;  %v419_v5 = vadd.f32 %v3384_v18, %v381_v61  ;;  %v840_v61 = vld [vmem:[%s4789_s3 + $0x70] sm:$0xff]  ;;  %1627 = vmatpush.msrb.mxu0 %v2991_v8  ;;  %v2954_v8 = vld [vmem:[%s4789_s3 + $0x148] sm:$0xff] }
  0x58   : > { %v511_v13 = vsel %vm439_vm12, %v403_v56, %v475_v2  ;;  %v422_v14 = vadd.f32 %v3384_v18, %v384_v4  ;;  %1021 = vmatpush.msrb.mxu1 %v840_v61 }
  0x59   : > { %v491_v22 = vmul.f32 0.2, %v419_v5  ;;  %vm455_vm0 = vcmp.gt.f32.partialorder %v419_v5, 0.0 }
  0x5a   : > { %v494_v28 = vmul.f32 0.2, %v422_v14  ;;  %vm458_vm2 = vcmp.gt.f32.partialorder %v422_v14, 0.0  ;;  %1022 = vmatpush.msrb.mxu1 %v839_v1 }
  0x5c   : > { %v530_v43 = vsel %vm458_vm2, %v422_v14, %v494_v28 }
  0x5e   : > { %671 = vperm.xlu0 %3118, %v570_v15   ;;  %617 = vperm.xlu1 %3119, %v552_v16   ;;  %v344_v15 = vld [vmem:[%s3364_s16 + $0xd0] sm:$0xff]  ;;  %v335_v16 = vld [vmem:[%s3364_s16 + $0x88] sm:$0xff] }
  0x5f   : > { %590 = vperm.xlu2 %3120, %v543_v17   ;;  %v382_v26 = vmul.f32 %v3372_v12, %v344_v15  ;;  %v373_v27 = vmul.f32 %v3372_v12, %v335_v16  ;;  %v415_v15 = vadd.f32 %v3384_v18, %v377_v59  ;;  %v318_v16 = vld [vmem:[%s3364_s16] sm:$0xff] }
  0x61   : > { %v420_v39 = vadd.f32 %v3384_v18, %v382_v26  ;;  %v411_v40 = vadd.f32 %v3384_v18, %v373_v27 }
  0x63   : > { %v492_v53 = vmul.f32 0.2, %v420_v39  ;;  %v483_v54 = vmul.f32 0.2, %v411_v40  ;;  %vm456_vm8 = vcmp.gt.f32.partialorder %v420_v39, 0.0  ;;  %vm447_vm10 = vcmp.gt.f32.partialorder %v411_v40, 0.0 }
  0x65   : > { %v528_v2 = vsel %vm456_vm8, %v420_v39, %v492_v53  ;;  %v519_v4 = vsel %vm447_vm10, %v411_v40, %v483_v54  ;;  %vm451_vm10 = vcmp.gt.f32.partialorder %v415_v15, 0.0  ;;  %v366_v54 = vmul.f32 %v3372_v12, %v328_v32  ;;  %v322_v32 = vld [vmem:[%s3364_s16 + $0x20] sm:$0xff] }
  0x66   : > { %674 = vperm.xlu0 %3118, %v571_v29   ;;  %677 = vperm.xlu1 %3119, %v572_v30   ;;  %v357_v29 = vmul.f32 %v3372_v12, %v319_v19  ;;  %v843_v30 = vld [vmem:[#allocation2 + $0x1a] sm:$0xff] }
  0x67   : > { %680 = vperm.xlu2 %3120, %v573_v31   ;;  %v2960_v31 = vld [vmem:[%s4789_s3 + $0x178] sm:$0xff]  ;;  %914 = vmatmul.f32.gmra.mxu0 %v843_v30  ;;  %v487_v30 = vmul.f32 0.2, %v415_v15 }
  0x68   : > { %1198 = vmatpush.msrb.mxu2 %v2960_v31  ;;  %v395_v45 = vadd.f32 %v3384_v18, %v357_v29  ;;  %v356_v29 = vmul.f32 %v3372_v12, %v318_v16  ;;  %v2970_v16 = vld [vmem:[%s4789_s3 + $0x1c8] sm:$0xff] }
  0x69   : > { %v3415_v36 = vpop.permute.xlu2 %593 }
  0x6a   : > { %4847 = vst [vmem:[#allocation3_spill] sm:$0xff] %v3415_v36  ;;  %vm688_vm5 = vcmp.eq.s32.totalorder %v3415_v36, 1  ;;  %1199 = vmatpush.msrb.mxu2 %v2959_v35  ;;  %v467_v56 = vmul.f32 0.2, %v395_v45  ;;  %vm431_vm11 = vcmp.gt.f32.partialorder %v395_v45, 0.0 }
  0x6b   : > { %v724_v37 = vsel %vm688_vm5, %v508_v34, 0.0  ;;  %v345_v34 = vld [vmem:[%s3364_s16 + $0xd8] sm:$0xff] }
  0x6c   : > { %760 = vst [vmem:[#allocation2 + $0x54] sm:$0xff] %v724_v37  ;;  %v527_v37 = vsel %vm455_vm0, %v419_v5, %v491_v22  ;;  %v383_v48 = vmul.f32 %v3372_v12, %v345_v34  ;;  %v3545_v14 = vsel %vm431_vm11, %v395_v45, %v467_v56  ;;  %v838_v34 = vld [vmem:[%s4789_s3 + $0x60] sm:$0xff]  ;;  %v837_v45 = vld [vmem:[%s4789_s3 + $0x58] sm:$0xff] }
  0x6d   : > { %1023 = vmatpush.msrb.mxu1 %v838_v34 }
  0x6e   : > { %v421_v60 = vadd.f32 %v3384_v18, %v383_v48 }
  0x6f   : > { %1024 = vmatpush.msrb.mxu1 %v837_v45  ;;  %v360_v45 = vmul.f32 %v3372_v12, %v322_v32  ;;  %v833_v32 = vld [vmem:[%s4789_s3 + $0x38] sm:$0xff] }
  0x70   : > { %vm457_vm2 = vcmp.gt.f32.partialorder %v421_v60, 0.0 }
  0x71   : > { %v3425_v44 = vpop.permute.xlu2 %596 }
  0x72   : > { %4848 = vst [vmem:[#allocation4_spill] sm:$0xff] %v3425_v44  ;;  %vm4813_vm7 = vcmp.eq.s32.totalorder %v3425_v44, 1 }
  0x73   : > { %v725_v47 = vsel %vm4813_vm7, %v509_v41, 0.0 }
  0x74   : > { %761 = vst [vmem:[#allocation2 + $0x5c] sm:$0xff] %v725_v47 }
  0x79   : > { %v3439_v58 = vpop.permute.xlu2 %599 }
  0x7a   : > { %4849 = vst [vmem:[#allocation5_spill] sm:$0xff] %v3439_v58  ;;  %vm4811_vm9 = vcmp.eq.s32.totalorder %v3439_v58, 1 }
  0x7b   : > { %v726_v62 = vsel %vm4811_vm9, %v510_v55, 0.0  ;;  %v851_v0 = vld [vmem:[#allocation2 + $0x5a] sm:$0xff]  ;;  %v374_v55 = vmul.f32 %v3372_v12, %v336_v46  ;;  %v2955_v46 = vld [vmem:[%s4789_s3 + $0x150] sm:$0xff] }
  0x7c   : > { %762 = vst [vmem:[#allocation2 + $0x64] sm:$0xff] %v726_v62  ;;  %938 = vmatmul.f32.vlgmr.msra.gmra.mxu1 %v851_v0  ;;  %v2958_v62 = vld [vmem:[%s4789_s3 + $0x168] sm:$0xff] }
  0x7d   : > { %1200 = vmatpush.msrb.mxu2 %v2958_v62  ;;  %v2974_v0 = vld [vmem:[%s4789_s3 + $0x1e8] sm:$0xff]  ;;  %v412_v5 = vadd.f32 %v3384_v18, %v374_v55  ;;  %v349_v55 = vld [vmem:[%s3364_s16 + $0xf8] sm:$0xff] }
  0x7e   : > { %1414 = vmatpush.msrb.mxu3 %v2974_v0 }
  0x7f   : > { %v484_v28 = vmul.f32 0.2, %v412_v5  ;;  %vm448_vm8 = vcmp.gt.f32.partialorder %v412_v5, 0.0 }
  0x80   : > { %v3450_v10 = vpop.permute.xlu1 %647  ;;  %v3452_v11 = vpop.permute.xlu0 %620  ;;  %1415 = vmatpush.msrb.mxu3 %v2973_v33 }
  0x81   : > { %4850 = vst [vmem:[#allocation6_spill] sm:$0xff] %v3450_v10  ;;  %vm4796_vm13 = vcmp.eq.s32.totalorder %v3450_v10, 1  ;;  %vm4806_vm14 = vcmp.eq.s32.totalorder %v3452_v11, 1  ;;  %v3459_v17 = vpop.permute.xlu2 %602  ;;  %v520_v40 = vsel %vm448_vm8, %v412_v5, %v484_v28  ;;  %v2989_v5 = vld [vmem:[%s4789_s3 + $0x260] sm:$0xff]  ;;  %v3016_v10 = vld [vmem:[%s4789_s3 + $0x338] sm:$0xff] }
  0x82   : > { %4851 = vst [vmem:[#allocation7_spill] sm:$0xff] %v3452_v11  ;;  %v742_v20 = vsel %vm4796_vm13, %v526_v6, 0.0  ;;  %v733_v21 = vsel %vm4806_vm14, %v517_v7, 0.0  ;;  %vm4810_vm15 = vcmp.eq.s32.totalorder %v3459_v17, 1  ;;  %v337_v6 = vld [vmem:[%s3364_s16 + $0x98] sm:$0xff]  ;;  %v2957_v7 = vld [vmem:[%s4789_s3 + $0x160] sm:$0xff] }
  0x83   : > { %4852 = vst [vmem:[#allocation8_spill] sm:$0xff] %v3459_v17  ;;  %v727_v23 = vsel %vm4810_vm15, %v511_v13, 0.0  ;;  %v852_v25 = vld [vmem:[#allocation2 + $0x62] sm:$0xff]  ;;  %1201 = vmatpush.msrb.mxu2 %v2957_v7  ;;  %v836_v7 = vld [vmem:[%s4789_s3 + $0x50] sm:$0xff] }
  0x84   : > { %778 = vst [vmem:[#allocation2 + $0xe4] sm:$0xff] %v742_v20  ;;  %941 = vmatmul.f32.gmra.mxu1 %v852_v25  ;;  %v493_v20 = vmul.f32 0.2, %v421_v60  ;;  %v375_v25 = vmul.f32 %v3372_v12, %v337_v6  ;;  %v2971_v6 = vld [vmem:[%s4789_s3 + $0x1d0] sm:$0xff] }
  0x85   : > { %769 = vst [vmem:[#allocation2 + $0x9c] sm:$0xff] %v733_v21  ;;  %v330_v21 = vld [vmem:[%s3364_s16 + $0x60] sm:$0xff]  ;;  %1202 = vmatpush.msrb.mxu2 %v2956_v3  ;;  %1025 = vmatpush.msrb.mxu1 %v836_v7  ;;  %v323_v7 = vld [vmem:[%s3364_s16 + $0x28] sm:$0xff] }
  0x86   : > { %763 = vst [vmem:[#allocation2 + $0x6c] sm:$0xff] %v727_v23  ;;  %v368_v31 = vmul.f32 %v3372_v12, %v330_v21  ;;  %v413_v35 = vadd.f32 %v3384_v18, %v375_v25  ;;  %v529_v39 = vsel %vm457_vm2, %v421_v60, %v493_v20 }
  0x87   : > { %1203 = vmatpush.msrb.mxu2 %v2955_v46  ;;  %v320_v46 = vld [vmem:[%s3364_s16 + $0x10] sm:$0xff] }
  0x88   : > { %v3492_v41 = vpop.permute.xlu1 %650  ;;  %v3494_v42 = vpop.permute.xlu0 %623  ;;  %v485_v60 = vmul.f32 0.2, %v413_v35 }
  0x89   : > { %4853 = vst [vmem:[#allocation9_spill] sm:$0xff] %v3492_v41  ;;  %vm4795_vm3 = vcmp.eq.s32.totalorder %v3492_v41, 1  ;;  %vm4804_vm4 = vcmp.eq.s32.totalorder %v3494_v42, 1  ;;  %v3501_v47 = vpop.permute.xlu2 %659  ;;  %1204 = vmatpush.msrb.mxu2 %v2954_v8 }
  0x8a   : > { %4854 = vst [vmem:[#allocation10_spill] sm:$0xff] %v3494_v42  ;;  %v743_v50 = vsel %vm4795_vm3, %v527_v37, 0.0  ;;  %v734_v51 = vsel %vm4804_vm4, %v518_v38, 0.0  ;;  %vm4792_vm6 = vcmp.eq.s32.totalorder %v3501_v47, 1  ;;  %v2990_v37 = vld [vmem:[%s4789_s3 + $0x268] sm:$0xff]  ;;  %v2972_v38 = vld [vmem:[%s4789_s3 + $0x1d8] sm:$0xff] }
  0x8b   : > { %4855 = vst [vmem:[#allocation11_spill] sm:$0xff] %v3501_v47  ;;  %v746_v52 = vsel %vm4792_vm6, %v530_v43, 0.0  ;;  %v394_v43 = vadd.f32 %v3384_v18, %v356_v29  ;;  %1628 = vmatpush.msrb.mxu0 %v2990_v37  ;;  %1416 = vmatpush.msrb.mxu3 %v2972_v38  ;;  %v329_v29 = vld [vmem:[%s3364_s16 + $0x58] sm:$0xff] }
  0x8c   : > { %779 = vst [vmem:[#allocation2 + $0xec] sm:$0xff] %v743_v50  ;;  %v523_v50 = vsel %vm451_vm10, %v415_v15, %v487_v30  ;;  %vm449_vm10 = vcmp.gt.f32.partialorder %v413_v35, 0.0  ;;  %v2988_v15 = vld [vmem:[%s4789_s3 + $0x258] sm:$0xff] }
  0x8d   : > { %770 = vst [vmem:[#allocation2 + $0xa4] sm:$0xff] %v734_v51  ;;  %v853_v57 = vld [vmem:[#allocation2 + $0x6a] sm:$0xff]  ;;  %v406_v51 = vadd.f32 %v3384_v18, %v368_v31  ;;  %v466_v63 = vmul.f32 0.2, %v394_v43  ;;  %vm430_vm6 = vcmp.gt.f32.partialorder %v394_v43, 0.0  ;;  %1629 = vmatpush.msrb.mxu0 %v2989_v5  ;;  %1417 = vmatpush.msrb.mxu3 %v2971_v6  ;;  %v521_v20 = vsel %vm449_vm10, %v413_v35, %v485_v60 }
  0x8e   : > { %782 = vst [vmem:[#allocation2 + $0x104] sm:$0xff] %v746_v52  ;;  %944 = vmatmul.f32.gmra.mxu1 %v853_v57  ;;  %v338_v52 = vld [vmem:[%s3364_s16 + $0xa0] sm:$0xff]  ;;  %v358_v6 = vmul.f32 %v3372_v12, %v320_v46  ;;  %v340_v46 = vld [vmem:[%s3364_s16 + $0xb0] sm:$0xff] }
  0x8f   : > { %v376_v0 = vmul.f32 %v3372_v12, %v338_v52  ;;  %v478_v1 = vmul.f32 0.2, %v406_v51  ;;  %v3630_v21 = vsel %vm430_vm6, %v394_v43, %v466_v63  ;;  %1630 = vmatpush.msrb.mxu0 %v2988_v15  ;;  %1418 = vmatpush.msrb.mxu3 %v2970_v16  ;;  %v2969_v52 = vld [vmem:[%s4789_s3 + $0x1c0] sm:$0xff] }
  0x90   : > { %v3540_v9 = vpop.permute.xlu1 %653  ;;  %v3542_v13 = vpop.permute.xlu0 %626 }
  0x91   : > { %4856 = vst [vmem:[#allocation12_spill] sm:$0xff] %v3540_v9  ;;  %vm4794_vm12 = vcmp.eq.s32.totalorder %v3540_v9, 1  ;;  %vm4803_vm0 = vcmp.eq.s32.totalorder %v3542_v13, 1  ;;  %v3551_v19 = vpop.permute.xlu2 %578  ;;  %1419 = vmatpush.msrb.mxu3 %v2969_v52 }
  0x92   : > { %4857 = vst [vmem:[#allocation13_spill] sm:$0xff] %v3542_v13  ;;  %v744_v22 = vsel %vm4794_vm12, %v528_v2, 0.0  ;;  %v735_v23 = vsel %vm4803_vm0, %v519_v4, 0.0  ;;  %vm683_vm1 = vcmp.eq.s32.totalorder %v3551_v19, 1  ;;  %v387_v2 = vmul.f32 %v3372_v12, %v349_v55  ;;  %v834_v55 = vld [vmem:[%s4789_s3 + $0x40] sm:$0xff] }
  0x93   : > { %v869_v24 = vld [vmem:[#allocation2 + $0xea] sm:$0xff]  ;;  %780 = vst [vmem:[#allocation2 + $0xf4] sm:$0xff] %v744_v22  ;;  %v719_v26 = vsel %vm683_vm1, %v3545_v14, 0.0  ;;  %v404_v4 = vadd.f32 %v3384_v18, %v366_v54  ;;  %v414_v22 = vadd.f32 %v3384_v18, %v376_v0 }
  0x94   : > { %v860_v27 = vld [vmem:[#allocation2 + $0xa2] sm:$0xff]  ;;  %992 = vmatmul.f32.vlgmr.msra.gmra.mxu3 %v869_v24  ;;  %771 = vst [vmem:[#allocation2 + $0xac] sm:$0xff] %v735_v23  ;;  %v425_v28 = vadd.f32 %v3384_v18, %v387_v2  ;;  %v398_v2 = vadd.f32 %v3384_v18, %v360_v45 }
  0x95   : > { %965 = vmatmul.f32.vlgmr.msra.gmra.mxu2 %v860_v27  ;;  %755 = vst [vmem:[#allocation2 + $0x2c] sm:$0xff] %v719_v26  ;;  %v347_v23 = vld [vmem:[%s3364_s16 + $0xe8] sm:$0xff]  ;;  %v476_v31 = vmul.f32 0.2, %v404_v4  ;;  %vm440_vm12 = vcmp.gt.f32.partialorder %v404_v4, 0.0  ;;  %vm450_vm3 = vcmp.gt.f32.partialorder %v414_v22, 0.0 }
  0x96   : > { %v835_v24 = vld [vmem:[%s4789_s3 + $0x48] sm:$0xff]  ;;  %v385_v3 = vmul.f32 %v3372_v12, %v347_v23  ;;  %v497_v43 = vmul.f32 0.2, %v425_v28  ;;  %vm461_vm13 = vcmp.gt.f32.partialorder %v425_v28, 0.0 }
  0x97   : > { %1026 = vmatpush.msrb.mxu1 %v835_v24  ;;  %v1375_v42 = vld [vmem:[#allocation2 + $0xa3] sm:$0xff] }
  0x98   : > { %v3589_v48 = vpop.permute.xlu1 %656  ;;  %v3591_v49 = vpop.permute.xlu0 %629  ;;  %v423_v54 = vadd.f32 %v3384_v18, %v385_v3  ;;  %v533_v0 = vsel %vm461_vm13, %v425_v28, %v497_v43  ;;  %v2967_v3 = vld [vmem:[%s4789_s3 + $0x1b0] sm:$0xff] }
  0x99   : > { %4858 = vst [vmem:[#allocation14_spill] sm:$0xff] %v3589_v48  ;;  %vm4793_vm11 = vcmp.eq.s32.totalorder %v3589_v48, 1  ;;  %vm4802_vm2 = vcmp.eq.s32.totalorder %v3591_v49, 1  ;;  %v3598_v53 = vpop.permute.xlu2 %638  ;;  %1027 = vmatpush.msrb.mxu1 %v834_v55 }
  0x9a   : > { %4859 = vst [vmem:[#allocation15_spill] sm:$0xff] %v3591_v49  ;;  %v745_v56 = vsel %vm4793_vm11, %v529_v39, 0.0  ;;  %v736_v57 = vsel %vm4802_vm2, %v520_v40, 0.0  ;;  %vm4797_vm8 = vcmp.eq.s32.totalorder %v3598_v53, 1  ;;  %v870_v59 = vld [vmem:[#allocation2 + $0xf2] sm:$0xff]  ;;  %vm442_vm11 = vcmp.gt.f32.partialorder %v406_v51, 0.0 }
  0x9b   : > { %4860 = vst [vmem:[#allocation16_spill] sm:$0xff] %v3598_v53  ;;  %v739_v61 = vsel %vm4797_vm8, %v523_v50, 0.0  ;;  %v861_v62 = vld [vmem:[#allocation2 + $0xaa] sm:$0xff]  ;;  %v514_v26 = vsel %vm442_vm11, %v406_v51, %v478_v1  ;;  %v486_v39 = vmul.f32 0.2, %v414_v22  ;;  %v367_v40 = vmul.f32 %v3372_v12, %v329_v29  ;;  %v2953_v50 = vld [vmem:[%s4789_s3 + $0x140] sm:$0xff]  ;;  %1028 = vmatpush.msrb.mxu1 %v833_v32 }
  0x9c   : > { %781 = vst [vmem:[#allocation2 + $0xfc] sm:$0xff] %v745_v56  ;;  %995 = vmatmul.f32.gmra.mxu3 %v870_v59  ;;  %v2987_v51 = vld [vmem:[%s4789_s3 + $0x250] sm:$0xff]  ;;  %1205 = vmatpush.msrb.mxu2 %v2953_v50  ;;  %v2952_v56 = vld [vmem:[%s4789_s3 + $0x138] sm:$0xff]  ;;  %v3681_v59 = vsel %vm440_vm12, %v404_v4, %v476_v31  ;;  %vm459_vm8 = vcmp.gt.f32.partialorder %v423_v54, 0.0  ;;  %v495_v23 = vmul.f32 0.2, %v423_v54  ;;  %v361_v31 = vmul.f32 %v3372_v12, %v323_v7 }
  0x9d   : > { %772 = vst [vmem:[#allocation2 + $0xb4] sm:$0xff] %v736_v57  ;;  %968 = vmatmul.f32.gmra.mxu2 %v861_v62  ;;  %1631 = vmatpush.msrb.mxu0 %v2987_v51  ;;  %v2986_v57 = vld [vmem:[%s4789_s3 + $0x248] sm:$0xff]  ;;  %v522_v60 = vsel %vm450_vm3, %v414_v22, %v486_v39  ;;  %v2968_v62 = vld [vmem:[%s4789_s3 + $0x1b8] sm:$0xff]  ;;  %v348_v4 = vld [vmem:[%s3364_s16 + $0xf0] sm:$0xff]  ;;  %v470_v29 = vmul.f32 0.2, %v398_v2 }
  0x9e   : > { %775 = vst [vmem:[#allocation2 + $0xcc] sm:$0xff] %v739_v61  ;;  %v405_v61 = vadd.f32 %v3384_v18, %v367_v40  ;;  %1206 = vmatpush.msrb.mxu2 %v2952_v56  ;;  %1420 = vmatpush.msrb.mxu3 %v2968_v62  ;;  %v2984_v39 = vld [vmem:[%s4789_s3 + $0x238] sm:$0xff]  ;;  %v531_v40 = vsel %vm459_vm8, %v423_v54, %v495_v23  ;;  %v2966_v50 = vld [vmem:[%s4789_s3 + $0x1a8] sm:$0xff]  ;;  %v830_v32 = vld [vmem:[%s4789_s3 + $0x20] sm:$0xff] }
  0x9f   : > { %1632 = vmatpush.msrb.mxu0 %v2986_v57  ;;  %v399_v54 = vadd.f32 %v3384_v18, %v361_v31  ;;  %v321_v56 = vld [vmem:[%s3364_s16 + $0x18] sm:$0xff]  ;;  %v331_v23 = vld [vmem:[%s3364_s16 + $0x68] sm:$0xff]  ;;  %v2965_v31 = vld [vmem:[%s4789_s3 + $0x1a0] sm:$0xff] }
  0xa0   : > { %v3637_v25 = vpop.permute.xlu0 %632  ;;  %v3640_v27 = vpop.permute.xlu1 %575  ;;  %v477_v24 = vmul.f32 0.2, %v405_v61  ;;  %1421 = vmatpush.msrb.mxu3 %v2967_v3  ;;  %v1588_v53 = vld [vmem:[#allocation2 + $0x9c] sm:$0xff] }
  0xa1   : > { %4861 = vst [vmem:[#allocation17_spill] sm:$0xff] %v3637_v25  ;;  %vm4798_vm6 = vcmp.eq.s32.totalorder %v3637_v25, 1  ;;  %v3645_v30 = vpop.permute.xlu2 %611  ;;  %vm682_vm10 = vcmp.eq.s32.totalorder %v3640_v27, 1  ;;  %vm435_vm2 = vcmp.gt.f32.partialorder %v399_v54, 0.0 }
  0xa2   : > { %4862 = vst [vmem:[#allocation18_spill] sm:$0xff] %v3645_v30  ;;  %v737_v33 = vsel %vm4798_vm6, %v521_v20, 0.0  ;;  %vm4809_vm11 = vcmp.eq.s32.totalorder %v3645_v30, 1  ;;  %v718_v34 = vsel %vm682_vm10, %v3630_v21, 0.0  ;;  %vm441_vm6 = vcmp.gt.f32.partialorder %v405_v61, 0.0  ;;  %1422 = vmatpush.msrb.mxu3 %v2966_v50 }
  0xa3   : > { %v871_v35 = vld [vmem:[#allocation2 + $0xfa] sm:$0xff]  ;;  %773 = vst [vmem:[#allocation2 + $0xbc] sm:$0xff] %v737_v33  ;;  %v730_v37 = vsel %vm4809_vm11, %v514_v26, 0.0  ;;  %v872_v20 = vld [vmem:[#allocation2 + $0x102] sm:$0xff]  ;;  %v386_v26 = vmul.f32 %v3372_v12, %v348_v4  ;;  %v396_v33 = vadd.f32 %v3384_v18, %v358_v6  ;;  %v3734_v43 = vsel %vm441_vm6, %v405_v61, %v477_v24 }
  0xa4   : > { %v862_v38 = vld [vmem:[#allocation2 + $0xb2] sm:$0xff]  ;;  %998 = vmatmul.f32.gmra.mxu3 %v871_v35  ;;  %766 = vst [vmem:[#allocation2 + $0x84] sm:$0xff] %v730_v37  ;;  %v2985_v35 = vld [vmem:[%s4789_s3 + $0x240] sm:$0xff]  ;;  %v831_v24 = vld [vmem:[%s4789_s3 + $0x28] sm:$0xff] }
  0xa5   : > { %971 = vmatmul.f32.gmra.mxu2 %v862_v38  ;;  %754 = vst [vmem:[#allocation2 + $0x24] sm:$0xff] %v718_v34  ;;  %v2951_v34 = vld [vmem:[%s4789_s3 + $0x130] sm:$0xff]  ;;  %1633 = vmatpush.msrb.mxu0 %v2985_v35  ;;  %v2950_v38 = vld [vmem:[%s4789_s3 + $0x128] sm:$0xff]  ;;  %v424_v45 = vadd.f32 %v3384_v18, %v386_v26  ;;  %v468_v6 = vmul.f32 0.2, %v396_v33  ;;  %v2949_v26 = vld [vmem:[%s4789_s3 + $0x120] sm:$0xff] }
  0xa6   : > { %1207 = vmatpush.msrb.mxu2 %v2951_v34  ;;  %v832_v37 = vld [vmem:[%s4789_s3 + $0x30] sm:$0xff]  ;;  %1423 = vmatpush.msrb.mxu3 %v2965_v31 }
  0xa7   : > { %1029 = vmatpush.msrb.mxu1 %v832_v37  ;;  %1634 = vmatpush.msrb.mxu0 %v2984_v39  ;;  %v496_v7 = vmul.f32 0.2, %v424_v45  ;;  %v2948_v37 = vld [vmem:[%s4789_s3 + $0x118] sm:$0xff] }
  0xa8   : > { %v3687_v63 = vpop.permute.xlu0 %605  ;;  %v3690_v1 = vpop.permute.xlu1 %635  ;;  %1208 = vmatpush.msrb.mxu2 %v2950_v38  ;;  %v2982_v38 = vld [vmem:[%s4789_s3 + $0x228] sm:$0xff] }
  0xa9   : > { %4863 = vst [vmem:[#allocation19_spill] sm:$0xff] %v3687_v63  ;;  %vm692_vm3 = vcmp.eq.s32.totalorder %v3687_v63, 1  ;;  %v3695_v5 = vpop.permute.xlu2 %668  ;;  %vm4800_vm12 = vcmp.eq.s32.totalorder %v3690_v1, 1  ;;  %1030 = vmatpush.msrb.mxu1 %v831_v24  ;;  %v2963_v24 = vld [vmem:[%s4789_s3 + $0x190] sm:$0xff] }
  0xaa   : > { %4864 = vst [vmem:[#allocation20_spill] sm:$0xff] %v3690_v1  ;;  %v728_v8 = vsel %vm692_vm3, %v3681_v59, 0.0  ;;  %vm4799_vm13 = vcmp.eq.s32.totalorder %v3695_v5, 1  ;;  %v738_v15 = vsel %vm4800_vm12, %v522_v60, 0.0  ;;  %v863_v16 = vld [vmem:[#allocation2 + $0xba] sm:$0xff]  ;;  %vm432_vm12 = vcmp.gt.f32.partialorder %v396_v33, 0.0  ;;  %1209 = vmatpush.msrb.mxu2 %v2949_v26 }
  0xab   : > { %4865 = vst [vmem:[#allocation21_spill] sm:$0xff] %v3695_v5  ;;  %v749_v22 = vsel %vm4799_vm13, %v533_v0, 0.0  ;;  %vm434_vm13 = vcmp.gt.f32.partialorder %v398_v2, 0.0  ;;  %v353_v60 = vld [vmem:[%s3364_s16 + $0x118] sm:$0xff]  ;;  %v3785_v34 = vsel %vm432_vm12, %v396_v33, %v468_v6  ;;  %1031 = vmatpush.msrb.mxu1 %v830_v32  ;;  %v828_v32 = vld [vmem:[%s4789_s3 + $0x10] sm:$0xff] }
  0xac   : > { %764 = vst [vmem:[#allocation2 + $0x74] sm:$0xff] %v728_v8  ;;  %1001 = vmatmul.f32.gmra.mxu3 %v872_v20  ;;  %v844_v28 = vld [vmem:[#allocation2 + $0x22] sm:$0xff]  ;;  %v3744_v52 = vsel %vm434_vm13, %v398_v2, %v470_v29  ;;  %v378_v2 = vmul.f32 %v3372_v12, %v340_v46  ;;  %v359_v8 = vmul.f32 %v3372_v12, %v321_v56  ;;  %v471_v20 = vmul.f32 0.2, %v399_v54  ;;  %v2983_v29 = vld [vmem:[%s4789_s3 + $0x230] sm:$0xff]  ;;  %v341_v46 = vld [vmem:[%s3364_s16 + $0xb8] sm:$0xff] }
  0xad   : > { %785 = vst [vmem:[#allocation2 + $0x11c] sm:$0xff] %v749_v22  ;;  %974 = vmatmul.f32.gmra.mxu2 %v863_v16  ;;  %917 = vmatmul.f32.gmra.mxu0 %v844_v28  ;;  %v391_v22 = vmul.f32 %v3372_v12, %v353_v60  ;;  %v369_v56 = vmul.f32 %v3372_v12, %v331_v23  ;;  %v2981_v23 = vld [vmem:[%s4789_s3 + $0x220] sm:$0xff]  ;;  %v3048_v1 = vld [vmem:[%s4789_s3 + $0x438] sm:$0xff] }
  0xae   : > { %774 = vst [vmem:[#allocation2 + $0xc4] sm:$0xff] %v738_v15  ;;  %v845_v15 = vld [vmem:[#allocation2 + $0x2a] sm:$0xff]  ;;  %v416_v28 = vadd.f32 %v3384_v18, %v378_v2  ;;  %v397_v3 = vadd.f32 %v3384_v18, %v359_v8  ;;  %1635 = vmatpush.msrb.mxu0 %v2983_v29  ;;  %1210 = vmatpush.msrb.mxu2 %v2948_v37  ;;  %v2980_v37 = vld [vmem:[%s4789_s3 + $0x218] sm:$0xff] }
  0xaf   : > { %v1377_v63 = vld [vmem:[#allocation2 + $0xb3] sm:$0xff] }
  0xb0   : > { %v3741_v51 = vpop.permute.xlu0 %662  ;;  %v3746_v55 = vpop.permute.xlu1 %608  ;;  %1636 = vmatpush.msrb.mxu0 %v2982_v38  ;;  %vm452_vm0 = vcmp.gt.f32.partialorder %v416_v28, 0.0  ;;  %v469_v2 = vmul.f32 0.2, %v397_v3  ;;  %vm433_vm4 = vcmp.gt.f32.partialorder %v397_v3, 0.0 }
  0xb1   : > { %4866 = vst [vmem:[#allocation22_spill] sm:$0xff] %v3741_v51  ;;  %vm4801_vm8 = vcmp.eq.s32.totalorder %v3741_v51, 1  ;;  %v3751_v57 = vpop.permute.xlu2 %587  ;;  %vm693_vm6 = vcmp.eq.s32.totalorder %v3746_v55, 1 }
  0xb2   : > { %4867 = vst [vmem:[#allocation23_spill] sm:$0xff] %v3746_v55  ;;  %v747_v61 = vsel %vm4801_vm8, %v531_v40, 0.0  ;;  %vm686_vm13 = vcmp.eq.s32.totalorder %v3751_v57, 1  ;;  %v729_v62 = vsel %vm693_vm6, %v3734_v43, 0.0  ;;  %vm460_vm8 = vcmp.gt.f32.partialorder %v424_v45, 0.0  ;;  %1637 = vmatpush.msrb.mxu0 %v2981_v23 }
  0xb3   : > { %4868 = vst [vmem:[#allocation24_spill] sm:$0xff] %v3751_v57  ;;  %v854_v0 = vld [vmem:[#allocation2 + $0x72] sm:$0xff]  ;;  %v722_v4 = vsel %vm686_vm13, %v3744_v52, 0.0  ;;  %v532_v35 = vsel %vm460_vm8, %v424_v45, %v496_v7  ;;  %v3798_v40 = vsel %vm435_vm2, %v399_v54, %v471_v20  ;;  %v429_v45 = vadd.f32 %v3384_v18, %v391_v22 }
  0xb4   : > { %783 = vst [vmem:[#allocation2 + $0x10c] sm:$0xff] %v747_v61  ;;  %947 = vmatmul.f32.gmra.mxu1 %v854_v0  ;;  %v488_v0 = vmul.f32 0.2, %v416_v28  ;;  %v829_v20 = vld [vmem:[%s4789_s3 + $0x18] sm:$0xff]  ;;  %v2947_v22 = vld [vmem:[%s4789_s3 + $0x110] sm:$0xff]  ;;  %v3837_v29 = vsel %vm433_vm4, %v397_v3, %v469_v2  ;;  %1638 = vmatpush.msrb.mxu0 %v2980_v37 }
  0xb5   : > { %758 = vst [vmem:[#allocation2 + $0x44] sm:$0xff] %v722_v4  ;;  %v864_v16 = vld [vmem:[#allocation2 + $0xc2] sm:$0xff]  ;;  %920 = vmatmul.f32.gmra.mxu0 %v845_v15  ;;  %v379_v4 = vmul.f32 %v3372_v12, %v341_v46  ;;  %v865_v7 = vld [vmem:[#allocation2 + $0xca] sm:$0xff]  ;;  %v501_v8 = vmul.f32 0.2, %v429_v45  ;;  %v407_v15 = vadd.f32 %v3384_v18, %v369_v56  ;;  %1032 = vmatpush.msrb.mxu1 %v829_v20 }
  0xb6   : > { %765 = vst [vmem:[#allocation2 + $0x7c] sm:$0xff] %v729_v62  ;;  %977 = vmatmul.f32.gmra.mxu2 %v864_v16  ;;  %v2964_v16 = vld [vmem:[%s4789_s3 + $0x198] sm:$0xff]  ;;  %v350_v12 = vld [vmem:[%s3364_s16 + $0x100] sm:$0xff]  ;;  %v524_v26 = vsel %vm452_vm0, %v416_v28, %v488_v0  ;;  %v2962_v56 = vld [vmem:[%s4789_s3 + $0x188] sm:$0xff] }
  0xb7   : > { %1424 = vmatpush.msrb.mxu3 %v2964_v16  ;;  %v417_v31 = vadd.f32 %v3384_v18, %v379_v4  ;;  %1211 = vmatpush.msrb.mxu2 %v2947_v22  ;;  %v332_v18 = vld [vmem:[%s3364_s16 + $0x70] sm:$0xff]  ;;  %v2945_v46 = vld [vmem:[%s4789_s3 + $0x100] sm:$0xff]  ;;  %v827_v20 = vld [vmem:[%s4789_s3 + $0x8] sm:$0xff] }
  0xb8   : > { %v3795_v39 = vpop.permute.xlu0 %581  ;;  %v3800_v33 = vpop.permute.xlu1 %665  ;;  %1033 = vmatpush.msrb.mxu1 %v828_v32  ;;  %v3123_v4 = vld [vmem:[%s4788_s2] ss:$0 sm:$0xff]  ;;  %v2979_v22 = vld [vmem:[%s4789_s3 + $0x210] sm:$0xff]  ;;  %v3024_v32 = vld [vmem:[%s4789_s3 + $0x378] sm:$0xff] }
  0xb9   : > { %4869 = vst [vmem:[#allocation25_spill] sm:$0xff] %v3800_v33  ;;  %vm684_vm12 = vcmp.eq.s32.totalorder %v3795_v39, 1  ;;  %v3805_v50 = vpop.permute.xlu2 %590  ;;  %vm4805_vm8 = vcmp.eq.s32.totalorder %v3800_v33, 1  ;;  %1425 = vmatpush.msrb.mxu3 %v2963_v24  ;;  %v489_v2 = vmul.f32 0.2, %v417_v31  ;;  %1639 = vmatpush.msrb.mxu0 %v2979_v22  ;;  %v2978_v24 = vld [vmem:[%s4789_s3 + $0x208] sm:$0xff] }
  0xba   : > { %4870 = vst [vmem:[#allocation26_spill] sm:$0xff] %v3805_v50  ;;  %v720_v54 = vsel %vm684_vm12, %v3785_v34, 0.0  ;;  %vm687_vm2 = vcmp.eq.s32.totalorder %v3805_v50, 1  ;;  %v748_v60 = vsel %vm4805_vm8, %v532_v35, 0.0  ;;  %vm465_vm8 = vcmp.gt.f32.partialorder %v429_v45, 0.0  ;;  %v2946_v35 = vld [vmem:[%s4789_s3 + $0x108] sm:$0xff]  ;;  %1034 = vmatpush.msrb.mxu1 %v827_v20 }
  0xbb   : > { %v873_v61 = vld [vmem:[#allocation2 + $0x10a] sm:$0xff]  ;;  %756 = vst [vmem:[#allocation2 + $0x34] sm:$0xff] %v720_v54  ;;  %v723_v62 = vsel %vm687_vm2, %v3798_v40, 0.0  ;;  %v537_v28 = vsel %vm465_vm8, %v429_v45, %v501_v8  ;;  %vm443_vm8 = vcmp.gt.f32.partialorder %v407_v15, 0.0  ;;  %1212 = vmatpush.msrb.mxu2 %v2946_v35  ;;  %1426 = vmatpush.msrb.mxu3 %v2962_v56  ;;  %v3040_v20 = vld [vmem:[%s4789_s3 + $0x3f8] sm:$0xff] }
  0xbc   : > { %1004 = vmatmul.f32.gmra.mxu3 %v873_v61  ;;  %759 = vst [vmem:[#allocation2 + $0x4c] sm:$0xff] %v723_v62  ;;  %v479_v62 = vmul.f32 0.2, %v407_v15  ;;  %1640 = vmatpush.msrb.mxu0 %v2978_v24  ;;  %v3008_v22 = vld [vmem:[%s4789_s3 + $0x2f8] sm:$0xff]  ;;  %v1380_v44 = vld [vmem:[#allocation2 + $0xcb] sm:$0xff] }
  0xbd   : > { %v855_v6 = vld [vmem:[#allocation2 + $0x7a] sm:$0xff]  ;;  %784 = vst [vmem:[#allocation2 + $0x114] sm:$0xff] %v748_v60  ;;  %1213 = vmatpush.msrb.mxu2 %v2945_v46  ;;  %v856_v8 = vld [vmem:[#allocation2 + $0x82] sm:$0xff] }
  0xbe   : > { %950 = vmatmul.f32.gmra.mxu1 %v855_v6  ;;  %980 = vmatmul.f32.gmra.mxu2 %v865_v7  ;;  %v388_v6 = vmul.f32 %v3123_v4, %v350_v12  ;;  %v370_v7 = vmul.f32 %v3123_v4, %v332_v18  ;;  %v2961_v12 = vld [vmem:[%s4789_s3 + $0x180] sm:$0xff]  ;;  %v3886_v23 = vsel %vm443_vm8, %v407_v15, %v479_v62 }
  0xbf   : > { %v3124_v15 = vld [vmem:[%s4788_s2 + $0x1] ss:$0 sm:$0xff]  ;;  %1427 = vmatpush.msrb.mxu3 %v2961_v12  ;;  %2054 = vmatpush.msra.mxu2 %v3024_v32 }
  0xc0   : > { %v3849_v38 = vpop.permute.xlu0 %641  ;;  %v3852_v3 = vpop.permute.xlu1 %584  ;;  %v426_v37 = vadd.f32 %v3124_v15, %v388_v6  ;;  %v2977_v18 = vld [vmem:[%s4789_s3 + $0x200] sm:$0xff] }
  0xc1   : > { %4871 = vst [vmem:[#allocation27_spill] sm:$0xff] %v3849_v38  ;;  %vm4807_vm4 = vcmp.eq.s32.totalorder %v3849_v38, 1  ;;  %v3862_v54 = vpop.permute.xlu2 %680  ;;  %vm685_vm0 = vcmp.eq.s32.totalorder %v3852_v3, 1  ;;  %1641 = vmatpush.msrb.mxu0 %v2977_v18  ;;  %2268 = vmatpush.msra.mxu3 %v3040_v20 }
  0xc2   : > { %4872 = vst [vmem:[#allocation28_spill] sm:$0xff] %v3862_v54  ;;  %v740_v45 = vsel %vm4807_vm4, %v524_v26, 0.0  ;;  %vm4808_vm14 = vcmp.eq.s32.totalorder %v3862_v54, 1  ;;  %v721_v60 = vsel %vm685_vm0, %v3837_v29, 0.0  ;;  %v846_v61 = vld [vmem:[#allocation2 + $0x32] sm:$0xff]  ;;  %vm453_vm4 = vcmp.gt.f32.partialorder %v417_v31, 0.0 }
  0xc3   : > { %776 = vst [vmem:[#allocation2 + $0xd4] sm:$0xff] %v740_v45  ;;  %v753_v0 = vsel %vm4808_vm14, %v537_v28, 0.0  ;;  %923 = vmatmul.f32.gmra.mxu0 %v846_v61  ;;  %v826_v26 = vld [vmem:[%s4789_s3] sm:$0xff]  ;;  %v3897_v35 = vsel %vm453_vm4, %v417_v31, %v489_v2  ;;  %v408_v28 = vadd.f32 %v3124_v15, %v370_v7  ;;  %v351_v45 = vld [vmem:[%s3364_s16 + $0x108] sm:$0xff]  ;;  %vm462_vm14 = vcmp.gt.f32.partialorder %v426_v37, 0.0 }
  0xc4   : > { %789 = vst [vmem:[#allocation2 + $0x13c] sm:$0xff] %v753_v0  ;;  %v874_v16 = vld [vmem:[#allocation2 + $0x112] sm:$0xff]  ;;  %1035 = vmatpush.msrb.mxu1 %v826_v26  ;;  %v498_v0 = vmul.f32 0.2, %v426_v37  ;;  %v389_v6 = vmul.f32 %v3123_v4, %v351_v45 }
  0xc5   : > { %757 = vst [vmem:[#allocation2 + $0x3c] sm:$0xff] %v721_v60  ;;  %1007 = vmatmul.f32.gmra.mxu3 %v874_v16  ;;  %v352_v60 = vld [vmem:[%s3364_s16 + $0x110] sm:$0xff]  ;;  %v480_v2 = vmul.f32 0.2, %v408_v28  ;;  %v875_v16 = vld [vmem:[#allocation2 + $0x11a] sm:$0xff]  ;;  %vm444_vm11 = vcmp.gt.f32.partialorder %v408_v28, 0.0 }
  0xc6   : > { %953 = vmatmul.f32.gmra.mxu1 %v856_v8  ;;  %v390_v7 = vmul.f32 %v3123_v4, %v352_v60  ;;  %v534_v12 = vsel %vm462_vm14, %v426_v37, %v498_v0  ;;  %v427_v4 = vadd.f32 %v3124_v15, %v389_v6 }
  0xc7   : > { %1840 = vmatpush.msra.mxu1 %v3008_v22  ;;  %v3925_v24 = vsel %vm444_vm11, %v408_v28, %v480_v2 }
  0xc8   : > { %v3905_v46 = vpop.permute.xlu0 %614  ;;  %v3907_v56 = vpop.permute.xlu1 %644  ;;  %v428_v26 = vadd.f32 %v3124_v15, %v390_v7  ;;  %v499_v15 = vmul.f32 0.2, %v427_v4  ;;  %vm463_vm14 = vcmp.gt.f32.partialorder %v427_v4, 0.0 }
  0xc9   : > { %4873 = vst [vmem:[#allocation29_spill] sm:$0xff] %v3905_v46  ;;  %vm695_vm4 = vcmp.eq.s32.totalorder %v3905_v46, 1  ;;  %vm705_vm8 = vcmp.eq.s32.totalorder %v3907_v56, 1 }
  0xca   : > { %4874 = vst [vmem:[#allocation30_spill] sm:$0xff] %v3907_v56  ;;  %v731_v31 = vsel %vm695_vm4, %v3886_v23, 0.0  ;;  %v741_v61 = vsel %vm705_vm8, %v3897_v35, 0.0  ;;  %v866_v62 = vld [vmem:[#allocation2 + $0xd2] sm:$0xff]  ;;  %vm464_vm11 = vcmp.gt.f32.partialorder %v428_v26, 0.0  ;;  %v535_v0 = vsel %vm463_vm14, %v427_v4, %v499_v15  ;;  %v849_v4 = vld [vmem:[#allocation2 + $0x4a] sm:$0xff] }
  0xcb   : > { %767 = vst [vmem:[#allocation2 + $0x8c] sm:$0xff] %v731_v31  ;;  %983 = vmatmul.f32.gmra.mxu2 %v866_v62  ;;  %v500_v31 = vmul.f32 0.2, %v428_v26  ;;  %v3056_v62 = vld [vmem:[%s4789_s3 + $0x478] sm:$0xff] }
  0xcc   : > { %777 = vst [vmem:[#allocation2 + $0xdc] sm:$0xff] %v741_v61  ;;  %v847_v8 = vld [vmem:[#allocation2 + $0x3a] sm:$0xff]  ;;  %v848_v61 = vld [vmem:[#allocation2 + $0x42] sm:$0xff]  ;;  %2482 = vmatpush.msra.mxu0 %v3056_v62  ;;  %v790_v62 = vld [vmem:[#allocation2 + $0x11] sm:$0xff] }
  0xcd   : > { %926 = vmatmul.f32.gmra.mxu0 %v847_v8  ;;  %1010 = vmatmul.f32.gmra.mxu3 %v875_v16  ;;  %v536_v2 = vsel %vm464_vm11, %v428_v26, %v500_v31  ;;  %v3023_v26 = vld [vmem:[%s4789_s3 + $0x370] sm:$0xff] }
  0xce   : > { %2055 = vmatpush.msra.mxu2 %v3023_v26  ;;  %v850_v31 = vld [vmem:[#allocation2 + $0x52] sm:$0xff]  ;;  %v792_v26 = vld [vmem:[#allocation2 + $0x21] sm:$0xff] }
  0xd0   : > { %v3927_v32 = vpop.permute.xlu0 %671  ;;  %v3929_v18 = vpop.permute.xlu1 %617 }
  0xd1   : > { %4875 = vst [vmem:[#allocation31_spill] sm:$0xff] %v3927_v32  ;;  %vm4812_vm15 = vcmp.eq.s32.totalorder %v3927_v32, 1  ;;  %vm696_vm9 = vcmp.eq.s32.totalorder %v3929_v18, 1  ;;  %v1371_v32 = vld [vmem:[#allocation2 + $0x83] sm:$0xff] }
  0xd2   : > { %4876 = vst [vmem:[#allocation32_spill] sm:$0xff] %v3929_v18  ;;  %v750_v45 = vsel %vm4812_vm15, %v534_v12, 0.0  ;;  %v732_v60 = vsel %vm696_vm9, %v3925_v24, 0.0  ;;  %v857_v37 = vld [vmem:[#allocation2 + $0x8a] sm:$0xff] }
  0xd3   : > { %786 = vst [vmem:[#allocation2 + $0x124] sm:$0xff] %v750_v45  ;;  %956 = vmatmul.f32.gmra.mxu1 %v857_v37  ;;  %v867_v28 = vld [vmem:[#allocation2 + $0xda] sm:$0xff]  ;;  %v868_v12 = vld [vmem:[#allocation2 + $0xe2] sm:$0xff]  ;;  %v3039_v45 = vld [vmem:[%s4789_s3 + $0x3f0] sm:$0xff] }
  0xd4   : > { %768 = vst [vmem:[#allocation2 + $0x94] sm:$0xff] %v732_v60  ;;  %986 = vmatmul.f32.gmra.mxu2 %v867_v28  ;;  %v3007_v60 = vld [vmem:[%s4789_s3 + $0x2f0] sm:$0xff]  ;;  %2269 = vmatpush.msra.mxu3 %v3039_v45  ;;  %v3021_v45 = vld [vmem:[%s4789_s3 + $0x360] sm:$0xff] }
  0xd5   : > { %929 = vmatmul.f32.gmra.mxu0 %v848_v61  ;;  %1841 = vmatpush.msra.mxu1 %v3007_v60  ;;  %v1145_v37 = vld [vmem:[#allocation2 + $0x13] sm:$0xff]  ;;  %v1362_v60 = vld [vmem:[#allocation2 + $0x3b] sm:$0xff]  ;;  %v1372_v48 = vld [vmem:[#allocation2 + $0x8b] sm:$0xff] }
  0xd6   : > { %v3055_v61 = vld [vmem:[%s4789_s3 + $0x470] sm:$0xff]  ;;  %v1382_v57 = vld [vmem:[#allocation2 + $0xdb] sm:$0xff] }
  0xd7   : > { %2483 = vmatpush.msra.mxu0 %v3055_v61  ;;  %v3020_v61 = vld [vmem:[%s4789_s3 + $0x358] sm:$0xff] }
  0xd8   : > { %v3941_v6 = vpop.permute.xlu0 %674  ;;  %v3943_v7 = vpop.permute.xlu1 %677 }
  0xd9   : > { %4877 = vst [vmem:[#allocation33_spill] sm:$0xff] %v3941_v6  ;;  %vm715_vm15 = vcmp.eq.s32.totalorder %v3941_v6, 1  ;;  %vm716_vm7 = vcmp.eq.s32.totalorder %v3943_v7, 1  ;;  %v801_v6 = vld [vmem:[#allocation2 + $0x69] sm:$0xff] }
  0xda   : > { %4878 = vst [vmem:[#allocation34_spill] sm:$0xff] %v3943_v7  ;;  %v751_v8 = vsel %vm715_vm15, %v535_v0, 0.0  ;;  %v752_v16 = vsel %vm716_vm7, %v536_v2, 0.0  ;;  %v876_v20 = vld [vmem:[#allocation2 + $0x122] sm:$0xff] }
  0xdb   : > { %787 = vst [vmem:[#allocation2 + $0x12c] sm:$0xff] %v751_v8  ;;  %v858_v22 = vld [vmem:[#allocation2 + $0x92] sm:$0xff]  ;;  %1013 = vmatmul.f32.gmra.mxu3 %v876_v20  ;;  %v859_v15 = vld [vmem:[#allocation2 + $0x9a] sm:$0xff]  ;;  %v1359_v2 = vld [vmem:[#allocation2 + $0x23] sm:$0xff] }
  0xdc   : > { %788 = vst [vmem:[#allocation2 + $0x134] sm:$0xff] %v752_v16  ;;  %959 = vmatmul.f32.gmra.mxu1 %v858_v22  ;;  %989 = vmatmul.f32.gmra.mxu2 %v868_v12  ;;  %v1146_v0 = vld [vmem:[#allocation2 + $0x1b] sm:$0xff]  ;;  %v3022_v8 = vld [vmem:[%s4789_s3 + $0x368] sm:$0xff]  ;;  %v1373_v41 = vld [vmem:[#allocation2 + $0x93] sm:$0xff] }
  0xdd   : > { %932 = vmatmul.f32.gmra.mxu0 %v849_v4  ;;  %v3038_v16 = vld [vmem:[%s4789_s3 + $0x3e8] sm:$0xff]  ;;  %2056 = vmatpush.msra.mxu2 %v3022_v8  ;;  %v791_v22 = vld [vmem:[#allocation2 + $0x19] sm:$0xff]  ;;  %v806_v11 = vld [vmem:[#allocation2 + $0x91] sm:$0xff] }
  0xde   : > { %v3006_v20 = vld [vmem:[%s4789_s3 + $0x2e8] sm:$0xff]  ;;  %2270 = vmatpush.msra.mxu3 %v3038_v16  ;;  %v1361_v4 = vld [vmem:[#allocation2 + $0x33] sm:$0xff]  ;;  %v4018_v16 = vpop.f32.mrf.mxu0 }
  0xdf   : > { %1842 = vmatpush.msra.mxu1 %v3006_v20  ;;  %v1360_v12 = vld [vmem:[#allocation2 + $0x2b] sm:$0xff]  ;;  %2057 = vmatpush.msra.mxu2 %v3021_v45  ;;  %v1365_v20 = vld [vmem:[#allocation2 + $0x53] sm:$0xff]  ;;  %v1366_v45 = vld [vmem:[#allocation2 + $0x5b] sm:$0xff] }
  0xe0   : > { %v807_v46 = vld [vmem:[#allocation2 + $0x99] sm:$0xff] }
  0xe1   : > { %2058 = vmatpush.msra.mxu2 %v3020_v61  ;;  %v1367_v61 = vld [vmem:[#allocation2 + $0x63] sm:$0xff] }
  0xe2   : > { %v877_v28 = vld [vmem:[#allocation2 + $0x12a] sm:$0xff] }
  0xe3   : > { %1016 = vmatmul.f32.gmra.mxu3 %v877_v28  ;;  %v1363_v28 = vld [vmem:[#allocation2 + $0x43] sm:$0xff] }
  0xe4   : > { %962 = vmatmul.f32.gmra.mxu1 %v859_v15  ;;  %1214 = vmatmul.f32.vlgmr.msrb.gmra.mxu2 %v1145_v37  ;;  %v793_v37 = vld [vmem:[#allocation2 + $0x29] sm:$0xff]  ;;  %v3053_v15 = vld [vmem:[%s4789_s3 + $0x460] sm:$0xff] }
  0xe5   : > { %935 = vmatmul.f32.gmra.mxu0 %v850_v31  ;;  %v794_v31 = vld [vmem:[#allocation2 + $0x31] sm:$0xff] }
  0xeb   : > { %1428 = vmatmul.f32.vlgmr.msrb.gmra.mxu3 %v1359_v2 }
  0xec   : > { %1036 = vmatmul.f32.vlgmr.msrb.gmra.mxu1 %v790_v62  ;;  %1217 = vmatmul.f32.gmra.mxu2 %v1146_v0  ;;  %v795_v62 = vld [vmem:[#allocation2 + $0x39] sm:$0xff] }
  0xed   : > { %3125 = vmatmul.msk.f32.vlgmr.msrb.gmra.mxu0 %vm682_vm10, %v3630_v21  ;;  %v3054_v21 = vld [vmem:[%s4789_s3 + $0x468] sm:$0xff]  ;;  %v3036_v0 = vld [vmem:[%s4789_s3 + $0x3d8] sm:$0xff] }
  0xee   : > { %2484 = vmatpush.msra.mxu0 %v3054_v21  ;;  %v3052_v21 = vld [vmem:[%s4789_s3 + $0x458] sm:$0xff] }
  0xf0   : > { %2485 = vmatpush.msra.mxu0 %v3053_v15 }
  0xf2   : > { %2486 = vmatpush.msra.mxu0 %v3052_v21 }
  0xf3   : > { %1431 = vmatmul.f32.gmra.mxu3 %v1360_v12 }
  0xf4   : > { %1039 = vmatmul.f32.gmra.mxu1 %v791_v22  ;;  %1220 = vmatmul.f32.gmra.mxu2 %v1359_v2  ;;  %v796_v22 = vld [vmem:[#allocation2 + $0x41] sm:$0xff] }
  0xf5   : > { %3126 = vmatmul.msk.f32.gmra.mxu0 %vm683_vm1, %v3545_v14  ;;  %v3037_v14 = vld [vmem:[%s4789_s3 + $0x3e0] sm:$0xff] }
  0xf6   : > { %2271 = vmatpush.msra.mxu3 %v3037_v14  ;;  %v797_v14 = vld [vmem:[#allocation2 + $0x49] sm:$0xff] }
  0xf8   : > { %2272 = vmatpush.msra.mxu3 %v3036_v0 }
  0xf9   : > { %v4016_v8 = vpop.f32.mrf.mxu1 }
  0xfb   : > { %1434 = vmatmul.f32.gmra.mxu3 %v1361_v4 }
  0xfc   : > { %1042 = vmatmul.f32.gmra.mxu1 %v792_v26  ;;  %1223 = vmatmul.f32.gmra.mxu2 %v1360_v12  ;;  %v1579_v12 = vld [vmem:[#allocation2 + $0x54] sm:$0xff] }
  0xfd   : > { %3127 = vmatmul.msk.f32.gmra.mxu0 %vm684_vm12, %v3785_v34  ;;  %v3005_v34 = vld [vmem:[%s4789_s3 + $0x2e0] sm:$0xff] }
  0xfe   : > { %1843 = vmatpush.msra.mxu1 %v3005_v34  ;;  %v3019_v34 = vld [vmem:[%s4789_s3 + $0x350] sm:$0xff] }
  0xff   : > { %2059 = vmatpush.msra.mxu2 %v3019_v34 }
 0x101   : > { %v4027_v26 = vpop.f32.mrf.mxu1 }
 0x103   : > { %1437 = vmatmul.f32.gmra.mxu3 %v1362_v60 }
 0x104   : > { %1045 = vmatmul.f32.gmra.mxu1 %v793_v37  ;;  %1226 = vmatmul.f32.gmra.mxu2 %v1361_v4  ;;  %v1580_v37 = vld [vmem:[#allocation2 + $0x5c] sm:$0xff] }
 0x105   : > { %3128 = vmatmul.msk.f32.gmra.mxu0 %vm685_vm0, %v3837_v29  ;;  %v1364_v29 = vld [vmem:[#allocation2 + $0x4b] sm:$0xff] }
 0x10b   : > { %1440 = vmatmul.f32.gmra.mxu3 %v1363_v28  ;;  %v4044_v0 = vpop.f32.mrf.mxu1 }
 0x10c   : > { %1048 = vmatmul.f32.gmra.mxu1 %v794_v31  ;;  %1229 = vmatmul.f32.gmra.mxu2 %v1362_v60  ;;  %v4029_v60 = vpop.f32.mrf.mxu0 }
 0x10d   : > { %3129 = vmatmul.msk.f32.gmra.mxu0 %vm686_vm13, %v3744_v52  ;;  %v3004_v52 = vld [vmem:[%s4789_s3 + $0x2d8] sm:$0xff] }
 0x10e   : > { %1844 = vmatpush.msra.mxu1 %v3004_v52  ;;  %v1581_v52 = vld [vmem:[#allocation2 + $0x64] sm:$0xff] }
 0x113   : > { %1443 = vmatmul.f32.gmra.mxu3 %v1364_v29 }
 0x114   : > { %1051 = vmatmul.f32.gmra.mxu1 %v795_v62  ;;  %1232 = vmatmul.f32.gmra.mxu2 %v1363_v28  ;;  %v3035_v28 = vld [vmem:[%s4789_s3 + $0x3d0] sm:$0xff] }
 0x115   : > { %3130 = vmatmul.msk.f32.gmra.mxu0 %vm687_vm2, %v3798_v40  ;;  %2273 = vmatpush.msra.mxu3 %v3035_v28  ;;  %v798_v62 = vld [vmem:[#allocation2 + $0x51] sm:$0xff]  ;;  %v3018_v28 = vld [vmem:[%s4789_s3 + $0x348] sm:$0xff] }
 0x116   : > { %2060 = vmatpush.msra.mxu2 %v3018_v28 }
 0x117   : > { %v4020_v40 = vpop.f32.mrf.mxu3 }
 0x118   : > { %v4014_v2 = vpop.f32.mrf.mxu2 }
 0x11b   : > { %1446 = vmatmul.f32.gmra.mxu3 %v1365_v20 }
 0x11c   : > { %1054 = vmatmul.f32.gmra.mxu1 %v796_v22  ;;  %1235 = vmatmul.f32.gmra.mxu2 %v1364_v29  ;;  %v3003_v29 = vld [vmem:[%s4789_s3 + $0x2d0] sm:$0xff] }
 0x11d   : > { %1660 = vmatmul.f32.gmra.mxu0 %v1579_v12  ;;  %1845 = vmatpush.msra.mxu1 %v3003_v29  ;;  %v3034_v29 = vld [vmem:[%s4789_s3 + $0x3c8] sm:$0xff] }
 0x11e   : > { %2274 = vmatpush.msra.mxu3 %v3034_v29  ;;  %v3050_v29 = vld [vmem:[%s4789_s3 + $0x448] sm:$0xff] }
 0x11f   : > { %v4037_v15 = vpop.f32.mrf.mxu3 }
 0x120   : > { %v4025_v4 = vpop.f32.mrf.mxu2 }
 0x123   : > { %1449 = vmatmul.f32.gmra.mxu3 %v1366_v45 }
 0x124   : > { %1057 = vmatmul.f32.gmra.mxu1 %v797_v14  ;;  %1238 = vmatmul.f32.gmra.mxu2 %v1365_v20  ;;  %v3051_v20 = vld [vmem:[%s4789_s3 + $0x450] sm:$0xff] }
 0x125   : > { %1663 = vmatmul.f32.gmra.mxu0 %v1580_v37  ;;  %v1368_v14 = vld [vmem:[#allocation2 + $0x6b] sm:$0xff]  ;;  %v799_v37 = vld [vmem:[#allocation2 + $0x59] sm:$0xff] }
 0x126   : > { %2487 = vmatpush.msra.mxu0 %v3051_v20  ;;  %v1369_v20 = vld [vmem:[#allocation2 + $0x73] sm:$0xff] }
 0x127   : > { %v4051_v12 = vpop.f32.mrf.mxu3 }
 0x128   : > { %v4039_v31 = vpop.f32.mrf.mxu2  ;;  %2488 = vmatpush.msra.mxu0 %v3050_v29 }
 0x12a   : > { %v4049_v22 = vpop.f32.mrf.mxu0 }
 0x12b   : > { %1452 = vmatmul.f32.gmra.mxu3 %v1367_v61 }
 0x12c   : > { %1060 = vmatmul.f32.gmra.mxu1 %v798_v62  ;;  %1241 = vmatmul.f32.gmra.mxu2 %v1366_v45  ;;  %v1582_v45 = vld [vmem:[#allocation2 + $0x6c] sm:$0xff] }
 0x12d   : > { %1666 = vmatmul.f32.gmra.mxu0 %v1581_v52 }
 0x12f   : > { %v4065_v52 = vpop.f32.mrf.mxu3 }
 0x130   : > { %v4053_v21 = vpop.f32.mrf.mxu2 }
 0x131   : > { %v4055_v34 = vpop.f32.mrf.mxu1 }
 0x132   : > { %v4063_v62 = vpop.f32.mrf.mxu0 }
 0x133   : > { %1455 = vmatmul.f32.gmra.mxu3 %v1368_v14 }
 0x134   : > { %1063 = vmatmul.f32.gmra.mxu1 %v799_v37  ;;  %1244 = vmatmul.f32.gmra.mxu2 %v1367_v61  ;;  %v3002_v61 = vld [vmem:[%s4789_s3 + $0x2c8] sm:$0xff] }
 0x135   : > { %1669 = vmatmul.f32.gmra.mxu0 %v1582_v45  ;;  %v800_v37 = vld [vmem:[#allocation2 + $0x61] sm:$0xff]  ;;  %1846 = vmatpush.msra.mxu1 %v3002_v61 }
 0x136   : > { %v1370_v61 = vld [vmem:[#allocation2 + $0x7b] sm:$0xff] }
 0x139   : > { %v4070_v45 = vpop.f32.mrf.mxu2 }
 0x13b   : > { %1458 = vmatmul.f32.gmra.mxu3 %v1369_v20  ;;  %v4075_v28 = vpop.f32.mrf.mxu1 }
 0x13c   : > { %1066 = vmatmul.f32.gmra.mxu1 %v800_v37  ;;  %1247 = vmatmul.f32.gmra.mxu2 %v1368_v14  ;;  %v3017_v14 = vld [vmem:[%s4789_s3 + $0x340] sm:$0xff] }
 0x13d   : > { %3131 = vmatmul.msk.f32.gmra.mxu0 %vm692_vm3, %v3681_v59  ;;  %2061 = vmatpush.msra.mxu2 %v3017_v14  ;;  %v3001_v14 = vld [vmem:[%s4789_s3 + $0x2c0] sm:$0xff] }
 0x13e   : > { %1847 = vmatpush.msra.mxu1 %v3001_v14 }
 0x13f   : > { %v4082_v7 = vpop.f32.mrf.mxu3  ;;  %2062 = vmatpush.msra.mxu2 %v3016_v10 }
 0x140   : > { %v4080_v54 = vpop.f32.mrf.mxu0 }
 0x141   : > { %v4087_v59 = vpop.f32.mrf.mxu2 }
 0x143   : > { %1461 = vmatmul.f32.gmra.mxu3 %v1370_v61  ;;  %v4092_v37 = vpop.f32.mrf.mxu1 }
 0x144   : > { %1069 = vmatmul.f32.gmra.mxu1 %v801_v6  ;;  %1250 = vmatmul.f32.gmra.mxu2 %v1369_v20  ;;  %v3033_v6 = vld [vmem:[%s4789_s3 + $0x3c0] sm:$0xff]  ;;  %v802_v20 = vld [vmem:[#allocation2 + $0x71] sm:$0xff] }
 0x145   : > { %3132 = vmatmul.msk.f32.gmra.mxu0 %vm693_vm6, %v3734_v43  ;;  %v1585_v43 = vld [vmem:[#allocation2 + $0x84] sm:$0xff]  ;;  %2275 = vmatpush.msra.mxu3 %v3033_v6 }
 0x148   : > { %v4099_v5 = vpop.f32.mrf.mxu3 }
 0x14a   : > { %v4094_v29 = vpop.f32.mrf.mxu0 }
 0x14b   : > { %1464 = vmatmul.f32.gmra.mxu3 %v1371_v32 }
 0x14c   : > { %1072 = vmatmul.f32.gmra.mxu1 %v802_v20  ;;  %1253 = vmatmul.f32.gmra.mxu2 %v1370_v61  ;;  %v3049_v20 = vld [vmem:[%s4789_s3 + $0x440] sm:$0xff] }
 0x14d   : > { %1678 = vmatmul.f32.gmra.mxu0 %v1585_v43  ;;  %v803_v61 = vld [vmem:[#allocation2 + $0x79] sm:$0xff] }
 0x14e   : > { %v4104_v33 = vpop.f32.mrf.mxu2  ;;  %2489 = vmatpush.msra.mxu0 %v3049_v20  ;;  %v804_v20 = vld [vmem:[#allocation2 + $0x81] sm:$0xff] }
 0x150   : > { %v4106_v51 = vpop.f32.mrf.mxu1  ;;  %v4116_v6 = vpop.f32.mrf.mxu3  ;;  %2490 = vmatpush.msra.mxu0 %v3048_v1  ;;  %v3031_v1 = vld [vmem:[%s4789_s3 + $0x3b0] sm:$0xff] }
 0x152   : > { %v4108_v47 = vpop.f32.mrf.mxu0 }
 0x153   : > { %1467 = vmatmul.f32.gmra.mxu3 %v1372_v48 }
 0x154   : > { %1075 = vmatmul.f32.gmra.mxu1 %v803_v61  ;;  %1256 = vmatmul.f32.gmra.mxu2 %v1371_v32  ;;  %v3000_v32 = vld [vmem:[%s4789_s3 + $0x2b8] sm:$0xff] }
 0x155   : > { %3133 = vmatmul.msk.f32.gmra.mxu0 %vm695_vm4, %v3886_v23  ;;  %v3032_v23 = vld [vmem:[%s4789_s3 + $0x3b8] sm:$0xff]  ;;  %1848 = vmatpush.msra.mxu1 %v3000_v32 }
 0x156   : > { %2276 = vmatpush.msra.mxu3 %v3032_v23 }
 0x157   : > { %v4118_v43 = vpop.f32.mrf.mxu2 }
 0x158   : > { %2277 = vmatpush.msra.mxu3 %v3031_v1 }
 0x159   : > { %v4120_v14 = vpop.f32.mrf.mxu1 }
 0x15a   : > { %v4122_v9 = vpop.f32.mrf.mxu0 }
 0x15b   : > { %1470 = vmatmul.f32.gmra.mxu3 %v1373_v41 }
 0x15c   : > { %1078 = vmatmul.f32.gmra.mxu1 %v804_v20  ;;  %1259 = vmatmul.f32.gmra.mxu2 %v1372_v48  ;;  %v1374_v20 = vld [vmem:[#allocation2 + $0x9b] sm:$0xff] }
 0x15d   : > { %3134 = vmatmul.msk.f32.gmra.mxu0 %vm696_vm9, %v3925_v24  ;;  %v805_v24 = vld [vmem:[#allocation2 + $0x89] sm:$0xff] }
 0x15e   : > { %v4136_v61 = vpop.f32.mrf.mxu3 }
 0x15f   : > { %v4138_v38 = vpop.f32.mrf.mxu2 }
 0x161   : > { %v4140_v10 = vpop.f32.mrf.mxu1 }
 0x162   : > { %v4142_v48 = vpop.f32.mrf.mxu0 }
 0x163   : > { %1473 = vmatmul.f32.gmra.mxu3 %v1374_v20 }
 0x164   : > { %1081 = vmatmul.f32.gmra.mxu1 %v805_v24  ;;  %1262 = vmatmul.f32.gmra.mxu2 %v1373_v41  ;;  %v1589_v41 = vld [vmem:[#allocation2 + $0xa4] sm:$0xff]  ;;  %v3015_v24 = vld [vmem:[%s4789_s3 + $0x330] sm:$0xff] }
 0x165   : > { %1687 = vmatmul.f32.gmra.mxu0 %v1588_v53  ;;  %2063 = vmatpush.msra.mxu2 %v3015_v24  ;;  %v1590_v24 = vld [vmem:[#allocation2 + $0xac] sm:$0xff] }
 0x166   : > { %v4147_v25 = vpop.f32.mrf.mxu3 }
 0x167   : > { %v1215_v23 = vpop.f32.mrf.mxu2 }
 0x169   : > { %v1037_v32 = vpop.f32.mrf.mxu1 }
 0x16a   : > { %v1038_v49 = vadd.f32 %v1037_v32, %v4018_v16  ;;  %v4150_v13 = vpop.f32.mrf.mxu0 }
 0x16b   : > { %1476 = vmatmul.f32.gmra.mxu3 %v1375_v42 }
 0x16c   : > { %1084 = vmatmul.f32.gmra.mxu1 %v806_v11  ;;  %1265 = vmatmul.f32.gmra.mxu2 %v1374_v20  ;;  %v1323_v53 = vadd.f32 %v1215_v23, %v1038_v49  ;;  %v2999_v11 = vld [vmem:[%s4789_s3 + $0x2b0] sm:$0xff] }
 0x16d   : > { %1690 = vmatmul.f32.gmra.mxu0 %v1589_v41  ;;  %1849 = vmatpush.msra.mxu1 %v2999_v11  ;;  %v1376_v41 = vld [vmem:[#allocation2 + $0xab] sm:$0xff] }
 0x16e   : > { %v1429_v18 = vpop.f32.mrf.mxu3 }
 0x16f   : > { %v1218_v16 = vpop.f32.mrf.mxu2  ;;  %v4158_v32 = vadd.f32 %v1429_v18, %v1323_v53  ;;  %v3047_v18 = vld [vmem:[%s4789_s3 + $0x430] sm:$0xff] }
 0x170   : > { %2491 = vmatpush.msra.mxu0 %v3047_v18 }
 0x171   : > { %v1040_v49 = vpop.f32.mrf.mxu1 }
 0x172   : > { %v1041_v20 = vadd.f32 %v1040_v49, %v4029_v60  ;;  %v4164_v23 = vpop.f32.mrf.mxu0 }
 0x173   : > { %1479 = vmatmul.f32.gmra.mxu3 %v1376_v41 }
 0x174   : > { %1087 = vmatmul.f32.gmra.mxu1 %v807_v46  ;;  %1268 = vmatmul.f32.gmra.mxu2 %v1375_v42  ;;  %v1324_v1 = vadd.f32 %v1218_v16, %v1041_v20  ;;  %v808_v46 = vld [vmem:[#allocation2 + $0xa1] sm:$0xff]  ;;  %v1591_v42 = vld [vmem:[#allocation2 + $0xb4] sm:$0xff] }
 0x175   : > { %1693 = vmatmul.f32.gmra.mxu0 %v1590_v24  ;;  %v3014_v20 = vld [vmem:[%s4789_s3 + $0x328] sm:$0xff] }
 0x176   : > { %v1432_v53 = vpop.f32.mrf.mxu3  ;;  %2064 = vmatpush.msra.mxu2 %v3014_v20 }
 0x177   : > { %v1221_v11 = vpop.f32.mrf.mxu2  ;;  %v4169_v30 = vadd.f32 %v1432_v53, %v1324_v1 }
 0x179   : > { %v1043_v60 = vpop.f32.mrf.mxu1 }
 0x17a   : > { %v1044_v49 = vadd.f32 %v1043_v60, %v4049_v22  ;;  %v4172_v55 = vpop.f32.mrf.mxu0  ;;  %v3030_v22 = vld [vmem:[%s4789_s3 + $0x3a8] sm:$0xff] }
 0x17b   : > { %1482 = vmatmul.f32.gmra.mxu3 %v1377_v63 }
 0x17c   : > { %1090 = vmatmul.f32.gmra.mxu1 %v808_v46  ;;  %1271 = vmatmul.f32.gmra.mxu2 %v1376_v41  ;;  %v1325_v16 = vadd.f32 %v1221_v11, %v1044_v49  ;;  %v1378_v11 = vld [vmem:[#allocation2 + $0xbb] sm:$0xff]  ;;  %v2998_v49 = vld [vmem:[%s4789_s3 + $0x2a8] sm:$0xff] }
 0x17d   : > { %1696 = vmatmul.f32.gmra.mxu0 %v1591_v42  ;;  %2278 = vmatpush.msra.mxu3 %v3030_v22  ;;  %v809_v46 = vld [vmem:[#allocation2 + $0xa9] sm:$0xff]  ;;  %v1592_v42 = vld [vmem:[#allocation2 + $0xbc] sm:$0xff] }
 0x17e   : > { %v1435_v24 = vpop.f32.mrf.mxu3  ;;  %1850 = vmatpush.msra.mxu1 %v2998_v49  ;;  %v1379_v49 = vld [vmem:[#allocation2 + $0xc3] sm:$0xff] }
 0x17f   : > { %v1224_v1 = vpop.f32.mrf.mxu2  ;;  %v4177_v18 = vadd.f32 %v1435_v24, %v1325_v16 }
 0x181   : > { %v1046_v53 = vpop.f32.mrf.mxu1 }
 0x182   : > { %v1047_v41 = vadd.f32 %v1046_v53, %v4063_v62  ;;  %v4183_v60 = vpop.f32.mrf.mxu0  ;;  %v3046_v62 = vld [vmem:[%s4789_s3 + $0x428] sm:$0xff] }
 0x183   : > { %1485 = vmatmul.f32.gmra.mxu3 %v1378_v11  ;;  %2492 = vmatpush.msra.mxu0 %v3046_v62 }
 0x184   : > { %1093 = vmatmul.f32.gmra.mxu1 %v809_v46  ;;  %1274 = vmatmul.f32.gmra.mxu2 %v1377_v63  ;;  %v1326_v16 = vadd.f32 %v1224_v1, %v1047_v41  ;;  %v810_v46 = vld [vmem:[#allocation2 + $0xb1] sm:$0xff]  ;;  %v1593_v63 = vld [vmem:[#allocation2 + $0xc4] sm:$0xff] }
 0x185   : > { %1699 = vmatmul.f32.gmra.mxu0 %v1592_v42 }
 0x186   : > { %v1438_v20 = vpop.f32.mrf.mxu3 }
 0x187   : > { %v1227_v24 = vpop.f32.mrf.mxu2  ;;  %v4188_v22 = vadd.f32 %v1438_v20, %v1326_v16  ;;  %v3013_v20 = vld [vmem:[%s4789_s3 + $0x320] sm:$0xff] }
 0x188   : > { %2065 = vmatpush.msra.mxu2 %v3013_v20 }
 0x189   : > { %v1049_v53 = vpop.f32.mrf.mxu1 }
 0x18a   : > { %v1050_v17 = vadd.f32 %v1049_v53, %v4080_v54  ;;  %v4194_v58 = vpop.f32.mrf.mxu0 }
 0x18b   : > { %1488 = vmatmul.f32.gmra.mxu3 %v1379_v49 }
 0x18c   : > { %1096 = vmatmul.f32.gmra.mxu1 %v810_v46  ;;  %1277 = vmatmul.f32.gmra.mxu2 %v1378_v11  ;;  %v1327_v1 = vadd.f32 %v1227_v24, %v1050_v17  ;;  %v3029_v17 = vld [vmem:[%s4789_s3 + $0x3a0] sm:$0xff]  ;;  %v1594_v24 = vld [vmem:[#allocation2 + $0xcc] sm:$0xff] }
 0x18d   : > { %1702 = vmatmul.f32.gmra.mxu0 %v1593_v63  ;;  %v811_v11 = vld [vmem:[#allocation2 + $0xb9] sm:$0xff]  ;;  %2279 = vmatpush.msra.mxu3 %v3029_v17 }
 0x18e   : > { %v1441_v41 = vpop.f32.mrf.mxu3  ;;  %v2997_v63 = vld [vmem:[%s4789_s3 + $0x2a0] sm:$0xff] }
 0x18f   : > { %v1230_v42 = vpop.f32.mrf.mxu2  ;;  %v4196_v16 = vadd.f32 %v1441_v41, %v1327_v1  ;;  %1851 = vmatpush.msra.mxu1 %v2997_v63 }
 0x191   : > { %v1052_v54 = vpop.f32.mrf.mxu1 }
 0x192   : > { %v1053_v62 = vadd.f32 %v1052_v54, %v4094_v29  ;;  %v4202_v53 = vpop.f32.mrf.mxu0 }
 0x193   : > { %1491 = vmatmul.f32.gmra.mxu3 %v1380_v44 }
 0x194   : > { %1099 = vmatmul.f32.gmra.mxu1 %v811_v11  ;;  %1280 = vmatmul.f32.gmra.mxu2 %v1379_v49  ;;  %v1328_v46 = vadd.f32 %v1230_v42, %v1053_v62  ;;  %v1381_v11 = vld [vmem:[#allocation2 + $0xd3] sm:$0xff]  ;;  %v3045_v49 = vld [vmem:[%s4789_s3 + $0x420] sm:$0xff] }
 0x195   : > { %1705 = vmatmul.f32.gmra.mxu0 %v1594_v24  ;;  %v812_v42 = vld [vmem:[#allocation2 + $0xc1] sm:$0xff]  ;;  %v1595_v62 = vld [vmem:[#allocation2 + $0xd4] sm:$0xff] }
 0x196   : > { %v1444_v29 = vpop.f32.mrf.mxu3  ;;  %2493 = vmatpush.msra.mxu0 %v3045_v49 }
 0x197   : > { %v1233_v1 = vpop.f32.mrf.mxu2  ;;  %v4210_v41 = vadd.f32 %v1444_v29, %v1328_v46 }
 0x199   : > { %v1055_v20 = vpop.f32.mrf.mxu1 }
 0x19a   : > { %v1056_v54 = vadd.f32 %v1055_v20, %v4108_v47  ;;  %v4213_v36 = vpop.f32.mrf.mxu0  ;;  %v4222_v47 = vadd.f32 %v4150_v13, %v4158_v32  ;;  %v2996_v13 = vld [vmem:[%s4789_s3 + $0x298] sm:$0xff] }
 0x19b   : > { %1494 = vmatmul.f32.gmra.mxu3 %v1381_v11  ;;  %1852 = vmatpush.msra.mxu1 %v2996_v13  ;;  %v1384_v13 = vld [vmem:[#allocation2 + $0xeb] sm:$0xff] }
 0x19c   : > { %1102 = vmatmul.f32.gmra.mxu1 %v812_v42  ;;  %1283 = vmatmul.f32.gmra.mxu2 %v1380_v44  ;;  %v1329_v17 = vadd.f32 %v1233_v1, %v1056_v54  ;;  %v3012_v44 = vld [vmem:[%s4789_s3 + $0x318] sm:$0xff]  ;;  %v813_v1 = vld [vmem:[#allocation2 + $0xc9] sm:$0xff] }
 0x19d   : > { %1708 = vmatmul.f32.gmra.mxu0 %v1595_v62  ;;  %2066 = vmatpush.msra.mxu2 %v3012_v44  ;;  %v3044_v44 = vld [vmem:[%s4789_s3 + $0x418] sm:$0xff] }
 0x19e   : > { %v1447_v24 = vpop.f32.mrf.mxu3  ;;  %2494 = vmatpush.msra.mxu0 %v3044_v44 }
 0x19f   : > { %v1236_v46 = vpop.f32.mrf.mxu2  ;;  %v4218_v63 = vadd.f32 %v1447_v24, %v1329_v17  ;;  %v1383_v24 = vld [vmem:[#allocation2 + $0xe3] sm:$0xff] }
 0x1a1   : > { %v1058_v29 = vpop.f32.mrf.mxu1 }
 0x1a2   : > { %v1059_v20 = vadd.f32 %v1058_v29, %v4122_v9  ;;  %v4225_v50 = vpop.f32.mrf.mxu0  ;;  %v3028_v9 = vld [vmem:[%s4789_s3 + $0x398] sm:$0xff]  ;;  %v1597_v29 = vld [vmem:[#allocation2 + $0xe4] sm:$0xff] }
 0x1a3   : > { %1497 = vmatmul.f32.gmra.mxu3 %v1382_v57 }
 0x1a4   : > { %1105 = vmatmul.f32.gmra.mxu1 %v813_v1  ;;  %1286 = vmatmul.f32.gmra.mxu2 %v1381_v11  ;;  %v1330_v54 = vadd.f32 %v1236_v46, %v1059_v20  ;;  %v4243_v11 = vadd.f32 %v4164_v23, %v4169_v30  ;;  %v814_v46 = vld [vmem:[#allocation2 + $0xd1] sm:$0xff] }
 0x1a5   : > { %3135 = vmatmul.msk.f32.gmra.mxu0 %vm705_vm8, %v3897_v35  ;;  %2280 = vmatpush.msra.mxu3 %v3028_v9 }
 0x1a6   : > { %v1450_v32 = vpop.f32.mrf.mxu3 }
 0x1a7   : > { %v1239_v49 = vpop.f32.mrf.mxu2  ;;  %v4239_v42 = vadd.f32 %v1450_v32, %v1330_v54  ;;  %v815_v32 = vld [vmem:[#allocation2 + $0xd9] sm:$0xff] }
 0x1a9   : > { %v1061_v62 = vpop.f32.mrf.mxu1 }
 0x1aa   : > { %v1062_v35 = vadd.f32 %v1061_v62, %v4142_v48  ;;  %v4246_v17 = vpop.f32.mrf.mxu0  ;;  %v4255_v48 = vadd.f32 %v4172_v55, %v4177_v18  ;;  %v3027_v55 = vld [vmem:[%s4789_s3 + $0x390] sm:$0xff] }
 0x1ab   : > { %1500 = vmatmul.f32.gmra.mxu3 %v1383_v24 }
 0x1ac   : > { %1108 = vmatmul.f32.gmra.mxu1 %v814_v46  ;;  %1289 = vmatmul.f32.gmra.mxu2 %v1382_v57  ;;  %v1331_v20 = vadd.f32 %v1239_v49, %v1062_v35  ;;  %v1598_v49 = vld [vmem:[#allocation2 + $0xec] sm:$0xff] }
 0x1ad   : > { %1714 = vmatmul.f32.gmra.mxu0 %v1597_v29  ;;  %v3011_v35 = vld [vmem:[%s4789_s3 + $0x310] sm:$0xff]  ;;  %2281 = vmatpush.msra.mxu3 %v3027_v55  ;;  %v4273_v29 = vadd.f32 %v4183_v60, %v4188_v22 }
 0x1ae   : > { %v1453_v1 = vpop.f32.mrf.mxu3  ;;  %2067 = vmatpush.msra.mxu2 %v3011_v35 }
 0x1af   : > { %v1242_v30 = vpop.f32.mrf.mxu2  ;;  %v4251_v23 = vadd.f32 %v1453_v1, %v1331_v20 }
 0x1b1   : > { %v1064_v54 = vpop.f32.mrf.mxu1 }
 0x1b2   : > { %v1065_v9 = vadd.f32 %v1064_v54, %v4016_v8  ;;  %v4258_v57 = vpop.f32.mrf.mxu0  ;;  %v816_v54 = vld [vmem:[#allocation2 + $0xe1] sm:$0xff] }
 0x1b3   : > { %1503 = vmatmul.f32.gmra.mxu3 %v1384_v13 }
 0x1b4   : > { %1111 = vmatmul.f32.gmra.mxu1 %v815_v32  ;;  %1292 = vmatmul.f32.gmra.mxu2 %v1383_v24  ;;  %v1332_v62 = vadd.f32 %v1242_v30, %v1065_v9  ;;  %v2995_v24 = vld [vmem:[%s4789_s3 + $0x290] sm:$0xff] }
 0x1b5   : > { %1717 = vmatmul.f32.gmra.mxu0 %v1598_v49  ;;  %1853 = vmatpush.msra.mxu1 %v2995_v24  ;;  %v1385_v30 = vld [vmem:[#allocation2 + $0xf3] sm:$0xff]  ;;  %v1600_v24 = vld [vmem:[#allocation2 + $0xfc] sm:$0xff] }
 0x1b6   : > { %v1456_v18 = vpop.f32.mrf.mxu3  ;;  %v1599_v9 = vld [vmem:[#allocation2 + $0xf4] sm:$0xff] }
 0x1b7   : > { %v1245_v8 = vpop.f32.mrf.mxu2  ;;  %v4266_v46 = vadd.f32 %v1456_v18, %v1332_v62  ;;  %v3043_v49 = vld [vmem:[%s4789_s3 + $0x410] sm:$0xff]  ;;  %v1386_v18 = vld [vmem:[#allocation2 + $0xfb] sm:$0xff] }
 0x1b8   : > { %2495 = vmatpush.msra.mxu0 %v3043_v49 }
 0x1b9   : > { %v1067_v20 = vpop.f32.mrf.mxu1 }
 0x1ba   : > { %v1068_v44 = vadd.f32 %v1067_v20, %v4027_v26  ;;  %v4276_v1 = vpop.f32.mrf.mxu0  ;;  %v4285_v26 = vadd.f32 %v4194_v58, %v4196_v16 }
 0x1bb   : > { %1506 = vmatmul.f32.gmra.mxu3 %v1385_v30 }
 0x1bc   : > { %1114 = vmatmul.f32.gmra.mxu1 %v816_v54  ;;  %1295 = vmatmul.f32.gmra.mxu2 %v1384_v13  ;;  %v1333_v32 = vadd.f32 %v1245_v8, %v1068_v44  ;;  %v817_v8 = vld [vmem:[#allocation2 + $0xe9] sm:$0xff] }
 0x1bd   : > { %1720 = vmatmul.f32.gmra.mxu0 %v1599_v9  ;;  %v3010_v44 = vld [vmem:[%s4789_s3 + $0x308] sm:$0xff]  ;;  %v4300_v9 = vadd.f32 %v4202_v53, %v4210_v41 }
 0x1be   : > { %v1459_v60 = vpop.f32.mrf.mxu3  ;;  %2068 = vmatpush.msra.mxu2 %v3010_v44 }
 0x1bf   : > { %v1248_v22 = vpop.f32.mrf.mxu2  ;;  %v4281_v62 = vadd.f32 %v1459_v60, %v1333_v32  ;;  %v1387_v60 = vld [vmem:[#allocation2 + $0x103] sm:$0xff] }
 0x1c1   : > { %v1070_v35 = vpop.f32.mrf.mxu1 }
 0x1c2   : > { %v1071_v55 = vadd.f32 %v1070_v35, %v4044_v0  ;;  %v4288_v13 = vpop.f32.mrf.mxu0  ;;  %v3026_v0 = vld [vmem:[%s4789_s3 + $0x388] sm:$0xff]  ;;  %v818_v35 = vld [vmem:[#allocation2 + $0xf1] sm:$0xff] }
 0x1c3   : > { %1509 = vmatmul.f32.gmra.mxu3 %v1386_v18 }
 0x1c4   : > { %1117 = vmatmul.f32.gmra.mxu1 %v817_v8  ;;  %1298 = vmatmul.f32.gmra.mxu2 %v1385_v30  ;;  %v1334_v20 = vadd.f32 %v1248_v22, %v1071_v55  ;;  %v2994_v22 = vld [vmem:[%s4789_s3 + $0x288] sm:$0xff] }
 0x1c5   : > { %1723 = vmatmul.f32.gmra.mxu0 %v1600_v24  ;;  %2282 = vmatpush.msra.mxu3 %v3026_v0  ;;  %v1601_v55 = vld [vmem:[#allocation2 + $0x104] sm:$0xff] }
 0x1c6   : > { %v1462_v54 = vpop.f32.mrf.mxu3  ;;  %1854 = vmatpush.msra.mxu1 %v2994_v22  ;;  %v1388_v0 = vld [vmem:[#allocation2 + $0x10b] sm:$0xff] }
 0x1c7   : > { %v1251_v58 = vpop.f32.mrf.mxu2  ;;  %v4293_v16 = vadd.f32 %v1462_v54, %v1334_v20 }
 0x1c9   : > { %v1073_v30 = vpop.f32.mrf.mxu1 }
 0x1ca   : > { %v1074_v32 = vadd.f32 %v1073_v30, %v4055_v34  ;;  %v4303_v49 = vpop.f32.mrf.mxu0  ;;  %v3042_v34 = vld [vmem:[%s4789_s3 + $0x408] sm:$0xff]  ;;  %v819_v30 = vld [vmem:[#allocation2 + $0xf9] sm:$0xff] }
 0x1cb   : > { %1512 = vmatmul.f32.gmra.mxu3 %v1387_v60  ;;  %2496 = vmatpush.msra.mxu0 %v3042_v34  ;;  %v1389_v34 = vld [vmem:[#allocation2 + $0x113] sm:$0xff] }
 0x1cc   : > { %1120 = vmatmul.f32.gmra.mxu1 %v818_v35  ;;  %1301 = vmatmul.f32.gmra.mxu2 %v1386_v18  ;;  %v1335_v53 = vadd.f32 %v1251_v58, %v1074_v32  ;;  %v1602_v18 = vld [vmem:[#allocation2 + $0x10c] sm:$0xff] }
 0x1cd   : > { %1726 = vmatmul.f32.gmra.mxu0 %v1601_v55  ;;  %v3009_v55 = vld [vmem:[%s4789_s3 + $0x300] sm:$0xff] }
 0x1ce   : > { %v1465_v41 = vpop.f32.mrf.mxu3  ;;  %2069 = vmatpush.msra.mxu2 %v3009_v55 }
 0x1cf   : > { %v1254_v8 = vpop.f32.mrf.mxu2  ;;  %v4308_v24 = vadd.f32 %v1465_v41, %v1335_v53 }
 0x1d1   : > { %v1076_v20 = vpop.f32.mrf.mxu1 }
 0x1d2   : > { %v1077_v44 = vadd.f32 %v1076_v20, %v4075_v28  ;;  %v4314_v54 = vpop.f32.mrf.mxu0  ;;  %v4323_v28 = vadd.f32 %v4213_v36, %v4218_v63  ;;  %v820_v20 = vld [vmem:[#allocation2 + $0x101] sm:$0xff] }
 0x1d3   : > { %1515 = vmatmul.f32.gmra.mxu3 %v1388_v0  ;;  %v2993_v36 = vld [vmem:[%s4789_s3 + $0x280] sm:$0xff] }
 0x1d4   : > { %1123 = vmatmul.f32.gmra.mxu1 %v819_v30  ;;  %1304 = vmatmul.f32.gmra.mxu2 %v1387_v60  ;;  %v1336_v58 = vadd.f32 %v1254_v8, %v1077_v44  ;;  %v3025_v8 = vld [vmem:[%s4789_s3 + $0x380] sm:$0xff]  ;;  %v1603_v44 = vld [vmem:[#allocation2 + $0x114] sm:$0xff] }
 0x1d5   : > { %1729 = vmatmul.f32.gmra.mxu0 %v1602_v18  ;;  %2283 = vmatpush.msra.mxu3 %v3025_v8  ;;  %v1604_v8 = vld [vmem:[#allocation2 + $0x11c] sm:$0xff] }
 0x1d6   : > { %v1468_v32 = vpop.f32.mrf.mxu3  ;;  %1855 = vmatpush.msra.mxu1 %v2993_v36 }
 0x1d7   : > { %v1257_v22 = vpop.f32.mrf.mxu2  ;;  %v4316_v35 = vadd.f32 %v1468_v32, %v1336_v58  ;;  %v4338_v32 = vadd.f32 %v4225_v50, %v4239_v42 }
 0x1d9   : > { %v1079_v53 = vpop.f32.mrf.mxu1 }
 0x1da   : > { %v1080_v41 = vadd.f32 %v1079_v53, %v4092_v37  ;;  %v4326_v60 = vpop.f32.mrf.mxu0  ;;  %v3041_v53 = vld [vmem:[%s4789_s3 + $0x400] sm:$0xff] }
 0x1db   : > { %1518 = vmatmul.f32.gmra.mxu3 %v1389_v34  ;;  %2497 = vmatpush.msra.mxu0 %v3041_v53  ;;  %v822_v53 = vld [vmem:[#allocation2 + $0x111] sm:$0xff] }
 0x1dc   : > { %1126 = vmatmul.f32.gmra.mxu1 %v820_v20  ;;  %1307 = vmatmul.f32.gmra.mxu2 %v1388_v0  ;;  %v1337_v30 = vadd.f32 %v1257_v22, %v1080_v41  ;;  %v1390_v22 = vld [vmem:[#allocation2 + $0x11b] sm:$0xff]  ;;  %v821_v41 = vld [vmem:[#allocation2 + $0x109] sm:$0xff] }
 0x1dd   : > { %1732 = vmatmul.f32.gmra.mxu0 %v1603_v44 }
 0x1de   : > { %v1471_v37 = vpop.f32.mrf.mxu3 }
 0x1df   : > { %v1260_v63 = vpop.f32.mrf.mxu2  ;;  %v4334_v18 = vadd.f32 %v1471_v37, %v1337_v30  ;;  %v4350_v30 = vadd.f32 %v4246_v17, %v4251_v23  ;;  %v4359_v17 = vadd.f32 %v4258_v57, %v4266_v46  ;;  %v4368_v57 = vadd.f32 %v4276_v1, %v4281_v62 }
 0x1e0   : > { %v4377_v1 = vadd.f32 %v4288_v13, %v4293_v16  ;;  %v4386_v13 = vadd.f32 %v4303_v49, %v4308_v24  ;;  %v4395_v49 = vadd.f32 %v4314_v54, %v4316_v35 }
 0x1e1   : > { %v1082_v58 = vpop.f32.mrf.mxu1  ;;  %v4404_v54 = vadd.f32 %v4326_v60, %v4334_v18  ;;  %v2218_v18 = vld [vmem:[#allocation2 + $0x4e] sm:$0xff] }
 0x1e2   : > { %v1083_v0 = vadd.f32 %v1082_v58, %v4106_v51  ;;  %v4341_v55 = vpop.f32.mrf.mxu0  ;;  %v1391_v58 = vld [vmem:[#allocation2 + $0x123] sm:$0xff] }
 0x1e3   : > { %1521 = vmatmul.f32.gmra.mxu3 %v1390_v22 }
 0x1e4   : > { %1129 = vmatmul.f32.gmra.mxu1 %v821_v41  ;;  %1310 = vmatmul.f32.gmra.mxu2 %v1389_v34  ;;  %v1338_v20 = vadd.f32 %v1260_v63, %v1083_v0  ;;  %v1605_v34 = vld [vmem:[#allocation2 + $0x124] sm:$0xff] }
 0x1e5   : > { %1735 = vmatmul.f32.gmra.mxu0 %v1604_v8 }
 0x1e6   : > { %v1474_v44 = vpop.f32.mrf.mxu3 }
 0x1e7   : > { %v1263_v50 = vpop.f32.mrf.mxu2  ;;  %v4346_v42 = vadd.f32 %v1474_v44, %v1338_v20  ;;  %v1392_v44 = vld [vmem:[#allocation2 + $0x12b] sm:$0xff] }
 0x1e9   : > { %v1085_v51 = vpop.f32.mrf.mxu1  ;;  %v4413_v60 = vadd.f32 %v4341_v55, %v4346_v42 }
 0x1ea   : > { %v1086_v36 = vadd.f32 %v1085_v51, %v4120_v14  ;;  %v4353_v37 = vpop.f32.mrf.mxu0  ;;  %v823_v51 = vld [vmem:[#allocation2 + $0x119] sm:$0xff] }
 0x1eb   : > { %1524 = vmatmul.f32.gmra.mxu3 %v1391_v58 }
 0x1ec   : > { %1132 = vmatmul.f32.gmra.mxu1 %v822_v53  ;;  %1313 = vmatmul.f32.gmra.mxu2 %v1390_v22  ;;  %v1339_v63 = vadd.f32 %v1263_v50, %v1086_v36  ;;  %v1606_v22 = vld [vmem:[#allocation2 + $0x12c] sm:$0xff] }
 0x1ed   : > { %1738 = vmatmul.f32.gmra.mxu0 %v1605_v34 }
 0x1ee   : > { %v1477_v0 = vpop.f32.mrf.mxu3 }
 0x1ef   : > { %v1266_v41 = vpop.f32.mrf.mxu2  ;;  %v4355_v8 = vadd.f32 %v1477_v0, %v1339_v63  ;;  %v1393_v0 = vld [vmem:[#allocation2 + $0x133] sm:$0xff] }
 0x1f1   : > { %v1088_v20 = vpop.f32.mrf.mxu1  ;;  %v4422_v55 = vadd.f32 %v4353_v37, %v4355_v8 }
 0x1f2   : > { %v1089_v14 = vadd.f32 %v1088_v20, %v4140_v10  ;;  %v4362_v23 = vpop.f32.mrf.mxu0  ;;  %v824_v20 = vld [vmem:[#allocation2 + $0x121] sm:$0xff] }
 0x1f3   : > { %1527 = vmatmul.f32.gmra.mxu3 %v1392_v44 }
 0x1f4   : > { %1135 = vmatmul.f32.gmra.mxu1 %v823_v51  ;;  %1316 = vmatmul.f32.gmra.mxu2 %v1391_v58  ;;  %v1340_v50 = vadd.f32 %v1266_v41, %v1089_v14  ;;  %v1607_v58 = vld [vmem:[#allocation2 + $0x134] sm:$0xff] }
 0x1f5   : > { %1741 = vmatmul.f32.gmra.mxu0 %v1606_v22 }
 0x1f6   : > { %v1480_v36 = vpop.f32.mrf.mxu3 }
 0x1f7   : > { %v1269_v53 = vpop.f32.mrf.mxu2  ;;  %v4364_v34 = vadd.f32 %v1480_v36, %v1340_v50  ;;  %v1394_v36 = vld [vmem:[#allocation2 + $0x13b] sm:$0xff] }
 0x1f9   : > { %v1091_v63 = vpop.f32.mrf.mxu1  ;;  %v4431_v37 = vadd.f32 %v4362_v23, %v4364_v34 }
 0x1fa   : > { %v1092_v10 = vadd.f32 %v1091_v63, %v4014_v2  ;;  %v4371_v46 = vpop.f32.mrf.mxu0  ;;  %v825_v63 = vld [vmem:[#allocation2 + $0x129] sm:$0xff] }
 0x1fb   : > { %1530 = vmatmul.f32.gmra.mxu3 %v1393_v0  ;;  %v1608_v0 = vld [vmem:[#allocation2 + $0x13c] sm:$0xff] }
 0x1fc   : > { %1138 = vmatmul.f32.gmra.mxu1 %v824_v20  ;;  %1319 = vmatmul.f32.gmra.mxu2 %v1392_v44  ;;  %v1341_v41 = vadd.f32 %v1269_v53, %v1092_v10  ;;  %v2001_v44 = vld [vmem:[#allocation2 + $0x35] sm:$0xff] }
 0x1fd   : > { %1744 = vmatmul.f32.gmra.mxu0 %v1607_v58 }
 0x1fe   : > { %v1483_v14 = vpop.f32.mrf.mxu3 }
 0x1ff   : > { %v1272_v51 = vpop.f32.mrf.mxu2  ;;  %v4373_v22 = vadd.f32 %v1483_v14, %v1341_v41  ;;  %v2215_v14 = vld [vmem:[#allocation2 + $0x36] sm:$0xff] }
 0x201   : > { %v1094_v50 = vpop.f32.mrf.mxu1  ;;  %v4440_v23 = vadd.f32 %v4371_v46, %v4373_v22 }
 0x202   : > { %v1095_v2 = vadd.f32 %v1094_v50, %v4025_v4  ;;  %v4380_v62 = vpop.f32.mrf.mxu0  ;;  %v1787_v50 = vld [vmem:[#allocation2 + $0x25] sm:$0xff] }
 0x203   : > { %1533 = vmatmul.f32.gmra.mxu3 %v1394_v36  ;;  %v2002_v36 = vld [vmem:[#allocation2 + $0x3d] sm:$0xff] }
 0x204   : > { %1141 = vmatmul.f32.gmra.mxu1 %v825_v63  ;;  %2070 = vmatmul.f32.vlgmr.msra.gmra.mxu2 %v2001_v44  ;;  %v1342_v53 = vadd.f32 %v1272_v51, %v1095_v2  ;;  %v2429_v51 = vld [vmem:[#allocation2 + $0x37] sm:$0xff] }
 0x205   : > { %1747 = vmatmul.f32.gmra.mxu0 %v1608_v0 }
 0x206   : > { %v1486_v10 = vpop.f32.mrf.mxu3 }
 0x207   : > { %v1275_v20 = vpop.f32.mrf.mxu2  ;;  %v4382_v58 = vadd.f32 %v1486_v10, %v1342_v53 }
 0x209   : > { %v1097_v41 = vpop.f32.mrf.mxu1  ;;  %v4449_v46 = vadd.f32 %v4380_v62, %v4382_v58 }
 0x20a   : > { %v1098_v4 = vadd.f32 %v1097_v41, %v4039_v31  ;;  %v4389_v16 = vpop.f32.mrf.mxu0  ;;  %v2216_v41 = vld [vmem:[#allocation2 + $0x3e] sm:$0xff] }
 0x20b   : > { %2284 = vmatmul.f32.vlgmr.msra.gmra.mxu3 %v2215_v14  ;;  %v1788_v14 = vld [vmem:[#allocation2 + $0x2d] sm:$0xff] }
 0x20c   : > { %1856 = vmatmul.f32.vlgmr.msra.gmra.mxu1 %v1787_v50  ;;  %2073 = vmatmul.f32.gmra.mxu2 %v2002_v36  ;;  %v1343_v2 = vadd.f32 %v1275_v20, %v1098_v4  ;;  %v2003_v50 = vld [vmem:[#allocation2 + $0x45] sm:$0xff] }
 0x20d   : > { %2498 = vmatmul.f32.vlgmr.msra.gmra.mxu0 %v2429_v51  ;;  %v2430_v20 = vld [vmem:[#allocation2 + $0x3f] sm:$0xff] }
 0x20e   : > { %v1489_v63 = vpop.f32.mrf.mxu3 }
 0x20f   : > { %v1278_v0 = vpop.f32.mrf.mxu2  ;;  %v4391_v53 = vadd.f32 %v1489_v63, %v1343_v2 }
 0x211   : > { %v1100_v10 = vpop.f32.mrf.mxu1  ;;  %v4458_v62 = vadd.f32 %v4389_v16, %v4391_v53 }
 0x212   : > { %v1101_v31 = vadd.f32 %v1100_v10, %v4053_v21  ;;  %v4398_v24 = vpop.f32.mrf.mxu0  ;;  %v2217_v10 = vld [vmem:[#allocation2 + $0x46] sm:$0xff] }
 0x213   : > { %2287 = vmatmul.f32.gmra.mxu3 %v2216_v41  ;;  %v2004_v41 = vld [vmem:[#allocation2 + $0x4d] sm:$0xff] }
 0x214   : > { %1859 = vmatmul.f32.gmra.mxu1 %v1788_v14  ;;  %2076 = vmatmul.f32.gmra.mxu2 %v2003_v50  ;;  %v1344_v4 = vadd.f32 %v1278_v0, %v1101_v31  ;;  %v2431_v14 = vld [vmem:[#allocation2 + $0x47] sm:$0xff] }
 0x215   : > { %2501 = vmatmul.f32.gmra.mxu0 %v2430_v20 }
 0x216   : > { %v1492_v51 = vpop.f32.mrf.mxu3 }
 0x217   : > { %v1281_v2 = vpop.f32.mrf.mxu2  ;;  %v4400_v63 = vadd.f32 %v1492_v51, %v1344_v4 }
 0x219   : > { %v1103_v56 = vpop.f32.mrf.mxu1  ;;  %v4467_v16 = vadd.f32 %v4398_v24, %v4400_v63 }
 0x21a   : > { %v1104_v21 = vadd.f32 %v1103_v56, %v4070_v45  ;;  %v4407_v35 = vpop.f32.mrf.mxu0 }
 0x21b   : > { %2290 = vmatmul.f32.gmra.mxu3 %v2217_v10  ;;  %v2005_v10 = vld [vmem:[#allocation2 + $0x55] sm:$0xff] }
 0x21c   : > { %1862 = vmatmul.f32.gmra.mxu1 %v2001_v44  ;;  %2079 = vmatmul.f32.gmra.mxu2 %v2004_v41  ;;  %v1345_v0 = vadd.f32 %v1281_v2, %v1104_v21  ;;  %v2432_v44 = vld [vmem:[#allocation2 + $0x4f] sm:$0xff] }
 0x21d   : > { %2504 = vmatmul.f32.gmra.mxu0 %v2431_v14 }
 0x21e   : > { %v1495_v31 = vpop.f32.mrf.mxu3 }
 0x21f   : > { %v1284_v20 = vpop.f32.mrf.mxu2  ;;  %v4409_v4 = vadd.f32 %v1495_v31, %v1345_v0 }
 0x221   : > { %v1106_v51 = vpop.f32.mrf.mxu1  ;;  %v4476_v24 = vadd.f32 %v4407_v35, %v4409_v4 }
 0x222   : > { %v1107_v56 = vadd.f32 %v1106_v51, %v4087_v59  ;;  %v4416_v45 = vpop.f32.mrf.mxu0  ;;  %v2219_v51 = vld [vmem:[#allocation2 + $0x56] sm:$0xff] }
 0x223   : > { %2293 = vmatmul.f32.gmra.mxu3 %v2218_v18  ;;  %v2006_v18 = vld [vmem:[#allocation2 + $0x5d] sm:$0xff] }
 0x224   : > { %1865 = vmatmul.f32.gmra.mxu1 %v2002_v36  ;;  %2082 = vmatmul.f32.gmra.mxu2 %v2005_v10  ;;  %v1346_v2 = vadd.f32 %v1284_v20, %v1107_v56  ;;  %v2433_v36 = vld [vmem:[#allocation2 + $0x57] sm:$0xff] }
 0x225   : > { %2507 = vmatmul.f32.gmra.mxu0 %v2432_v44 }
 0x226   : > { %v1498_v21 = vpop.f32.mrf.mxu3 }
 0x227   : > { %v1287_v14 = vpop.f32.mrf.mxu2  ;;  %v4418_v0 = vadd.f32 %v1498_v21, %v1346_v2 }
 0x229   : > { %v1109_v31 = vpop.f32.mrf.mxu1  ;;  %v4485_v35 = vadd.f32 %v4416_v45, %v4418_v0 }
 0x22a   : > { %v1110_v59 = vadd.f32 %v1109_v31, %v4104_v33  ;;  %v4425_v42 = vpop.f32.mrf.mxu0  ;;  %v2220_v31 = vld [vmem:[#allocation2 + $0x5e] sm:$0xff] }
 0x22b   : > { %2296 = vmatmul.f32.gmra.mxu3 %v2219_v51  ;;  %v2007_v51 = vld [vmem:[#allocation2 + $0x65] sm:$0xff] }
 0x22c   : > { %1868 = vmatmul.f32.gmra.mxu1 %v2003_v50  ;;  %2085 = vmatmul.f32.gmra.mxu2 %v2006_v18  ;;  %v1347_v20 = vadd.f32 %v1287_v14, %v1110_v59  ;;  %v2434_v50 = vld [vmem:[#allocation2 + $0x5f] sm:$0xff] }
 0x22d   : > { %2510 = vmatmul.f32.gmra.mxu0 %v2433_v36 }
 0x22e   : > { %v1501_v56 = vpop.f32.mrf.mxu3 }
 0x22f   : > { %v1290_v44 = vpop.f32.mrf.mxu2  ;;  %v4427_v2 = vadd.f32 %v1501_v56, %v1347_v20 }
 0x231   : > { %v1112_v21 = vpop.f32.mrf.mxu1  ;;  %v4494_v45 = vadd.f32 %v4425_v42, %v4427_v2 }
 0x232   : > { %v1113_v33 = vadd.f32 %v1112_v21, %v4118_v43  ;;  %v4434_v8 = vpop.f32.mrf.mxu0  ;;  %v2221_v21 = vld [vmem:[#allocation2 + $0x66] sm:$0xff] }
 0x233   : > { %2299 = vmatmul.f32.gmra.mxu3 %v2220_v31  ;;  %v2008_v31 = vld [vmem:[#allocation2 + $0x6d] sm:$0xff] }
 0x234   : > { %1871 = vmatmul.f32.gmra.mxu1 %v2004_v41  ;;  %2088 = vmatmul.f32.gmra.mxu2 %v2007_v51  ;;  %v1348_v14 = vadd.f32 %v1290_v44, %v1113_v33  ;;  %v2435_v41 = vld [vmem:[#allocation2 + $0x67] sm:$0xff] }
 0x235   : > { %2513 = vmatmul.f32.gmra.mxu0 %v2434_v50 }
 0x236   : > { %v1504_v59 = vpop.f32.mrf.mxu3 }
 0x237   : > { %v1293_v36 = vpop.f32.mrf.mxu2  ;;  %v4436_v20 = vadd.f32 %v1504_v59, %v1348_v14 }
 0x239   : > { %v1115_v56 = vpop.f32.mrf.mxu1  ;;  %v4503_v42 = vadd.f32 %v4434_v8, %v4436_v20 }
 0x23a   : > { %v1116_v43 = vadd.f32 %v1115_v56, %v4138_v38  ;;  %v4443_v34 = vpop.f32.mrf.mxu0  ;;  %v2222_v56 = vld [vmem:[#allocation2 + $0x6e] sm:$0xff] }
 0x23b   : > { %2302 = vmatmul.f32.gmra.mxu3 %v2221_v21  ;;  %v2009_v21 = vld [vmem:[#allocation2 + $0x75] sm:$0xff] }
 0x23c   : > { %1874 = vmatmul.f32.gmra.mxu1 %v2005_v10  ;;  %2091 = vmatmul.f32.gmra.mxu2 %v2008_v31  ;;  %v1349_v44 = vadd.f32 %v1293_v36, %v1116_v43  ;;  %v2436_v10 = vld [vmem:[#allocation2 + $0x6f] sm:$0xff] }
 0x23d   : > { %2516 = vmatmul.f32.gmra.mxu0 %v2435_v41 }
 0x23e   : > { %v1507_v33 = vpop.f32.mrf.mxu3 }
 0x23f   : > { %v1296_v50 = vpop.f32.mrf.mxu2  ;;  %v4445_v14 = vadd.f32 %v1507_v33, %v1349_v44 }
 0x241   : > { %v1118_v59 = vpop.f32.mrf.mxu1  ;;  %v4512_v8 = vadd.f32 %v4443_v34, %v4445_v14 }
 0x242   : > { %v1119_v38 = vadd.f32 %v1118_v59, %v4020_v40  ;;  %v4452_v22 = vpop.f32.mrf.mxu0  ;;  %v2223_v59 = vld [vmem:[#allocation2 + $0x76] sm:$0xff] }
 0x243   : > { %2305 = vmatmul.f32.gmra.mxu3 %v2222_v56  ;;  %v2010_v56 = vld [vmem:[#allocation2 + $0x7d] sm:$0xff] }
 0x244   : > { %1877 = vmatmul.f32.gmra.mxu1 %v2006_v18  ;;  %2094 = vmatmul.f32.gmra.mxu2 %v2009_v21  ;;  %v1350_v36 = vadd.f32 %v1296_v50, %v1119_v38  ;;  %v2437_v18 = vld [vmem:[#allocation2 + $0x77] sm:$0xff] }
 0x245   : > { %2519 = vmatmul.f32.gmra.mxu0 %v2436_v10 }
 0x246   : > { %v1510_v43 = vpop.f32.mrf.mxu3 }
 0x247   : > { %v1299_v41 = vpop.f32.mrf.mxu2  ;;  %v4454_v44 = vadd.f32 %v1510_v43, %v1350_v36 }
 0x249   : > { %v1121_v33 = vpop.f32.mrf.mxu1  ;;  %v4521_v34 = vadd.f32 %v4452_v22, %v4454_v44 }
 0x24a   : > { %v1122_v40 = vadd.f32 %v1121_v33, %v4037_v15  ;;  %v4461_v58 = vpop.f32.mrf.mxu0  ;;  %v2224_v33 = vld [vmem:[#allocation2 + $0x7e] sm:$0xff] }
 0x24b   : > { %2308 = vmatmul.f32.gmra.mxu3 %v2223_v59  ;;  %v2011_v59 = vld [vmem:[#allocation2 + $0x85] sm:$0xff] }
 0x24c   : > { %1880 = vmatmul.f32.gmra.mxu1 %v2007_v51  ;;  %2097 = vmatmul.f32.gmra.mxu2 %v2010_v56  ;;  %v1351_v50 = vadd.f32 %v1299_v41, %v1122_v40  ;;  %v2438_v51 = vld [vmem:[#allocation2 + $0x7f] sm:$0xff] }
 0x24d   : > { %2522 = vmatmul.f32.gmra.mxu0 %v2437_v18 }
 0x24e   : > { %v1513_v38 = vpop.f32.mrf.mxu3 }
 0x24f   : > { %v1302_v10 = vpop.f32.mrf.mxu2  ;;  %v4463_v36 = vadd.f32 %v1513_v38, %v1351_v50 }
 0x251   : > { %v1124_v43 = vpop.f32.mrf.mxu1  ;;  %v4530_v22 = vadd.f32 %v4461_v58, %v4463_v36 }
 0x252   : > { %v1125_v15 = vadd.f32 %v1124_v43, %v4051_v12  ;;  %v4470_v53 = vpop.f32.mrf.mxu0  ;;  %v2225_v43 = vld [vmem:[#allocation2 + $0x86] sm:$0xff] }
 0x253   : > { %2311 = vmatmul.f32.gmra.mxu3 %v2224_v33  ;;  %v2012_v33 = vld [vmem:[#allocation2 + $0x8d] sm:$0xff] }
 0x254   : > { %1883 = vmatmul.f32.gmra.mxu1 %v2008_v31  ;;  %2100 = vmatmul.f32.gmra.mxu2 %v2011_v59  ;;  %v1352_v41 = vadd.f32 %v1302_v10, %v1125_v15  ;;  %v2439_v31 = vld [vmem:[#allocation2 + $0x87] sm:$0xff] }
 0x255   : > { %2525 = vmatmul.f32.gmra.mxu0 %v2438_v51 }
 0x256   : > { %v1516_v40 = vpop.f32.mrf.mxu3 }
 0x257   : > { %v1305_v18 = vpop.f32.mrf.mxu2  ;;  %v4472_v50 = vadd.f32 %v1516_v40, %v1352_v41 }
 0x259   : > { %v1127_v38 = vpop.f32.mrf.mxu1  ;;  %v4545_v36 = vadd.f32 %v4470_v53, %v4472_v50 }
 0x25a   : > { %v1128_v12 = vadd.f32 %v1127_v38, %v4065_v52  ;;  %v4479_v63 = vpop.f32.mrf.mxu0  ;;  %v2226_v38 = vld [vmem:[#allocation2 + $0x8e] sm:$0xff] }
 0x25b   : > { %2314 = vmatmul.f32.gmra.mxu3 %v2225_v43  ;;  %v2013_v43 = vld [vmem:[#allocation2 + $0x95] sm:$0xff] }
 0x25c   : > { %1886 = vmatmul.f32.gmra.mxu1 %v2009_v21  ;;  %2103 = vmatmul.f32.gmra.mxu2 %v2012_v33  ;;  %v1353_v10 = vadd.f32 %v1305_v18, %v1128_v12  ;;  %v2440_v21 = vld [vmem:[#allocation2 + $0x8f] sm:$0xff] }
 0x25d   : > { %2528 = vmatmul.f32.gmra.mxu0 %v2439_v31 }
 0x25e   : > { %v1519_v15 = vpop.f32.mrf.mxu3 }
 0x25f   : > { %v1308_v51 = vpop.f32.mrf.mxu2  ;;  %v4481_v41 = vadd.f32 %v1519_v15, %v1353_v10 }
 0x261   : > { %v1130_v40 = vpop.f32.mrf.mxu1 }
 0x262   : > { %v1131_v52 = vadd.f32 %v1130_v40, %v4082_v7  ;;  %v4488_v4 = vpop.f32.mrf.mxu0  ;;  %v2227_v40 = vld [vmem:[#allocation2 + $0x96] sm:$0xff] }
 0x263   : > { %2317 = vmatmul.f32.gmra.mxu3 %v2226_v38  ;;  %v2014_v38 = vld [vmem:[#allocation2 + $0x9d] sm:$0xff] }
 0x264   : > { %1889 = vmatmul.f32.gmra.mxu1 %v2010_v56  ;;  %2106 = vmatmul.f32.gmra.mxu2 %v2013_v43  ;;  %v1354_v18 = vadd.f32 %v1308_v51, %v1131_v52  ;;  %v2441_v56 = vld [vmem:[#allocation2 + $0x97] sm:$0xff] }
 0x265   : > { %2531 = vmatmul.f32.gmra.mxu0 %v2440_v21 }
 0x266   : > { %v1522_v12 = vpop.f32.mrf.mxu3 }
 0x267   : > { %v1311_v31 = vpop.f32.mrf.mxu2  ;;  %v4490_v10 = vadd.f32 %v1522_v12, %v1354_v18 }
 0x269   : > { %v1133_v15 = vpop.f32.mrf.mxu1 }
 0x26a   : > { %v1134_v7 = vadd.f32 %v1133_v15, %v4099_v5  ;;  %v4497_v0 = vpop.f32.mrf.mxu0  ;;  %v2228_v15 = vld [vmem:[#allocation2 + $0x9e] sm:$0xff] }
 0x26b   : > { %2320 = vmatmul.f32.gmra.mxu3 %v2227_v40  ;;  %v2015_v40 = vld [vmem:[#allocation2 + $0xa5] sm:$0xff] }
 0x26c   : > { %1892 = vmatmul.f32.gmra.mxu1 %v2011_v59  ;;  %2109 = vmatmul.f32.gmra.mxu2 %v2014_v38  ;;  %v1355_v51 = vadd.f32 %v1311_v31, %v1134_v7  ;;  %v2442_v59 = vld [vmem:[#allocation2 + $0x9f] sm:$0xff] }
 0x26d   : > { %2534 = vmatmul.f32.gmra.mxu0 %v2441_v56 }
 0x26e   : > { %v1525_v52 = vpop.f32.mrf.mxu3 }
 0x26f   : > { %v1314_v21 = vpop.f32.mrf.mxu2  ;;  %v4499_v18 = vadd.f32 %v1525_v52, %v1355_v51 }
 0x271   : > { %v1136_v12 = vpop.f32.mrf.mxu1 }
 0x272   : > { %v1137_v5 = vadd.f32 %v1136_v12, %v4116_v6  ;;  %v4506_v2 = vpop.f32.mrf.mxu0  ;;  %v2229_v12 = vld [vmem:[#allocation2 + $0xa6] sm:$0xff] }
 0x273   : > { %2323 = vmatmul.f32.gmra.mxu3 %v2228_v15  ;;  %v2016_v15 = vld [vmem:[#allocation2 + $0xad] sm:$0xff] }
 0x274   : > { %1895 = vmatmul.f32.gmra.mxu1 %v2012_v33  ;;  %2112 = vmatmul.f32.gmra.mxu2 %v2015_v40  ;;  %v1356_v31 = vadd.f32 %v1314_v21, %v1137_v5  ;;  %v2443_v33 = vld [vmem:[#allocation2 + $0xa7] sm:$0xff] }
 0x275   : > { %2537 = vmatmul.f32.gmra.mxu0 %v2442_v59 }
 0x276   : > { %v1528_v7 = vpop.f32.mrf.mxu3 }
 0x277   : > { %v1317_v56 = vpop.f32.mrf.mxu2  ;;  %v4508_v51 = vadd.f32 %v1528_v7, %v1356_v31 }
 0x279   : > { %v1139_v52 = vpop.f32.mrf.mxu1 }
 0x27a   : > { %v1140_v6 = vadd.f32 %v1139_v52, %v4136_v61  ;;  %v4515_v20 = vpop.f32.mrf.mxu0  ;;  %v2230_v52 = vld [vmem:[#allocation2 + $0xae] sm:$0xff] }
 0x27b   : > { %2326 = vmatmul.f32.gmra.mxu3 %v2229_v12  ;;  %v2017_v12 = vld [vmem:[#allocation2 + $0xb5] sm:$0xff] }
 0x27c   : > { %1898 = vmatmul.f32.gmra.mxu1 %v2013_v43  ;;  %2115 = vmatmul.f32.gmra.mxu2 %v2016_v15  ;;  %v1357_v21 = vadd.f32 %v1317_v56, %v1140_v6  ;;  %v2444_v43 = vld [vmem:[#allocation2 + $0xaf] sm:$0xff] }
 0x27d   : > { %2540 = vmatmul.f32.gmra.mxu0 %v2443_v33 }
 0x27e   : > { %v1531_v5 = vpop.f32.mrf.mxu3 }
 0x27f   : > { %v1320_v59 = vpop.f32.mrf.mxu2  ;;  %v4517_v31 = vadd.f32 %v1531_v5, %v1357_v21 }
 0x281   : > { %v1142_v7 = vpop.f32.mrf.mxu1 }
 0x282   : > { %v1143_v61 = vadd.f32 %v1142_v7, %v4147_v25  ;;  %v4524_v14 = vpop.f32.mrf.mxu0  ;;  %v2231_v7 = vld [vmem:[#allocation2 + $0xb6] sm:$0xff] }
 0x283   : > { %2329 = vmatmul.f32.gmra.mxu3 %v2230_v52  ;;  %v4533_v52 = vld [vmem:[#allocation2 + $0xbd] sm:$0xff] }
 0x284   : > { %1901 = vmatmul.f32.gmra.mxu1 %v2014_v38  ;;  %2118 = vmatmul.f32.gmra.mxu2 %v2017_v12  ;;  %v1358_v56 = vadd.f32 %v1320_v59, %v1143_v61  ;;  %v2445_v38 = vld [vmem:[#allocation2 + $0xb7] sm:$0xff] }
 0x285   : > { %2543 = vmatmul.f32.gmra.mxu0 %v2444_v43 }
 0x286   : > { %v1534_v6 = vpop.f32.mrf.mxu3 }
 0x287   : > { %v4526_v33 = vadd.f32 %v1534_v6, %v1358_v56  ;;  %v2071_v21 = vpop.f32.mrf.mxu2 }
 0x289   : > { %v1857_v5 = vpop.f32.mrf.mxu1 }
 0x28a   : > { %v1965_v25 = vadd.f32 %v1857_v5, %v4222_v47  ;;  %v2499_v44 = vpop.f32.mrf.mxu0  ;;  %v4549_v5 = vld [vmem:[#allocation2 + $0xc5] sm:$0xff] }
 0x28b   : > { %2332 = vmatmul.f32.gmra.mxu3 %v2231_v7 }
 0x28c   : > { %1904 = vmatmul.f32.gmra.mxu1 %v2015_v40  ;;  %2121 = vmatmul.f32.gmra.mxu2 %v4533_v52  ;;  %v2179_v59 = vadd.f32 %v2071_v21, %v1965_v25  ;;  %v2232_v21 = vld [vmem:[#allocation2 + $0xbe] sm:$0xff] }
 0x28d   : > { %2546 = vmatmul.f32.gmra.mxu0 %v2445_v38  ;;  %v2446_v25 = vld [vmem:[#allocation2 + $0xbf] sm:$0xff] }
 0x28e   : > { %v2285_v61 = vpop.f32.mrf.mxu3 }
 0x28f   : > { %v2074_v43 = vpop.f32.mrf.mxu2  ;;  %v2393_v56 = vadd.f32 %v2285_v61, %v2179_v59  ;;  %v4556_v61 = vadd.f32 %v4479_v63, %v4481_v41  ;;  %v2447_v63 = vld [vmem:[#allocation2 + $0xc7] sm:$0xff] }
 0x291   : > { %v2607_v47 = vadd.f32 %v2499_v44, %v2393_v56  ;;  %v1860_v58 = vpop.f32.mrf.mxu1 }
 0x292   : > { %v1966_v40 = vadd.f32 %v1860_v58, %v4243_v11  ;;  %v2502_v6 = vpop.f32.mrf.mxu0  ;;  %v2233_v58 = vld [vmem:[#allocation2 + $0xc6] sm:$0xff] }
 0x293   : > { %2679 = vst [vmem:[%s4541_s24] sm:$0xff] %v2607_v47  ;;  %2335 = vmatmul.f32.gmra.mxu3 %v2232_v21  ;;  %v2643_v53 = vsel %vm682_vm10, %v2607_v47, 0.0 }
 0x294   : > { %1907 = vmatmul.f32.gmra.mxu1 %v2016_v15  ;;  %2124 = vmatmul.f32.gmra.mxu2 %v4549_v5  ;;  %v2180_v44 = vadd.f32 %v2074_v43, %v1966_v40  ;;  %v4562_v43 = vld [vmem:[#allocation2 + $0xcd] sm:$0xff]  ;;  %v2757_v40 = vmul.f32 %v2643_v53, %v2643_v53 }
 0x295   : > { %2549 = vmatmul.f32.gmra.mxu0 %v2446_v25 }
 0x296   : > { %v2288_v7 = vpop.f32.mrf.mxu3 }
 0x297   : > { %v2077_v38 = vpop.f32.mrf.mxu2  ;;  %v2394_v59 = vadd.f32 %v2288_v7, %v2180_v44 }
 0x299   : > { %v2608_v11 = vadd.f32 %v2502_v6, %v2394_v59  ;;  %v1863_v50 = vpop.f32.mrf.mxu1  ;;  %v4567_v59 = vadd.f32 %v4488_v4, %v4490_v10  ;;  %v2448_v4 = vld [vmem:[#allocation2 + $0xcf] sm:$0xff] }
 0x29a   : > { %v1967_v15 = vadd.f32 %v1863_v50, %v4255_v48  ;;  %v2505_v56 = vpop.f32.mrf.mxu0 }
 0x29b   : > { %v2644_v21 = vsel %vm683_vm1, %v2608_v11, 0.0  ;;  %2680 = vst [vmem:[%s4541_s24 + $0x8] sm:$0xff] %v2608_v11  ;;  %2338 = vmatmul.f32.gmra.mxu3 %v2233_v58  ;;  %v4573_v58 = vld [vmem:[#allocation2 + $0xd5] sm:$0xff] }
 0x29c   : > { %v2715_v27 = vadd.f32 %v2644_v21, %v2643_v53  ;;  %v2758_v47 = vmul.f32 %v2644_v21, %v2644_v21  ;;  %1910 = vmatmul.f32.gmra.mxu1 %v2017_v12  ;;  %2127 = vmatmul.f32.gmra.mxu2 %v4562_v43  ;;  %v2181_v41 = vadd.f32 %v2077_v38, %v1967_v15  ;;  %v2234_v12 = vld [vmem:[#allocation2 + $0xce] sm:$0xff] }
 0x29d   : > { %2552 = vmatmul.f32.gmra.mxu0 %v2447_v63  ;;  %v4579_v63 = vadd.f32 %v4497_v0, %v4499_v18  ;;  %v2449_v0 = vld [vmem:[#allocation2 + $0xd7] sm:$0xff] }
 0x29e   : > { %v2793_v48 = vadd.f32 %v2758_v47, %v2757_v40  ;;  %v2291_v6 = vpop.f32.mrf.mxu3 }
 0x29f   : > { %v2080_v25 = vpop.f32.mrf.mxu2  ;;  %v2395_v44 = vadd.f32 %v2291_v6, %v2181_v41 }
 0x2a1   : > { %v2609_v19 = vadd.f32 %v2505_v56, %v2395_v44  ;;  %v1866_v7 = vpop.f32.mrf.mxu1  ;;  %v4585_v44 = vld [vmem:[#allocation2 + $0xdd] sm:$0xff] }
 0x2a2   : > { %v1968_v53 = vadd.f32 %v1866_v7, %v4273_v29  ;;  %v2508_v11 = vpop.f32.mrf.mxu0 }
 0x2a3   : > { %v2645_v50 = vsel %vm684_vm12, %v2609_v19, 0.0  ;;  %2681 = vst [vmem:[%s4541_s24 + $0x10] sm:$0xff] %v2609_v19  ;;  %2341 = vmatmul.f32.gmra.mxu3 %v2234_v12  ;;  %v4591_v12 = vadd.f32 %v4506_v2, %v4508_v51  ;;  %v2450_v2 = vld [vmem:[#allocation2 + $0xdf] sm:$0xff] }
 0x2a4   : > { %v2716_v38 = vadd.f32 %v2715_v27, %v2645_v50  ;;  %v2759_v15 = vmul.f32 %v2645_v50, %v2645_v50  ;;  %1913 = vmatmul.f32.gmra.mxu1 %v4533_v52  ;;  %2130 = vmatmul.f32.gmra.mxu2 %v4573_v58  ;;  %v2182_v10 = vadd.f32 %v2080_v25, %v1968_v53  ;;  %v2235_v52 = vld [vmem:[#allocation2 + $0xd6] sm:$0xff] }
 0x2a5   : > { %2555 = vmatmul.f32.gmra.mxu0 %v2448_v4 }
 0x2a6   : > { %v2794_v29 = vadd.f32 %v2793_v48, %v2759_v15  ;;  %v2294_v56 = vpop.f32.mrf.mxu3 }
 0x2a7   : > { %v2083_v21 = vpop.f32.mrf.mxu2  ;;  %v2396_v40 = vadd.f32 %v2294_v56, %v2182_v10  ;;  %v4597_v10 = vld [vmem:[#allocation2 + $0xe5] sm:$0xff] }
 0x2a9   : > { %v2610_v39 = vadd.f32 %v2508_v11, %v2396_v40  ;;  %v1869_v47 = vpop.f32.mrf.mxu1 }
 0x2aa   : > { %v1969_v27 = vadd.f32 %v1869_v47, %v4285_v26  ;;  %v2511_v41 = vpop.f32.mrf.mxu0 }
 0x2ab   : > { %v2646_v6 = vsel %vm685_vm0, %v2610_v39, 0.0  ;;  %2682 = vst [vmem:[%s4541_s24 + $0x18] sm:$0xff] %v2610_v39  ;;  %2344 = vmatmul.f32.gmra.mxu3 %v2235_v52 }
 0x2ac   : > { %v2717_v48 = vadd.f32 %v2716_v38, %v2646_v6  ;;  %v2760_v25 = vmul.f32 %v2646_v6, %v2646_v6  ;;  %1916 = vmatmul.f32.gmra.mxu1 %v4549_v5  ;;  %2133 = vmatmul.f32.gmra.mxu2 %v4585_v44  ;;  %v2183_v18 = vadd.f32 %v2083_v21, %v1969_v27  ;;  %v2236_v5 = vld [vmem:[#allocation2 + $0xde] sm:$0xff] }
 0x2ad   : > { %2558 = vmatmul.f32.gmra.mxu0 %v2449_v0  ;;  %v4609_v0 = vld [vmem:[#allocation2 + $0xed] sm:$0xff] }
 0x2ae   : > { %v2795_v26 = vadd.f32 %v2794_v29, %v2760_v25  ;;  %v2297_v19 = vpop.f32.mrf.mxu3 }
 0x2af   : > { %v2086_v7 = vpop.f32.mrf.mxu2  ;;  %v2397_v53 = vadd.f32 %v2297_v19, %v2183_v18 }
 0x2b1   : > { %v2611_v3 = vadd.f32 %v2511_v41, %v2397_v53  ;;  %v1872_v11 = vpop.f32.mrf.mxu1  ;;  %v4603_v41 = vadd.f32 %v4515_v20, %v4517_v31  ;;  %v2451_v20 = vld [vmem:[#allocation2 + $0xe7] sm:$0xff] }
 0x2b2   : > { %v1970_v50 = vadd.f32 %v1872_v11, %v4300_v9  ;;  %v2514_v38 = vpop.f32.mrf.mxu0 }
 0x2b3   : > { %v2647_v4 = vsel %vm686_vm13, %v2611_v3, 0.0  ;;  %2683 = vst [vmem:[%s4541_s24 + $0x20] sm:$0xff] %v2611_v3  ;;  %2347 = vmatmul.f32.gmra.mxu3 %v2236_v5 }
 0x2b4   : > { %v2718_v29 = vadd.f32 %v2717_v48, %v2647_v4  ;;  %v2761_v56 = vmul.f32 %v2647_v4, %v2647_v4  ;;  %1919 = vmatmul.f32.gmra.mxu1 %v4562_v43  ;;  %2136 = vmatmul.f32.gmra.mxu2 %v4597_v10  ;;  %v2184_v51 = vadd.f32 %v2086_v7, %v1970_v50  ;;  %v2237_v43 = vld [vmem:[#allocation2 + $0xe6] sm:$0xff] }
 0x2b5   : > { %2561 = vmatmul.f32.gmra.mxu0 %v2450_v2  ;;  %v4615_v50 = vadd.f32 %v4524_v14, %v4526_v33  ;;  %v2452_v14 = vld [vmem:[#allocation2 + $0xef] sm:$0xff] }
 0x2b6   : > { %v2796_v9 = vadd.f32 %v2795_v26, %v2761_v56  ;;  %v2300_v21 = vpop.f32.mrf.mxu3 }
 0x2b7   : > { %v2089_v40 = vpop.f32.mrf.mxu2  ;;  %v2398_v39 = vadd.f32 %v2300_v21, %v2184_v51 }
 0x2b9   : > { %v2612_v47 = vadd.f32 %v2514_v38, %v2398_v39  ;;  %v1875_v27 = vpop.f32.mrf.mxu1 }
 0x2ba   : > { %v1971_v52 = vadd.f32 %v1875_v27, %v4323_v28  ;;  %v2517_v6 = vpop.f32.mrf.mxu0 }
 0x2bb   : > { %v2648_v25 = vsel %vm687_vm2, %v2612_v47, 0.0  ;;  %2684 = vst [vmem:[%s4541_s24 + $0x28] sm:$0xff] %v2612_v47  ;;  %2350 = vmatmul.f32.gmra.mxu3 %v2237_v43 }
 0x2bc   : > { %v2719_v18 = vadd.f32 %v2718_v29, %v2648_v25  ;;  %v2762_v26 = vmul.f32 %v2648_v25, %v2648_v25  ;;  %1922 = vmatmul.f32.gmra.mxu1 %v4573_v58  ;;  %2139 = vmatmul.f32.gmra.mxu2 %v4609_v0  ;;  %v2185_v31 = vadd.f32 %v2089_v40, %v1971_v52  ;;  %v2238_v58 = vld [vmem:[#allocation2 + $0xee] sm:$0xff]  ;;  %v2239_v52 = vld [vmem:[#allocation2 + $0xf6] sm:$0xff] }
 0x2bd   : > { %2564 = vmatmul.f32.gmra.mxu0 %v2451_v20  ;;  %v4621_v29 = vld [vmem:[#allocation2 + $0xf5] sm:$0xff] }
 0x2be   : > { %v2797_v28 = vadd.f32 %v2796_v9, %v2762_v26  ;;  %v2303_v19 = vpop.f32.mrf.mxu3 }
 0x2bf   : > { %v2092_v7 = vpop.f32.mrf.mxu2  ;;  %v2399_v53 = vadd.f32 %v2303_v19, %v2185_v31 }
 0x2c1   : > { %v2613_v3 = vadd.f32 %v2517_v6, %v2399_v53  ;;  %v1878_v11 = vpop.f32.mrf.mxu1  ;;  %v4882_v6 = vld [vmem:[#allocation4_spill] sm:$0xff] }
 0x2c2   : > { %v1972_v38 = vadd.f32 %v1878_v11, %v4338_v32  ;;  %v2520_v5 = vpop.f32.mrf.mxu0  ;;  %v2240_v11 = vld [vmem:[#allocation2 + $0xfe] sm:$0xff] }
 0x2c3   : > { %v2649_v4 = vsel %vm688_vm5, %v2613_v3, 0.0  ;;  %2685 = vst [vmem:[%s4541_s24 + $0x30] sm:$0xff] %v2613_v3  ;;  %2353 = vmatmul.f32.gmra.mxu3 %v2238_v58  ;;  %vm4883_vm5 = vcmp.eq.s32.totalorder %v4882_v6, 1  ;;  %v2455_v6 = vld [vmem:[#allocation2 + $0x107] sm:$0xff] }
 0x2c4   : > { %v2720_v56 = vadd.f32 %v2719_v18, %v2649_v4  ;;  %v2763_v2 = vmul.f32 %v2649_v4, %v2649_v4  ;;  %1925 = vmatmul.f32.gmra.mxu1 %v4585_v44  ;;  %2142 = vmatmul.f32.gmra.mxu2 %v4621_v29  ;;  %v2186_v33 = vadd.f32 %v2092_v7, %v1972_v38  ;;  %v4629_v44 = vld [vmem:[#allocation2 + $0xfd] sm:$0xff] }
 0x2c5   : > { %2567 = vmatmul.f32.gmra.mxu0 %v2452_v14  ;;  %v2453_v18 = vld [vmem:[#allocation2 + $0xf7] sm:$0xff]  ;;  %v2454_v4 = vld [vmem:[#allocation2 + $0xff] sm:$0xff] }
 0x2c6   : > { %v2798_v32 = vadd.f32 %v2797_v28, %v2763_v2  ;;  %v2306_v51 = vpop.f32.mrf.mxu3  ;;  %v4884_v38 = vld [vmem:[#allocation5_spill] sm:$0xff] }
 0x2c7   : > { %v2095_v9 = vpop.f32.mrf.mxu2  ;;  %v2400_v21 = vadd.f32 %v2306_v51, %v2186_v33  ;;  %vm4885_vm1 = vcmp.eq.s32.totalorder %v4884_v38, 1 }
 0x2c9   : > { %v2614_v40 = vadd.f32 %v2520_v5, %v2400_v21  ;;  %v1881_v39 = vpop.f32.mrf.mxu1 }
 0x2ca   : > { %v1973_v47 = vadd.f32 %v1881_v39, %v4350_v30  ;;  %v2523_v27 = vpop.f32.mrf.mxu0  ;;  %v4886_v39 = vld [vmem:[#allocation8_spill] sm:$0xff] }
 0x2cb   : > { %v2650_v43 = vsel %vm4883_vm5, %v2614_v40, 0.0  ;;  %2686 = vst [vmem:[%s4541_s24 + $0x38] sm:$0xff] %v2614_v40  ;;  %2356 = vmatmul.f32.gmra.mxu3 %v2239_v52  ;;  %v2241_v40 = vld [vmem:[#allocation2 + $0x106] sm:$0xff]  ;;  %vm4887_vm10 = vcmp.eq.s32.totalorder %v4886_v39, 1 }
 0x2cc   : > { %v2721_v48 = vadd.f32 %v2720_v56, %v2650_v43  ;;  %v2764_v25 = vmul.f32 %v2650_v43, %v2650_v43  ;;  %1928 = vmatmul.f32.gmra.mxu1 %v4597_v10  ;;  %2145 = vmatmul.f32.gmra.mxu2 %v4629_v44  ;;  %v2187_v26 = vadd.f32 %v2095_v9, %v1973_v47  ;;  %v4637_v10 = vld [vmem:[#allocation2 + $0x105] sm:$0xff] }
 0x2cd   : > { %2570 = vmatmul.f32.gmra.mxu0 %v2453_v18 }
 0x2ce   : > { %v2799_v30 = vadd.f32 %v2798_v32, %v2764_v25  ;;  %v2309_v20 = vpop.f32.mrf.mxu3 }
 0x2cf   : > { %v2098_v31 = vpop.f32.mrf.mxu2  ;;  %v2401_v28 = vadd.f32 %v2309_v20, %v2187_v26 }
 0x2d1   : > { %v2615_v19 = vadd.f32 %v2523_v27, %v2401_v28  ;;  %v1884_v7 = vpop.f32.mrf.mxu1  ;;  %v2242_v28 = vld [vmem:[#allocation2 + $0x10e] sm:$0xff] }
 0x2d2   : > { %v1974_v53 = vadd.f32 %v1884_v7, %v4359_v17  ;;  %v2526_v3 = vpop.f32.mrf.mxu0 }
 0x2d3   : > { %v2651_v5 = vsel %vm4885_vm1, %v2615_v19, 0.0  ;;  %2687 = vst [vmem:[%s4541_s24 + $0x40] sm:$0xff] %v2615_v19  ;;  %2359 = vmatmul.f32.gmra.mxu3 %v2240_v11  ;;  %v2456_v11 = vld [vmem:[#allocation2 + $0x10f] sm:$0xff] }
 0x2d4   : > { %v2722_v58 = vadd.f32 %v2721_v48, %v2651_v5  ;;  %v2765_v15 = vmul.f32 %v2651_v5, %v2651_v5  ;;  %1931 = vmatmul.f32.gmra.mxu1 %v4609_v0  ;;  %2148 = vmatmul.f32.gmra.mxu2 %v4637_v10  ;;  %v2188_v56 = vadd.f32 %v2098_v31, %v1974_v53  ;;  %v4645_v0 = vld [vmem:[#allocation2 + $0x10d] sm:$0xff] }
 0x2d5   : > { %2573 = vmatmul.f32.gmra.mxu0 %v2454_v4 }
 0x2d6   : > { %v2800_v17 = vadd.f32 %v2799_v30, %v2765_v15  ;;  %v2312_v2 = vpop.f32.mrf.mxu3 }
 0x2d7   : > { %v2101_v14 = vpop.f32.mrf.mxu2  ;;  %v2402_v33 = vadd.f32 %v2312_v2, %v2188_v56 }
 0x2d9   : > { %v2616_v32 = vadd.f32 %v2526_v3, %v2402_v33  ;;  %v1887_v51 = vpop.f32.mrf.mxu1 }
 0x2da   : > { %v1975_v9 = vadd.f32 %v1887_v51, %v4368_v57  ;;  %v2529_v21 = vpop.f32.mrf.mxu0 }
 0x2db   : > { %v2652_v47 = vsel %vm4887_vm10, %v2616_v32, 0.0  ;;  %2688 = vst [vmem:[%s4541_s24 + $0x48] sm:$0xff] %v2616_v32  ;;  %2362 = vmatmul.f32.gmra.mxu3 %v2241_v40 }
 0x2dc   : > { %v2723_v27 = vadd.f32 %v2722_v58, %v2652_v47  ;;  %v2766_v52 = vmul.f32 %v2652_v47, %v2652_v47  ;;  %1934 = vmatmul.f32.gmra.mxu1 %v4621_v29  ;;  %2151 = vmatmul.f32.gmra.mxu2 %v4645_v0  ;;  %v2189_v43 = vadd.f32 %v2101_v14, %v1975_v9  ;;  %v4653_v29 = vld [vmem:[#allocation2 + $0x115] sm:$0xff] }
 0x2dd   : > { %2576 = vmatmul.f32.gmra.mxu0 %v2455_v6  ;;  %v2243_v14 = vld [vmem:[#allocation2 + $0x116] sm:$0xff] }
 0x2de   : > { %v2801_v57 = vadd.f32 %v2800_v17, %v2766_v52  ;;  %v2315_v48 = vpop.f32.mrf.mxu3 }
 0x2df   : > { %v2104_v25 = vpop.f32.mrf.mxu2  ;;  %v2403_v18 = vadd.f32 %v2315_v48, %v2189_v43  ;;  %v2244_v48 = vld [vmem:[#allocation2 + $0x11e] sm:$0xff] }
 0x2e1   : > { %v2617_v26 = vadd.f32 %v2529_v21, %v2403_v18  ;;  %v1890_v30 = vpop.f32.mrf.mxu1  ;;  %v2457_v21 = vld [vmem:[#allocation2 + $0x117] sm:$0xff] }
 0x2e2   : > { %v1976_v20 = vadd.f32 %v1890_v30, %v4377_v1  ;;  %v2532_v31 = vpop.f32.mrf.mxu0 }
 0x2e3   : > { %v2653_v7 = vsel %vm692_vm3, %v2617_v26, 0.0  ;;  %2689 = vst [vmem:[%s4541_s24 + $0x50] sm:$0xff] %v2617_v26  ;;  %2365 = vmatmul.f32.gmra.mxu3 %v2242_v28 }
 0x2e4   : > { %v2724_v53 = vadd.f32 %v2723_v27, %v2653_v7  ;;  %v2767_v3 = vmul.f32 %v2653_v7, %v2653_v7  ;;  %1937 = vmatmul.f32.gmra.mxu1 %v4629_v44  ;;  %2154 = vmatmul.f32.gmra.mxu2 %v4653_v29  ;;  %v2190_v38 = vadd.f32 %v2104_v25, %v1976_v20  ;;  %v4661_v44 = vld [vmem:[#allocation2 + $0x11d] sm:$0xff] }
 0x2e5   : > { %2579 = vmatmul.f32.gmra.mxu0 %v2456_v11  ;;  %v4890_v25 = vld [vmem:[#allocation18_spill] sm:$0xff] }
 0x2e6   : > { %v2802_v1 = vadd.f32 %v2801_v57, %v2767_v3  ;;  %v2318_v5 = vpop.f32.mrf.mxu3  ;;  %vm4891_vm3 = vcmp.eq.s32.totalorder %v4890_v25, 1  ;;  %v2458_v20 = vld [vmem:[#allocation2 + $0x11f] sm:$0xff] }
 0x2e7   : > { %v2107_v58 = vpop.f32.mrf.mxu2  ;;  %v2404_v15 = vadd.f32 %v2318_v5, %v2190_v38 }
 0x2e9   : > { %v2618_v4 = vadd.f32 %v2532_v31, %v2404_v15  ;;  %v1893_v56 = vpop.f32.mrf.mxu1 }
 0x2ea   : > { %v1977_v17 = vadd.f32 %v1893_v56, %v4386_v13  ;;  %v2535_v2 = vpop.f32.mrf.mxu0  ;;  %v2459_v56 = vld [vmem:[#allocation2 + $0x127] sm:$0xff] }
 0x2eb   : > { %v2654_v32 = vsel %vm693_vm6, %v2618_v4, 0.0  ;;  %2690 = vst [vmem:[%s4541_s24 + $0x58] sm:$0xff] %v2618_v4  ;;  %2368 = vmatmul.f32.gmra.mxu3 %v2243_v14 }
 0x2ec   : > { %v2725_v51 = vadd.f32 %v2724_v53, %v2654_v32  ;;  %v2768_v9 = vmul.f32 %v2654_v32, %v2654_v32  ;;  %1940 = vmatmul.f32.gmra.mxu1 %v4637_v10  ;;  %2157 = vmatmul.f32.gmra.mxu2 %v4661_v44  ;;  %v2191_v40 = vadd.f32 %v2107_v58, %v1977_v17  ;;  %v4669_v10 = vld [vmem:[#allocation2 + $0x125] sm:$0xff] }
 0x2ed   : > { %2582 = vmatmul.f32.gmra.mxu0 %v2457_v21 }
 0x2ee   : > { %v2803_v13 = vadd.f32 %v2802_v1, %v2768_v9  ;;  %v2321_v39 = vpop.f32.mrf.mxu3  ;;  %v2245_v1 = vld [vmem:[#allocation2 + $0x126] sm:$0xff] }
 0x2ef   : > { %v2110_v47 = vpop.f32.mrf.mxu2  ;;  %v2405_v27 = vadd.f32 %v2321_v39, %v2191_v40  ;;  %v2246_v40 = vld [vmem:[#allocation2 + $0x12e] sm:$0xff] }
 0x2f1   : > { %v2619_v52 = vadd.f32 %v2535_v2, %v2405_v27  ;;  %v1896_v6 = vpop.f32.mrf.mxu1 }
 0x2f2   : > { %v1978_v43 = vadd.f32 %v1896_v6, %v4395_v49  ;;  %v2538_v57 = vpop.f32.mrf.mxu0 }
 0x2f3   : > { %v2655_v18 = vsel %vm4891_vm3, %v2619_v52, 0.0  ;;  %2691 = vst [vmem:[%s4541_s24 + $0x60] sm:$0xff] %v2619_v52  ;;  %2371 = vmatmul.f32.gmra.mxu3 %v2244_v48  ;;  %v2460_v52 = vld [vmem:[#allocation2 + $0x12f] sm:$0xff] }
 0x2f4   : > { %v2726_v26 = vadd.f32 %v2725_v51, %v2655_v18  ;;  %v2769_v30 = vmul.f32 %v2655_v18, %v2655_v18  ;;  %1943 = vmatmul.f32.gmra.mxu1 %v4645_v0  ;;  %2160 = vmatmul.f32.gmra.mxu2 %v4669_v10  ;;  %v2192_v31 = vadd.f32 %v2110_v47, %v1978_v43  ;;  %v4677_v0 = vld [vmem:[#allocation2 + $0x12d] sm:$0xff] }
 0x2f5   : > { %2585 = vmatmul.f32.gmra.mxu0 %v2458_v20  ;;  %v2247_v20 = vld [vmem:[#allocation2 + $0x136] sm:$0xff] }
 0x2f6   : > { %v2804_v49 = vadd.f32 %v2803_v13, %v2769_v30  ;;  %v2324_v28 = vpop.f32.mrf.mxu3 }
 0x2f7   : > { %v2113_v19 = vpop.f32.mrf.mxu2  ;;  %v2406_v7 = vadd.f32 %v2324_v28, %v2192_v31  ;;  %v4894_v31 = vld [vmem:[#allocation7_spill] sm:$0xff] }
 0x2f9   : > { %v2620_v53 = vadd.f32 %v2538_v57, %v2406_v7  ;;  %v1899_v3 = vpop.f32.mrf.mxu1  ;;  %v2461_v7 = vld [vmem:[#allocation2 + $0x137] sm:$0xff] }
 0x2fa   : > { %v1979_v11 = vadd.f32 %v1899_v3, %v4404_v54  ;;  %v2541_v38 = vpop.f32.mrf.mxu0 }
 0x2fb   : > { %v2656_v58 = vsel %vm695_vm4, %v2620_v53, 0.0  ;;  %2692 = vst [vmem:[%s4541_s24 + $0x68] sm:$0xff] %v2620_v53  ;;  %2374 = vmatmul.f32.gmra.mxu3 %v2245_v1 }
 0x2fc   : > { %v2727_v15 = vadd.f32 %v2726_v26, %v2656_v58  ;;  %v2770_v4 = vmul.f32 %v2656_v58, %v2656_v58  ;;  %1946 = vmatmul.f32.gmra.mxu1 %v4653_v29  ;;  %2163 = vmatmul.f32.gmra.mxu2 %v4677_v0  ;;  %v2193_v17 = vadd.f32 %v2113_v19, %v1979_v11  ;;  %v4685_v29 = vld [vmem:[#allocation2 + $0x135] sm:$0xff]  ;;  %v2035_v58 = vld [vmem:[#allocation2 + $0x145] sm:$0xff] }
 0x2fd   : > { %2588 = vmatmul.f32.gmra.mxu0 %v2459_v56  ;;  %v2248_v56 = vld [vmem:[#allocation2 + $0x13e] sm:$0xff] }
 0x2fe   : > { %v2805_v54 = vadd.f32 %v2804_v49, %v2770_v4  ;;  %v2327_v2 = vpop.f32.mrf.mxu3 }
 0x2ff   : > { %v2116_v14 = vpop.f32.mrf.mxu2  ;;  %v2407_v33 = vadd.f32 %v2327_v2, %v2193_v17  ;;  %v4896_v17 = vld [vmem:[#allocation10_spill] sm:$0xff] }
 0x300   : > { %vm4897_vm6 = vcmp.eq.s32.totalorder %v4896_v17, 1 }
 0x301   : > { %v2621_v32 = vadd.f32 %v2541_v38, %v2407_v33  ;;  %v1902_v51 = vpop.f32.mrf.mxu1 }
 0x302   : > { %v1980_v9 = vadd.f32 %v1902_v51, %v4413_v60  ;;  %v2544_v21 = vpop.f32.mrf.mxu0 }
 0x303   : > { %v2657_v39 = vsel %vm696_vm9, %v2621_v32, 0.0  ;;  %2693 = vst [vmem:[%s4541_s24 + $0x70] sm:$0xff] %v2621_v32  ;;  %2377 = vmatmul.f32.gmra.mxu3 %v2246_v40  ;;  %vm4895_vm9 = vcmp.eq.s32.totalorder %v4894_v31, 1 }
 0x304   : > { %v2728_v47 = vadd.f32 %v2727_v15, %v2657_v39  ;;  %v2771_v27 = vmul.f32 %v2657_v39, %v2657_v39  ;;  %1949 = vmatmul.f32.gmra.mxu1 %v4661_v44  ;;  %2166 = vmatmul.f32.gmra.mxu2 %v4685_v29  ;;  %v2194_v6 = vadd.f32 %v2116_v14, %v1980_v9  ;;  %v4693_v44 = vld [vmem:[#allocation2 + $0x13d] sm:$0xff]  ;;  %v2036_v39 = vld [vmem:[#allocation2 + $0x14d] sm:$0xff] }
 0x305   : > { %2591 = vmatmul.f32.gmra.mxu0 %v2460_v52  ;;  %v2462_v14 = vld [vmem:[#allocation2 + $0x13f] sm:$0xff]  ;;  %v2463_v52 = vld [vmem:[#allocation2 + $0x147] sm:$0xff] }
 0x306   : > { %v2806_v60 = vadd.f32 %v2805_v54, %v2771_v27  ;;  %v2330_v43 = vpop.f32.mrf.mxu3 }
 0x307   : > { %v2119_v57 = vpop.f32.mrf.mxu2  ;;  %v2408_v48 = vadd.f32 %v2330_v43, %v2194_v6  ;;  %v4898_v6 = vld [vmem:[#allocation13_spill] sm:$0xff] }
 0x308   : > { %vm4899_vm13 = vcmp.eq.s32.totalorder %v4898_v6, 1 }
 0x309   : > { %v2622_v25 = vadd.f32 %v2544_v21, %v2408_v48  ;;  %v1905_v18 = vpop.f32.mrf.mxu1  ;;  %v2249_v21 = vld [vmem:[#allocation2 + $0x146] sm:$0xff] }
 0x30a   : > { %v1981_v26 = vadd.f32 %v1905_v18, %v4422_v55  ;;  %v2547_v30 = vpop.f32.mrf.mxu0 }
 0x30b   : > { %v2658_v49 = vsel %vm4895_vm9, %v2622_v25, 0.0  ;;  %2694 = vst [vmem:[%s4541_s24 + $0x78] sm:$0xff] %v2622_v25  ;;  %2380 = vmatmul.f32.gmra.mxu3 %v2247_v20 }
 0x30c   : > { %v2729_v28 = vadd.f32 %v2728_v47, %v2658_v49  ;;  %v2772_v19 = vmul.f32 %v2658_v49, %v2658_v49  ;;  %1952 = vmatmul.f32.gmra.mxu1 %v4669_v10  ;;  %2169 = vmatmul.f32.gmra.mxu2 %v4693_v44  ;;  %v2195_v53 = vadd.f32 %v2119_v57, %v1981_v26 }
 0x30d   : > { %2594 = vmatmul.f32.gmra.mxu0 %v2461_v7 }
 0x30e   : > { %v2807_v55 = vadd.f32 %v2806_v60, %v2772_v19  ;;  %v2333_v3 = vpop.f32.mrf.mxu3  ;;  %v4900_v19 = vld [vmem:[#allocation15_spill] sm:$0xff] }
 0x30f   : > { %v2122_v11 = vpop.f32.mrf.mxu2  ;;  %v2409_v38 = vadd.f32 %v2333_v3, %v2195_v53  ;;  %vm4901_vm12 = vcmp.eq.s32.totalorder %v4900_v19, 1 }
 0x311   : > { %v2623_v1 = vadd.f32 %v2547_v30, %v2409_v38  ;;  %v1908_v5 = vpop.f32.mrf.mxu1 }
 0x312   : > { %v1982_v15 = vadd.f32 %v1908_v5, %v4431_v37  ;;  %v2550_v4 = vpop.f32.mrf.mxu0 }
 0x313   : > { %v2659_v10 = vsel %vm4897_vm6, %v2623_v1, 0.0  ;;  %2695 = vst [vmem:[%s4541_s24 + $0x80] sm:$0xff] %v2623_v1  ;;  %2383 = vmatmul.f32.gmra.mxu3 %v2248_v56 }
 0x314   : > { %v2730_v54 = vadd.f32 %v2729_v28, %v2659_v10  ;;  %v2773_v2 = vmul.f32 %v2659_v10, %v2659_v10  ;;  %1955 = vmatmul.f32.gmra.mxu1 %v4677_v0  ;;  %2172 = vmatmul.f32.gmra.mxu2 %v2035_v58  ;;  %v2196_v33 = vadd.f32 %v2122_v11, %v1982_v15  ;;  %v2464_v28 = vld [vmem:[#allocation2 + $0x14f] sm:$0xff] }
 0x315   : > { %2597 = vmatmul.f32.gmra.mxu0 %v2462_v14 }
 0x316   : > { %v2808_v32 = vadd.f32 %v2807_v55, %v2773_v2  ;;  %v2336_v51 = vpop.f32.mrf.mxu3 }
 0x317   : > { %v2125_v9 = vpop.f32.mrf.mxu2  ;;  %v2410_v37 = vadd.f32 %v2336_v51, %v2196_v33 }
 0x319   : > { %v2624_v40 = vadd.f32 %v2550_v4, %v2410_v37  ;;  %v1911_v13 = vpop.f32.mrf.mxu1  ;;  %v4902_v4 = vld [vmem:[#allocation17_spill] sm:$0xff] }
 0x31a   : > { %v1983_v47 = vadd.f32 %v1911_v13, %v4440_v23  ;;  %v2553_v27 = vpop.f32.mrf.mxu0  ;;  %v2250_v23 = vld [vmem:[#allocation2 + $0x14e] sm:$0xff]  ;;  %vm4903_vm2 = vcmp.eq.s32.totalorder %v4902_v4, 1 }
 0x31b   : > { %v2660_v0 = vsel %vm4899_vm13, %v2624_v40, 0.0  ;;  %2696 = vst [vmem:[%s4541_s24 + $0x88] sm:$0xff] %v2624_v40  ;;  %2386 = vmatmul.f32.gmra.mxu3 %v2249_v21 }
 0x31c   : > { %v2731_v60 = vadd.f32 %v2730_v54, %v2660_v0  ;;  %v2774_v43 = vmul.f32 %v2660_v0, %v2660_v0  ;;  %1958 = vmatmul.f32.gmra.mxu1 %v4685_v29  ;;  %2175 = vmatmul.f32.gmra.mxu2 %v2036_v39  ;;  %v2197_v57 = vadd.f32 %v2125_v9, %v1983_v47 }
 0x31d   : > { %2600 = vmatmul.f32.gmra.mxu0 %v2463_v52 }
 0x31e   : > { %v2809_v48 = vadd.f32 %v2808_v32, %v2774_v43  ;;  %v2339_v25 = vpop.f32.mrf.mxu3 }
 0x31f   : > { %v2128_v18 = vpop.f32.mrf.mxu2  ;;  %v2411_v26 = vadd.f32 %v2339_v25, %v2197_v57 }
 0x321   : > { %v2625_v30 = vadd.f32 %v2553_v27, %v2411_v26  ;;  %v1914_v20 = vpop.f32.mrf.mxu1 }
 0x322   : > { %v1984_v31 = vadd.f32 %v1914_v20, %v4449_v46  ;;  %v2556_v49 = vpop.f32.mrf.mxu0 }
 0x323   : > { %v2661_v7 = vsel %vm4901_vm12, %v2625_v30, 0.0  ;;  %2697 = vst [vmem:[%s4541_s24 + $0x90] sm:$0xff] %v2625_v30  ;;  %2389 = vmatmul.f32.gmra.mxu3 %v2250_v23 }
 0x324   : > { %v2732_v29 = vadd.f32 %v2731_v60, %v2661_v7  ;;  %v2775_v53 = vmul.f32 %v2661_v7, %v2661_v7  ;;  %1961 = vmatmul.f32.gmra.mxu1 %v4693_v44  ;;  %v2198_v55 = vadd.f32 %v2128_v18, %v1984_v31 }
 0x325   : > { %2603 = vmatmul.f32.gmra.mxu0 %v2464_v28 }
 0x326   : > { %v2810_v3 = vadd.f32 %v2809_v48, %v2775_v53  ;;  %v2342_v11 = vpop.f32.mrf.mxu3 }
 0x327   : > { %v2131_v38 = vpop.f32.mrf.mxu2  ;;  %v2412_v1 = vadd.f32 %v2342_v11, %v2198_v55 }
 0x329   : > { %v2626_v5 = vadd.f32 %v2556_v49, %v2412_v1  ;;  %v1917_v46 = vpop.f32.mrf.mxu1 }
 0x32a   : > { %v1985_v58 = vadd.f32 %v1917_v46, %v4458_v62  ;;  %v2559_v15 = vpop.f32.mrf.mxu0  ;;  %v4904_v62 = vld [vmem:[#allocation20_spill] sm:$0xff] }
 0x32b   : > { %v2662_v56 = vsel %vm4903_vm2, %v2626_v5, 0.0  ;;  %2698 = vst [vmem:[%s4541_s24 + $0x98] sm:$0xff] %v2626_v5  ;;  %vm4905_vm0 = vcmp.eq.s32.totalorder %v4904_v62, 1 }
 0x32c   : > { %v2733_v17 = vadd.f32 %v2732_v29, %v2662_v56  ;;  %v2776_v10 = vmul.f32 %v2662_v56, %v2662_v56  ;;  %v2199_v54 = vadd.f32 %v2131_v38, %v1985_v58 }
 0x32e   : > { %v2811_v44 = vadd.f32 %v2810_v3, %v2776_v10  ;;  %v2345_v2 = vpop.f32.mrf.mxu3 }
 0x32f   : > { %v2134_v14 = vpop.f32.mrf.mxu2  ;;  %v2413_v33 = vadd.f32 %v2345_v2, %v2199_v54 }
 0x331   : > { %v2627_v32 = vadd.f32 %v2559_v15, %v2413_v33  ;;  %v1920_v51 = vpop.f32.mrf.mxu1 }
 0x332   : > { %v1986_v9 = vadd.f32 %v1920_v51, %v4467_v16  ;;  %v2562_v37 = vpop.f32.mrf.mxu0  ;;  %v4906_v16 = vld [vmem:[#allocation16_spill] sm:$0xff] }
 0x333   : > { %v2663_v21 = vsel %vm4905_vm0, %v2627_v32, 0.0  ;;  %2699 = vst [vmem:[%s4541_s24 + $0xa0] sm:$0xff] %v2627_v32  ;;  %vm4907_vm4 = vcmp.eq.s32.totalorder %v4906_v16, 1 }
 0x334   : > { %v2734_v40 = vadd.f32 %v2733_v17, %v2663_v21  ;;  %v2777_v13 = vmul.f32 %v2663_v21, %v2663_v21  ;;  %v2200_v39 = vadd.f32 %v2134_v14, %v1986_v9 }
 0x336   : > { %v2812_v47 = vadd.f32 %v2811_v44, %v2777_v13  ;;  %v2348_v27 = vpop.f32.mrf.mxu3 }
 0x337   : > { %v2137_v52 = vpop.f32.mrf.mxu2  ;;  %v2414_v6 = vadd.f32 %v2348_v27, %v2200_v39 }
 0x339   : > { %v2628_v0 = vadd.f32 %v2562_v37, %v2414_v6  ;;  %v1923_v60 = vpop.f32.mrf.mxu1 }
 0x33a   : > { %v1987_v43 = vadd.f32 %v1923_v60, %v4476_v24  ;;  %v2565_v57 = vpop.f32.mrf.mxu0  ;;  %v4908_v24 = vld [vmem:[#allocation27_spill] sm:$0xff] }
 0x33b   : > { %v2664_v48 = vsel %vm4907_vm4, %v2628_v0, 0.0  ;;  %2700 = vst [vmem:[%s4541_s24 + $0xa8] sm:$0xff] %v2628_v0  ;;  %vm4909_vm14 = vcmp.eq.s32.totalorder %v4908_v24, 1 }
 0x33c   : > { %v2735_v25 = vadd.f32 %v2734_v40, %v2664_v48  ;;  %v2778_v18 = vmul.f32 %v2664_v48, %v2664_v48  ;;  %v2201_v26 = vadd.f32 %v2137_v52, %v1987_v43 }
 0x33e   : > { %v2813_v23 = vadd.f32 %v2812_v47, %v2778_v18  ;;  %v2351_v30 = vpop.f32.mrf.mxu3 }
 0x33f   : > { %v2140_v20 = vpop.f32.mrf.mxu2  ;;  %v2415_v31 = vadd.f32 %v2351_v30, %v2201_v26 }
 0x341   : > { %v2629_v49 = vadd.f32 %v2565_v57, %v2415_v31  ;;  %v1926_v28 = vpop.f32.mrf.mxu1 }
 0x342   : > { %v1988_v19 = vadd.f32 %v1926_v28, %v4485_v35  ;;  %v2568_v7 = vpop.f32.mrf.mxu0 }
 0x343   : > { %v2665_v29 = vsel %vm4909_vm14, %v2629_v49, 0.0  ;;  %2701 = vst [vmem:[%s4541_s24 + $0xb0] sm:$0xff] %v2629_v49 }
 0x344   : > { %v2736_v53 = vadd.f32 %v2735_v25, %v2665_v29  ;;  %v2779_v55 = vmul.f32 %v2665_v29, %v2665_v29  ;;  %v2202_v3 = vadd.f32 %v2140_v20, %v1988_v19 }
 0x346   : > { %v2814_v11 = vadd.f32 %v2813_v23, %v2779_v55  ;;  %v2354_v38 = vpop.f32.mrf.mxu3 }
 0x347   : > { %v2143_v1 = vpop.f32.mrf.mxu2  ;;  %v2416_v5 = vadd.f32 %v2354_v38, %v2202_v3 }
 0x349   : > { %v2630_v46 = vadd.f32 %v2568_v7, %v2416_v5  ;;  %v1929_v58 = vpop.f32.mrf.mxu1 }
 0x34a   : > { %v1989_v15 = vadd.f32 %v1929_v58, %v4494_v45  ;;  %v2571_v4 = vpop.f32.mrf.mxu0  ;;  %v4911_v45 = vld [vmem:[#allocation6_spill] sm:$0xff] }
 0x34b   : > { %v2666_v56 = vsel %vm705_vm8, %v2630_v46, 0.0  ;;  %2702 = vst [vmem:[%s4541_s24 + $0xb8] sm:$0xff] %v2630_v46  ;;  %vm4912_vm11 = vcmp.eq.s32.totalorder %v4911_v45, 1 }
 0x34c   : > { %v2737_v17 = vadd.f32 %v2736_v53, %v2666_v56  ;;  %v2780_v10 = vmul.f32 %v2666_v56, %v2666_v56  ;;  %v2203_v54 = vadd.f32 %v2143_v1, %v1989_v15 }
 0x34e   : > { %v2815_v44 = vadd.f32 %v2814_v11, %v2780_v10  ;;  %v2357_v2 = vpop.f32.mrf.mxu3 }
 0x34f   : > { %v2146_v14 = vpop.f32.mrf.mxu2  ;;  %v2417_v33 = vadd.f32 %v2357_v2, %v2203_v54 }
 0x351   : > { %v2631_v32 = vadd.f32 %v2571_v4, %v2417_v33  ;;  %v1932_v51 = vpop.f32.mrf.mxu1 }
 0x352   : > { %v1990_v9 = vadd.f32 %v1932_v51, %v4503_v42  ;;  %v2574_v37 = vpop.f32.mrf.mxu0  ;;  %v4913_v42 = vld [vmem:[#allocation9_spill] sm:$0xff] }
 0x353   : > { %v2667_v62 = vsel %vm4912_vm11, %v2631_v32, 0.0  ;;  %2703 = vst [vmem:[%s4541_s24 + $0xc0] sm:$0xff] %v2631_v32  ;;  %vm4914_vm8 = vcmp.eq.s32.totalorder %v4913_v42, 1 }
 0x354   : > { %v2738_v21 = vadd.f32 %v2737_v17, %v2667_v62  ;;  %v2781_v40 = vmul.f32 %v2667_v62, %v2667_v62  ;;  %v2204_v13 = vadd.f32 %v2146_v14, %v1990_v9 }
 0x356   : > { %v2816_v39 = vadd.f32 %v2815_v44, %v2781_v40  ;;  %v2360_v47 = vpop.f32.mrf.mxu3 }
 0x357   : > { %v2149_v27 = vpop.f32.mrf.mxu2  ;;  %v2418_v52 = vadd.f32 %v2360_v47, %v2204_v13 }
 0x359   : > { %v2632_v6 = vadd.f32 %v2574_v37, %v2418_v52  ;;  %v1935_v0 = vpop.f32.mrf.mxu1 }
 0x35a   : > { %v1991_v60 = vadd.f32 %v1935_v0, %v4512_v8  ;;  %v2577_v43 = vpop.f32.mrf.mxu0  ;;  %v4915_v8 = vld [vmem:[#allocation12_spill] sm:$0xff] }
 0x35b   : > { %v2668_v57 = vsel %vm4914_vm8, %v2632_v6, 0.0  ;;  %2704 = vst [vmem:[%s4541_s24 + $0xc8] sm:$0xff] %v2632_v6  ;;  %vm4916_vm5 = vcmp.eq.s32.totalorder %v4915_v8, 1 }
 0x35c   : > { %v2739_v16 = vadd.f32 %v2738_v21, %v2668_v57  ;;  %v2782_v48 = vmul.f32 %v2668_v57, %v2668_v57  ;;  %v2205_v25 = vadd.f32 %v2149_v27, %v1991_v60 }
 0x35e   : > { %v2817_v18 = vadd.f32 %v2816_v39, %v2782_v48  ;;  %v2363_v26 = vpop.f32.mrf.mxu3 }
 0x35f   : > { %v2152_v23 = vpop.f32.mrf.mxu2  ;;  %v2419_v30 = vadd.f32 %v2363_v26, %v2205_v25 }
 0x361   : > { %v2633_v20 = vadd.f32 %v2577_v43, %v2419_v30  ;;  %v1938_v31 = vpop.f32.mrf.mxu1 }
 0x362   : > { %v1992_v49 = vadd.f32 %v1938_v31, %v4521_v34  ;;  %v2580_v28 = vpop.f32.mrf.mxu0  ;;  %v4917_v34 = vld [vmem:[#allocation14_spill] sm:$0xff] }
 0x363   : > { %v2669_v19 = vsel %vm4916_vm5, %v2633_v20, 0.0  ;;  %2705 = vst [vmem:[%s4541_s24 + $0xd0] sm:$0xff] %v2633_v20  ;;  %vm4918_vm1 = vcmp.eq.s32.totalorder %v4917_v34, 1 }
 0x364   : > { %v2740_v7 = vadd.f32 %v2739_v16, %v2669_v19  ;;  %v2783_v24 = vmul.f32 %v2669_v19, %v2669_v19  ;;  %v2206_v29 = vadd.f32 %v2152_v23, %v1992_v49 }
 0x366   : > { %v2818_v53 = vadd.f32 %v2817_v18, %v2783_v24  ;;  %v2366_v55 = vpop.f32.mrf.mxu3 }
 0x367   : > { %v2155_v3 = vpop.f32.mrf.mxu2  ;;  %v2420_v11 = vadd.f32 %v2366_v55, %v2206_v29 }
 0x369   : > { %v2634_v38 = vadd.f32 %v2580_v28, %v2420_v11  ;;  %v1941_v1 = vpop.f32.mrf.mxu1 }
 0x36a   : > { %v1993_v5 = vadd.f32 %v1941_v1, %v4530_v22  ;;  %v2583_v46 = vpop.f32.mrf.mxu0  ;;  %v4919_v22 = vld [vmem:[#allocation11_spill] sm:$0xff] }
 0x36b   : > { %v2670_v58 = vsel %vm4918_vm1, %v2634_v38, 0.0  ;;  %2706 = vst [vmem:[%s4541_s24 + $0xd8] sm:$0xff] %v2634_v38  ;;  %vm4920_vm10 = vcmp.eq.s32.totalorder %v4919_v22, 1 }
 0x36c   : > { %v2741_v15 = vadd.f32 %v2740_v7, %v2670_v58  ;;  %v2784_v4 = vmul.f32 %v2670_v58, %v2670_v58  ;;  %v2207_v35 = vadd.f32 %v2155_v3, %v1993_v5 }
 0x36e   : > { %v2819_v56 = vadd.f32 %v2818_v53, %v2784_v4  ;;  %v2369_v17 = vpop.f32.mrf.mxu3 }
 0x36f   : > { %v2158_v10 = vpop.f32.mrf.mxu2  ;;  %v2421_v54 = vadd.f32 %v2369_v17, %v2207_v35  ;;  %v4927_v35 = vld [vmem:[#allocation31_spill] sm:$0xff] }
 0x370   : > { %vm4928_vm13 = vcmp.eq.s32.totalorder %v4927_v35, 1 }
 0x371   : > { %v2635_v44 = vadd.f32 %v2583_v46, %v2421_v54  ;;  %v1944_v2 = vpop.f32.mrf.mxu1 }
 0x372   : > { %v1994_v14 = vadd.f32 %v1944_v2, %v4545_v36  ;;  %v2586_v33 = vpop.f32.mrf.mxu0  ;;  %v4921_v36 = vld [vmem:[#allocation22_spill] sm:$0xff] }
 0x373   : > { %v2671_v32 = vsel %vm4920_vm10, %v2635_v44, 0.0  ;;  %2707 = vst [vmem:[%s4541_s24 + $0xe0] sm:$0xff] %v2635_v44  ;;  %vm4922_vm3 = vcmp.eq.s32.totalorder %v4921_v36, 1 }
 0x374   : > { %v2742_v51 = vadd.f32 %v2741_v15, %v2671_v32  ;;  %v2785_v9 = vmul.f32 %v2671_v32, %v2671_v32  ;;  %v2208_v37 = vadd.f32 %v2158_v10, %v1994_v14 }
 0x376   : > { %v2820_v45 = vadd.f32 %v2819_v56, %v2785_v9  ;;  %v2372_v62 = vpop.f32.mrf.mxu3 }
 0x377   : > { %v2161_v21 = vpop.f32.mrf.mxu2  ;;  %v2422_v40 = vadd.f32 %v2372_v62, %v2208_v37 }
 0x379   : > { %v2636_v13 = vadd.f32 %v2586_v33, %v2422_v40  ;;  %v1947_v39 = vpop.f32.mrf.mxu1 }
 0x37a   : > { %v1995_v47 = vadd.f32 %v1947_v39, %v4556_v61  ;;  %v2589_v27 = vpop.f32.mrf.mxu0  ;;  %v4923_v61 = vld [vmem:[#allocation25_spill] sm:$0xff] }
 0x37b   : > { %v2672_v52 = vsel %vm4922_vm3, %v2636_v13, 0.0  ;;  %2708 = vst [vmem:[%s4541_s24 + $0xe8] sm:$0xff] %v2636_v13  ;;  %vm4924_vm9 = vcmp.eq.s32.totalorder %v4923_v61, 1 }
 0x37c   : > { %v2743_v6 = vadd.f32 %v2742_v51, %v2672_v52  ;;  %v2786_v0 = vmul.f32 %v2672_v52, %v2672_v52  ;;  %v2209_v60 = vadd.f32 %v2161_v21, %v1995_v47 }
 0x37e   : > { %v2821_v43 = vadd.f32 %v2820_v45, %v2786_v0  ;;  %v2375_v42 = vpop.f32.mrf.mxu3 }
 0x37f   : > { %v2164_v57 = vpop.f32.mrf.mxu2  ;;  %v2423_v16 = vadd.f32 %v2375_v42, %v2209_v60 }
 0x381   : > { %v2637_v48 = vadd.f32 %v2589_v27, %v2423_v16  ;;  %v1950_v25 = vpop.f32.mrf.mxu1 }
 0x382   : > { %v1996_v18 = vadd.f32 %v1950_v25, %v4567_v59  ;;  %v2592_v26 = vpop.f32.mrf.mxu0  ;;  %v4925_v59 = vld [vmem:[#allocation21_spill] sm:$0xff] }
 0x383   : > { %v2673_v23 = vsel %vm4924_vm9, %v2637_v48, 0.0  ;;  %2709 = vst [vmem:[%s4541_s24 + $0xf0] sm:$0xff] %v2637_v48  ;;  %vm4926_vm6 = vcmp.eq.s32.totalorder %v4925_v59, 1 }
 0x384   : > { %v2744_v30 = vadd.f32 %v2743_v6, %v2673_v23  ;;  %v2787_v20 = vmul.f32 %v2673_v23, %v2673_v23  ;;  %v2210_v31 = vadd.f32 %v2164_v57, %v1996_v18  ;;  %v4931_v18 = vld [vmem:[#allocation28_spill] sm:$0xff] }
 0x386   : > { %v2822_v49 = vadd.f32 %v2821_v43, %v2787_v20  ;;  %v2378_v28 = vpop.f32.mrf.mxu3 }
 0x387   : > { %v2167_v8 = vpop.f32.mrf.mxu2  ;;  %v2424_v19 = vadd.f32 %v2378_v28, %v2210_v31 }
 0x389   : > { %v2638_v7 = vadd.f32 %v2592_v26, %v2424_v19  ;;  %v1953_v24 = vpop.f32.mrf.mxu1 }
 0x38a   : > { %v1997_v29 = vadd.f32 %v1953_v24, %v4579_v63  ;;  %v2595_v53 = vpop.f32.mrf.mxu0 }
 0x38b   : > { %v2674_v55 = vsel %vm4926_vm6, %v2638_v7, 0.0  ;;  %2710 = vst [vmem:[%s4541_s24 + $0xf8] sm:$0xff] %v2638_v7 }
 0x38c   : > { %v2745_v3 = vadd.f32 %v2744_v30, %v2674_v55  ;;  %v2788_v11 = vmul.f32 %v2674_v55, %v2674_v55  ;;  %v2211_v38 = vadd.f32 %v2167_v8, %v1997_v29 }
 0x38e   : > { %v2823_v1 = vadd.f32 %v2822_v49, %v2788_v11  ;;  %v2381_v5 = vpop.f32.mrf.mxu3 }
 0x38f   : > { %v2425_v46 = vadd.f32 %v2381_v5, %v2211_v38  ;;  %v2170_v34 = vpop.f32.mrf.mxu2 }
 0x391   : > { %v2639_v58 = vadd.f32 %v2595_v53, %v2425_v46  ;;  %v1956_v15 = vpop.f32.mrf.mxu1 }
 0x392   : > { %v1998_v4 = vadd.f32 %v1956_v15, %v4591_v12  ;;  %v2598_v10 = vpop.f32.mrf.mxu0 }
 0x393   : > { %v2675_v63 = vsel %vm4928_vm13, %v2639_v58, 0.0  ;;  %2711 = vst [vmem:[%s4541_s24 + $0x100] sm:$0xff] %v2639_v58 }
 0x394   : > { %v2746_v56 = vadd.f32 %v2745_v3, %v2675_v63  ;;  %v2789_v17 = vmul.f32 %v2675_v63, %v2675_v63  ;;  %v2212_v54 = vadd.f32 %v2170_v34, %v1998_v4 }
 0x396   : > { %v2824_v44 = vadd.f32 %v2823_v1, %v2789_v17  ;;  %v2384_v2 = vpop.f32.mrf.mxu3 }
 0x397   : > { %v2426_v14 = vadd.f32 %v2384_v2, %v2212_v54  ;;  %v2173_v33 = vpop.f32.mrf.mxu2 }
 0x399   : > { %v2640_v22 = vadd.f32 %v2598_v10, %v2426_v14  ;;  %v1959_v32 = vpop.f32.mrf.mxu1 }
 0x39a   : > { %v1999_v51 = vadd.f32 %v1959_v32, %v4603_v41  ;;  %v2601_v45 = vpop.f32.mrf.mxu0 }
 0x39b   : > { %v2676_v12 = vsel %vm715_vm15, %v2640_v22, 0.0  ;;  %2712 = vst [vmem:[%s4541_s24 + $0x108] sm:$0xff] %v2640_v22  ;;  %vm4932_vm15 = vcmp.eq.s32.totalorder %v4931_v18, 1 }
 0x39c   : > { %v2790_v37 = vmul.f32 %v2676_v12, %v2676_v12  ;;  %v2747_v62 = vadd.f32 %v2746_v56, %v2676_v12  ;;  %v2213_v21 = vadd.f32 %v2173_v33, %v1999_v51 }
 0x39e   : > { %v2387_v40 = vpop.f32.mrf.mxu3  ;;  %v2825_v13 = vadd.f32 %v2824_v44, %v2790_v37 }
 0x39f   : > { %v2427_v39 = vadd.f32 %v2387_v40, %v2213_v21  ;;  %v2176_v52 = vpop.f32.mrf.mxu2 }
 0x3a1   : > { %v1962_v47 = vpop.f32.mrf.mxu1  ;;  %v2641_v27 = vadd.f32 %v2601_v45, %v2427_v39 }
 0x3a2   : > { %v2000_v36 = vadd.f32 %v1962_v47, %v4615_v50  ;;  %v2604_v16 = vpop.f32.mrf.mxu0 }
 0x3a3   : > { %v2677_v41 = vsel %vm716_vm7, %v2641_v27, 0.0  ;;  %2713 = vst [vmem:[%s4541_s24 + $0x110] sm:$0xff] %v2641_v27 }
 0x3a4   : > { %v2748_v0 = vadd.f32 %v2747_v62, %v2677_v41  ;;  %v2791_v60 = vmul.f32 %v2677_v41, %v2677_v41  ;;  %v2214_v43 = vadd.f32 %v2176_v52, %v2000_v36 }
 0x3a6   : > { %v2826_v42 = vadd.f32 %v2825_v13, %v2791_v60  ;;  %v2390_v57 = vpop.f32.mrf.mxu3 }
 0x3a7   : > { %v2428_v48 = vadd.f32 %v2390_v57, %v2214_v43 }
 0x3a9   : > { %v2642_v25 = vadd.f32 %v2604_v16, %v2428_v48 }
 0x3ab   : > { %v2678_v26 = vsel %vm4932_vm15, %v2642_v25, 0.0  ;;  %2714 = vst [vmem:[%s4541_s24 + $0x118] sm:$0xff] %v2642_v25 }
 0x3ac   : > { %v2749_v61 = vadd.f32 %v2748_v0, %v2678_v26  ;;  %v2792_v50 = vmul.f32 %v2678_v26, %v2678_v26 }
 0x3ae   : > { %v2750_v23 = vrot.slane %v2749_v61, 4  ;;  %v2827_v30 = vadd.f32 %v2826_v42, %v2792_v50 }
 0x3b0   : > { %v2751_v20 = vadd.f32 %v2750_v23, %v2749_v61  ;;  %v2828_v31 = vrot.slane %v2827_v30, 4 }
 0x3b2   : > { %v2752_v49 = vrot.slane %v2751_v20, 2  ;;  %v2829_v28 = vadd.f32 %v2828_v31, %v2827_v30 }
 0x3b4   : > { %v2753_v8 = vadd.f32 %v2752_v49, %v2751_v20  ;;  %v2830_v19 = vrot.slane %v2829_v28, 2 }
 0x3b6   : > { %v2754_v7 = vrot.slane %v2753_v8, 1  ;;  %v2831_v24 = vadd.f32 %v2830_v19, %v2829_v28 }
 0x3b8   : > { %v2755_v29 = vadd.f32 %v2754_v7, %v2753_v8  ;;  %v2832_v53 = vrot.slane %v2831_v24, 1 }
 0x3ba   : > { %2756 = vst [vmem:[%s235_s28] sm:$0x1] %v2755_v29  ;;  %v2833_v59 = vadd.f32 %v2832_v53, %v2831_v24 }
 0x3bc   : > { %2834 = vst [vmem:[%s235_s28 + $0x1] sm:$0x1] %v2833_v59 }
 0x3bd PF: > { %s16_s18 = sadd.s32 1, %s3142_s18  }
 0x3be   : > { %p13_p4 = scmp.ge.s32.totalorder %s16_s18, 4  }
 0x3c0   :  { %15 = sbr.rel (!%p13_p4) target bundleno = 1 (0x1), region = 86 }

</bundles_post_ra>
